<compile_context>
chip_gen: v7x
topology: tpu7x:2x2x1
jax: 0.10.0
libtpu: 0.0.40
codegen_flags: <defaults>
</compile_context>

<pallas_src>
import functools

import jax
import jax.numpy as jnp
from jax.experimental import pallas as pl
from jax.experimental.pallas import tpu as pltpu


# ----------------------------------------------------------------------------
# In-kernel 3x3 contraction helper
# ----------------------------------------------------------------------------
def _conv3x3_contract(get_tap, w_ref, m, cin, cout):
    """3x3 conv as MXU contractions with f32 accumulation.

    get_tap(t) -> (m, cin) bf16 tap t (t = 3*dy + dx), w_ref: (9, cin, cout) bf16
    (BN scale pre-folded).  If cin is lane-aligned (multiple of 128), concatenate the
    taps and hit the MXU once with K = 9*cin; otherwise use 9 accumulating dots to
    avoid XLU lane permutes from a misaligned concatenation.
    """
    if cin % 128 == 0:
        patch = jnp.concatenate([get_tap(t) for t in range(9)], axis=-1)
        wmat = w_ref[...].reshape(9 * cin, cout)
        return jnp.dot(patch, wmat, preferred_element_type=jnp.float32)
    acc = jnp.zeros((m, cout), jnp.float32)
    for t in range(9):
        acc = acc + jnp.dot(get_tap(t), w_ref[t],
                            preferred_element_type=jnp.float32)
    return acc


# ----------------------------------------------------------------------------
# Fully fused ResidualBlock kernel (one image per grid step)
# ----------------------------------------------------------------------------
def _residual_block_kernel(*refs, hout, wout, cin, cout, fold, project):
    """Block shapes (one batch element per grid step):
      x_ref:   unfolded: (1, H+2, W+2, cin) bf16        padded conv input
               folded:   (1, (H+2)/2, 2, (W+2)/2, 2*cin) bf16  (stride-2 s2d view)
      w1_ref:  (9, cin, cout)  bf16   conv1 taps, BN1 scale folded in
      s1_ref:  (1, cout)       f32    BN1 shift
      w2_ref:  (9, cout, cout) bf16   conv2 taps, BN2 scale folded in
      s2_ref:  (1, cout)       f32    BN2 shift
      [wsc_ref: (cin, cout) bf16, ssc_ref: (1, cout) f32]  1x1 projection (if any)
      o_ref:   (1, hout, wout, cout)
      mid_ref: (hout+2, wout+2, cout) bf16 VMEM scratch   padded conv1 output
    """
    x_ref, w1_ref, s1_ref, w2_ref, s2_ref = refs[:5]
    idx = 5
    if project:
        wsc_ref, ssc_ref = refs[idx:idx + 2]
        idx += 2
    o_ref = refs[idx]
    mid_ref = refs[idx + 1]

    m = hout * wout

    # ---- conv1 (BN1 scale folded into weights) + shift + ReLU -> VMEM scratch ----
    def tap1(t):
        dy, dx = divmod(t, 3)
        if not fold:                       # stride 1: padded input, static offsets
            p = x_ref[0, pl.ds(dy, hout), pl.ds(dx, wout), :]
        else:                              # stride 2: space-to-depth folded input
            p = x_ref[0, pl.ds(dy // 2, hout), dy % 2,
                      pl.ds(dx // 2, wout), pl.ds((dx % 2) * cin, cin)]
        return p.reshape(m, cin)

    y1 = _conv3x3_contract(tap1, w1_ref, m, cin, cout)
    y1 = jnp.maximum(y1 + s1_ref[...], 0.0)

    # Padded conv1 output stays in VMEM: no HBM write/read and no XLA pad op.
    mid_ref[...] = jnp.zeros_like(mid_ref)                 # zero halo border
    mid_ref[pl.ds(1, hout), pl.ds(1, wout), :] = (
        y1.reshape(hout, wout, cout).astype(mid_ref.dtype))

    # ---- conv2 (BN2 scale folded into weights) + shift ----
    def tap2(t):
        dy, dx = divmod(t, 3)
        return mid_ref[pl.ds(dy, hout), pl.ds(dx, wout), :].reshape(m, cout)

    y2 = _conv3x3_contract(tap2, w2_ref, m, cout, cout) + s2_ref[...]

    # ---- shortcut: reuses x_ref (no extra whole-image operand) ----
    if not fold:                           # stride 1: interior of the padded input
        pix = x_ref[0, pl.ds(1, hout), pl.ds(1, wout), :]
    else:                                  # stride 2: odd/odd pixels of the fold
        pix = x_ref[0, pl.ds(0, hout), 1, pl.ds(0, wout), pl.ds(cin, cin)]
    pix = pix.reshape(m, cin)
    if project:                            # 1x1 conv + folded BN_sc
        sc = (jnp.dot(pix, wsc_ref[...], preferred_element_type=jnp.float32)
              + ssc_ref[...])
    else:                                  # identity (stride 1, cin == cout)
        sc = pix.astype(jnp.float32)

    y = jnp.maximum(y2 + sc, 0.0)
    o_ref[0] = y.reshape(hout, wout, cout).astype(o_ref.dtype)


# ----------------------------------------------------------------------------
# Wrapper
# ----------------------------------------------------------------------------
def _fold_bn(bn, eps=1e-5):
    scale = bn["gamma"] / jnp.sqrt(bn["var"] + eps)
    shift = bn["beta"] - bn["mean"] * scale
    return scale, shift


def _fold_s2d(x_pad):
    """Free space-to-depth view of a spatially padded NHWC array (for stride-2)."""
    n, hp, wp, c = x_pad.shape
    return x_pad.reshape(n, hp // 2, 2, wp // 2, 2 * c)


def _vmem_limit_bytes():
    """Generation-aware VMEM budget: ~100 MiB on v5e/v6e, ~56 MiB on v7x."""
    try:
        cap = pltpu.get_tpu_info().vmem_capacity_bytes
    except Exception:
        cap = 64 * 1024 * 1024
    return int(min(cap - 8 * 1024 * 1024, 100 * 1024 * 1024))


def residual_block_forward(x_nchw, params, stride=1):
    """Matches ResidualBlock.forward (eval-mode BN).  Input/output are NCHW f32."""
    if stride not in (1, 2):
        raise NotImplementedError("stride must be 1 or 2")  # TODO(synk): general stride

    # Single NCHW<->NHWC conversion at the block boundary (channels on the 128-lane
    # axis); the bf16 cast + spatial zero-pad fuse with the transpose into one XLA
    # pass over x.  A full network would keep activations NHWC/bf16 throughout.
    x = jnp.transpose(x_nchw, (0, 2, 3, 1))
    N, H, W, Cin = x.shape
    Cout = params["w1"].shape[-1]
    assert H % stride == 0 and W % stride == 0
    Hout, Wout = H // stride, W // stride
    fold = stride == 2
    project = stride != 1 or Cin != Cout
    if not project:
        assert Cin == Cout

    xp = jnp.pad(x, ((0, 0), (1, 1), (1, 1), (0, 0))).astype(jnp.bfloat16)

    # Fold BN scales into the conv weights (f32 fold, then bf16 MXU operands);
    # only the shift add remains in the kernel.
    s1, b1 = _fold_bn(params["bn1"])
    s2, b2 = _fold_bn(params["bn2"])
    w1f = (params["w1"] * s1).reshape(9, Cin, Cout).astype(jnp.bfloat16)
    w2f = (params["w2"] * s2).reshape(9, Cout, Cout).astype(jnp.bfloat16)

    # TODO(synk): for large feature maps, replace the whole-image input block with a
    # row-tile + 2-row halo (or manual halo DMA via pl.ANY) so VMEM does not scale
    # with H*W; at that point single-buffer the grid-invariant weight operands too.
    if fold:
        x_in = _fold_s2d(xp)
        x_spec = pl.BlockSpec((1,) + x_in.shape[1:], lambda n: (n, 0, 0, 0, 0))
    else:
        x_in = xp
        x_spec = pl.BlockSpec((1,) + x_in.shape[1:], lambda n: (n, 0, 0, 0))

    in_specs = [
        x_spec,
        pl.BlockSpec((9, Cin, Cout), lambda n: (0, 0, 0)),
        pl.BlockSpec((1, Cout), lambda n: (0, 0)),
        pl.BlockSpec((9, Cout, Cout), lambda n: (0, 0, 0)),
        pl.BlockSpec((1, Cout), lambda n: (0, 0)),
    ]
    args = [
        x_in,
        w1f,
        b1.reshape(1, Cout).astype(jnp.float32),
        w2f,
        b2.reshape(1, Cout).astype(jnp.float32),
    ]
    if project:
        ssc, bsc = _fold_bn(params["bn_sc"])
        wscf = (params["w_sc"] * ssc).astype(jnp.bfloat16)      # (Cin, Cout)
        in_specs += [
            pl.BlockSpec((Cin, Cout), lambda n: (0, 0)),
            pl.BlockSpec((1, Cout), lambda n: (0, 0)),
        ]
        args += [wscf, bsc.reshape(1, Cout).astype(jnp.float32)]

    kern = functools.partial(
        _residual_block_kernel, hout=Hout, wout=Wout, cin=Cin, cout=Cout,
        fold=fold, project=project)

    # TODO(synk): emit bf16 block output when the consuming layer accepts it
    # (halves the writeback HBM traffic); f32 kept here to match the module API.
    y = pl.pallas_call(
        kern,
        out_shape=jax.ShapeDtypeStruct((N, Hout, Wout, Cout), jnp.float32),
        grid_spec=pltpu.PrefetchScalarGridSpec(
            num_scalar_prefetch=0,
            grid=(N,),
            in_specs=in_specs,
            out_specs=pl.BlockSpec((1, Hout, Wout, Cout), lambda n: (n, 0, 0, 0)),
            scratch_shapes=[pltpu.VMEM((Hout + 2, Wout + 2, Cout), jnp.bfloat16)],
        ),
        compiler_params=pltpu.CompilerParams(
            dimension_semantics=("parallel",),
            vmem_limit_bytes=_vmem_limit_bytes(),
        ),
    )(*args)
    return jnp.transpose(y, (0, 3, 1, 2))


# ----------------------------------------------------------------------------
# Pure-JAX reference (for correctness check)
# ----------------------------------------------------------------------------
def _ref_forward(x_nchw, params, stride=1, eps=1e-5):
    x = jnp.transpose(x_nchw, (0, 2, 3, 1))

    def conv(x, w, s, pad):
        return jax.lax.conv_general_dilated(
            x, w, (s, s), ((pad, pad), (pad, pad)),
            dimension_numbers=("NHWC", "HWIO", "NHWC"),
            precision=jax.lax.Precision.HIGHEST)

    def bn(x, p):
        return (x - p["mean"]) / jnp.sqrt(p["var"] + eps) * p["gamma"] + p["beta"]

    out = jax.nn.relu(bn(conv(x, params["w1"], stride, 1), params["bn1"]))
    out = bn(conv(out, params["w2"], 1, 1), params["bn2"])
    in_c, out_c = x.shape[-1], params["w1"].shape[-1]
    if stride != 1 or in_c != out_c:
        sc = bn(conv(x, params["w_sc"].reshape(1, 1, in_c, out_c), stride, 0),
                params["bn_sc"])
    else:
        sc = x
    out = jax.nn.relu(out + sc)
    return jnp.transpose(out, (0, 3, 1, 2))


# ----------------------------------------------------------------------------
# Main
# ----------------------------------------------------------------------------
if __name__ == "__main__":
    key = jax.random.PRNGKey(0)

    def bn_params(k, c):
        k1, k2, k3, k4 = jax.random.split(k, 4)
        return dict(
            gamma=1.0 + 0.1 * jax.random.normal(k1, (c,), jnp.float32),
            beta=0.1 * jax.random.normal(k2, (c,), jnp.float32),
            mean=0.1 * jax.random.normal(k3, (c,), jnp.float32),
            var=1.0 + 0.1 * jnp.abs(jax.random.normal(k4, (c,), jnp.float32)),
        )

    def make_params(k, cin, cout):
        ks = jax.random.split(k, 6)
        return dict(
            w1=0.1 * jax.random.normal(ks[0], (3, 3, cin, cout), jnp.float32),
            w2=0.1 * jax.random.normal(ks[1], (3, 3, cout, cout), jnp.float32),
            w_sc=0.1 * jax.random.normal(ks[2], (cin, cout), jnp.float32),
            bn1=bn_params(ks[3], cout),
            bn2=bn_params(ks[4], cout),
            bn_sc=bn_params(ks[5], cout),
        )

    N, H, W = 2, 16, 16
    cases = [
        (4, 8, 1),   # projection shortcut (Cin != Cout), stride 1
        (4, 8, 2),   # projection shortcut, stride 2 (in-kernel space-to-depth)
        (8, 8, 1),   # identity shortcut
    ]
    kp, kx = jax.random.split(key)
    for i, (cin, cout, stride) in enumerate(cases):
        params = make_params(jax.random.fold_in(kp, i), cin, cout)
        x = jax.random.normal(jax.random.fold_in(kx, i), (N, cin, H, W), jnp.float32)

        y = jax.block_until_ready(residual_block_forward(x, params, stride=stride))
        y_ref = _ref_forward(x, params, stride=stride)

        assert y.shape == (N, cout, H // stride, W // stride), y.shape
        max_err = float(jnp.max(jnp.abs(y - y_ref)))
        # bf16 MXU operands (input, BN-folded weights) with f32 accumulation.
        assert max_err < 5e-2, (
            f"case {i} (cin={cin}, cout={cout}, stride={stride}): {max_err}")

    print("KERNEL_OK")
</pallas_src>

<mosaic_0001>
module attributes {stable_mosaic.version = 11 : i64} {
  func.func @_residual_block_kernel(%arg0: i32, %arg1: memref<1x18x18x4xbf16, #tpu.memory_space<vmem>>, %arg2: memref<9x4x8xbf16, #tpu.memory_space<vmem>>, %arg3: memref<1x8xf32, #tpu.memory_space<vmem>>, %arg4: memref<9x8x8xbf16, #tpu.memory_space<vmem>>, %arg5: memref<1x8xf32, #tpu.memory_space<vmem>>, %arg6: memref<4x8xbf16, #tpu.memory_space<vmem>>, %arg7: memref<1x8xf32, #tpu.memory_space<vmem>>, %arg8: memref<1x16x16x8xf32, #tpu.memory_space<vmem>>, %arg9: memref<18x18x8xbf16, #tpu.memory_space<vmem>>) attributes {dimension_semantics = [#tpu.dimension_semantics<parallel>], iteration_bounds = array<i64: 2>, scalar_prefetch = 0 : i64, scratch_operands = 1 : i64, tpu.core_type = #tpu.core_type<tc>, window_params = [{transform_indices = @transform_0, window_bounds = array<i64: 1, 18, 18, 4>}, {pipeline_mode = #tpu.pipeline_mode<synchronous>, transform_indices = @transform_1, window_bounds = array<i64: 9, 4, 8>}, {pipeline_mode = #tpu.pipeline_mode<synchronous>, transform_indices = @transform_2, window_bounds = array<i64: 1, 8>}, {pipeline_mode = #tpu.pipeline_mode<synchronous>, transform_indices = @transform_3, window_bounds = array<i64: 9, 8, 8>}, {pipeline_mode = #tpu.pipeline_mode<synchronous>, transform_indices = @transform_4, window_bounds = array<i64: 1, 8>}, {pipeline_mode = #tpu.pipeline_mode<synchronous>, transform_indices = @transform_5, window_bounds = array<i64: 4, 8>}, {pipeline_mode = #tpu.pipeline_mode<synchronous>, transform_indices = @transform_6, window_bounds = array<i64: 1, 8>}, {transform_indices = @transform_7, window_bounds = array<i64: 1, 16, 16, 8>}]} {
    %cst = arith.constant 0.000000e+00 : f32
    %0 = vector.broadcast %cst : f32 to vector<256x8xf32>
    %c0 = arith.constant 0 : index
    %c0_0 = arith.constant 0 : index
    %c0_1 = arith.constant 0 : index
    %c0_2 = arith.constant 0 : index
    %1 = vector.load %arg1[%c0, %c0_0, %c0_1, %c0_2] : memref<1x18x18x4xbf16, #tpu.memory_space<vmem>>, vector<1x16x16x4xbf16>
    %2 = vector.shape_cast %1 : vector<1x16x16x4xbf16> to vector<16x16x4xbf16>
    %3 = vector.shape_cast %2 : vector<16x16x4xbf16> to vector<256x4xbf16>
    %c0_3 = arith.constant 0 : index
    %c0_4 = arith.constant 0 : index
    %c0_5 = arith.constant 0 : index
    %4 = vector.load %arg2[%c0_3, %c0_4, %c0_5] : memref<9x4x8xbf16, #tpu.memory_space<vmem>>, vector<1x4x8xbf16>
    %5 = vector.shape_cast %4 : vector<1x4x8xbf16> to vector<4x8xbf16>
    %cst_6 = arith.constant dense<0.000000e+00> : vector<256x8xf32>
    %6 = tpu.matmul %3, %5, %cst_6 {dimension_numbers = #tpu.dot_dimension_numbers<[1], [0], [0], [1], [0, 0, 1, 1], [], []>} : vector<256x4xbf16>, vector<4x8xbf16>, vector<256x8xf32> -> vector<256x8xf32>
    %7 = arith.addf %0, %6 : vector<256x8xf32>
    %c0_7 = arith.constant 0 : index
    %c0_8 = arith.constant 0 : index
    %c1 = arith.constant 1 : index
    %c0_9 = arith.constant 0 : index
    %8 = vector.load %arg1[%c0_7, %c0_8, %c1, %c0_9] : memref<1x18x18x4xbf16, #tpu.memory_space<vmem>>, vector<1x16x16x4xbf16>
    %9 = vector.shape_cast %8 : vector<1x16x16x4xbf16> to vector<16x16x4xbf16>
    %10 = vector.shape_cast %9 : vector<16x16x4xbf16> to vector<256x4xbf16>
    %c1_10 = arith.constant 1 : index
    %c0_11 = arith.constant 0 : index
    %c0_12 = arith.constant 0 : index
    %11 = vector.load %arg2[%c1_10, %c0_11, %c0_12] : memref<9x4x8xbf16, #tpu.memory_space<vmem>>, vector<1x4x8xbf16>
    %12 = vector.shape_cast %11 : vector<1x4x8xbf16> to vector<4x8xbf16>
    %cst_13 = arith.constant dense<0.000000e+00> : vector<256x8xf32>
    %13 = tpu.matmul %10, %12, %cst_13 {dimension_numbers = #tpu.dot_dimension_numbers<[1], [0], [0], [1], [0, 0, 1, 1], [], []>} : vector<256x4xbf16>, vector<4x8xbf16>, vector<256x8xf32> -> vector<256x8xf32>
    %14 = arith.addf %7, %13 : vector<256x8xf32>
    %c0_14 = arith.constant 0 : index
    %c0_15 = arith.constant 0 : index
    %c2 = arith.constant 2 : index
    %c0_16 = arith.constant 0 : index
    %15 = vector.load %arg1[%c0_14, %c0_15, %c2, %c0_16] : memref<1x18x18x4xbf16, #tpu.memory_space<vmem>>, vector<1x16x16x4xbf16>
    %16 = vector.shape_cast %15 : vector<1x16x16x4xbf16> to vector<16x16x4xbf16>
    %17 = vector.shape_cast %16 : vector<16x16x4xbf16> to vector<256x4xbf16>
    %c2_17 = arith.constant 2 : index
    %c0_18 = arith.constant 0 : index
    %c0_19 = arith.constant 0 : index
    %18 = vector.load %arg2[%c2_17, %c0_18, %c0_19] : memref<9x4x8xbf16, #tpu.memory_space<vmem>>, vector<1x4x8xbf16>
    %19 = vector.shape_cast %18 : vector<1x4x8xbf16> to vector<4x8xbf16>
    %cst_20 = arith.constant dense<0.000000e+00> : vector<256x8xf32>
    %20 = tpu.matmul %17, %19, %cst_20 {dimension_numbers = #tpu.dot_dimension_numbers<[1], [0], [0], [1], [0, 0, 1, 1], [], []>} : vector<256x4xbf16>, vector<4x8xbf16>, vector<256x8xf32> -> vector<256x8xf32>
    %21 = arith.addf %14, %20 : vector<256x8xf32>
    %c0_21 = arith.constant 0 : index
    %c1_22 = arith.constant 1 : index
    %c0_23 = arith.constant 0 : index
    %c0_24 = arith.constant 0 : index
    %22 = vector.load %arg1[%c0_21, %c1_22, %c0_23, %c0_24] : memref<1x18x18x4xbf16, #tpu.memory_space<vmem>>, vector<1x16x16x4xbf16>
    %23 = vector.shape_cast %22 : vector<1x16x16x4xbf16> to vector<16x16x4xbf16>
    %24 = vector.shape_cast %23 : vector<16x16x4xbf16> to vector<256x4xbf16>
    %c3 = arith.constant 3 : index
    %c0_25 = arith.constant 0 : index
    %c0_26 = arith.constant 0 : index
    %25 = vector.load %arg2[%c3, %c0_25, %c0_26] : memref<9x4x8xbf16, #tpu.memory_space<vmem>>, vector<1x4x8xbf16>
    %26 = vector.shape_cast %25 : vector<1x4x8xbf16> to vector<4x8xbf16>
    %cst_27 = arith.constant dense<0.000000e+00> : vector<256x8xf32>
    %27 = tpu.matmul %24, %26, %cst_27 {dimension_numbers = #tpu.dot_dimension_numbers<[1], [0], [0], [1], [0, 0, 1, 1], [], []>} : vector<256x4xbf16>, vector<4x8xbf16>, vector<256x8xf32> -> vector<256x8xf32>
    %28 = arith.addf %21, %27 : vector<256x8xf32>
    %c0_28 = arith.constant 0 : index
    %c1_29 = arith.constant 1 : index
    %c1_30 = arith.constant 1 : index
    %c0_31 = arith.constant 0 : index
    %29 = vector.load %arg1[%c0_28, %c1_29, %c1_30, %c0_31] : memref<1x18x18x4xbf16, #tpu.memory_space<vmem>>, vector<1x16x16x4xbf16>
    %30 = vector.shape_cast %29 : vector<1x16x16x4xbf16> to vector<16x16x4xbf16>
    %31 = vector.shape_cast %30 : vector<16x16x4xbf16> to vector<256x4xbf16>
    %c4 = arith.constant 4 : index
    %c0_32 = arith.constant 0 : index
    %c0_33 = arith.constant 0 : index
    %32 = vector.load %arg2[%c4, %c0_32, %c0_33] : memref<9x4x8xbf16, #tpu.memory_space<vmem>>, vector<1x4x8xbf16>
    %33 = vector.shape_cast %32 : vector<1x4x8xbf16> to vector<4x8xbf16>
    %cst_34 = arith.constant dense<0.000000e+00> : vector<256x8xf32>
    %34 = tpu.matmul %31, %33, %cst_34 {dimension_numbers = #tpu.dot_dimension_numbers<[1], [0], [0], [1], [0, 0, 1, 1], [], []>} : vector<256x4xbf16>, vector<4x8xbf16>, vector<256x8xf32> -> vector<256x8xf32>
    %35 = arith.addf %28, %34 : vector<256x8xf32>
    %c0_35 = arith.constant 0 : index
    %c1_36 = arith.constant 1 : index
    %c2_37 = arith.constant 2 : index
    %c0_38 = arith.constant 0 : index
    %36 = vector.load %arg1[%c0_35, %c1_36, %c2_37, %c0_38] : memref<1x18x18x4xbf16, #tpu.memory_space<vmem>>, vector<1x16x16x4xbf16>
    %37 = vector.shape_cast %36 : vector<1x16x16x4xbf16> to vector<16x16x4xbf16>
    %38 = vector.shape_cast %37 : vector<16x16x4xbf16> to vector<256x4xbf16>
    %c5 = arith.constant 5 : index
    %c0_39 = arith.constant 0 : index
    %c0_40 = arith.constant 0 : index
    %39 = vector.load %arg2[%c5, %c0_39, %c0_40] : memref<9x4x8xbf16, #tpu.memory_space<vmem>>, vector<1x4x8xbf16>
    %40 = vector.shape_cast %39 : vector<1x4x8xbf16> to vector<4x8xbf16>
    %cst_41 = arith.constant dense<0.000000e+00> : vector<256x8xf32>
    %41 = tpu.matmul %38, %40, %cst_41 {dimension_numbers = #tpu.dot_dimension_numbers<[1], [0], [0], [1], [0, 0, 1, 1], [], []>} : vector<256x4xbf16>, vector<4x8xbf16>, vector<256x8xf32> -> vector<256x8xf32>
    %42 = arith.addf %35, %41 : vector<256x8xf32>
    %c0_42 = arith.constant 0 : index
    %c2_43 = arith.constant 2 : index
    %c0_44 = arith.constant 0 : index
    %c0_45 = arith.constant 0 : index
    %43 = vector.load %arg1[%c0_42, %c2_43, %c0_44, %c0_45] : memref<1x18x18x4xbf16, #tpu.memory_space<vmem>>, vector<1x16x16x4xbf16>
    %44 = vector.shape_cast %43 : vector<1x16x16x4xbf16> to vector<16x16x4xbf16>
    %45 = vector.shape_cast %44 : vector<16x16x4xbf16> to vector<256x4xbf16>
    %c6 = arith.constant 6 : index
    %c0_46 = arith.constant 0 : index
    %c0_47 = arith.constant 0 : index
    %46 = vector.load %arg2[%c6, %c0_46, %c0_47] : memref<9x4x8xbf16, #tpu.memory_space<vmem>>, vector<1x4x8xbf16>
    %47 = vector.shape_cast %46 : vector<1x4x8xbf16> to vector<4x8xbf16>
    %cst_48 = arith.constant dense<0.000000e+00> : vector<256x8xf32>
    %48 = tpu.matmul %45, %47, %cst_48 {dimension_numbers = #tpu.dot_dimension_numbers<[1], [0], [0], [1], [0, 0, 1, 1], [], []>} : vector<256x4xbf16>, vector<4x8xbf16>, vector<256x8xf32> -> vector<256x8xf32>
    %49 = arith.addf %42, %48 : vector<256x8xf32>
    %c0_49 = arith.constant 0 : index
    %c2_50 = arith.constant 2 : index
    %c1_51 = arith.constant 1 : index
    %c0_52 = arith.constant 0 : index
    %50 = vector.load %arg1[%c0_49, %c2_50, %c1_51, %c0_52] : memref<1x18x18x4xbf16, #tpu.memory_space<vmem>>, vector<1x16x16x4xbf16>
    %51 = vector.shape_cast %50 : vector<1x16x16x4xbf16> to vector<16x16x4xbf16>
    %52 = vector.shape_cast %51 : vector<16x16x4xbf16> to vector<256x4xbf16>
    %c7 = arith.constant 7 : index
    %c0_53 = arith.constant 0 : index
    %c0_54 = arith.constant 0 : index
    %53 = vector.load %arg2[%c7, %c0_53, %c0_54] : memref<9x4x8xbf16, #tpu.memory_space<vmem>>, vector<1x4x8xbf16>
    %54 = vector.shape_cast %53 : vector<1x4x8xbf16> to vector<4x8xbf16>
    %cst_55 = arith.constant dense<0.000000e+00> : vector<256x8xf32>
    %55 = tpu.matmul %52, %54, %cst_55 {dimension_numbers = #tpu.dot_dimension_numbers<[1], [0], [0], [1], [0, 0, 1, 1], [], []>} : vector<256x4xbf16>, vector<4x8xbf16>, vector<256x8xf32> -> vector<256x8xf32>
    %56 = arith.addf %49, %55 : vector<256x8xf32>
    %c0_56 = arith.constant 0 : index
    %c2_57 = arith.constant 2 : index
    %c2_58 = arith.constant 2 : index
    %c0_59 = arith.constant 0 : index
    %57 = vector.load %arg1[%c0_56, %c2_57, %c2_58, %c0_59] : memref<1x18x18x4xbf16, #tpu.memory_space<vmem>>, vector<1x16x16x4xbf16>
    %58 = vector.shape_cast %57 : vector<1x16x16x4xbf16> to vector<16x16x4xbf16>
    %59 = vector.shape_cast %58 : vector<16x16x4xbf16> to vector<256x4xbf16>
    %c8 = arith.constant 8 : index
    %c0_60 = arith.constant 0 : index
    %c0_61 = arith.constant 0 : index
    %60 = vector.load %arg2[%c8, %c0_60, %c0_61] : memref<9x4x8xbf16, #tpu.memory_space<vmem>>, vector<1x4x8xbf16>
    %61 = vector.shape_cast %60 : vector<1x4x8xbf16> to vector<4x8xbf16>
    %cst_62 = arith.constant dense<0.000000e+00> : vector<256x8xf32>
    %62 = tpu.matmul %59, %61, %cst_62 {dimension_numbers = #tpu.dot_dimension_numbers<[1], [0], [0], [1], [0, 0, 1, 1], [], []>} : vector<256x4xbf16>, vector<4x8xbf16>, vector<256x8xf32> -> vector<256x8xf32>
    %63 = arith.addf %56, %62 : vector<256x8xf32>
    %c0_63 = arith.constant 0 : index
    %c0_64 = arith.constant 0 : index
    %64 = vector.load %arg3[%c0_63, %c0_64] : memref<1x8xf32, #tpu.memory_space<vmem>>, vector<1x8xf32>
    %65 = vector.broadcast %64 : vector<1x8xf32> to vector<256x8xf32>
    %66 = arith.addf %63, %65 : vector<256x8xf32>
    %cst_65 = arith.constant 0.000000e+00 : f32
    %67 = vector.broadcast %cst_65 : f32 to vector<256x8xf32>
    %68 = arith.maximumf %66, %67 : vector<256x8xf32>
    %cst_66 = arith.constant 0.000000e+00 : bf16
    %69 = vector.broadcast %cst_66 : bf16 to vector<18x18x8xbf16>
    %c0_67 = arith.constant 0 : index
    %c0_68 = arith.constant 0 : index
    %c0_69 = arith.constant 0 : index
    %70 = vector.load %arg9[%c0_67, %c0_68, %c0_69] : memref<18x18x8xbf16, #tpu.memory_space<vmem>>, vector<18x18x8xbf16>
    tpu.vector_store %arg9[%c0_67, %c0_68, %c0_69], %69 {strides = array<i32>} : memref<18x18x8xbf16, #tpu.memory_space<vmem>>, vector<18x18x8xbf16>,
    %71 = vector.shape_cast %68 : vector<256x8xf32> to vector<16x16x8xf32>
    %72 = arith.truncf %71 : vector<16x16x8xf32> to vector<16x16x8xbf16>
    %c1_70 = arith.constant 1 : index
    %c1_71 = arith.constant 1 : index
    %c0_72 = arith.constant 0 : index
    %73 = vector.load %arg9[%c1_70, %c1_71, %c0_72] : memref<18x18x8xbf16, #tpu.memory_space<vmem>>, vector<16x16x8xbf16>
    tpu.vector_store %arg9[%c1_70, %c1_71, %c0_72], %72 {strides = array<i32>} : memref<18x18x8xbf16, #tpu.memory_space<vmem>>, vector<16x16x8xbf16>,
    %cst_73 = arith.constant 0.000000e+00 : f32
    %74 = vector.broadcast %cst_73 : f32 to vector<256x8xf32>
    %c0_74 = arith.constant 0 : index
    %c0_75 = arith.constant 0 : index
    %c0_76 = arith.constant 0 : index
    %75 = vector.load %arg9[%c0_74, %c0_75, %c0_76] : memref<18x18x8xbf16, #tpu.memory_space<vmem>>, vector<16x16x8xbf16>
    %76 = vector.shape_cast %75 : vector<16x16x8xbf16> to vector<256x8xbf16>
    %c0_77 = arith.constant 0 : index
    %c0_78 = arith.constant 0 : index
    %c0_79 = arith.constant 0 : index
    %77 = vector.load %arg4[%c0_77, %c0_78, %c0_79] : memref<9x8x8xbf16, #tpu.memory_space<vmem>>, vector<1x8x8xbf16>
    %78 = vector.shape_cast %77 : vector<1x8x8xbf16> to vector<8x8xbf16>
    %cst_80 = arith.constant dense<0.000000e+00> : vector<256x8xf32>
    %79 = tpu.matmul %76, %78, %cst_80 {dimension_numbers = #tpu.dot_dimension_numbers<[1], [0], [0], [1], [0, 0, 1, 1], [], []>} : vector<256x8xbf16>, vector<8x8xbf16>, vector<256x8xf32> -> vector<256x8xf32>
    %80 = arith.addf %74, %79 : vector<256x8xf32>
    %c0_81 = arith.constant 0 : index
    %c1_82 = arith.constant 1 : index
    %c0_83 = arith.constant 0 : index
    %81 = vector.load %arg9[%c0_81, %c1_82, %c0_83] : memref<18x18x8xbf16, #tpu.memory_space<vmem>>, vector<16x16x8xbf16>
    %82 = vector.shape_cast %81 : vector<16x16x8xbf16> to vector<256x8xbf16>
    %c1_84 = arith.constant 1 : index
    %c0_85 = arith.constant 0 : index
    %c0_86 = arith.constant 0 : index
    %83 = vector.load %arg4[%c1_84, %c0_85, %c0_86] : memref<9x8x8xbf16, #tpu.memory_space<vmem>>, vector<1x8x8xbf16>
    %84 = vector.shape_cast %83 : vector<1x8x8xbf16> to vector<8x8xbf16>
    %cst_87 = arith.constant dense<0.000000e+00> : vector<256x8xf32>
    %85 = tpu.matmul %82, %84, %cst_87 {dimension_numbers = #tpu.dot_dimension_numbers<[1], [0], [0], [1], [0, 0, 1, 1], [], []>} : vector<256x8xbf16>, vector<8x8xbf16>, vector<256x8xf32> -> vector<256x8xf32>
    %86 = arith.addf %80, %85 : vector<256x8xf32>
    %c0_88 = arith.constant 0 : index
    %c2_89 = arith.constant 2 : index
    %c0_90 = arith.constant 0 : index
    %87 = vector.load %arg9[%c0_88, %c2_89, %c0_90] : memref<18x18x8xbf16, #tpu.memory_space<vmem>>, vector<16x16x8xbf16>
    %88 = vector.shape_cast %87 : vector<16x16x8xbf16> to vector<256x8xbf16>
    %c2_91 = arith.constant 2 : index
    %c0_92 = arith.constant 0 : index
    %c0_93 = arith.constant 0 : index
    %89 = vector.load %arg4[%c2_91, %c0_92, %c0_93] : memref<9x8x8xbf16, #tpu.memory_space<vmem>>, vector<1x8x8xbf16>
    %90 = vector.shape_cast %89 : vector<1x8x8xbf16> to vector<8x8xbf16>
    %cst_94 = arith.constant dense<0.000000e+00> : vector<256x8xf32>
    %91 = tpu.matmul %88, %90, %cst_94 {dimension_numbers = #tpu.dot_dimension_numbers<[1], [0], [0], [1], [0, 0, 1, 1], [], []>} : vector<256x8xbf16>, vector<8x8xbf16>, vector<256x8xf32> -> vector<256x8xf32>
    %92 = arith.addf %86, %91 : vector<256x8xf32>
    %c1_95 = arith.constant 1 : index
    %c0_96 = arith.constant 0 : index
    %c0_97 = arith.constant 0 : index
    %93 = vector.load %arg9[%c1_95, %c0_96, %c0_97] : memref<18x18x8xbf16, #tpu.memory_space<vmem>>, vector<16x16x8xbf16>
    %94 = vector.shape_cast %93 : vector<16x16x8xbf16> to vector<256x8xbf16>
    %c3_98 = arith.constant 3 : index
    %c0_99 = arith.constant 0 : index
    %c0_100 = arith.constant 0 : index
    %95 = vector.load %arg4[%c3_98, %c0_99, %c0_100] : memref<9x8x8xbf16, #tpu.memory_space<vmem>>, vector<1x8x8xbf16>
    %96 = vector.shape_cast %95 : vector<1x8x8xbf16> to vector<8x8xbf16>
    %cst_101 = arith.constant dense<0.000000e+00> : vector<256x8xf32>
    %97 = tpu.matmul %94, %96, %cst_101 {dimension_numbers = #tpu.dot_dimension_numbers<[1], [0], [0], [1], [0, 0, 1, 1], [], []>} : vector<256x8xbf16>, vector<8x8xbf16>, vector<256x8xf32> -> vector<256x8xf32>
    %98 = arith.addf %92, %97 : vector<256x8xf32>
    %c1_102 = arith.constant 1 : index
    %c1_103 = arith.constant 1 : index
    %c0_104 = arith.constant 0 : index
    %99 = vector.load %arg9[%c1_102, %c1_103, %c0_104] : memref<18x18x8xbf16, #tpu.memory_space<vmem>>, vector<16x16x8xbf16>
    %100 = vector.shape_cast %99 : vector<16x16x8xbf16> to vector<256x8xbf16>
    %c4_105 = arith.constant 4 : index
    %c0_106 = arith.constant 0 : index
    %c0_107 = arith.constant 0 : index
    %101 = vector.load %arg4[%c4_105, %c0_106, %c0_107] : memref<9x8x8xbf16, #tpu.memory_space<vmem>>, vector<1x8x8xbf16>
    %102 = vector.shape_cast %101 : vector<1x8x8xbf16> to vector<8x8xbf16>
    %cst_108 = arith.constant dense<0.000000e+00> : vector<256x8xf32>
    %103 = tpu.matmul %100, %102, %cst_108 {dimension_numbers = #tpu.dot_dimension_numbers<[1], [0], [0], [1], [0, 0, 1, 1], [], []>} : vector<256x8xbf16>, vector<8x8xbf16>, vector<256x8xf32> -> vector<256x8xf32>
    %104 = arith.addf %98, %103 : vector<256x8xf32>
    %c1_109 = arith.constant 1 : index
    %c2_110 = arith.constant 2 : index
    %c0_111 = arith.constant 0 : index
    %105 = vector.load %arg9[%c1_109, %c2_110, %c0_111] : memref<18x18x8xbf16, #tpu.memory_space<vmem>>, vector<16x16x8xbf16>
    %106 = vector.shape_cast %105 : vector<16x16x8xbf16> to vector<256x8xbf16>
    %c5_112 = arith.constant 5 : index
    %c0_113 = arith.constant 0 : index
    %c0_114 = arith.constant 0 : index
    %107 = vector.load %arg4[%c5_112, %c0_113, %c0_114] : memref<9x8x8xbf16, #tpu.memory_space<vmem>>, vector<1x8x8xbf16>
    %108 = vector.shape_cast %107 : vector<1x8x8xbf16> to vector<8x8xbf16>
    %cst_115 = arith.constant dense<0.000000e+00> : vector<256x8xf32>
    %109 = tpu.matmul %106, %108, %cst_115 {dimension_numbers = #tpu.dot_dimension_numbers<[1], [0], [0], [1], [0, 0, 1, 1], [], []>} : vector<256x8xbf16>, vector<8x8xbf16>, vector<256x8xf32> -> vector<256x8xf32>
    %110 = arith.addf %104, %109 : vector<256x8xf32>
    %c2_116 = arith.constant 2 : index
    %c0_117 = arith.constant 0 : index
    %c0_118 = arith.constant 0 : index
    %111 = vector.load %arg9[%c2_116, %c0_117, %c0_118] : memref<18x18x8xbf16, #tpu.memory_space<vmem>>, vector<16x16x8xbf16>
    %112 = vector.shape_cast %111 : vector<16x16x8xbf16> to vector<256x8xbf16>
    %c6_119 = arith.constant 6 : index
    %c0_120 = arith.constant 0 : index
    %c0_121 = arith.constant 0 : index
    %113 = vector.load %arg4[%c6_119, %c0_120, %c0_121] : memref<9x8x8xbf16, #tpu.memory_space<vmem>>, vector<1x8x8xbf16>
    %114 = vector.shape_cast %113 : vector<1x8x8xbf16> to vector<8x8xbf16>
    %cst_122 = arith.constant dense<0.000000e+00> : vector<256x8xf32>
    %115 = tpu.matmul %112, %114, %cst_122 {dimension_numbers = #tpu.dot_dimension_numbers<[1], [0], [0], [1], [0, 0, 1, 1], [], []>} : vector<256x8xbf16>, vector<8x8xbf16>, vector<256x8xf32> -> vector<256x8xf32>
    %116 = arith.addf %110, %115 : vector<256x8xf32>
    %c2_123 = arith.constant 2 : index
    %c1_124 = arith.constant 1 : index
    %c0_125 = arith.constant 0 : index
    %117 = vector.load %arg9[%c2_123, %c1_124, %c0_125] : memref<18x18x8xbf16, #tpu.memory_space<vmem>>, vector<16x16x8xbf16>
    %118 = vector.shape_cast %117 : vector<16x16x8xbf16> to vector<256x8xbf16>
    %c7_126 = arith.constant 7 : index
    %c0_127 = arith.constant 0 : index
    %c0_128 = arith.constant 0 : index
    %119 = vector.load %arg4[%c7_126, %c0_127, %c0_128] : memref<9x8x8xbf16, #tpu.memory_space<vmem>>, vector<1x8x8xbf16>
    %120 = vector.shape_cast %119 : vector<1x8x8xbf16> to vector<8x8xbf16>
    %cst_129 = arith.constant dense<0.000000e+00> : vector<256x8xf32>
    %121 = tpu.matmul %118, %120, %cst_129 {dimension_numbers = #tpu.dot_dimension_numbers<[1], [0], [0], [1], [0, 0, 1, 1], [], []>} : vector<256x8xbf16>, vector<8x8xbf16>, vector<256x8xf32> -> vector<256x8xf32>
    %122 = arith.addf %116, %121 : vector<256x8xf32>
    %c2_130 = arith.constant 2 : index
    %c2_131 = arith.constant 2 : index
    %c0_132 = arith.constant 0 : index
    %123 = vector.load %arg9[%c2_130, %c2_131, %c0_132] : memref<18x18x8xbf16, #tpu.memory_space<vmem>>, vector<16x16x8xbf16>
    %124 = vector.shape_cast %123 : vector<16x16x8xbf16> to vector<256x8xbf16>
    %c8_133 = arith.constant 8 : index
    %c0_134 = arith.constant 0 : index
    %c0_135 = arith.constant 0 : index
    %125 = vector.load %arg4[%c8_133, %c0_134, %c0_135] : memref<9x8x8xbf16, #tpu.memory_space<vmem>>, vector<1x8x8xbf16>
    %126 = vector.shape_cast %125 : vector<1x8x8xbf16> to vector<8x8xbf16>
    %cst_136 = arith.constant dense<0.000000e+00> : vector<256x8xf32>
    %127 = tpu.matmul %124, %126, %cst_136 {dimension_numbers = #tpu.dot_dimension_numbers<[1], [0], [0], [1], [0, 0, 1, 1], [], []>} : vector<256x8xbf16>, vector<8x8xbf16>, vector<256x8xf32> -> vector<256x8xf32>
    %128 = arith.addf %122, %127 : vector<256x8xf32>
    %c0_137 = arith.constant 0 : index
    %c0_138 = arith.constant 0 : index
    %129 = vector.load %arg5[%c0_137, %c0_138] : memref<1x8xf32, #tpu.memory_space<vmem>>, vector<1x8xf32>
    %130 = vector.broadcast %129 : vector<1x8xf32> to vector<256x8xf32>
    %131 = arith.addf %128, %130 : vector<256x8xf32>
    %c0_139 = arith.constant 0 : index
    %c1_140 = arith.constant 1 : index
    %c1_141 = arith.constant 1 : index
    %c0_142 = arith.constant 0 : index
    %132 = vector.load %arg1[%c0_139, %c1_140, %c1_141, %c0_142] : memref<1x18x18x4xbf16, #tpu.memory_space<vmem>>, vector<1x16x16x4xbf16>
    %133 = vector.shape_cast %132 : vector<1x16x16x4xbf16> to vector<16x16x4xbf16>
    %134 = vector.shape_cast %133 : vector<16x16x4xbf16> to vector<256x4xbf16>
    %c0_143 = arith.constant 0 : index
    %c0_144 = arith.constant 0 : index
    %135 = vector.load %arg6[%c0_143, %c0_144] : memref<4x8xbf16, #tpu.memory_space<vmem>>, vector<4x8xbf16>
    %cst_145 = arith.constant dense<0.000000e+00> : vector<256x8xf32>
    %136 = tpu.matmul %134, %135, %cst_145 {dimension_numbers = #tpu.dot_dimension_numbers<[1], [0], [0], [1], [0, 0, 1, 1], [], []>} : vector<256x4xbf16>, vector<4x8xbf16>, vector<256x8xf32> -> vector<256x8xf32>
    %c0_146 = arith.constant 0 : index
    %c0_147 = arith.constant 0 : index
    %137 = vector.load %arg7[%c0_146, %c0_147] : memref<1x8xf32, #tpu.memory_space<vmem>>, vector<1x8xf32>
    %138 = vector.broadcast %137 : vector<1x8xf32> to vector<256x8xf32>
    %139 = arith.addf %136, %138 : vector<256x8xf32>
    %140 = arith.addf %131, %139 : vector<256x8xf32>
    %cst_148 = arith.constant 0.000000e+00 : f32
    %141 = vector.broadcast %cst_148 : f32 to vector<256x8xf32>
    %142 = arith.maximumf %140, %141 : vector<256x8xf32>
    %143 = vector.shape_cast %142 : vector<256x8xf32> to vector<16x16x8xf32>
    %c0_149 = arith.constant 0 : index
    %c0_150 = arith.constant 0 : index
    %c0_151 = arith.constant 0 : index
    %c0_152 = arith.constant 0 : index
    %144 = vector.load %arg8[%c0_149, %c0_150, %c0_151, %c0_152] : memref<1x16x16x8xf32, #tpu.memory_space<vmem>>, vector<1x16x16x8xf32>
    %145 = vector.shape_cast %144 : vector<1x16x16x8xf32> to vector<16x16x8xf32>
    %146 = vector.shape_cast %143 : vector<16x16x8xf32> to vector<1x16x16x8xf32>
    tpu.vector_store %arg8[%c0_149, %c0_150, %c0_151, %c0_152], %146 {strides = array<i32>} : memref<1x16x16x8xf32, #tpu.memory_space<vmem>>, vector<1x16x16x8xf32>,
    return
  }
  func.func @transform_0(%arg0: i32) -> (i32, i32, i32, i32) {
    %c0_i32 = arith.constant 0 : i32
    %c0_i32_0 = arith.constant 0 : i32
    %c0_i32_1 = arith.constant 0 : i32
    %c0_i32_2 = arith.constant 0 : i32
    return %arg0, %c0_i32, %c0_i32_0, %c0_i32_1 : i32, i32, i32, i32
  }
  func.func @transform_1(%arg0: i32) -> (i32, i32, i32) {
    %c0_i32 = arith.constant 0 : i32
    %c0_i32_0 = arith.constant 0 : i32
    %c0_i32_1 = arith.constant 0 : i32
    %c0_i32_2 = arith.constant 0 : i32
    return %c0_i32, %c0_i32_0, %c0_i32_1 : i32, i32, i32
  }
  func.func @transform_2(%arg0: i32) -> (i32, i32) {
    %c0_i32 = arith.constant 0 : i32
    %c0_i32_0 = arith.constant 0 : i32
    %c0_i32_1 = arith.constant 0 : i32
    return %c0_i32, %c0_i32_0 : i32, i32
  }
  func.func @transform_3(%arg0: i32) -> (i32, i32, i32) {
    %c0_i32 = arith.constant 0 : i32
    %c0_i32_0 = arith.constant 0 : i32
    %c0_i32_1 = arith.constant 0 : i32
    %c0_i32_2 = arith.constant 0 : i32
    return %c0_i32, %c0_i32_0, %c0_i32_1 : i32, i32, i32
  }
  func.func @transform_4(%arg0: i32) -> (i32, i32) {
    %c0_i32 = arith.constant 0 : i32
    %c0_i32_0 = arith.constant 0 : i32
    %c0_i32_1 = arith.constant 0 : i32
    return %c0_i32, %c0_i32_0 : i32, i32
  }
  func.func @transform_5(%arg0: i32) -> (i32, i32) {
    %c0_i32 = arith.constant 0 : i32
    %c0_i32_0 = arith.constant 0 : i32
    %c0_i32_1 = arith.constant 0 : i32
    return %c0_i32, %c0_i32_0 : i32, i32
  }
  func.func @transform_6(%arg0: i32) -> (i32, i32) {
    %c0_i32 = arith.constant 0 : i32
    %c0_i32_0 = arith.constant 0 : i32
    %c0_i32_1 = arith.constant 0 : i32
    return %c0_i32, %c0_i32_0 : i32, i32
  }
  func.func @transform_7(%arg0: i32) -> (i32, i32, i32, i32) {
    %c0_i32 = arith.constant 0 : i32
    %c0_i32_0 = arith.constant 0 : i32
    %c0_i32_1 = arith.constant 0 : i32
    %c0_i32_2 = arith.constant 0 : i32
    return %arg0, %c0_i32, %c0_i32_0, %c0_i32_1 : i32, i32, i32, i32
  }
}

</mosaic_0001>

<bundles_post_ra>
// kernel: tpu_custom_call.1
= control target key start
LH: loop header
LB: loop body
LE: loop exit
PB: predicated region body
PF: predicated region fallthrough
CT: control target
= control target key end

     0   :  { %s13751_s24 = smov 0   ;;  %s17754_s0 = inlined_call_operand.vmem [shape: bf16[2,18,18,4], index: 0, kind: input, shape index: {}]   ;;  %s17755_s1 = inlined_call_operand.vmem [shape: bf16[9,4,8], index: 1, kind: input, shape index: {}]   ;;  %s17756_s2 = inlined_call_operand.vmem [shape: f32[1,8], index: 2, kind: input, shape index: {}]   ;;  %s17757_s3 = inlined_call_operand.vmem [shape: bf16[9,8,8], index: 3, kind: input, shape index: {}]   ;;  %s17758_s4 = inlined_call_operand.vmem [shape: f32[1,8], index: 4, kind: input, shape index: {}]   ;;  %s17759_s5 = inlined_call_operand.vmem [shape: bf16[4,8], index: 5, kind: input, shape index: {}]   ;;  %s17760_s6 = inlined_call_operand.vmem [shape: f32[1,8], index: 6, kind: input, shape index: {}]   ;;  %s17761_s7 = inlined_call_operand.vmem [shape: f32[2,16,16,8], index: 7, kind: output, shape index: {}]  }
   0x1 LB: > { %s10945_s25 = sadd.s32 4294967295, %s13708_s24   ;;  %p10949_p0 = scmp.ge.s32.totalorder %s13708_s24, 1  ;;  %s13708_s24 = sphi %s13751_s24, %s17_s24  }
   0x2   : > { %p237_p1 = scmp.lt.s32.totalorder %s13708_s24, 3 }
   0x4   : > { %p238_p2 = pnand %p10949_p0, %p237_p1 }
   0x6   : > { %241 = sbr.rel (%p238_p2) target bundleno = 1710 (0x6ae), region = 48 }
   0xd   : > { %v10953_v0 = vld [vmem:[%s17755_s1 + $0x2] sm:$0x3]  ;;  %vm815_vm0 = vcmask 1041408   ;;  %p269_p3 = scmp.lt.s32.totalorder %s10945_s25, 1  ;;  %v312_v2 = vld [vmem:[%s17755_s1] sm:$0x3] }
   0xe   : > { %13562 = vmatprep.subr.msk.bf16.mxu0 %vm815_vm0, %v10953_v0  ;;  %v817_v1 = vsel %vm815_vm0, %v10953_v0, 0  ;;  %vm329_vm1 = vsmask.f32 3328  ;;  %vm330_vm2 = vsmask.f32 7440  ;;  %vm766_vm3 = vcmask 31744  }
   0xf   : > { %12307 = vmatpush3.bf16.msra.mxu0 %v817_v1  ;;  %s18168_s25 = smov (!%p269_p3, %s10945_s25), 1  ;;  %v13797_v14 = vsel %vm815_vm0, %v312_v2, 0  ;;  %vm13809_vm4 = vmor %vm329_vm1, %vm330_vm2  ;;  %v17863_v28 = vmov 0  ;;  %vm1320_vm5 = vcmask 1042432   ;;  %vm1321_vm6 = vcmask 1046532  }
  0x10   : > { %13563 = vmatprep.subr.msk.bf16.mxu0 %vm815_vm0, %v312_v2  ;;  %s13582_s30 = smul.u32 216, %s18168_s25  ;;  %v17864_v28 = vsel %vm13809_vm4, 4294967295, %v17863_v28  ;;  %vm14124_vm7 = vmor %vm1320_vm5, %vm1321_vm6  ;;  %vm4910_vm8 = vcmask 60416   ;;  %vm4913_vm9 = vcmask 57344   ;;  %vm6035_vm10 = vcmask 1043456   ;;  %s11950_s14 = sshll.u32 %s18168_s25, 8 }
  0x11   : > { %17865 = vst [vmem:[#allocation3_spill] sm:$0xff] %v17864_v28  ;;  %vm5986_vm11 = vcmask 64512   ;;  %vm5387_vm12 = vsmask.f32 7938  ;;  %vm5062_vm13 = vsmask.f32 256  ;;  %s17650_s16 = scalar_lea.vmem %s17761_s7, %s11950_s14 }
  0x12   : > { %s13774_s10 = scalar_lea.vmem %s17754_s0, %s13582_s30  ;;  %vm5063_vm14 = vsmask.f32 4368  ;;  %vm15592_vm15 = vmand %vm4910_vm8, %vm5387_vm12 }
  0x13   : > { %v13777_v3 = vld [vmem:[%s13774_s10] sm:$0xf]  ;;  %v13780_v4 = vld [vmem:[%s13774_s10 + $0x4] sm:$0xf]  ;;  %v313_v5 = vld [vmem:[%s13774_s10 + $0x8] sm:$0x1] }
  0x14   : > { %v333_v6 = vshrl.u32 %v13777_v3, 16  ;;  %v336_v7 = vshll.u32 %v13777_v3, 16  ;;  %v342_v8 = vshll.u32 %v13780_v4, 16  ;;  %v346_v9 = vshrl.u32 %v13780_v4, 16  ;;  %v13788_v10 = vld [vmem:[%s13774_s10 + $0xc] sm:$0xf]  ;;  %vm15599_vm1 = vmor %vm5062_vm13, %vm5063_vm14 }
  0x15   : > { %v352_v11 = vshll.u32 %v313_v5, 16  ;;  %v13791_v12 = vld [vmem:[%s13774_s10 + $0x10] sm:$0xf]  ;;  %v13794_v13 = vld [vmem:[%s13774_s10 + $0x14] sm:$0x1]  ;;  %v357_v20 = vshrl.u32 %v13788_v10, 16  ;;  %vm15605_vm2 = vmand %vm4913_vm9, %vm5062_vm13 }
  0x16   : > { %v335_v15 = vrot.slane %v333_v6, 4  ;;  %v338_v16 = vrot.slane %v336_v7, 5  ;;  %v344_v17 = vrot.slane %v342_v8, 5  ;;  %v348_v18 = vrot.slane %v346_v9, 4  ;;  %v13805_v27 = vld [vmem:[%s13774_s10 + $0x18] sm:$0xf] }
  0x17   : > { %v354_v19 = vrot.slane %v352_v11, 5  ;;  %v360_v21 = vshll.u32 %v13788_v10, 16  ;;  %v366_v22 = vshll.u32 %v13791_v12, 16  ;;  %v370_v25 = vshrl.u32 %v13791_v12, 16  ;;  %v13814_v32 = vld [vmem:[%s13774_s10 + $0x1c] sm:$0xf] }
  0x18   : > { %v339_v23 = vor.u32 %v338_v16, %v335_v15  ;;  %v349_v24 = vor.u32 %v348_v18, %v344_v17  ;;  %v376_v26 = vshll.u32 %v13794_v13, 16  ;;  %v359_v29 = vrot.slane %v357_v20, 4  ;;  %v315_v40 = vld [vmem:[%s13774_s10 + $0x20] sm:$0x1]  ;;  %v13828_v47 = vld [vmem:[%s13774_s10 + $0x24] sm:$0xf] }
  0x19   : > { %v362_v30 = vrot.slane %v360_v21, 5  ;;  %v368_v31 = vrot.slane %v366_v22, 5  ;;  %v372_v36 = vrot.slane %v370_v25, 4  ;;  %v381_v41 = vshrl.u32 %v13805_v27, 16  ;;  %v13831_v52 = vld [vmem:[%s13774_s10 + $0x28] sm:$0xf] }
  0x1a   : > { %v340_v34 = vrot.slane %v339_v23, 4  ;;  %v350_v35 = vrot.slane %v349_v24, 4  ;;  %v378_v39 = vrot.slane %v376_v26, 5  ;;  %v384_v42 = vshll.u32 %v13805_v27, 16  ;;  %v13838_v59 = vld [vmem:[%s13774_s10 + $0x2c] sm:$0x1] }
  0x1b   : > { %v363_v38 = vor.u32 %v362_v30, %v359_v29  ;;  %v373_v45 = vor.u32 %v372_v36, %v368_v31  ;;  %v390_v46 = vshll.u32 %v13814_v32, 16  ;;  %v383_v50 = vrot.slane %v381_v41, 4  ;;  %v13846_v2 = vld [vmem:[%s13774_s10 + $0x30] sm:$0xf]  ;;  %v13849_v9 = vld [vmem:[%s13774_s10 + $0x34] sm:$0xf] }
  0x1c   : > { %v345_v43 = vsel %vm13809_vm4, %v340_v34, %v344_v17  ;;  %v355_v44 = vsel %vm13809_vm4, %v350_v35, %v354_v19  ;;  %v386_v51 = vrot.slane %v384_v42, 5  ;;  %v394_v55 = vshrl.u32 %v13814_v32, 16  ;;  %v13856_v18 = vld [vmem:[%s17755_s1 + $0x4] sm:$0x3]  ;;  %v13862_v21 = vld [vmem:[%s13774_s10 + $0x38] sm:$0x1] }
  0x1d   : > { %v10954_v48 = vcombine.low %v345_v43, %v355_v44  ;;  %v364_v49 = vrot.slane %v363_v38, 4  ;;  %v374_v53 = vrot.slane %v373_v45, 4  ;;  %v392_v54 = vrot.slane %v390_v46, 5  ;;  %v13870_v36 = vld [vmem:[%s13774_s10 + $0x3c] sm:$0xf] }
  0x1e   : > { %v400_v56 = vshll.u32 %v315_v40, 16  ;;  %v387_v58 = vor.u32 %v386_v51, %v383_v50  ;;  %v405_v60 = vshrl.u32 %v13828_v47, 16  ;;  %v408_v61 = vshll.u32 %v13828_v47, 16  ;;  %v13878_v41 = vld [vmem:[%s13774_s10 + $0x40] sm:$0xf] }
  0x1f   : > { %12308 = vmatprep.mubr.msk.bf16.mxu0 %vm766_vm3, %v10954_v48  ;;  %v369_v57 = vsel %vm13809_vm4, %v364_v49, %v368_v31  ;;  %v379_v62 = vsel %vm13809_vm4, %v374_v53, %v378_v39  ;;  %v396_v63 = vrot.slane %v394_v55, 4  ;;  %v414_v1 = vshll.u32 %v13831_v52, 16  ;;  %v13883_v46 = vld [vmem:[%s13774_s10 + $0x44] sm:$0x1] }
  0x20   : > { %v402_v0 = vrot.slane %v400_v56, 5  ;;  %v10955_v5 = vcombine.low %v369_v57, %v379_v62  ;;  %v388_v6 = vrot.slane %v387_v58, 4  ;;  %v407_v7 = vrot.slane %v405_v60, 4  ;;  %v13891_v57 = vld [vmem:[%s13774_s10 + $0x48] sm:$0xf] }
  0x21   : > { %v410_v8 = vrot.slane %v408_v61, 5  ;;  %v397_v11 = vor.u32 %v396_v63, %v392_v54  ;;  %v416_v15 = vrot.slane %v414_v1, 5  ;;  %v418_v16 = vshrl.u32 %v13831_v52, 16  ;;  %v13897_v63 = vld [vmem:[%s13774_s10 + $0x4c] sm:$0xf] }
  0x22   : > { %v424_v17 = vshll.u32 %v13838_v59, 16  ;;  %12309 = vmatmul.mubr.msk.bf16.vlgmr.msra.gmra.mrb[0].mxu0 %vm766_vm3, %v10955_v5  ;;  %v393_v19 = vsel %vm13809_vm4, %v388_v6, %v392_v54  ;;  %v429_v22 = vshrl.u32 %v13846_v2, 16  ;;  %v432_v23 = vshll.u32 %v13846_v2, 16 }
  0x23   : > { %v411_v20 = vor.u32 %v410_v8, %v407_v7  ;;  %12341 = vmatpush3.bf16.msra.mxu0 %v13797_v14  ;;  %v398_v24 = vrot.slane %v397_v11, 4  ;;  %v420_v25 = vrot.slane %v418_v16, 4  ;;  %v438_v29 = vshll.u32 %v13849_v9, 16 }
  0x24   : > { %v426_v26 = vrot.slane %v424_v17, 5  ;;  %v431_v31 = vrot.slane %v429_v22, 4  ;;  %v434_v34 = vrot.slane %v432_v23, 5  ;;  %v442_v35 = vshrl.u32 %v13849_v9, 16  ;;  %13564 = vmatprep.subr.msk.bf16.mxu0 %vm815_vm0, %v13856_v18  ;;  %v13912_v23 = vld [vmem:[%s13774_s10 + $0x54] sm:$0xf] }
  0x25   : > { %v412_v30 = vrot.slane %v411_v20, 4  ;;  %v403_v38 = vsel %vm13809_vm4, %v398_v24, %v402_v0  ;;  %v421_v14 = vor.u32 %v420_v25, %v416_v15  ;;  %v440_v39 = vrot.slane %v438_v29, 5 }
  0x26   : > { %v448_v40 = vshll.u32 %v13862_v21, 16  ;;  %v10956_v42 = vcombine.low %v393_v19, %v403_v38  ;;  %v435_v44 = vor.u32 %v434_v34, %v431_v31  ;;  %v444_v45 = vrot.slane %v442_v35, 4 }
  0x27   : > { %v417_v43 = vsel %vm13809_vm4, %v412_v30, %v416_v15  ;;  %v422_v48 = vrot.slane %v421_v14, 4  ;;  %v453_v50 = vshrl.u32 %v13870_v36, 16  ;;  %v456_v51 = vshll.u32 %v13870_v36, 16  ;;  %v13902_v15 = vld [vmem:[%s13774_s10 + $0x50] sm:$0x1] }
  0x28   : > { %v450_v49 = vrot.slane %v448_v40, 5  ;;  %12312 = vmatprep.mubr.msk.bf16.mxu0 %vm766_vm3, %v10956_v42  ;;  %v436_v53 = vrot.slane %v435_v44, 4  ;;  %v445_v54 = vor.u32 %v444_v45, %v440_v39  ;;  %v462_v55 = vshll.u32 %v13878_v41, 16  ;;  %v13915_v30 = vld [vmem:[%s13774_s10 + $0x58] sm:$0xf] }
  0x29   : > { %v466_v56 = vshrl.u32 %v13878_v41, 16  ;;  %v427_v58 = vsel %vm13809_vm4, %v422_v48, %v426_v26  ;;  %v455_v60 = vrot.slane %v453_v50, 4  ;;  %v458_v61 = vrot.slane %v456_v51, 5  ;;  %v13924_v48 = vld [vmem:[%s13774_s10 + $0x5c] sm:$0x1] }
  0x2a   : > { %v472_v62 = vshll.u32 %v13883_v46, 16  ;;  %v10957_v0 = vcombine.low %v417_v43, %v427_v58  ;;  %v441_v1 = vsel %vm13809_vm4, %v436_v53, %v440_v39  ;;  %v446_v5 = vrot.slane %v445_v54, 4  ;;  %17866 = vst [vmem:[#allocation4_spill] sm:$0xff] %v13924_v48  ;;  %v13928_v50 = vld [vmem:[%s13774_s10 + $0x60] sm:$0xf] }
  0x2b   : > { %v464_v6 = vrot.slane %v462_v55, 5  ;;  %v459_v7 = vor.u32 %v458_v61, %v455_v60  ;;  %v468_v8 = vrot.slane %v466_v56, 4  ;;  %v477_v16 = vshrl.u32 %v13891_v57, 16  ;;  %v13934_v56 = vld [vmem:[%s13774_s10 + $0x64] sm:$0xf] }
  0x2c   : > { %v474_v11 = vrot.slane %v472_v62, 5  ;;  %12313 = vmatmul.mubr.msk.bf16.gmra.mrb[4].mxu0 %vm766_vm3, %v10957_v0  ;;  %v451_v17 = vsel %vm13809_vm4, %v446_v5, %v450_v49  ;;  %v480_v19 = vshll.u32 %v13891_v57, 16  ;;  %v486_v20 = vshll.u32 %v13897_v63, 16 }
  0x2d   : > { %v490_v22 = vshrl.u32 %v13897_v63, 16  ;;  %v10958_v24 = vcombine.low %v441_v1, %v451_v17  ;;  %v460_v25 = vrot.slane %v459_v7, 4  ;;  %v469_v26 = vor.u32 %v468_v8, %v464_v6 }
  0x2e   : > { %v479_v29 = vrot.slane %v477_v16, 4  ;;  %v482_v31 = vrot.slane %v480_v19, 5  ;;  %v488_v34 = vrot.slane %v486_v20, 5  ;;  %v496_v38 = vshll.u32 %v13902_v15, 16  ;;  %v13949_v19 = vld [vmem:[%s13774_s10 + $0x6c] sm:$0xf] }
  0x2f   : > { %v492_v35 = vrot.slane %v490_v22, 4  ;;  %12316 = vmatprep.mubr.msk.bf16.mxu0 %vm766_vm3, %v10958_v24  ;;  %v465_v14 = vsel %vm13809_vm4, %v460_v25, %v464_v6  ;;  %v470_v39 = vrot.slane %v469_v26, 4  ;;  %v501_v40 = vshrl.u32 %v13912_v23, 16  ;;  %v13952_v26 = vld [vmem:[%s13774_s10 + $0x70] sm:$0xf] }
  0x30   : > { %v504_v42 = vshll.u32 %v13912_v23, 16  ;;  %v483_v43 = vor.u32 %v482_v31, %v479_v29  ;;  %v498_v45 = vrot.slane %v496_v38, 5  ;;  %v510_v49 = vshll.u32 %v13915_v30, 16 }
  0x31   : > { %v493_v44 = vor.u32 %v492_v35, %v488_v34  ;;  %v475_v51 = vsel %vm13809_vm4, %v470_v39, %v474_v11  ;;  %v503_v53 = vrot.slane %v501_v40, 4  ;;  %v514_v55 = vshrl.u32 %v13915_v30, 16  ;;  %v13944_v11 = vld [vmem:[%s13774_s10 + $0x68] sm:$0x1]  ;;  %v13960_v40 = vld [vmem:[%s13774_s10 + $0x74] sm:$0x1] }
  0x32   : > { %v506_v54 = vrot.slane %v504_v42, 5  ;;  %v10959_v58 = vcombine.low %v465_v14, %v475_v51  ;;  %v484_v60 = vrot.slane %v483_v43, 4  ;;  %v512_v62 = vrot.slane %v510_v49, 5  ;;  %17867 = vst [vmem:[#allocation5_spill] sm:$0xff] %v13944_v11  ;;  %17868 = vst [vmem:[#allocation6_spill] sm:$0xff] %v13960_v40 }
  0x33   : > { %v494_v61 = vrot.slane %v493_v44, 4  ;;  %v516_v1 = vrot.slane %v514_v55, 4  ;;  %v520_v5 = vshll.u32 %v13924_v48, 16  ;;  %v525_v6 = vshrl.u32 %v13928_v50, 16  ;;  %v13966_v51 = vld [vmem:[%s13774_s10 + $0x78] sm:$0xf] }
  0x34   : > { %v507_v0 = vor.u32 %v506_v54, %v503_v53  ;;  %12317 = vmatmul.mubr.msk.bf16.gmra.mrb[8].mxu0 %vm766_vm3, %v10959_v58  ;;  %v489_v7 = vsel %vm13809_vm4, %v484_v60, %v488_v34  ;;  %v528_v16 = vshll.u32 %v13928_v50, 16  ;;  %v534_v17 = vshll.u32 %v13934_v56, 16 }
  0x35   : > { %v499_v8 = vsel %vm13809_vm4, %v494_v61, %v498_v45  ;;  %v517_v24 = vor.u32 %v516_v1, %v512_v62  ;;  %v522_v25 = vrot.slane %v520_v5, 5  ;;  %v527_v29 = vrot.slane %v525_v6, 4  ;;  %v13972_v1 = vld [vmem:[%s13774_s10 + $0x7c] sm:$0xf]  ;;  %v13975_v5 = vld [vmem:[%s13774_s10 + $0x80] sm:$0x1] }
  0x36   : > { %v10960_v20 = vcombine.low %v489_v7, %v499_v8  ;;  %v508_v22 = vrot.slane %v507_v0, 4  ;;  %v530_v31 = vrot.slane %v528_v16, 5  ;;  %v536_v34 = vrot.slane %v534_v17, 5  ;;  %17869 = vst [vmem:[#allocation7_spill] sm:$0xff] %v13975_v5  ;;  %v13980_v17 = vld [vmem:[%s13774_s10 + $0x84] sm:$0xf] }
  0x37   : > { %v538_v35 = vshrl.u32 %v13934_v56, 16  ;;  %v518_v14 = vrot.slane %v517_v24, 4  ;;  %v544_v39 = vshll.u32 %v13944_v11, 16  ;;  %v549_v42 = vshrl.u32 %v13949_v19, 16 }
  0x38   : > { %12320 = vmatprep.mubr.msk.bf16.mxu0 %vm766_vm3, %v10960_v20  ;;  %v513_v38 = vsel %vm13809_vm4, %v508_v22, %v512_v62  ;;  %v531_v43 = vor.u32 %v530_v31, %v527_v29  ;;  %v552_v45 = vshll.u32 %v13949_v19, 16  ;;  %v558_v49 = vshll.u32 %v13952_v26, 16  ;;  %v13987_v29 = vld [vmem:[%s13774_s10 + $0x88] sm:$0xf] }
  0x39   : > { %v540_v44 = vrot.slane %v538_v35, 4  ;;  %v523_v53 = vsel %vm13809_vm4, %v518_v14, %v522_v25  ;;  %v546_v54 = vrot.slane %v544_v39, 5  ;;  %v551_v55 = vrot.slane %v549_v42, 4 }
  0x3a   : > { %v562_v58 = vshrl.u32 %v13952_v26, 16  ;;  %v10961_v60 = vcombine.low %v513_v38, %v523_v53  ;;  %v532_v61 = vrot.slane %v531_v43, 4  ;;  %v554_v0 = vrot.slane %v552_v45, 5 }
  0x3b   : > { %v541_v62 = vor.u32 %v540_v44, %v536_v34  ;;  %v560_v6 = vrot.slane %v558_v49, 5  ;;  %v568_v8 = vshll.u32 %v13960_v40, 16  ;;  %v573_v16 = vshrl.u32 %v13966_v51, 16  ;;  %v13994_v44 = vld [vmem:[%s13774_s10 + $0x8c] sm:$0x1] }
  0x3c   : > { %v564_v7 = vrot.slane %v562_v58, 4  ;;  %12321 = vmatmul.mubr.msk.bf16.gmra.mrb[12].mxu0 %vm766_vm3, %v10961_v60  ;;  %v537_v20 = vsel %vm13809_vm4, %v532_v61, %v536_v34  ;;  %v555_v24 = vor.u32 %v554_v0, %v551_v55  ;;  %v576_v25 = vshll.u32 %v13966_v51, 16  ;;  %17870 = vst [vmem:[#allocation8_spill] sm:$0xff] %v13994_v44  ;;  %v13998_v58 = vld [vmem:[%s13774_s10 + $0x90] sm:$0xf] }
  0x3d   : > { %v542_v22 = vrot.slane %v541_v62, 4  ;;  %v570_v35 = vrot.slane %v568_v8, 5  ;;  %v575_v38 = vrot.slane %v573_v16, 4  ;;  %v582_v14 = vshll.u32 %v13972_v1, 16  ;;  %v14004_v0 = vld [vmem:[%s13774_s10 + $0x94] sm:$0xf] }
  0x3e   : > { %v565_v31 = vor.u32 %v564_v7, %v560_v6  ;;  %v556_v42 = vrot.slane %v555_v24, 4  ;;  %v578_v43 = vrot.slane %v576_v25, 5  ;;  %v586_v34 = vshrl.u32 %v13972_v1, 16  ;;  %v14071_v40 = vld [vmem:[%s13774_s10 + $0xbc] sm:$0x1] }
  0x3f   : > { %v547_v39 = vsel %vm13809_vm4, %v542_v22, %v546_v54  ;;  %v584_v53 = vrot.slane %v582_v14, 5  ;;  %v592_v55 = vshll.u32 %v13975_v5, 16  ;;  %v597_v54 = vshrl.u32 %v13980_v17, 16 }
  0x40   : > { %v10962_v45 = vcombine.low %v537_v20, %v547_v39  ;;  %v566_v49 = vrot.slane %v565_v31, 4  ;;  %v561_v60 = vsel %vm13809_vm4, %v556_v42, %v560_v6  ;;  %v579_v61 = vor.u32 %v578_v43, %v575_v38  ;;  %v14014_v42 = vld [vmem:[%s13774_s10 + $0x98] sm:$0x1]  ;;  %v14017_v43 = vld [vmem:[%s13774_s10 + $0x9c] sm:$0xf] }
  0x41   : > { %v588_v62 = vrot.slane %v586_v34, 4  ;;  %v594_v8 = vrot.slane %v592_v55, 5  ;;  %v600_v16 = vshll.u32 %v13980_v17, 16  ;;  %v606_v20 = vshll.u32 %v13987_v29, 16  ;;  %17871 = vst [vmem:[#allocation9_spill] sm:$0xff] %v14014_v42 }
  0x42   : > { %12324 = vmatprep.mubr.msk.bf16.mxu0 %vm766_vm3, %v10962_v45  ;;  %v571_v7 = vsel %vm13809_vm4, %v566_v49, %v570_v35  ;;  %v580_v6 = vrot.slane %v579_v61, 4  ;;  %v599_v25 = vrot.slane %v597_v54, 4  ;;  %v610_v14 = vshrl.u32 %v13987_v29, 16 }
  0x43   : > { %v10963_v22 = vcombine.low %v561_v60, %v571_v7  ;;  %v589_v24 = vor.u32 %v588_v62, %v584_v53  ;;  %v602_v31 = vrot.slane %v600_v16, 5  ;;  %v608_v38 = vrot.slane %v606_v20, 5 }
  0x44   : > { %v616_v39 = vshll.u32 %v13994_v44, 16  ;;  %v585_v35 = vsel %vm13809_vm4, %v580_v6, %v584_v53  ;;  %v621_v45 = vshrl.u32 %v13998_v58, 16  ;;  %v624_v49 = vshll.u32 %v13998_v58, 16  ;;  %v14029_v53 = vld [vmem:[%s13774_s10 + $0xa0] sm:$0xf] }
  0x45   : > { %12325 = vmatmul.mubr.msk.bf16.gmra.mrb[16].mxu0 %vm766_vm3, %v10963_v22  ;;  %v590_v34 = vrot.slane %v589_v24, 4  ;;  %v603_v55 = vor.u32 %v602_v31, %v599_v25  ;;  %v612_v60 = vrot.slane %v610_v14, 4  ;;  %v630_v62 = vshll.u32 %v14004_v0, 16  ;;  %v14032_v25 = vld [vmem:[%s13774_s10 + $0xa4] sm:$0x1] }
  0x46   : > { %v618_v61 = vrot.slane %v616_v39, 5  ;;  %v623_v7 = vrot.slane %v621_v45, 4  ;;  %v626_v16 = vrot.slane %v624_v49, 5  ;;  %v634_v20 = vshrl.u32 %v14004_v0, 16  ;;  %17872 = vst [vmem:[#allocation10_spill] sm:$0xff] %v14032_v25 }
  0x47   : > { %v595_v54 = vsel %vm13809_vm4, %v590_v34, %v594_v8  ;;  %v604_v6 = vrot.slane %v603_v55, 4  ;;  %v613_v24 = vor.u32 %v612_v60, %v608_v38  ;;  %v632_v33 = vrot.slane %v630_v62, 5  ;;  %v14037_v8 = vld [vmem:[%s13774_s10 + $0xa8] sm:$0xf]  ;;  %v14045_v55 = vld [vmem:[%s13774_s10 + $0xac] sm:$0xf] }
  0x48   : > { %v10964_v22 = vcombine.low %v585_v35, %v595_v54  ;;  %v627_v31 = vor.u32 %v626_v16, %v623_v7  ;;  %v636_v14 = vrot.slane %v634_v20, 4  ;;  %v640_v39 = vshll.u32 %v14014_v42, 16 }
  0x49   : > { %v645_v37 = vshrl.u32 %v14017_v43, 16  ;;  %v609_v34 = vsel %vm13809_vm4, %v604_v6, %v608_v38  ;;  %v614_v35 = vrot.slane %v613_v24, 4  ;;  %v648_v45 = vshll.u32 %v14017_v43, 16  ;;  %v14051_v38 = vld [vmem:[%s13774_s10 + $0xb0] sm:$0x1] }
  0x4a   : > { %12328 = vmatprep.mubr.msk.bf16.mxu0 %vm766_vm3, %v10964_v22  ;;  %v654_v49 = vshll.u32 %v14029_v53, 16  ;;  %v628_v60 = vrot.slane %v627_v31, 4  ;;  %v637_v62 = vor.u32 %v636_v14, %v632_v33  ;;  %v642_v54 = vrot.slane %v640_v39, 5  ;;  %17873 = vst [vmem:[#allocation11_spill] sm:$0xff] %v14051_v38 }
  0x4b   : > { %v647_v7 = vrot.slane %v645_v37, 4  ;;  %v619_v16 = vsel %vm13809_vm4, %v614_v35, %v618_v61  ;;  %v650_v20 = vrot.slane %v648_v45, 5  ;;  %v658_v22 = vshrl.u32 %v14029_v53, 16 }
  0x4c   : > { %v656_v42 = vrot.slane %v654_v49, 5  ;;  %v10965_v6 = vcombine.low %v609_v34, %v619_v16  ;;  %v633_v24 = vsel %vm13809_vm4, %v628_v60, %v632_v33  ;;  %v638_v44 = vrot.slane %v637_v62, 4  ;;  %v14064_v49 = vld [vmem:[%s13774_s10 + $0xb4] sm:$0xf] }
  0x4d   : > { %v664_v31 = vshll.u32 %v14032_v25, 16  ;;  %v651_v14 = vor.u32 %v650_v20, %v647_v7  ;;  %v660_v37 = vrot.slane %v658_v22, 4  ;;  %v669_v39 = vshrl.u32 %v14037_v8, 16  ;;  %v14067_v20 = vld [vmem:[%s13774_s10 + $0xb8] sm:$0xf] }
  0x4e   : > { %v672_v61 = vshll.u32 %v14037_v8, 16  ;;  %12329 = vmatmul.mubr.msk.bf16.gmra.mrb[20].mxu0 %vm766_vm3, %v10965_v6  ;;  %v643_v35 = vsel %vm13809_vm4, %v638_v44, %v642_v54  ;;  %v678_v45 = vshll.u32 %v14045_v55, 16  ;;  %v682_v33 = vshrl.u32 %v14045_v55, 16 }
  0x4f   : > { %v666_v34 = vrot.slane %v664_v31, 5  ;;  %v10966_v60 = vcombine.low %v633_v24, %v643_v35  ;;  %v652_v62 = vrot.slane %v651_v14, 4  ;;  %v661_v7 = vor.u32 %v660_v37, %v656_v42 }
  0x50   : > { %v671_v16 = vrot.slane %v669_v39, 4  ;;  %v674_v22 = vrot.slane %v672_v61, 5  ;;  %v680_v25 = vrot.slane %v678_v45, 5  ;;  %v684_v5 = vrot.slane %v682_v33, 4 }
  0x51   : > { %v688_v6 = vshll.u32 %v14051_v38, 16  ;;  %12332 = vmatprep.mubr.msk.bf16.mxu0 %vm766_vm3, %v10966_v60  ;;  %v657_v44 = vsel %vm13809_vm4, %v652_v62, %v656_v42  ;;  %v662_v54 = vrot.slane %v661_v7, 4  ;;  %v693_v24 = vshrl.u32 %v14064_v49, 16 }
  0x52   : > { %v696_v31 = vshll.u32 %v14064_v49, 16  ;;  %v675_v14 = vor.u32 %v674_v22, %v671_v16  ;;  %v685_v37 = vor.u32 %v684_v5, %v680_v25  ;;  %v702_v61 = vshll.u32 %v14067_v20, 16 }
  0x53   : > { %v690_v39 = vrot.slane %v688_v6, 5  ;;  %v667_v35 = vsel %vm13809_vm4, %v662_v54, %v666_v34  ;;  %v695_v45 = vrot.slane %v693_v24, 4  ;;  %v706_v60 = vshrl.u32 %v14067_v20, 16 }
  0x54   : > { %v698_v33 = vrot.slane %v696_v31, 5  ;;  %v10967_v38 = vcombine.low %v657_v44, %v667_v35  ;;  %v676_v11 = vrot.slane %v675_v14, 4  ;;  %v686_v42 = vrot.slane %v685_v37, 4  ;;  %v1281_v35 = vld [vmem:[%s13774_s10 + $0x6c] sm:$0xe] }
  0x55   : > { %v704_v62 = vrot.slane %v702_v61, 5  ;;  %v708_v48 = vrot.slane %v706_v60, 4  ;;  %v712_v16 = vshll.u32 %v14071_v40, 16  ;;  %v10987_v5 = vcombine.low %v13788_v10, %v13791_v12 }
  0x56   : > { %v699_v7 = vor.u32 %v698_v33, %v695_v45  ;;  %v1335_v22 = vrot.slane %v13794_v13, 5  ;;  %12333 = vmatmul.mubr.msk.bf16.gmra.mrb[24].mxu0 %vm766_vm3, %v10967_v38  ;;  %v681_v34 = vsel %vm13809_vm4, %v676_v11, %v680_v25  ;;  %v691_v6 = vsel %vm13809_vm4, %v686_v42, %v690_v39  ;;  %v1273_v25 = vld [vmem:[%s13774_s10 + $0xc] sm:$0xe]  ;;  %v1280_v33 = vld [vmem:[%s13774_s10 + $0x60] sm:$0xe] }
  0x57   : > { %v10989_v44 = vcombine.low %v13828_v47, %v13831_v52  ;;  %v10968_v54 = vcombine.low %v681_v34, %v691_v6  ;;  %v709_v31 = vor.u32 %v708_v48, %v704_v62  ;;  %v714_v14 = vrot.slane %v712_v16, 5  ;;  %v1275_v6 = vld [vmem:[%s13774_s10 + $0x24] sm:$0xe]  ;;  %v1284_v38 = vld [vmem:[%s13774_s10 + $0x90] sm:$0xe] }
  0x58   : > { %v700_v24 = vrot.slane %v699_v7, 4  ;;  %v10990_v37 = vcombine.low %v13846_v2, %v13849_v9  ;;  %v1276_v7 = vld [vmem:[%s13774_s10 + $0x30] sm:$0xe]  ;;  %v1356_v60 = vrot.slane %v13862_v21, 5  ;;  %v17884_v2 = vld [vmem:[#allocation9_spill] sm:$0xff] }
  0x59   : > { %12336 = vmatprep.mubr.msk.bf16.mxu0 %vm766_vm3, %v10968_v54  ;;  %v710_v39 = vrot.slane %v709_v31, 4  ;;  %v17876_v31 = vrot.slane %v13791_v12, 5 }
  0x5a   : > { %v705_v48 = vsel %vm13809_vm4, %v700_v24, %v704_v62  ;;  %v11019_v24 = vrot.slane %v1273_v25, 9  ;;  %v11021_v25 = vrot.slane %v1275_v6, 9  ;;  %v11022_v6 = vrot.slane %v1276_v7, 9 }
  0x5b   : > { %v715_v62 = vsel %vm13809_vm4, %v710_v39, %v714_v14  ;;  %v1334_v14 = vrot.slane %v17876_v31, 4  ;;  %v17877_v39 = vcombine.low %v13777_v3, %v13780_v4  ;;  %v1278_v4 = vld [vmem:[%s13774_s10 + $0x48] sm:$0xe]  ;;  %v10988_v3 = vcombine.low %v13805_v27, %v13814_v32 }
  0x5c   : > { %v10969_v34 = vcombine.low %v705_v48, %v715_v62  ;;  %v17878_v48 = vmov %v17876_v31  ;;  %v1346_v31 = vrot.slane %v13831_v52, 5  ;;  %v1363_v32 = vrot.slane %v13883_v46, 5 }
  0x5d   : > { %v14139_v62 = vsel %vm14124_vm7, %v11019_v24, %v17878_v48  ;;  %v14143_v16 = vsel %vm14124_vm7, %v1334_v14, %v1335_v22  ;;  %v1349_v24 = vrot.slane %v13838_v59, 5  ;;  %v1279_v48 = vld [vmem:[%s13774_s10 + $0x54] sm:$0xe]  ;;  %v1534_v22 = vsel %vm815_vm0, %v13856_v18, 0 }
  0x5e   : > { %12337 = vmatmul.mubr.msk.bf16.gmra.mrb[28].mxu0 %vm766_vm3, %v10969_v34  ;;  %v1277_v34 = vld [vmem:[%s13774_s10 + $0x3c] sm:$0xe]  ;;  %v1348_v42 = vrot.slane %v1346_v31, 4  ;;  %v1353_v14 = vrot.slane %v13849_v9, 5  ;;  %v1360_v18 = vrot.slane %v13878_v41, 5  ;;  %v1370_v46 = vrot.slane %v13902_v15, 5 }
  0x5f   : > { %12342 = vmatprep.mubr.msk.bf16.mxu0 %vm766_vm3, %v17877_v39  ;;  %v14153_v39 = vsel %vm14124_vm7, %v11021_v25, %v1346_v31  ;;  %v14166_v25 = vld [vmem:[%s17755_s1 + $0x6] sm:$0x3]  ;;  %v11023_v31 = vrot.slane %v1277_v34, 9  ;;  %v11024_v34 = vrot.slane %v1278_v4, 9  ;;  %v1412_v9 = vrot.slane %v17884_v2, 5  ;;  %v17885_v2 = vld [vmem:[#allocation10_spill] sm:$0xff] }
  0x60   : > { %v14170_v59 = vsel %vm14124_vm7, %v1348_v42, %v1349_v24  ;;  %v14177_v21 = vsel %vm14124_vm7, %v11022_v6, %v1353_v14  ;;  %v1355_v27 = vrot.slane %v1353_v14, 4  ;;  %v1362_v42 = vrot.slane %v1360_v18, 4 }
  0x61   : > { %v14183_v45 = vsel %vm14124_vm7, %v11023_v31, %v1360_v18  ;;  %v1367_v24 = vrot.slane %v13897_v63, 5  ;;  %v11025_v14 = vrot.slane %v1279_v48, 9  ;;  %v1374_v31 = vrot.slane %v13915_v30, 5 }
  0x62   : > { %v14193_v6 = vsel %vm14124_vm7, %v1355_v27, %v1356_v60  ;;  %v14202_v10 = vsel %vm14124_vm7, %v1362_v42, %v1363_v32  ;;  %v1282_v60 = vld [vmem:[%s13774_s10 + $0x78] sm:$0xe]  ;;  %v1283_v27 = vld [vmem:[%s13774_s10 + $0x84] sm:$0xe]  ;;  %v11026_v42 = vrot.slane %v1280_v33, 9  ;;  %v1419_v47 = vrot.slane %v17885_v2, 5 }
  0x63   : > { %v14206_v12 = vsel %vm14124_vm7, %v11024_v34, %v1367_v24  ;;  %v1376_v48 = vrot.slane %v1374_v31, 4  ;;  %v1381_v34 = vrot.slane %v13934_v56, 5  ;;  %v17887_v2 = vcombine.low %v13870_v36, %v13878_v41 }
  0x65   : > { %v14236_v33 = vsel %vm14124_vm7, %v11026_v42, %v1381_v34  ;;  %v11029_v42 = vrot.slane %v1283_v27, 9 }
  0x66   : > { %12343 = vmatmul.mubr.msk.bf16.vlgmr.msra.gmra.mrb[0].mxu0 %vm766_vm3, %v10987_v5  ;;  %v1369_v5 = vrot.slane %v1367_v24, 4  ;;  %v17880_v24 = vld [vmem:[#allocation5_spill] sm:$0xff] }
  0x67   : > { %12375 = vmatpush3.bf16.msra.mxu0 %v1534_v22  ;;  %12346 = vmatprep.mubr.msk.bf16.mxu0 %vm766_vm3, %v10988_v3  ;;  %v14215_v3 = vsel %vm14124_vm7, %v11025_v14, %v1374_v31  ;;  %v17879_v22 = vld [vmem:[#allocation4_spill] sm:$0xff]  ;;  %v1384_v4 = vrot.slane %v17880_v24, 5  ;;  %v11027_v31 = vrot.slane %v1281_v35, 9  ;;  %v17881_v24 = vld [vmem:[#allocation6_spill] sm:$0xff]  ;;  %v1395_v35 = vrot.slane %v13972_v1, 5 }
  0x68   : > { %13565 = vmatprep.subr.msk.bf16.mxu0 %vm815_vm0, %v14166_v25  ;;  %v1377_v18 = vrot.slane %v17879_v22, 5  ;;  %v14221_v32 = vsel %vm14124_vm7, %v1369_v5, %v1370_v46  ;;  %v1388_v22 = vrot.slane %v13952_v26, 5  ;;  %v1383_v5 = vrot.slane %v1381_v34, 4  ;;  %v17882_v46 = vld [vmem:[#allocation7_spill] sm:$0xff] }
  0x69   : > { %v1391_v7 = vrot.slane %v17881_v24, 5  ;;  %v1398_v11 = vrot.slane %v17882_v46, 5  ;;  %v1402_v34 = vrot.slane %v13987_v29, 5  ;;  %v1397_v27 = vrot.slane %v1395_v35, 4 }
  0x6a   : > { %v14229_v14 = vsel %vm14124_vm7, %v1376_v48, %v1377_v18  ;;  %v14241_v15 = vsel %vm14124_vm7, %v11027_v31, %v1388_v22  ;;  %v1390_v48 = vrot.slane %v1388_v22, 4  ;;  %v11028_v18 = vrot.slane %v1282_v60, 9  ;;  %v1285_v22 = vld [vmem:[%s13774_s10 + $0x9c] sm:$0xe] }
  0x6b   : > { %v14246_v61 = vsel %vm14124_vm7, %v1383_v5, %v1384_v4  ;;  %v14274_v52 = vsel %vm14124_vm7, %v11029_v42, %v1402_v34  ;;  %v14279_v5 = vsel %vm14124_vm7, %v1397_v27, %v1398_v11  ;;  %v11030_v24 = vrot.slane %v1284_v38, 9  ;;  %v17886_v11 = vld [vmem:[#allocation11_spill] sm:$0xff] }
  0x6c   : > { %v14259_v31 = vsel %vm14124_vm7, %v1390_v48, %v1391_v7  ;;  %v14263_v4 = vsel %vm14124_vm7, %v11028_v18, %v1395_v35  ;;  %v17883_v7 = vld [vmem:[#allocation8_spill] sm:$0xff]  ;;  %v1409_v48 = vrot.slane %v14004_v0, 5  ;;  %v11031_v42 = vrot.slane %v1285_v22, 9 }
  0x6d   : > { %v1405_v46 = vrot.slane %v17883_v7, 5  ;;  %v1287_v7 = vld [vmem:[%s13774_s10 + $0xb4] sm:$0xe]  ;;  %v1423_v22 = vrot.slane %v14045_v55, 5  ;;  %v1426_v13 = vrot.slane %v17886_v11, 5  ;;  %v17888_v11 = vcombine.low %v13891_v57, %v13897_v63 }
  0x6e   : > { %12347 = vmatmul.mubr.msk.bf16.gmra.mrb[4].mxu0 %vm766_vm3, %v10989_v44  ;;  %v1404_v44 = vrot.slane %v1402_v34, 4  ;;  %v1416_v34 = vrot.slane %v14029_v53, 5  ;;  %v14296_v38 = vsel %vm14124_vm7, %v11030_v24, %v1409_v48  ;;  %v1411_v27 = vrot.slane %v1409_v48, 4 }
  0x6f   : > { %12350 = vmatprep.mubr.msk.bf16.mxu0 %vm766_vm3, %v10990_v37  ;;  %v1286_v37 = vld [vmem:[%s13774_s10 + $0xa8] sm:$0xe]  ;;  %v11033_v28 = vrot.slane %v1287_v7, 9  ;;  %v1430_v24 = vrot.slane %v14067_v20, 5  ;;  %v17891_v57 = vcombine.low %v13949_v19, %v13952_v26  ;;  %v17892_v63 = vcombine.low %v13966_v51, %v13972_v1  ;;  %v1272_v19 = vld [vmem:[%s13774_s10] sm:$0xe] }
  0x70   : > { %v14288_v35 = vsel %vm14124_vm7, %v1404_v44, %v1405_v46  ;;  %v14301_v18 = vsel %vm14124_vm7, %v11031_v42, %v1416_v34  ;;  %v1418_v44 = vrot.slane %v1416_v34, 4  ;;  %v11032_v46 = vrot.slane %v1286_v37, 9  ;;  %v13682_v26 = vld [vmem:[%s13774_s10 + $0x8] sm:$0x1] }
  0x71   : > { %v14306_v60 = vsel %vm14124_vm7, %v1411_v27, %v1412_v9  ;;  %v1425_v34 = vrot.slane %v1423_v22, 4  ;;  %v1431_v7 = vsel %vm14124_vm7, %v11033_v28, %v1430_v24  ;;  %v17889_v28 = vcombine.low %v13912_v23, %v13915_v30 }
  0x72   : > { %v11047_v48 = vcombine.low %v14296_v38, %v14306_v60  ;;  %v1420_v42 = vsel %vm14124_vm7, %v1418_v44, %v1419_v47  ;;  %v1424_v37 = vsel %vm14124_vm7, %v11032_v46, %v1423_v22  ;;  %v1432_v60 = vrot.slane %v1430_v24, 4  ;;  %v1274_v46 = vld [vmem:[%s13774_s10 + $0x18] sm:$0xe] }
  0x73   : > { %v11048_v9 = vcombine.low %v14301_v18, %v1420_v42  ;;  %v1433_v47 = vrot.slane %v14071_v40, 5  ;;  %v1427_v36 = vsel %vm14124_vm7, %v1425_v34, %v1426_v13  ;;  %v17890_v40 = vcombine.low %v13928_v50, %v13934_v56  ;;  %v13681_v50 = vld [vmem:[%s13774_s10 + $0x4] sm:$0xf] }
  0x74   : > { %v11049_v41 = vcombine.low %v1424_v37, %v1427_v36  ;;  %v17893_v23 = vcombine.low %v13980_v17, %v13987_v29  ;;  %v17894_v30 = vcombine.low %v13998_v58, %v14004_v0  ;;  %v1325_v56 = vrot.slane %v13681_v50, 5  ;;  %v13683_v0 = vld [vmem:[%s13774_s10 + $0x1c] sm:$0xf] }
  0x75   : > { %v1434_v18 = vsel %vm14124_vm7, %v1432_v60, %v1433_v47  ;;  %v1328_v13 = vrot.slane %v13682_v26, 5  ;;  %v11018_v51 = vrot.slane %v1272_v19, 9  ;;  %v17895_v27 = vcombine.low %v14017_v43, %v14029_v53  ;;  %v13684_v43 = vld [vmem:[%s13774_s10 + $0x20] sm:$0x1]  ;;  %v13614_v47 = vld [vmem:[%s13774_s10 + $0x54] sm:$0xff]  }
  0x76   : > { %12351 = vmatmul.mubr.msk.bf16.gmra.mrb[8].mxu0 %vm766_vm3, %v17887_v2  ;;  %v11050_v38 = vcombine.low %v1431_v7, %v1434_v18  ;;  %v1327_v1 = vrot.slane %v1325_v56, 4  ;;  %v17896_v17 = vcombine.low %v14037_v8, %v14045_v55  ;;  %v1339_v44 = vrot.slane %v13683_v0, 5  ;;  %v11180_v7 = vld [vmem:[%s17755_s1 + $0x8] sm:$0x3]  ;;  %v14492_v19 = vld [vmem:[%s13774_s10 + $0x10] sm:$0xf] }
  0x77   : > { %12354 = vmatprep.mubr.msk.bf16.mxu0 %vm766_vm3, %v17888_v11  ;;  %v1326_v29 = vsel %vm14124_vm7, %v11018_v51, %v1325_v56  ;;  %v11020_v24 = vrot.slane %v1274_v46, 9  ;;  %v1342_v53 = vrot.slane %v13684_v43, 5  ;;  %v17897_v37 = vcombine.low %v14064_v49, %v14067_v20  ;;  %v14478_v18 = vld [vmem:[%s13774_s10 + $0x68] sm:$0x1]  ;;  %v13616_v56 = vld [vmem:[%s13774_s10 + $0x6c] sm:$0xff]   ;;  %v13623_v51 = vld [vmem:[%s13774_s10 + $0xc0] sm:$0xff]  }
  0x78   : > { %v1329_v58 = vsel %vm14124_vm7, %v1327_v1, %v1328_v13  ;;  %v1341_v42 = vrot.slane %v1339_v44, 4  ;;  %v1893_v2 = vsel %vm815_vm0, %v14166_v25, 0  ;;  %v17898_v49 = vcombine.low %v14139_v62, %v14143_v16  ;;  %v11135_v13 = vld [vmem:[%s13774_s10 + $0x18] sm:$0xf]  ;;  %v14508_v0 = vld [vmem:[%s13774_s10 + $0x80] sm:$0x1] }
  0x79   : > { %v11035_v22 = vcombine.low %v1326_v29, %v1329_v58  ;;  %v1340_v8 = vsel %vm14124_vm7, %v11020_v24, %v1339_v44  ;;  %v17899_v20 = vcombine.low %v14153_v39, %v14170_v59  ;;  %v17900_v25 = vcombine.low %v14177_v21, %v14193_v6  ;;  %v14505_v58 = vld [vmem:[%s13774_s10 + $0x7c] sm:$0xf] }
  0x7a   : > { %v1343_v55 = vsel %vm14124_vm7, %v1341_v42, %v1342_v53  ;;  %v17901_v16 = vcombine.low %v14183_v45, %v14202_v10  ;;  %v17902_v62 = vcombine.low %v14206_v12, %v14221_v32  ;;  %v17903_v39 = vcombine.low %v14215_v3, %v14229_v14  ;;  %v13609_v10 = vld [vmem:[%s13774_s10 + $0x18] sm:$0xff]   ;;  %v13610_v12 = vld [vmem:[%s13774_s10 + $0x24] sm:$0xff]   ;;  %v13611_v32 = vld [vmem:[%s13774_s10 + $0x30] sm:$0xff]  }
  0x7b   : > { %v11037_v34 = vcombine.low %v1340_v8, %v1343_v55  ;;  %v17904_v59 = vcombine.low %v14236_v33, %v14246_v61  ;;  %v17905_v45 = vcombine.low %v14241_v15, %v14259_v31  ;;  %v17906_v21 = vcombine.low %v14263_v4, %v14279_v5  ;;  %v13608_v61 = vld [vmem:[%s13774_s10 + $0xc] sm:$0xff]   ;;  %v14442_v3 = vld [vmem:[%s17755_s1 + $0xa] sm:$0x3]  ;;  %v13612_v14 = vld [vmem:[%s13774_s10 + $0x3c] sm:$0xff]  }
  0x7c   : > { %v17907_v6 = vcombine.low %v14274_v52, %v14288_v35  ;;  %v2619_v15 = vsel %vm815_vm0, %v11180_v7, 0  ;;  %v14452_v33 = vld [vmem:[%s13774_s10 + $0x4c] sm:$0xf]  ;;  %v14455_v31 = vld [vmem:[%s13774_s10 + $0x50] sm:$0x1]  ;;  %v2150_v29 = vshrl.u32 %v14492_v19, 16 }
  0x7d   : > { %v11218_v4 = vld [vmem:[%s13774_s10 + $0x48] sm:$0xe]  ;;  %v2915_v52 = vrot.slane %v14452_v33, 5  ;;  %v2918_v5 = vrot.slane %v14455_v31, 5  ;;  %v2161_v44 = vshrl.u32 %v11135_v13, 16  ;;  %v2164_v46 = vshll.u32 %v11135_v13, 16 }
  0x7e   : > { %12355 = vmatmul.mubr.msk.bf16.gmra.mrb[12].mxu0 %vm766_vm3, %v17889_v28  ;;  %v11234_v35 = vrot.slane %v11218_v4, 9  ;;  %v2943_v24 = vrot.slane %v14505_v58, 5  ;;  %v2946_v42 = vrot.slane %v14508_v0, 5  ;;  %v14515_v43 = vld [vmem:[%s13774_s10 + $0x1c] sm:$0xf] }
  0x7f   : > { %12358 = vmatprep.mubr.msk.bf16.mxu0 %vm766_vm3, %v17890_v40  ;;  %v2932_v40 = vrot.slane %v14478_v18, 5  ;;  %v13617_v55 = vld [vmem:[%s13774_s10 + $0x78] sm:$0xff]  }
  0x80   : > { %v14464_v60 = vsel %vm14124_vm7, %v11234_v35, %v2915_v52  ;;  %v2945_v8 = vrot.slane %v2943_v24, 4  ;;  %v14550_v4 = vld [vmem:[%s13774_s10 + $0x98] sm:$0x1]  ;;  %v11224_v35 = vld [vmem:[%s13774_s10 + $0x90] sm:$0xe] }
  0x86   : > { %12359 = vmatmul.mubr.msk.bf16.gmra.mrb[16].mxu0 %vm766_vm3, %v17891_v57 }
  0x87   : > { %12362 = vmatprep.mubr.msk.bf16.mxu0 %vm766_vm3, %v17892_v63 }
  0x8e   : > { %12363 = vmatmul.mubr.msk.bf16.gmra.mrb[20].mxu0 %vm766_vm3, %v17893_v23  ;;  %v13615_v23 = vld [vmem:[%s13774_s10 + $0x60] sm:$0xff]  }
  0x8f   : > { %12366 = vmatprep.mubr.msk.bf16.mxu0 %vm766_vm3, %v17894_v30  ;;  %v11132_v30 = vld [vmem:[%s13774_s10 + $0xc] sm:$0xf] }
  0x90   : > { %v2137_v1 = vshrl.u32 %v11132_v30, 16 }
  0x96   : > { %12367 = vmatmul.mubr.msk.bf16.gmra.mrb[24].mxu0 %vm766_vm3, %v17895_v27  ;;  %v2140_v27 = vshll.u32 %v11132_v30, 16 }
  0x97   : > { %12370 = vmatprep.mubr.msk.bf16.mxu0 %vm766_vm3, %v17896_v17  ;;  %v2146_v17 = vshll.u32 %v14492_v19, 16 }
  0x9e   : > { %12371 = vmatmul.mubr.msk.bf16.gmra.mrb[28].mxu0 %vm766_vm3, %v17897_v37  ;;  %v2139_v37 = vrot.slane %v2137_v1, 4  ;;  %v11141_v1 = vld [vmem:[%s13774_s10 + $0x30] sm:$0xf] }
  0x9f   : > { %12376 = vmatprep.mubr.msk.bf16.mxu0 %vm766_vm3, %v11035_v22  ;;  %v11222_v22 = vld [vmem:[%s13774_s10 + $0x78] sm:$0xe] }
  0xa0   : > { %v11238_v53 = vrot.slane %v11222_v22, 9 }
  0xa6   : > { %12377 = vmatmul.mubr.msk.bf16.vlgmr.msra.gmra.mrb[0].mxu0 %vm766_vm3, %v17898_v49  ;;  %v2152_v49 = vrot.slane %v2150_v29, 4  ;;  %v13620_v29 = vld [vmem:[%s13774_s10 + $0x9c] sm:$0xff]  }
  0xa7   : > { %12409 = vmatpush3.bf16.msra.mxu0 %v1893_v2  ;;  %12380 = vmatprep.mubr.msk.bf16.mxu0 %vm766_vm3, %v11037_v34  ;;  %v14519_v34 = vld [vmem:[%s13774_s10 + $0x14] sm:$0x1]  ;;  %v2142_v2 = vrot.slane %v2140_v27, 5 }
  0xa8   : > { %13566 = vmatprep.subr.msk.bf16.mxu0 %vm815_vm0, %v11180_v7  ;;  %v14521_v7 = vrot.slane %v2146_v17, 5  ;;  %v14564_v27 = vld [vmem:[%s13774_s10 + $0x34] sm:$0xf] }
  0xae   : > { %12381 = vmatmul.mubr.msk.bf16.gmra.mrb[4].mxu0 %vm766_vm3, %v17899_v20  ;;  %v14525_v20 = vsel %vm14124_vm7, %v11238_v53, %v2943_v24 }
  0xaf   : > { %12384 = vmatprep.mubr.msk.bf16.mxu0 %vm766_vm3, %v17900_v25  ;;  %17909 = vst [vmem:[#allocation5_spill] sm:$0xff] %v14525_v20  ;;  %v13618_v25 = vld [vmem:[%s13774_s10 + $0x84] sm:$0xff]  }
  0xb6   : > { %12385 = vmatmul.mubr.msk.bf16.gmra.mrb[8].mxu0 %vm766_vm3, %v17901_v16  ;;  %v2163_v16 = vrot.slane %v2161_v44, 4 }
  0xb7   : > { %12388 = vmatprep.mubr.msk.bf16.mxu0 %vm766_vm3, %v17902_v62  ;;  %v2166_v62 = vrot.slane %v2164_v46, 5 }
  0xbe   : > { %12389 = vmatmul.mubr.msk.bf16.gmra.mrb[12].mxu0 %vm766_vm3, %v17903_v39  ;;  %v2170_v39 = vshll.u32 %v14515_v43, 16 }
  0xbf   : > { %12392 = vmatprep.mubr.msk.bf16.mxu0 %vm766_vm3, %v17904_v59  ;;  %v14531_v59 = vsel %vm14124_vm7, %v2945_v8, %v2946_v42  ;;  %v14645_v8 = vld [vmem:[%s13774_s10 + $0xc4] sm:$0xf] }
  0xc0   : > { %17910 = vst [vmem:[#allocation6_spill] sm:$0xff] %v14531_v59 }
  0xc6   : > { %12393 = vmatmul.mubr.msk.bf16.gmra.mrb[16].mxu0 %vm766_vm3, %v17905_v45  ;;  %v2174_v45 = vshrl.u32 %v14515_v43, 16 }
  0xc7   : > { %12396 = vmatprep.mubr.msk.bf16.mxu0 %vm766_vm3, %v17906_v21 }
  0xce   : > { %12397 = vmatmul.mubr.msk.bf16.gmra.mrb[20].mxu0 %vm766_vm3, %v17907_v6  ;;  %v2156_v6 = vshll.u32 %v14519_v34, 16 }
  0xcf   : > { %12400 = vmatprep.mubr.msk.bf16.mxu0 %vm766_vm3, %v11047_v48  ;;  %v2917_v48 = vrot.slane %v2915_v52, 4  ;;  %v2167_v52 = vor.u32 %v2166_v62, %v2163_v16  ;;  %v2218_v16 = vshll.u32 %v14564_v27, 16 }
  0xd0   : > { %v2158_v46 = vrot.slane %v2156_v6, 5  ;;  %v14592_v6 = vld [vmem:[%s13774_s10 + $0xb0] sm:$0x1] }
  0xd1   : > { %v14469_v11 = vsel %vm14124_vm7, %v2917_v48, %v2918_v5  ;;  %v14553_v5 = vrot.slane %v2170_v39, 5  ;;  %v14571_v22 = vrot.slane %v2167_v52, 4  ;;  %v2222_v39 = vshrl.u32 %v14564_v27, 16  ;;  %v11226_v52 = vld [vmem:[%s13774_s10 + $0xa8] sm:$0xe] }
  0xd6   : > { %12401 = vmatmul.mubr.msk.bf16.gmra.mrb[24].mxu0 %vm766_vm3, %v11048_v9  ;;  %v13613_v9 = vld [vmem:[%s13774_s10 + $0x48] sm:$0xff]  }
  0xd7   : > { %12404 = vmatprep.mubr.msk.bf16.mxu0 %vm766_vm3, %v11049_v41  ;;  %v14475_v41 = vld [vmem:[%s13774_s10 + $0x64] sm:$0xf] }
  0xd8   : > { %v2929_v28 = vrot.slane %v14475_v41, 5 }
  0xda   : > { %v2931_v63 = vrot.slane %v2929_v28, 4 }
  0xdc   : > { %v14496_v26 = vsel %vm14124_vm7, %v2931_v63, %v2932_v40  ;;  %v11240_v40 = vrot.slane %v11224_v35, 9 }
  0xdd   : > { %17908 = vst [vmem:[#allocation4_spill] sm:$0xff] %v14496_v26 }
  0xde   : > { %12405 = vmatmul.mubr.msk.bf16.gmra.mrb[28].mxu0 %vm766_vm3, %v11050_v38  ;;  %v11220_v38 = vld [vmem:[%s13774_s10 + $0x60] sm:$0xe] }
  0xdf   : > { %12410 = vmatprep.mubr.msk.bf16.mxu0 %vm766_vm3, %v13608_v61  ;;  %v11236_v57 = vrot.slane %v11220_v38, 9  ;;  %v14538_v61 = vld [vmem:[%s13774_s10 + $0x20] sm:$0x1] }
  0xe0   : > { %v2180_v63 = vshll.u32 %v14538_v61, 16 }
  0xe1   : > { %v14488_v50 = vsel %vm14124_vm7, %v11236_v57, %v2929_v28  ;;  %v13619_v57 = vld [vmem:[%s13774_s10 + $0x90] sm:$0xff]  }
  0xe6   : > { %12411 = vmatmul.mubr.msk.bf16.vlgmr.msra.gmra.mrb[0].mxu0 %vm766_vm3, %v13609_v10  ;;  %v11138_v10 = vld [vmem:[%s13774_s10 + $0x24] sm:$0xf] }
  0xe7   : > { %12443 = vmatpush3.bf16.msra.mxu0 %v2619_v15  ;;  %12414 = vmatprep.mubr.msk.bf16.mxu0 %vm766_vm3, %v13610_v12  ;;  %v2143_v12 = vor.u32 %v2142_v2, %v2139_v37  ;;  %v2153_v15 = vor.u32 %v2152_v49, %v14521_v7  ;;  %v2185_v38 = vshrl.u32 %v11138_v10, 16  ;;  %v2188_v28 = vshll.u32 %v11138_v10, 16 }
  0xe8   : > { %13567 = vmatprep.subr.msk.bf16.mxu0 %vm815_vm0, %v14442_v3  ;;  %v2209_v49 = vshrl.u32 %v11141_v1, 16 }
  0xe9   : > { %v2154_v44 = vrot.slane %v2153_v15, 4  ;;  %v2187_v53 = vrot.slane %v2185_v38, 4  ;;  %v2190_v37 = vrot.slane %v2188_v28, 5  ;;  %v14598_v15 = vrot.slane %v2180_v63, 5  ;;  %v11144_v28 = vld [vmem:[%s13774_s10 + $0x3c] sm:$0xf] }
  0xeb   : > { %v2191_v38 = vor.u32 %v2190_v37, %v2187_v53  ;;  %v2233_v37 = vshrl.u32 %v11144_v28, 16 }
  0xee   : > { %12415 = vmatmul.mubr.msk.bf16.gmra.mrb[4].mxu0 %vm766_vm3, %v13611_v32  ;;  %v14544_v32 = vld [vmem:[%s13774_s10 + $0x28] sm:$0xf] }
  0xef   : > { %12418 = vmatprep.mubr.msk.bf16.mxu0 %vm766_vm3, %v13612_v14  ;;  %v14547_v14 = vld [vmem:[%s13774_s10 + $0x94] sm:$0xf]  ;;  %v2198_v13 = vshrl.u32 %v14544_v32, 16 }
  0xf0   : > { %v2957_v48 = vrot.slane %v14547_v14, 5 }
  0xf1   : > { %v2200_v62 = vrot.slane %v2198_v13, 4 }
  0xf2   : > { %v2959_v30 = vrot.slane %v2957_v48, 4  ;;  %v14568_v17 = vsel %vm14124_vm7, %v11240_v40, %v2957_v48  ;;  %v2974_v48 = vrot.slane %v14592_v6, 5  ;;  %v11242_v40 = vrot.slane %v11226_v52, 9 }
  0xf3   : > { %17911 = vst [vmem:[#allocation7_spill] sm:$0xff] %v14568_v17 }
  0xf6   : > { %12419 = vmatmul.mubr.msk.bf16.gmra.mrb[8].mxu0 %vm766_vm3, %v13613_v9  ;;  %v2960_v9 = vrot.slane %v14550_v4, 5 }
  0xf7   : > { %12422 = vmatprep.mubr.msk.bf16.mxu0 %vm766_vm3, %v13614_v47  ;;  %v2176_v47 = vrot.slane %v2174_v45, 4  ;;  %v14589_v45 = vld [vmem:[%s13774_s10 + $0xac] sm:$0xf] }
  0xf8   : > { %v14575_v24 = vsel %vm14124_vm7, %v2959_v30, %v2960_v9  ;;  %v2971_v35 = vrot.slane %v14589_v45, 5  ;;  %v2159_v9 = vsel %vm13809_vm4, %v2154_v44, %v2158_v46  ;;  %v2224_v44 = vrot.slane %v2222_v39, 4 }
  0xf9   : > { %17912 = vst [vmem:[#allocation8_spill] sm:$0xff] %v14575_v24  ;;  %v2177_v42 = vor.u32 %v2176_v47, %v14553_v5 }
  0xfa   : > { %v2973_v30 = vrot.slane %v2971_v35, 4  ;;  %v14621_v46 = vsel %vm14124_vm7, %v11242_v40, %v2971_v35  ;;  %v2192_v35 = vrot.slane %v2191_v38, 4  ;;  %v14648_v38 = vld [vmem:[%s13774_s10 + $0xc8] sm:$0x1] }
  0xfb   : > { %v14605_v47 = vrot.slane %v2177_v42, 4  ;;  %17914 = vst [vmem:[#allocation9_spill] sm:$0xff] %v14621_v46  ;;  %v13622_v42 = vld [vmem:[%s13774_s10 + $0xb4] sm:$0xff]   ;;  %v2266_v46 = vshll.u32 %v14452_v33, 16 }
  0xfc   : > { %v14627_v52 = vsel %vm14124_vm7, %v2973_v30, %v2974_v48 }
  0xfd   : > { %17915 = vst [vmem:[#allocation10_spill] sm:$0xff] %v14627_v52 }
  0xfe   : > { %12423 = vmatmul.mubr.msk.bf16.gmra.mrb[12].mxu0 %vm766_vm3, %v13615_v23  ;;  %v2194_v23 = vshll.u32 %v14544_v32, 16 }
  0xff   : > { %12426 = vmatprep.mubr.msk.bf16.mxu0 %vm766_vm3, %v13616_v56  ;;  %v2144_v56 = vrot.slane %v2143_v12, 4 }
 0x100   : > { %v14583_v2 = vrot.slane %v2194_v23, 5  ;;  %v14610_v23 = vld [vmem:[%s13774_s10 + $0x40] sm:$0xf] }
 0x101   : > { %v2149_v12 = vsel %vm13809_vm4, %v2144_v56, %v14521_v7  ;;  %v13621_v56 = vld [vmem:[%s13774_s10 + $0xa8] sm:$0xff]   ;;  %v2246_v39 = vshrl.u32 %v14610_v23, 16 }
 0x102   : > { %v2201_v13 = vor.u32 %v2200_v62, %v14583_v2  ;;  %v11181_v53 = vcombine.low %v2149_v12, %v2159_v9  ;;  %v2242_v62 = vshll.u32 %v14610_v23, 16 }
 0x106   : > { %12427 = vmatmul.mubr.msk.bf16.gmra.mrb[16].mxu0 %vm766_vm3, %v13617_v55  ;;  %v14581_v55 = vld [vmem:[%s13774_s10 + $0x2c] sm:$0x1] }
 0x107   : > { %12430 = vmatprep.mubr.msk.bf16.mxu0 %vm766_vm3, %v13618_v25  ;;  %v2212_v25 = vshll.u32 %v11141_v1, 16  ;;  %v2204_v7 = vshll.u32 %v14581_v55, 16  ;;  %v14615_v1 = vld [vmem:[%s13774_s10 + $0x38] sm:$0x1] }
 0x108   : > { %v2228_v48 = vshll.u32 %v14615_v1, 16 }
 0x109   : > { %v2214_v63 = vrot.slane %v2212_v25, 5  ;;  %v11147_v25 = vld [vmem:[%s13774_s10 + $0x48] sm:$0xf]  ;;  %v2206_v9 = vrot.slane %v2204_v7, 5  ;;  %v2235_v7 = vrot.slane %v2233_v37, 4 }
 0x10a   : > { %v2257_v30 = vshrl.u32 %v11147_v25, 16  ;;  %v2260_v12 = vshll.u32 %v11147_v25, 16  ;;  %v14673_v25 = vld [vmem:[%s13774_s10 + $0x58] sm:$0xf] }
 0x10e   : > { %12431 = vmatmul.mubr.msk.bf16.gmra.mrb[20].mxu0 %vm766_vm3, %v13619_v57  ;;  %v2211_v57 = vrot.slane %v2209_v49, 4  ;;  %v2236_v49 = vshll.u32 %v11144_v28, 16 }
 0x10f   : > { %12434 = vmatprep.mubr.msk.bf16.mxu0 %vm766_vm3, %v13620_v29  ;;  %v14617_v29 = vrot.slane %v2218_v16, 5  ;;  %v2173_v16 = vsel %vm13809_vm4, %v14571_v22, %v14553_v5  ;;  %v2183_v5 = vsel %vm13809_vm4, %v14605_v47, %v14598_v15  ;;  %v2202_v22 = vrot.slane %v2201_v13, 4  ;;  %v14655_v47 = vld [vmem:[%s13774_s10 + $0x44] sm:$0x1] }
 0x110   : > { %v2215_v28 = vor.u32 %v2214_v63, %v2211_v57  ;;  %v2238_v57 = vrot.slane %v2236_v49, 5  ;;  %v11228_v63 = vld [vmem:[%s13774_s10 + $0xc0] sm:$0xe]  ;;  %v2988_v15 = vrot.slane %v14648_v38, 5  ;;  %v14657_v13 = vrot.slane %v2242_v62, 5 }
 0x111   : > { %v2225_v40 = vor.u32 %v2224_v44, %v14617_v29  ;;  %v2248_v44 = vrot.slane %v2246_v39, 4  ;;  %v11244_v21 = vrot.slane %v11228_v63, 9  ;;  %v14665_v49 = vrot.slane %v2228_v48, 5  ;;  %v11150_v39 = vld [vmem:[%s13774_s10 + $0x54] sm:$0xf] }
 0x112   : > { %v14663_v37 = vrot.slane %v2215_v28, 4  ;;  %v2207_v52 = vsel %vm13809_vm4, %v2202_v22, %v2206_v9  ;;  %v2270_v62 = vshrl.u32 %v14452_v33, 16  ;;  %v2252_v28 = vshll.u32 %v14655_v47, 16 }
 0x113   : > { %v2249_v9 = vor.u32 %v2248_v44, %v14657_v13  ;;  %v2259_v22 = vrot.slane %v2257_v30, 4  ;;  %v2262_v33 = vrot.slane %v2260_v12, 5  ;;  %v14694_v30 = vrot.slane %v2266_v46, 5 }
 0x114   : > { %v2272_v12 = vrot.slane %v2270_v62, 4  ;;  %v2221_v44 = vsel %vm13809_vm4, %v14663_v37, %v14617_v29  ;;  %v14714_v37 = vld [vmem:[%s13774_s10 + $0x70] sm:$0xf] }
 0x115   : > { %v2250_v62 = vrot.slane %v2249_v9, 4  ;;  %v2318_v9 = vshrl.u32 %v14475_v41, 16 }
 0x116   : > { %12435 = vmatmul.mubr.msk.bf16.gmra.mrb[24].mxu0 %vm766_vm3, %v13621_v56  ;;  %v2985_v56 = vrot.slane %v14645_v8, 5 }
 0x117   : > { %12438 = vmatprep.mubr.msk.bf16.mxu0 %vm766_vm3, %v13622_v42  ;;  %v2197_v42 = vsel %vm13809_vm4, %v2192_v35, %v14583_v2  ;;  %v14679_v2 = vrot.slane %v2225_v40, 4  ;;  %v2239_v35 = vor.u32 %v2238_v57, %v2235_v7  ;;  %v2290_v40 = vshll.u32 %v14673_v25, 16 }
 0x118   : > { %v2987_v36 = vrot.slane %v2985_v56, 4  ;;  %v14677_v63 = vsel %vm14124_vm7, %v11244_v21, %v2985_v56  ;;  %v2281_v21 = vshrl.u32 %v11150_v39, 16  ;;  %v2284_v56 = vshll.u32 %v11150_v39, 16 }
 0x119   : > { %17916 = vst [vmem:[#allocation11_spill] sm:$0xff] %v14677_v63  ;;  %v2294_v7 = vshrl.u32 %v14673_v25, 16  ;;  %v3089_v57 = vsel %vm815_vm0, %v14442_v3, 0  ;;  %v11153_v3 = vld [vmem:[%s13774_s10 + $0x60] sm:$0xf]  ;;  %v2240_v46 = vrot.slane %v2239_v35, 4  ;;  %v2263_v39 = vor.u32 %v2262_v33, %v2259_v22 }
 0x11a   : > { %v14684_v48 = vsel %vm14124_vm7, %v2987_v36, %v2988_v15  ;;  %v11182_v36 = vcombine.low %v2173_v16, %v2183_v5  ;;  %v11183_v15 = vcombine.low %v2197_v42, %v2207_v52  ;;  %v2254_v16 = vrot.slane %v2252_v28, 5  ;;  %v14706_v5 = vld [vmem:[%s13774_s10 + $0x5c] sm:$0x1]  ;;  %v11156_v52 = vld [vmem:[%s13774_s10 + $0x6c] sm:$0xf] }
 0x11b   : > { %17917 = vst [vmem:[#allocation3_spill] sm:$0xff] %v14684_v48  ;;  %v2283_v42 = vrot.slane %v2281_v21, 4  ;;  %v2286_v24 = vrot.slane %v2284_v56, 5  ;;  %v14711_v48 = vrot.slane %v2290_v40, 5  ;;  %v2296_v29 = vrot.slane %v2294_v7, 4 }
 0x11c   : > { %v2273_v63 = vor.u32 %v2272_v12, %v14694_v30  ;;  %v2308_v28 = vshll.u32 %v11153_v3, 16  ;;  %v2314_v35 = vshll.u32 %v14475_v41, 16  ;;  %v2332_v22 = vshll.u32 %v11156_v52, 16  ;;  %v11159_v41 = vld [vmem:[%s13774_s10 + $0x78] sm:$0xf] }
 0x11d   : > { %v2245_v33 = vsel %vm13809_vm4, %v2240_v46, %v14657_v13  ;;  %v2255_v21 = vsel %vm13809_vm4, %v2250_v62, %v2254_v16  ;;  %v2338_v56 = vshll.u32 %v14714_v37, 16  ;;  %v2342_v40 = vshrl.u32 %v14714_v37, 16 }
 0x11e   : > { %12439 = vmatmul.mubr.msk.bf16.gmra.mrb[28].mxu0 %vm766_vm3, %v13623_v51  ;;  %v2231_v51 = vsel %vm13809_vm4, %v14679_v2, %v14665_v49  ;;  %v2300_v49 = vshll.u32 %v14706_v5, 16  ;;  %v2305_v2 = vshrl.u32 %v11153_v3, 16  ;;  %v2264_v7 = vrot.slane %v2263_v39, 4 }
 0x11f   : > { %12444 = vmatprep.mubr.msk.bf16.mxu0 %vm766_vm3, %v11181_v53  ;;  %v2276_v53 = vshll.u32 %v14455_v31, 16  ;;  %v2329_v31 = vshrl.u32 %v11156_v52, 16  ;;  %v2287_v3 = vor.u32 %v2286_v24, %v2283_v42  ;;  %v2297_v17 = vor.u32 %v2296_v29, %v14711_v48  ;;  %v14732_v52 = vld [vmem:[%s17755_s1 + $0xc] sm:$0x3]  ;;  %v14739_v29 = vld [vmem:[%s13774_s10 + $0x74] sm:$0x1] }
 0x120   : > { %v2274_v13 = vrot.slane %v2273_v63, 4  ;;  %v2302_v16 = vrot.slane %v2300_v49, 5  ;;  %v2307_v46 = vrot.slane %v2305_v2, 4  ;;  %v2310_v62 = vrot.slane %v2308_v28, 5 }
 0x121   : > { %v2278_v12 = vrot.slane %v2276_v53, 5  ;;  %v14736_v39 = vrot.slane %v2314_v35, 5  ;;  %v2320_v24 = vrot.slane %v2318_v9, 4  ;;  %v2331_v53 = vrot.slane %v2329_v31, 4 }
 0x122   : > { %v2334_v42 = vrot.slane %v2332_v22, 5  ;;  %v14741_v59 = vrot.slane %v2338_v56, 5  ;;  %v2344_v20 = vrot.slane %v2342_v40, 4  ;;  %v2353_v26 = vshrl.u32 %v11159_v41, 16  ;;  %v11162_v40 = vld [vmem:[%s13774_s10 + $0x84] sm:$0xf] }
 0x123   : > { %v2356_v63 = vshll.u32 %v11159_v41, 16  ;;  %v2366_v49 = vshrl.u32 %v14505_v58, 16  ;;  %v11184_v2 = vcombine.low %v2221_v44, %v2231_v51  ;;  %v11185_v28 = vcombine.low %v2245_v33, %v2255_v21 }
 0x124   : > { %v2269_v35 = vsel %vm13809_vm4, %v2264_v7, %v14694_v30  ;;  %v2279_v9 = vsel %vm13809_vm4, %v2274_v13, %v2278_v12  ;;  %v2311_v31 = vor.u32 %v2310_v62, %v2307_v46  ;;  %v2321_v22 = vor.u32 %v2320_v24, %v14736_v39 }
 0x125   : > { %v2324_v56 = vshll.u32 %v14478_v18, 16  ;;  %v2345_v44 = vor.u32 %v2344_v20, %v14741_v59  ;;  %v2355_v51 = vrot.slane %v2353_v26, 4  ;;  %v2358_v33 = vrot.slane %v2356_v63, 5  ;;  %v11165_v63 = vld [vmem:[%s13774_s10 + $0x90] sm:$0xf] }
 0x126   : > { %12445 = vmatmul.mubr.msk.bf16.vlgmr.msra.gmra.mrb[0].mxu0 %vm766_vm3, %v11182_v36  ;;  %v2288_v36 = vrot.slane %v2287_v3, 4  ;;  %v14757_v3 = vld [vmem:[%s13774_s10 + $0x88] sm:$0xf]  ;;  %v2368_v18 = vrot.slane %v2366_v49, 4  ;;  %v2377_v12 = vshrl.u32 %v11162_v40, 16  ;;  %v2380_v41 = vshll.u32 %v11162_v40, 16 }
 0x127   : > { %12477 = vmatpush3.bf16.msra.mxu0 %v3089_v57  ;;  %12448 = vmatprep.mubr.msk.bf16.mxu0 %vm766_vm3, %v11183_v15  ;;  %v2298_v57 = vrot.slane %v2297_v17, 4  ;;  %v2362_v15 = vshll.u32 %v14505_v58, 16  ;;  %v2348_v17 = vshll.u32 %v14739_v29, 16  ;;  %v2335_v58 = vor.u32 %v2334_v42, %v2331_v53  ;;  %v14775_v49 = vld [vmem:[%s13774_s10 + $0x8c] sm:$0x1] }
 0x128   : > { %13568 = vmatprep.subr.msk.bf16.mxu0 %vm815_vm0, %v14732_v52  ;;  %v2293_v30 = vsel %vm13809_vm4, %v2288_v36, %v14711_v48  ;;  %v2386_v20 = vshll.u32 %v14757_v3, 16  ;;  %v2390_v26 = vshrl.u32 %v14757_v3, 16  ;;  %v2312_v13 = vrot.slane %v2311_v31, 4 }
 0x129   : > { %v2303_v21 = vsel %vm13809_vm4, %v2298_v57, %v2302_v16  ;;  %v14765_v7 = vrot.slane %v2362_v15, 5  ;;  %v2322_v48 = vrot.slane %v2321_v22, 4  ;;  %v2326_v46 = vrot.slane %v2324_v56, 5 }
 0x12a   : > { %v2350_v62 = vrot.slane %v2348_v17, 5  ;;  %v2336_v16 = vrot.slane %v2335_v58, 4  ;;  %v2346_v24 = vrot.slane %v2345_v44, 4  ;;  %v2359_v53 = vor.u32 %v2358_v33, %v2355_v51 }
 0x12b   : > { %v2372_v42 = vshll.u32 %v14508_v0, 16  ;;  %v11186_v36 = vcombine.low %v2269_v35, %v2279_v9  ;;  %v11187_v57 = vcombine.low %v2293_v30, %v2303_v21  ;;  %v2369_v15 = vor.u32 %v2368_v18, %v14765_v7  ;;  %v11168_v35 = vld [vmem:[%s13774_s10 + $0x9c] sm:$0xf]  ;;  %v14786_v9 = vld [vmem:[%s13774_s10 + $0xa0] sm:$0xf] }
 0x12c   : > { %v14777_v31 = vrot.slane %v2386_v20, 5  ;;  %v2392_v22 = vrot.slane %v2390_v26, 4  ;;  %v2317_v56 = vsel %vm13809_vm4, %v2312_v13, %v14736_v39  ;;  %v2327_v17 = vsel %vm13809_vm4, %v2322_v48, %v2326_v46 }
 0x12d   : > { %v2401_v0 = vshrl.u32 %v11165_v63, 16  ;;  %v2404_v40 = vshll.u32 %v11165_v63, 16  ;;  %v2341_v58 = vsel %vm13809_vm4, %v2336_v16, %v14741_v59  ;;  %v2351_v44 = vsel %vm13809_vm4, %v2346_v24, %v2350_v62 }
 0x12e   : > { %12449 = vmatmul.mubr.msk.bf16.gmra.mrb[4].mxu0 %vm766_vm3, %v11184_v2  ;;  %v2379_v2 = vrot.slane %v2377_v12, 4  ;;  %v2360_v51 = vrot.slane %v2359_v53, 4  ;;  %v2374_v33 = vrot.slane %v2372_v42, 5  ;;  %v2370_v30 = vrot.slane %v2369_v15, 4 }
 0x12f   : > { %12452 = vmatprep.mubr.msk.bf16.mxu0 %vm766_vm3, %v11185_v28  ;;  %v2382_v28 = vrot.slane %v2380_v41, 5  ;;  %v2396_v39 = vshll.u32 %v14775_v49, 16  ;;  %v2410_v21 = vshll.u32 %v14547_v14, 16  ;;  %v2414_v18 = vshrl.u32 %v14547_v14, 16 }
 0x130   : > { %v2425_v12 = vshrl.u32 %v11168_v35, 16  ;;  %v2428_v41 = vshll.u32 %v11168_v35, 16  ;;  %v2434_v20 = vshll.u32 %v14786_v9, 16  ;;  %v2438_v59 = vshrl.u32 %v14786_v9, 16 }
 0x131   : > { %v2383_v26 = vor.u32 %v2382_v28, %v2379_v2  ;;  %v2393_v13 = vor.u32 %v2392_v22, %v14777_v31  ;;  %v2403_v48 = vrot.slane %v2401_v0, 4  ;;  %v2406_v46 = vrot.slane %v2404_v40, 5  ;;  %v11171_v22 = vld [vmem:[%s13774_s10 + $0xa8] sm:$0xf] }
 0x132   : > { %v11188_v62 = vcombine.low %v2317_v56, %v2327_v17  ;;  %v11189_v16 = vcombine.low %v2341_v58, %v2351_v44  ;;  %v2365_v14 = vsel %vm13809_vm4, %v2360_v51, %v14765_v7  ;;  %v2375_v24 = vsel %vm13809_vm4, %v2370_v30, %v2374_v33  ;;  %v11174_v33 = vld [vmem:[%s13774_s10 + $0xb4] sm:$0xf]  ;;  %v14817_v30 = vld [vmem:[%s13774_s10 + $0xb8] sm:$0xf] }
 0x133   : > { %v2398_v53 = vrot.slane %v2396_v39, 5  ;;  %v14806_v42 = vrot.slane %v2410_v21, 5  ;;  %v2416_v63 = vrot.slane %v2414_v18, 4  ;;  %v2430_v15 = vrot.slane %v2428_v41, 5 }
 0x134   : > { %v2436_v2 = vrot.slane %v2434_v20, 5  ;;  %v2440_v28 = vrot.slane %v2438_v59, 4  ;;  %v2384_v56 = vrot.slane %v2383_v26, 4  ;;  %v2394_v17 = vrot.slane %v2393_v13, 4 }
 0x135   : > { %v2407_v0 = vor.u32 %v2406_v46, %v2403_v48  ;;  %v2420_v7 = vshll.u32 %v14550_v4, 16  ;;  %v11190_v35 = vcombine.low %v2365_v14, %v2375_v24  ;;  %v2417_v58 = vor.u32 %v2416_v63, %v14806_v42 }
 0x136   : > { %12453 = vmatmul.mubr.msk.bf16.gmra.mrb[8].mxu0 %vm766_vm3, %v11186_v36  ;;  %v14809_v36 = vld [vmem:[%s13774_s10 + $0xa4] sm:$0x1]  ;;  %v2449_v44 = vshrl.u32 %v11171_v22, 16  ;;  %v2452_v51 = vshll.u32 %v11171_v22, 16  ;;  %v2441_v21 = vor.u32 %v2440_v28, %v2436_v2  ;;  %v2458_v18 = vshll.u32 %v14589_v45, 16 }
 0x137   : > { %12456 = vmatprep.mubr.msk.bf16.mxu0 %vm766_vm3, %v11187_v57  ;;  %v2427_v57 = vrot.slane %v2425_v12, 4  ;;  %v2444_v40 = vshll.u32 %v14809_v36, 16  ;;  %v2462_v12 = vshrl.u32 %v14589_v45, 16  ;;  %v2389_v4 = vsel %vm13809_vm4, %v2384_v56, %v14777_v31 }
 0x138   : > { %v2399_v41 = vsel %vm13809_vm4, %v2394_v17, %v2398_v53  ;;  %v2408_v20 = vrot.slane %v2407_v0, 4  ;;  %v2422_v59 = vrot.slane %v2420_v7, 5  ;;  %v2473_v26 = vshrl.u32 %v11174_v33, 16  ;;  %v11177_v17 = vld [vmem:[%s13774_s10 + $0xc0] sm:$0xf] }
 0x139   : > { %v2431_v39 = vor.u32 %v2430_v15, %v2427_v57  ;;  %v2476_v13 = vshll.u32 %v11174_v33, 16  ;;  %v2482_v48 = vshll.u32 %v14817_v30, 16  ;;  %v2486_v46 = vshrl.u32 %v14817_v30, 16 }
 0x13a   : > { %v2446_v45 = vrot.slane %v2444_v40, 5  ;;  %v2454_v14 = vrot.slane %v2452_v51, 5  ;;  %v2442_v63 = vrot.slane %v2441_v21, 4  ;;  %v2460_v31 = vrot.slane %v2458_v18, 5 }
 0x13b   : > { %v2432_v24 = vrot.slane %v2431_v39, 4  ;;  %v2464_v57 = vrot.slane %v2462_v12, 4  ;;  %v11191_v15 = vcombine.low %v2389_v4, %v2399_v41  ;;  %v2475_v53 = vrot.slane %v2473_v26, 4 }
 0x13c   : > { %v2478_v28 = vrot.slane %v2476_v13, 5  ;;  %v2484_v22 = vrot.slane %v2482_v48, 5  ;;  %v2488_v56 = vrot.slane %v2486_v46, 4  ;;  %v2413_v0 = vsel %vm13809_vm4, %v2408_v20, %v14806_v42 }
 0x13d   : > { %v2447_v51 = vsel %vm13809_vm4, %v2442_v63, %v2446_v45  ;;  %v2465_v33 = vor.u32 %v2464_v57, %v2460_v31  ;;  %v2468_v39 = vshll.u32 %v14592_v6, 16  ;;  %v2497_v42 = vshrl.u32 %v11177_v17, 16 }
 0x13e   : > { %12457 = vmatmul.mubr.msk.bf16.gmra.mrb[12].mxu0 %vm766_vm3, %v11188_v62  ;;  %v2418_v62 = vrot.slane %v2417_v58, 4  ;;  %v14837_v58 = vld [vmem:[%s13774_s10 + $0xbc] sm:$0x1]  ;;  %v2500_v21 = vshll.u32 %v11177_v17, 16  ;;  %v2506_v18 = vshll.u32 %v14645_v8, 16  ;;  %v2510_v12 = vshrl.u32 %v14645_v8, 16 }
 0x13f   : > { %12460 = vmatprep.mubr.msk.bf16.mxu0 %vm766_vm3, %v11189_v16  ;;  %v2451_v16 = vrot.slane %v2449_v44, 4  ;;  %v2437_v44 = vsel %vm13809_vm4, %v2432_v24, %v2436_v2  ;;  %v2479_v4 = vor.u32 %v2478_v28, %v2475_v53  ;;  %v2489_v41 = vor.u32 %v2488_v56, %v2484_v22  ;;  %v11213_v17 = vld [vmem:[%s13774_s10 + $0xc] sm:$0xe] }
 0x140   : > { %v2423_v7 = vsel %vm13809_vm4, %v2418_v62, %v2422_v59  ;;  %v11193_v2 = vcombine.low %v2437_v44, %v2447_v51  ;;  %v2466_v26 = vrot.slane %v2465_v33, 4  ;;  %v2470_v13 = vrot.slane %v2468_v39, 5 }
 0x141   : > { %v2455_v40 = vor.u32 %v2454_v14, %v2451_v16  ;;  %v11192_v20 = vcombine.low %v2413_v0, %v2423_v7  ;;  %v2499_v48 = vrot.slane %v2497_v42, 4  ;;  %v2502_v46 = vrot.slane %v2500_v21, 5 }
 0x142   : > { %v2508_v6 = vrot.slane %v2506_v18, 5  ;;  %v2512_v62 = vrot.slane %v2510_v12, 4  ;;  %v2480_v45 = vrot.slane %v2479_v4, 4  ;;  %v2490_v16 = vrot.slane %v2489_v41, 4  ;;  %v11214_v18 = vld [vmem:[%s13774_s10 + $0x18] sm:$0xe] }
 0x143   : > { %v2456_v59 = vrot.slane %v2455_v40, 4  ;;  %v2471_v24 = vsel %vm13809_vm4, %v2466_v26, %v2470_v13  ;;  %v2503_v63 = vor.u32 %v2502_v46, %v2499_v48  ;;  %v2880_v56 = vrot.slane %v14492_v19, 5  ;;  %v11215_v12 = vld [vmem:[%s13774_s10 + $0x24] sm:$0xe] }
 0x144   : > { %v2513_v57 = vor.u32 %v2512_v62, %v2508_v6  ;;  %v2485_v53 = vsel %vm13809_vm4, %v2480_v45, %v2484_v22  ;;  %v11229_v51 = vrot.slane %v11213_v17, 9  ;;  %v2887_v39 = vrot.slane %v14515_v43, 5  ;;  %v11217_v62 = vld [vmem:[%s13774_s10 + $0x3c] sm:$0xe] }
 0x145   : > { %v2461_v8 = vsel %vm13809_vm4, %v2456_v59, %v2460_v31  ;;  %v2504_v7 = vrot.slane %v2503_v63, 4  ;;  %v2882_v33 = vrot.slane %v2880_v56, 4  ;;  %v11231_v59 = vrot.slane %v11215_v12, 9 }
 0x146   : > { %12461 = vmatmul.mubr.msk.bf16.gmra.mrb[16].mxu0 %vm766_vm3, %v11190_v35  ;;  %v2492_v35 = vshll.u32 %v14837_v58, 16  ;;  %v11194_v31 = vcombine.low %v2461_v8, %v2471_v24  ;;  %v2514_v40 = vrot.slane %v2513_v57, 4  ;;  %v2881_v42 = vsel %vm14124_vm7, %v11229_v51, %v2880_v56  ;;  %v11219_v56 = vld [vmem:[%s13774_s10 + $0x54] sm:$0xe] }
 0x147   : > { %12464 = vmatprep.mubr.msk.bf16.mxu0 %vm766_vm3, %v11191_v15  ;;  %v2516_v15 = vshll.u32 %v14648_v38, 16  ;;  %v2883_v38 = vrot.slane %v14519_v34, 5  ;;  %v2509_v22 = vsel %vm13809_vm4, %v2504_v7, %v2508_v6  ;;  %v2894_v34 = vrot.slane %v14544_v32, 5  ;;  %v11216_v6 = vld [vmem:[%s13774_s10 + $0x30] sm:$0xe] }
 0x148   : > { %v2494_v14 = vrot.slane %v2492_v35, 5  ;;  %v11230_v35 = vrot.slane %v11214_v18, 9  ;;  %v2897_v26 = vrot.slane %v14581_v55, 5  ;;  %v2901_v48 = vrot.slane %v14564_v27, 5  ;;  %v11223_v18 = vld [vmem:[%s13774_s10 + $0x84] sm:$0xe] }
 0x149   : > { %v2518_v44 = vrot.slane %v2516_v15, 5  ;;  %v2884_v21 = vsel %vm14124_vm7, %v2882_v33, %v2883_v38  ;;  %v2896_v43 = vrot.slane %v2894_v34, 4  ;;  %v2895_v46 = vsel %vm14124_vm7, %v11231_v59, %v2894_v34  ;;  %v11221_v33 = vld [vmem:[%s13774_s10 + $0x6c] sm:$0xe] }
 0x14a   : > { %v2495_v28 = vsel %vm13809_vm4, %v2490_v16, %v2494_v14  ;;  %v11246_v41 = vcombine.low %v2881_v42, %v2884_v21  ;;  %v2888_v32 = vsel %vm14124_vm7, %v11230_v35, %v2887_v39  ;;  %v2908_v55 = vrot.slane %v14610_v23, 5 }
 0x14b   : > { %v11195_v0 = vcombine.low %v2485_v53, %v2495_v28  ;;  %v2519_v19 = vsel %vm13809_vm4, %v2514_v40, %v2518_v44  ;;  %v11232_v14 = vrot.slane %v11216_v6, 9  ;;  %v2903_v8 = vrot.slane %v2901_v48, 4  ;;  %v14900_v53 = vld [vmem:[%s17755_s1 + $0xe] sm:$0x3] }
 0x14c   : > { %v11196_v4 = vcombine.low %v2509_v22, %v2519_v19  ;;  %v2904_v24 = vrot.slane %v14615_v1, 5  ;;  %v3448_v27 = vsel %vm815_vm0, %v14732_v52, 0  ;;  %v11233_v63 = vrot.slane %v11217_v62, 9  ;;  %v17924_v62 = vld [vmem:[#allocation7_spill] sm:$0xff] }
 0x14d   : > { %v2910_v57 = vrot.slane %v2908_v55, 4  ;;  %v2911_v15 = vrot.slane %v14655_v47, 5  ;;  %v2902_v23 = vsel %vm14124_vm7, %v11232_v14, %v2901_v48  ;;  %v2922_v28 = vrot.slane %v14673_v25, 5 }
 0x14e   : > { %12465 = vmatmul.mubr.msk.bf16.gmra.mrb[20].mxu0 %vm766_vm3, %v11192_v20  ;;  %v2889_v20 = vrot.slane %v2887_v39, 4  ;;  %v2905_v1 = vsel %vm14124_vm7, %v2903_v8, %v2904_v24  ;;  %v2909_v47 = vsel %vm14124_vm7, %v11233_v63, %v2908_v55  ;;  %v2925_v40 = vrot.slane %v14706_v5, 5  ;;  %v17927_v24 = vld [vmem:[#allocation9_spill] sm:$0xff] }
 0x14f   : > { %12468 = vmatprep.mubr.msk.bf16.mxu0 %vm766_vm3, %v11193_v2  ;;  %v2890_v2 = vrot.slane %v14538_v61, 5  ;;  %v2898_v61 = vsel %vm14124_vm7, %v2896_v43, %v2897_v26  ;;  %v2912_v52 = vsel %vm14124_vm7, %v2910_v57, %v2911_v15  ;;  %v11249_v17 = vcombine.low %v2902_v23, %v2905_v1  ;;  %v17922_v26 = vld [vmem:[#allocation6_spill] sm:$0xff]  ;;  %v17930_v57 = vld [vmem:[#allocation11_spill] sm:$0xff]  ;;  %v13625_v1 = vld [vmem:[%s13774_s10 + $0x24] sm:$0xff]  }
 0x150   : > { %v11248_v16 = vcombine.low %v2895_v46, %v2898_v61  ;;  %v2924_v7 = vrot.slane %v2922_v28, 4  ;;  %v2936_v51 = vrot.slane %v14714_v37, 5  ;;  %v11237_v22 = vrot.slane %v11221_v33, 9  ;;  %v11227_v46 = vld [vmem:[%s13774_s10 + $0xb4] sm:$0xe]  ;;  %v17931_v15 = vld [vmem:[#allocation3_spill] sm:$0xff] }
 0x151   : > { %v2891_v13 = vsel %vm14124_vm7, %v2889_v20, %v2890_v2  ;;  %v2939_v39 = vrot.slane %v14739_v29, 5  ;;  %v17918_v5 = vcombine.low %v14464_v60, %v14469_v11  ;;  %v2950_v21 = vrot.slane %v14757_v3, 5  ;;  %v17919_v60 = vld [vmem:[#allocation4_spill] sm:$0xff]  ;;  %v11225_v20 = vld [vmem:[%s13774_s10 + $0x9c] sm:$0xe] }
 0x152   : > { %v11247_v45 = vcombine.low %v2888_v32, %v2891_v13  ;;  %v2926_v25 = vsel %vm14124_vm7, %v2924_v7, %v2925_v40  ;;  %v2938_v19 = vrot.slane %v2936_v51, 4  ;;  %v2937_v42 = vsel %vm14124_vm7, %v11237_v22, %v2936_v51  ;;  %v13629_v51 = vld [vmem:[%s13774_s10 + $0x54] sm:$0xff]  }
 0x153   : > { %v11239_v12 = vrot.slane %v11223_v18, 9  ;;  %v2952_v29 = vrot.slane %v2950_v21, 4  ;;  %v17920_v11 = vcombine.low %v14488_v50, %v17919_v60  ;;  %v2964_v35 = vrot.slane %v14786_v9, 5  ;;  %v17921_v50 = vld [vmem:[#allocation5_spill] sm:$0xff]  ;;  %v13632_v60 = vld [vmem:[%s13774_s10 + $0x78] sm:$0xff]  }
 0x154   : > { %v2940_v37 = vsel %vm14124_vm7, %v2938_v19, %v2939_v39  ;;  %v11241_v59 = vrot.slane %v11225_v20, 9  ;;  %v2967_v43 = vrot.slane %v14809_v36, 5  ;;  %v17923_v32 = vcombine.low %v17921_v50, %v17922_v26  ;;  %v15022_v39 = vld [vmem:[%s13774_s10 + $0x70] sm:$0xf]  ;;  %v15055_v50 = vld [vmem:[%s13774_s10 + $0x8c] sm:$0x1] }
 0x155   : > { %v11254_v34 = vcombine.low %v2937_v42, %v2940_v37  ;;  %v2978_v48 = vrot.slane %v14817_v30, 5  ;;  %v11243_v61 = vrot.slane %v11227_v46, 9  ;;  %v2981_v55 = vrot.slane %v14837_v58, 5  ;;  %v13624_v58 = vld [vmem:[%s13774_s10 + $0x18] sm:$0xff]   ;;  %v11431_v42 = vld [vmem:[%s13774_s10 + $0x6c] sm:$0xe] }
 0x156   : > { %12469 = vmatmul.mubr.msk.bf16.gmra.mrb[24].mxu0 %vm766_vm3, %v11194_v31  ;;  %v11250_v31 = vcombine.low %v2909_v47, %v2912_v52  ;;  %v2965_v13 = vsel %vm14124_vm7, %v11241_v59, %v2964_v35  ;;  %v17932_v23 = vcombine.low %v17930_v57, %v17931_v15  ;;  %v13626_v47 = vld [vmem:[%s13774_s10 + $0x30] sm:$0xff]   ;;  %v4174_v52 = vsel %vm815_vm0, %v14900_v53, 0  ;;  %v15062_v46 = vld [vmem:[%s13774_s10 + $0x28] sm:$0xf] }
 0x157   : > { %12472 = vmatprep.mubr.msk.bf16.mxu0 %vm766_vm3, %v11195_v0  ;;  %v11235_v0 = vrot.slane %v11219_v56, 9  ;;  %v2980_v6 = vrot.slane %v2978_v48, 4  ;;  %v2979_v14 = vsel %vm14124_vm7, %v11243_v61, %v2978_v48  ;;  %v13627_v56 = vld [vmem:[%s13774_s10 + $0x3c] sm:$0xff]   ;;  %v4484_v37 = vrot.slane %v15022_v39, 5 }
 0x158   : > { %v11447_v18 = vrot.slane %v11431_v42, 9  ;;  %v4501_v48 = vrot.slane %v15055_v50, 5  ;;  %v3729_v57 = vshrl.u32 %v15062_v46, 16 }
 0x159   : > { %v2923_v44 = vsel %vm14124_vm7, %v11235_v0, %v2922_v28  ;;  %v2982_v30 = vsel %vm14124_vm7, %v2980_v6, %v2981_v55  ;;  %v14989_v28 = vld [vmem:[%s17755_s1 + $0x10] sm:$0x3]  ;;  %v11429_v0 = vld [vmem:[%s13774_s10 + $0x54] sm:$0xe]  ;;  %v13633_v55 = vld [vmem:[%s13774_s10 + $0x84] sm:$0xff]  }
 0x15a   : > { %v11252_v38 = vcombine.low %v2923_v44, %v2926_v25  ;;  %v11260_v8 = vcombine.low %v2979_v14, %v2982_v30  ;;  %v11445_v44 = vrot.slane %v11429_v0, 9  ;;  %v15094_v0 = vld [vmem:[%s13774_s10 + $0xa0] sm:$0xf]  ;;  %v3731_v42 = vrot.slane %v3729_v57, 4 }
 0x15e   : > { %12473 = vmatmul.mubr.msk.bf16.gmra.mrb[28].mxu0 %vm766_vm3, %v11196_v4  ;;  %v2953_v4 = vrot.slane %v14775_v49, 5  ;;  %v2966_v49 = vrot.slane %v2964_v35, 4  ;;  %v13639_v35 = vld [vmem:[%s13774_s10 + $0xcc] sm:$0xff]  }
 0x15f   : > { %12478 = vmatprep.mubr.msk.bf16.mxu0 %vm766_vm3, %v11246_v41  ;;  %v2951_v41 = vsel %vm14124_vm7, %v11239_v12, %v2950_v21  ;;  %v13631_v12 = vld [vmem:[%s13774_s10 + $0x6c] sm:$0xff]  }
 0x160   : > { %v2954_v3 = vsel %vm14124_vm7, %v2952_v29, %v2953_v4  ;;  %v2968_v9 = vsel %vm14124_vm7, %v2966_v49, %v2967_v43  ;;  %v11343_v29 = vld [vmem:[%s13774_s10 + $0x18] sm:$0xf]  ;;  %v15035_v4 = vsel %vm14124_vm7, %v11447_v18, %v4484_v37  ;;  %v15052_v43 = vld [vmem:[%s13774_s10 + $0x88] sm:$0xf] }
 0x161   : > { %v11256_v2 = vcombine.low %v2951_v41, %v2954_v3  ;;  %v11258_v36 = vcombine.low %v2965_v13, %v2968_v9  ;;  %v11346_v3 = vld [vmem:[%s13774_s10 + $0x24] sm:$0xf]  ;;  %v3692_v20 = vshrl.u32 %v11343_v29, 16  ;;  %v4498_v9 = vrot.slane %v15052_v43, 5 }
 0x162   : > { %v3716_v26 = vshrl.u32 %v11346_v3, 16  ;;  %v11433_v13 = vld [vmem:[%s13774_s10 + $0x84] sm:$0xe] }
 0x163   : > { %v3694_v61 = vrot.slane %v3692_v20, 4  ;;  %v4500_v6 = vrot.slane %v4498_v9, 4 }
 0x166   : > { %12479 = vmatmul.mubr.msk.bf16.vlgmr.msra.gmra.mrb[0].mxu0 %vm766_vm3, %v11247_v45  ;;  %v17925_v45 = vld [vmem:[#allocation8_spill] sm:$0xff] }
 0x167   : > { %12511 = vmatpush3.bf16.msra.mxu0 %v3448_v27  ;;  %12482 = vmatprep.mubr.msk.bf16.mxu0 %vm766_vm3, %v11248_v16  ;;  %v17926_v16 = vcombine.low %v17924_v62, %v17925_v45  ;;  %v17928_v27 = vld [vmem:[#allocation10_spill] sm:$0xff]  ;;  %v15066_v62 = vld [vmem:[%s13774_s10 + $0x20] sm:$0x1] }
 0x168   : > { %13569 = vmatprep.subr.msk.bf16.mxu0 %vm815_vm0, %v14900_v53  ;;  %v17929_v63 = vcombine.low %v17927_v24, %v17928_v27  ;;  %v14999_v53 = vld [vmem:[%s13774_s10 + $0x58] sm:$0xf]  ;;  %v3718_v24 = vrot.slane %v3716_v26, 4  ;;  %v13636_v26 = vld [vmem:[%s13774_s10 + $0xa8] sm:$0xff]  }
 0x169   : > { %v4470_v7 = vrot.slane %v14999_v53, 5 }
 0x16b   : > { %v4472_v25 = vrot.slane %v4470_v7, 4  ;;  %v15011_v33 = vsel %vm14124_vm7, %v11445_v44, %v4470_v7  ;;  %v15097_v7 = vld [vmem:[%s13774_s10 + $0xa4] sm:$0x1] }
 0x16e   : > { %12483 = vmatmul.mubr.msk.bf16.gmra.mrb[4].mxu0 %vm766_vm3, %v11249_v17  ;;  %v13628_v17 = vld [vmem:[%s13774_s10 + $0x48] sm:$0xff]  }
 0x16f   : > { %12486 = vmatprep.mubr.msk.bf16.mxu0 %vm766_vm3, %v11250_v31  ;;  %v15002_v31 = vld [vmem:[%s13774_s10 + $0x5c] sm:$0x1] }
 0x170   : > { %v4473_v40 = vrot.slane %v15002_v31, 5 }
 0x172   : > { %v15016_v22 = vsel %vm14124_vm7, %v4472_v25, %v4473_v40  ;;  %v11435_v25 = vld [vmem:[%s13774_s10 + $0x9c] sm:$0xe] }
 0x173   : > { %v11451_v18 = vrot.slane %v11435_v25, 9 }
 0x176   : > { %12487 = vmatmul.mubr.msk.bf16.gmra.mrb[8].mxu0 %vm766_vm3, %v17918_v5  ;;  %v15025_v5 = vld [vmem:[%s13774_s10 + $0x74] sm:$0x1] }
 0x177   : > { %12490 = vmatprep.mubr.msk.bf16.mxu0 %vm766_vm3, %v11252_v38  ;;  %v13630_v38 = vld [vmem:[%s13774_s10 + $0x60] sm:$0xff]   ;;  %v4487_v21 = vrot.slane %v15025_v5, 5 }
 0x17e   : > { %12491 = vmatmul.mubr.msk.bf16.gmra.mrb[12].mxu0 %vm766_vm3, %v17920_v11  ;;  %v15039_v11 = vld [vmem:[%s13774_s10 + $0x1c] sm:$0xf] }
 0x17f   : > { %12494 = vmatprep.mubr.msk.bf16.mxu0 %vm766_vm3, %v11254_v34  ;;  %v4486_v34 = vrot.slane %v4484_v37, 4  ;;  %v3701_v59 = vshll.u32 %v15039_v11, 16  ;;  %v3705_v49 = vshrl.u32 %v15039_v11, 16 }
 0x181   : > { %v15043_v41 = vsel %vm14124_vm7, %v4486_v34, %v4487_v21  ;;  %v3707_v14 = vrot.slane %v3705_v49, 4  ;;  %v13635_v34 = vld [vmem:[%s13774_s10 + $0x9c] sm:$0xff]  }
 0x182   : > { %17933 = vst [vmem:[#allocation4_spill] sm:$0xff] %v15043_v41  ;;  %v15281_v41 = vld [vmem:[%s13774_s10 + $0x80] sm:$0x1] }
 0x186   : > { %12495 = vmatmul.mubr.msk.bf16.gmra.mrb[16].mxu0 %vm766_vm3, %v17923_v32  ;;  %v3719_v32 = vshll.u32 %v11346_v3, 16 }
 0x187   : > { %12498 = vmatprep.mubr.msk.bf16.mxu0 %vm766_vm3, %v11256_v2  ;;  %v3695_v2 = vshll.u32 %v11343_v29, 16 }
 0x188   : > { %v3721_v27 = vrot.slane %v3719_v32, 5 }
 0x189   : > { %v3697_v45 = vrot.slane %v3695_v2, 5  ;;  %v11352_v2 = vld [vmem:[%s13774_s10 + $0x3c] sm:$0xf] }
 0x18a   : > { %v3722_v40 = vor.u32 %v3721_v27, %v3718_v24  ;;  %v3767_v24 = vshll.u32 %v11352_v2, 16 }
 0x18e   : > { %12499 = vmatmul.mubr.msk.bf16.gmra.mrb[20].mxu0 %vm766_vm3, %v17926_v16  ;;  %v15068_v16 = vrot.slane %v3701_v59, 5  ;;  %v15111_v59 = vld [vmem:[%s13774_s10 + $0x40] sm:$0xf] }
 0x18f   : > { %12502 = vmatprep.mubr.msk.bf16.mxu0 %vm766_vm3, %v11258_v36  ;;  %v11449_v36 = vrot.slane %v11433_v13, 9  ;;  %v3773_v27 = vshll.u32 %v15111_v59, 16  ;;  %v3777_v57 = vshrl.u32 %v15111_v59, 16 }
 0x191   : > { %v15072_v30 = vsel %vm14124_vm7, %v11449_v36, %v4498_v9  ;;  %v15118_v9 = vrot.slane %v3722_v40, 4  ;;  %v11437_v40 = vld [vmem:[%s13774_s10 + $0xb4] sm:$0xe] }
 0x192   : > { %17934 = vst [vmem:[#allocation5_spill] sm:$0xff] %v15072_v30 }
 0x196   : > { %12503 = vmatmul.mubr.msk.bf16.gmra.mrb[24].mxu0 %vm766_vm3, %v17929_v63  ;;  %v3725_v63 = vshll.u32 %v15062_v46, 16 }
 0x197   : > { %12506 = vmatprep.mubr.msk.bf16.mxu0 %vm766_vm3, %v11260_v8  ;;  %v13634_v8 = vld [vmem:[%s13774_s10 + $0x90] sm:$0xff]  }
 0x198   : > { %v15100_v44 = vrot.slane %v3725_v63, 5 }
 0x19a   : > { %v3732_v36 = vor.u32 %v3731_v42, %v15100_v44 }
 0x19c   : > { %v15152_v42 = vrot.slane %v3732_v36, 4  ;;  %v13638_v36 = vld [vmem:[%s13774_s10 + $0xc0] sm:$0xff]  }
 0x19e   : > { %12507 = vmatmul.mubr.msk.bf16.gmra.mrb[28].mxu0 %vm766_vm3, %v17932_v23  ;;  %v3711_v23 = vshll.u32 %v15066_v62, 16 }
 0x19f   : > { %12512 = vmatprep.mubr.msk.bf16.mxu0 %vm766_vm3, %v13624_v58  ;;  %v15078_v58 = vsel %vm14124_vm7, %v4500_v6, %v4501_v48 }
 0x1a0   : > { %17935 = vst [vmem:[#allocation6_spill] sm:$0xff] %v15078_v58  ;;  %v3713_v13 = vrot.slane %v3711_v23, 5  ;;  %v15136_v23 = vld [vmem:[%s13774_s10 + $0xb8] sm:$0xf] }
 0x1a1   : > { %v4526_v25 = vrot.slane %v15136_v23, 5 }
 0x1a6   : > { %12513 = vmatmul.mubr.msk.bf16.vlgmr.msra.gmra.mrb[0].mxu0 %vm766_vm3, %v13625_v1  ;;  %v15085_v1 = vld [vmem:[%s13774_s10 + $0x2c] sm:$0x1] }
 0x1a7   : > { %12545 = vmatpush3.bf16.msra.mxu0 %v4174_v52  ;;  %12516 = vmatprep.mubr.msk.bf16.mxu0 %vm766_vm3, %v13626_v47  ;;  %v11349_v47 = vld [vmem:[%s13774_s10 + $0x30] sm:$0xf]  ;;  %v3698_v52 = vor.u32 %v3697_v45, %v3694_v61  ;;  %v15128_v45 = vld [vmem:[%s13774_s10 + $0x38] sm:$0x1] }
 0x1a8   : > { %13570 = vmatprep.subr.msk.bf16.mxu0 %vm815_vm0, %v14989_v28  ;;  %v3740_v37 = vshrl.u32 %v11349_v47, 16  ;;  %v3743_v21 = vshll.u32 %v11349_v47, 16  ;;  %v15139_v47 = vld [vmem:[%s13774_s10 + $0xbc] sm:$0x1] }
 0x1a9   : > { %v3699_v3 = vrot.slane %v3698_v52, 4 }
 0x1aa   : > { %v3742_v61 = vrot.slane %v3740_v37, 4  ;;  %v3745_v6 = vrot.slane %v3743_v21, 5  ;;  %v11355_v21 = vld [vmem:[%s13774_s10 + $0x48] sm:$0xf] }
 0x1ab   : > { %v3704_v52 = vsel %vm13809_vm4, %v3699_v3, %v15068_v16  ;;  %v13637_v3 = vld [vmem:[%s13774_s10 + $0xb4] sm:$0xff]  }
 0x1ac   : > { %v3746_v37 = vor.u32 %v3745_v6, %v3742_v61  ;;  %v3788_v6 = vshrl.u32 %v11355_v21, 16 }
 0x1ae   : > { %12517 = vmatmul.mubr.msk.bf16.gmra.mrb[4].mxu0 %vm766_vm3, %v13627_v56  ;;  %v3708_v56 = vor.u32 %v3707_v14, %v15068_v16  ;;  %v3759_v16 = vshll.u32 %v15128_v45, 16 }
 0x1af   : > { %12520 = vmatprep.mubr.msk.bf16.mxu0 %vm766_vm3, %v13628_v17  ;;  %v15091_v17 = vld [vmem:[%s13774_s10 + $0x34] sm:$0xf] }
 0x1b0   : > { %v3749_v29 = vshll.u32 %v15091_v17, 16  ;;  %v3753_v20 = vshrl.u32 %v15091_v17, 16  ;;  %v3709_v32 = vrot.slane %v3708_v56, 4 }
 0x1b2   : > { %v15130_v14 = vrot.slane %v3749_v29, 5  ;;  %v3755_v63 = vrot.slane %v3753_v20, 4  ;;  %v15157_v29 = vld [vmem:[%s13774_s10 + $0x4c] sm:$0xf] }
 0x1b4   : > { %v3756_v20 = vor.u32 %v3755_v63, %v15130_v14  ;;  %v3797_v63 = vshll.u32 %v15157_v29, 16 }
 0x1b6   : > { %12521 = vmatmul.mubr.msk.bf16.gmra.mrb[8].mxu0 %vm766_vm3, %v13629_v51  ;;  %v4512_v51 = vrot.slane %v15094_v0, 5 }
 0x1b7   : > { %12524 = vmatprep.mubr.msk.bf16.mxu0 %vm766_vm3, %v13630_v38  ;;  %v4515_v38 = vrot.slane %v15097_v7, 5 }
 0x1b8   : > { %v15115_v49 = vsel %vm14124_vm7, %v11451_v18, %v4512_v51  ;;  %v11453_v18 = vrot.slane %v11437_v40, 9 }
 0x1b9   : > { %17936 = vst [vmem:[#allocation7_spill] sm:$0xff] %v15115_v49 }
 0x1be   : > { %12525 = vmatmul.mubr.msk.bf16.gmra.mrb[12].mxu0 %vm766_vm3, %v13631_v12  ;;  %v3735_v12 = vshll.u32 %v15085_v1, 16 }
 0x1bf   : > { %12528 = vmatprep.mubr.msk.bf16.mxu0 %vm766_vm3, %v13632_v60  ;;  %v4514_v60 = vrot.slane %v4512_v51, 4  ;;  %v4529_v51 = vrot.slane %v15139_v47, 5 }
 0x1c0   : > { %v15145_v56 = vrot.slane %v3735_v12, 5  ;;  %v3769_v12 = vrot.slane %v3767_v24, 5  ;;  %v11358_v24 = vld [vmem:[%s13774_s10 + $0x54] sm:$0xf] }
 0x1c1   : > { %v15122_v48 = vsel %vm14124_vm7, %v4514_v60, %v4515_v38  ;;  %v3714_v38 = vsel %vm13809_vm4, %v3709_v32, %v3713_v13  ;;  %v4528_v60 = vrot.slane %v4526_v25, 4  ;;  %v3779_v32 = vrot.slane %v3777_v57, 4 }
 0x1c2   : > { %17937 = vst [vmem:[#allocation8_spill] sm:$0xff] %v15122_v48  ;;  %v15168_v13 = vsel %vm14124_vm7, %v11453_v18, %v4526_v25  ;;  %v11392_v61 = vcombine.low %v3704_v52, %v3714_v38  ;;  %v3801_v57 = vshrl.u32 %v15157_v29, 16  ;;  %v3747_v25 = vrot.slane %v3746_v37, 4  ;;  %v15195_v37 = vld [vmem:[%s13774_s10 + $0xd4] sm:$0x1] }
 0x1c3   : > { %17938 = vst [vmem:[#allocation9_spill] sm:$0xff] %v15168_v13  ;;  %v15174_v40 = vsel %vm14124_vm7, %v4528_v60, %v4529_v51  ;;  %v3761_v38 = vrot.slane %v3759_v16, 5  ;;  %v3812_v60 = vshrl.u32 %v11358_v24, 16  ;;  %v3790_v16 = vrot.slane %v3788_v6, 4 }
 0x1c4   : > { %17939 = vst [vmem:[#allocation10_spill] sm:$0xff] %v15174_v40  ;;  %v3815_v52 = vshll.u32 %v11358_v24, 16  ;;  %v3821_v13 = vshll.u32 %v14999_v53, 16  ;;  %v15220_v24 = vld [vmem:[%s13774_s10 + $0x64] sm:$0xf] }
 0x1c6   : > { %12529 = vmatmul.mubr.msk.bf16.gmra.mrb[16].mxu0 %vm766_vm3, %v13633_v55  ;;  %v15192_v55 = vld [vmem:[%s13774_s10 + $0xd0] sm:$0xf] }
 0x1c7   : > { %12532 = vmatprep.mubr.msk.bf16.mxu0 %vm766_vm3, %v13634_v8  ;;  %v3764_v8 = vshrl.u32 %v11352_v2, 16  ;;  %v15162_v2 = vld [vmem:[%s13774_s10 + $0x44] sm:$0x1] }
 0x1c8   : > { %v3783_v51 = vshll.u32 %v15162_v2, 16 }
 0x1ce   : > { %12533 = vmatmul.mubr.msk.bf16.gmra.mrb[20].mxu0 %vm766_vm3, %v13635_v34  ;;  %v3766_v34 = vrot.slane %v3764_v8, 4  ;;  %v3791_v8 = vshll.u32 %v11355_v21, 16 }
 0x1cf   : > { %12536 = vmatprep.mubr.msk.bf16.mxu0 %vm766_vm3, %v13636_v26  ;;  %v15164_v26 = vrot.slane %v3773_v27, 5  ;;  %v3728_v27 = vsel %vm13809_vm4, %v15118_v9, %v15100_v44  ;;  %v3738_v44 = vsel %vm13809_vm4, %v15152_v42, %v15145_v56  ;;  %v3757_v9 = vrot.slane %v3756_v20, 4  ;;  %v15202_v42 = vld [vmem:[%s13774_s10 + $0x50] sm:$0x1] }
 0x1d0   : > { %v3770_v21 = vor.u32 %v3769_v12, %v3766_v34  ;;  %v3793_v34 = vrot.slane %v3791_v8, 5  ;;  %v11439_v12 = vld [vmem:[%s13774_s10 + $0xcc] sm:$0xe]  ;;  %v4543_v56 = vrot.slane %v15195_v37, 5  ;;  %v15204_v20 = vrot.slane %v3797_v63, 5 }
 0x1d1   : > { %v3780_v18 = vor.u32 %v3779_v32, %v15164_v26  ;;  %v3803_v32 = vrot.slane %v3801_v57, 4  ;;  %v11455_v15 = vrot.slane %v11439_v12, 9  ;;  %v15212_v8 = vrot.slane %v3783_v51, 5  ;;  %v11361_v57 = vld [vmem:[%s13774_s10 + $0x60] sm:$0xf] }
 0x1d2   : > { %v15210_v6 = vrot.slane %v3770_v21, 4  ;;  %v3762_v40 = vsel %vm13809_vm4, %v3757_v9, %v3761_v38  ;;  %v3825_v63 = vshrl.u32 %v14999_v53, 16  ;;  %v3807_v21 = vshll.u32 %v15202_v42, 16 }
 0x1d3   : > { %v3804_v38 = vor.u32 %v3803_v32, %v15204_v20  ;;  %v3814_v9 = vrot.slane %v3812_v60, 4  ;;  %v3817_v53 = vrot.slane %v3815_v52, 5  ;;  %v15241_v60 = vrot.slane %v3821_v13, 5 }
 0x1d4   : > { %v3827_v52 = vrot.slane %v3825_v63, 4  ;;  %v3776_v32 = vsel %vm13809_vm4, %v15210_v6, %v15164_v26  ;;  %v15261_v6 = vld [vmem:[%s13774_s10 + $0x7c] sm:$0xf] }
 0x1d5   : > { %v3805_v63 = vrot.slane %v3804_v38, 4  ;;  %v3873_v38 = vshrl.u32 %v15022_v39, 16 }
 0x1d6   : > { %12537 = vmatmul.mubr.msk.bf16.gmra.mrb[24].mxu0 %vm766_vm3, %v13637_v3  ;;  %v4540_v3 = vrot.slane %v15192_v55, 5 }
 0x1d7   : > { %12540 = vmatprep.mubr.msk.bf16.mxu0 %vm766_vm3, %v13638_v36  ;;  %v3752_v36 = vsel %vm13809_vm4, %v3747_v25, %v15130_v14  ;;  %v15226_v14 = vrot.slane %v3780_v18, 4  ;;  %v3794_v25 = vor.u32 %v3793_v34, %v3790_v16  ;;  %v3845_v18 = vshll.u32 %v15220_v24, 16 }
 0x1d8   : > { %v4542_v19 = vrot.slane %v4540_v3, 4  ;;  %v15224_v12 = vsel %vm14124_vm7, %v11455_v15, %v4540_v3  ;;  %v3836_v15 = vshrl.u32 %v11361_v57, 16  ;;  %v3839_v3 = vshll.u32 %v11361_v57, 16 }
 0x1d9   : > { %17940 = vst [vmem:[#allocation11_spill] sm:$0xff] %v15224_v12  ;;  %v3849_v16 = vshrl.u32 %v15220_v24, 16  ;;  %v4644_v34 = vsel %vm815_vm0, %v14989_v28, 0  ;;  %v11364_v28 = vld [vmem:[%s13774_s10 + $0x6c] sm:$0xf]  ;;  %v3795_v13 = vrot.slane %v3794_v25, 4  ;;  %v3818_v57 = vor.u32 %v3817_v53, %v3814_v9 }
 0x1da   : > { %v15231_v51 = vsel %vm14124_vm7, %v4542_v19, %v4543_v56  ;;  %v11393_v19 = vcombine.low %v3728_v27, %v3738_v44  ;;  %v11394_v56 = vcombine.low %v3752_v36, %v3762_v40  ;;  %v3809_v27 = vrot.slane %v3807_v21, 5  ;;  %v15253_v44 = vld [vmem:[%s13774_s10 + $0x68] sm:$0x1]  ;;  %v11367_v40 = vld [vmem:[%s13774_s10 + $0x78] sm:$0xf] }
 0x1db   : > { %17941 = vst [vmem:[#allocation3_spill] sm:$0xff] %v15231_v51  ;;  %v3838_v36 = vrot.slane %v3836_v15, 4  ;;  %v3841_v48 = vrot.slane %v3839_v3, 5  ;;  %v15258_v51 = vrot.slane %v3845_v18, 5  ;;  %v3851_v26 = vrot.slane %v3849_v16, 4 }
 0x1dc   : > { %v3828_v12 = vor.u32 %v3827_v52, %v15241_v60  ;;  %v3863_v21 = vshll.u32 %v11364_v28, 16  ;;  %v3869_v25 = vshll.u32 %v15022_v39, 16  ;;  %v3887_v9 = vshll.u32 %v11367_v40, 16  ;;  %v11370_v39 = vld [vmem:[%s13774_s10 + $0x84] sm:$0xf] }
 0x1dd   : > { %v3800_v53 = vsel %vm13809_vm4, %v3795_v13, %v15204_v20  ;;  %v3810_v15 = vsel %vm13809_vm4, %v3805_v63, %v3809_v27  ;;  %v3893_v3 = vshll.u32 %v15261_v6, 16  ;;  %v3897_v18 = vshrl.u32 %v15261_v6, 16 }
 0x1de   : > { %12541 = vmatmul.mubr.msk.bf16.gmra.mrb[28].mxu0 %vm766_vm3, %v13639_v35  ;;  %v3786_v35 = vsel %vm13809_vm4, %v15226_v14, %v15212_v8  ;;  %v3855_v8 = vshll.u32 %v15253_v44, 16  ;;  %v3860_v14 = vshrl.u32 %v11364_v28, 16  ;;  %v3819_v16 = vrot.slane %v3818_v57, 4 }
 0x1df   : > { %12546 = vmatprep.mubr.msk.bf16.mxu0 %vm766_vm3, %v11392_v61  ;;  %v3831_v61 = vshll.u32 %v15002_v31, 16  ;;  %v3884_v31 = vshrl.u32 %v11367_v40, 16  ;;  %v3842_v28 = vor.u32 %v3841_v48, %v3838_v36  ;;  %v3852_v49 = vor.u32 %v3851_v26, %v15258_v51 }
 0x1e0   : > { %v3829_v40 = vrot.slane %v3828_v12, 4  ;;  %v3857_v58 = vrot.slane %v3855_v8, 5  ;;  %v3862_v30 = vrot.slane %v3860_v14, 4  ;;  %v3865_v20 = vrot.slane %v3863_v21, 5 }
 0x1e1   : > { %v3833_v52 = vrot.slane %v3831_v61, 5  ;;  %v15278_v27 = vrot.slane %v3869_v25, 5  ;;  %v3875_v13 = vrot.slane %v3873_v38, 4  ;;  %v3886_v63 = vrot.slane %v3884_v31, 4 }
 0x1e2   : > { %v3889_v57 = vrot.slane %v3887_v9, 5  ;;  %v15283_v48 = vrot.slane %v3893_v3, 5  ;;  %v3899_v61 = vrot.slane %v3897_v18, 4  ;;  %v3911_v12 = vshll.u32 %v11370_v39, 16  ;;  %v11373_v3 = vld [vmem:[%s13774_s10 + $0x90] sm:$0xf] }
 0x1e3   : > { %v3843_v36 = vrot.slane %v3842_v28, 4  ;;  %v3853_v26 = vrot.slane %v3852_v49, 4  ;;  %v11395_v8 = vcombine.low %v3776_v32, %v3786_v35  ;;  %v11396_v14 = vcombine.low %v3800_v53, %v3810_v15  ;;  %v15297_v18 = vld [vmem:[%s13774_s10 + $0x94] sm:$0xf] }
 0x1e4   : > { %v3824_v21 = vsel %vm13809_vm4, %v3819_v16, %v15241_v60  ;;  %v3834_v25 = vsel %vm13809_vm4, %v3829_v40, %v3833_v52  ;;  %v3866_v38 = vor.u32 %v3865_v20, %v3862_v30  ;;  %v3876_v31 = vor.u32 %v3875_v13, %v15278_v27 }
 0x1e5   : > { %v3879_v9 = vshll.u32 %v15025_v5, 16  ;;  %v3903_v49 = vshll.u32 %v15281_v41, 16  ;;  %v3900_v32 = vor.u32 %v3899_v61, %v15283_v48  ;;  %v3913_v53 = vrot.slane %v3911_v12, 5 }
 0x1e6   : > { %12547 = vmatmul.mubr.msk.bf16.vlgmr.msra.gmra.mrb[0].mxu0 %vm766_vm3, %v11393_v19  ;;  %v3908_v19 = vshrl.u32 %v11370_v39, 16  ;;  %v3848_v60 = vsel %vm13809_vm4, %v3843_v36, %v15258_v51  ;;  %v3858_v30 = vsel %vm13809_vm4, %v3853_v26, %v3857_v58  ;;  %v3932_v16 = vshrl.u32 %v11373_v3, 16 }
 0x1e7   : > { %12579 = vmatpush3.bf16.msra.mxu0 %v4644_v34  ;;  %12550 = vmatprep.mubr.msk.bf16.mxu0 %vm766_vm3, %v11394_v56  ;;  %v3917_v34 = vshll.u32 %v15052_v43, 16  ;;  %v3921_v56 = vshrl.u32 %v15052_v43, 16  ;;  %v3890_v43 = vor.u32 %v3889_v57, %v3886_v63  ;;  %v3935_v52 = vshll.u32 %v11373_v3, 16 }
 0x1e8   : > { %v3910_v35 = vrot.slane %v3908_v19, 4  ;;  %v3941_v28 = vshll.u32 %v15297_v18, 16  ;;  %v3945_v39 = vshrl.u32 %v15297_v18, 16  ;;  %v3867_v40 = vrot.slane %v3866_v38, 4  ;;  %v11376_v19 = vld [vmem:[%s13774_s10 + $0x9c] sm:$0xf] }
 0x1e9   : > { %v15305_v15 = vrot.slane %v3917_v34, 5  ;;  %v3923_v5 = vrot.slane %v3921_v56, 4  ;;  %v3877_v51 = vrot.slane %v3876_v31, 4  ;;  %v3881_v20 = vrot.slane %v3879_v9, 5  ;;  %v15315_v34 = vld [vmem:[%s13774_s10 + $0x98] sm:$0x1] }
 0x1ea   : > { %v3905_v13 = vrot.slane %v3903_v49, 5  ;;  %v3891_v58 = vrot.slane %v3890_v43, 4  ;;  %v3901_v63 = vrot.slane %v3900_v32, 4  ;;  %v3914_v57 = vor.u32 %v3913_v53, %v3910_v35 }
 0x1eb   : > { %v3927_v61 = vshll.u32 %v15055_v50, 16  ;;  %v11397_v12 = vcombine.low %v3824_v21, %v3834_v25  ;;  %v11398_v36 = vcombine.low %v3848_v60, %v3858_v30  ;;  %v3924_v26 = vor.u32 %v3923_v5, %v15305_v15  ;;  %v11379_v21 = vld [vmem:[%s13774_s10 + $0xa8] sm:$0xf]  ;;  %v15326_v25 = vld [vmem:[%s13774_s10 + $0xac] sm:$0xf] }
 0x1ec   : > { %v3934_v56 = vrot.slane %v3932_v16, 4  ;;  %v3947_v38 = vrot.slane %v3945_v39, 4  ;;  %v3872_v31 = vsel %vm13809_vm4, %v3867_v40, %v15278_v27  ;;  %v3882_v9 = vsel %vm13809_vm4, %v3877_v51, %v3881_v20 }
 0x1ed   : > { %v3956_v50 = vshrl.u32 %v11376_v19, 16  ;;  %v3959_v49 = vshll.u32 %v11376_v19, 16  ;;  %v3896_v3 = vsel %vm13809_vm4, %v3891_v58, %v15283_v48  ;;  %v3906_v43 = vsel %vm13809_vm4, %v3901_v63, %v3905_v13  ;;  %v15349_v19 = vld [vmem:[%s13774_s10 + $0xb0] sm:$0x1] }
 0x1ee   : > { %12551 = vmatmul.mubr.msk.bf16.gmra.mrb[4].mxu0 %vm766_vm3, %v11395_v8  ;;  %v3937_v8 = vrot.slane %v3935_v52, 5  ;;  %v3915_v32 = vrot.slane %v3914_v57, 4  ;;  %v3929_v35 = vrot.slane %v3927_v61, 5  ;;  %v3925_v53 = vrot.slane %v3924_v26, 4 }
 0x1ef   : > { %12554 = vmatprep.mubr.msk.bf16.mxu0 %vm766_vm3, %v11396_v14  ;;  %v15317_v14 = vrot.slane %v3941_v28, 5  ;;  %v3951_v27 = vshll.u32 %v15315_v34, 16  ;;  %v3965_v60 = vshll.u32 %v15094_v0, 16  ;;  %v3969_v30 = vshrl.u32 %v15094_v0, 16 }
 0x1f0   : > { %v3980_v5 = vshrl.u32 %v11379_v21, 16  ;;  %v3983_v16 = vshll.u32 %v11379_v21, 16  ;;  %v3989_v52 = vshll.u32 %v15326_v25, 16  ;;  %v3993_v48 = vshrl.u32 %v15326_v25, 16 }
 0x1f1   : > { %v3938_v28 = vor.u32 %v3937_v8, %v3934_v56  ;;  %v3948_v39 = vor.u32 %v3947_v38, %v15317_v14  ;;  %v3958_v40 = vrot.slane %v3956_v50, 4  ;;  %v3961_v51 = vrot.slane %v3959_v49, 5  ;;  %v11382_v8 = vld [vmem:[%s13774_s10 + $0xb4] sm:$0xf] }
 0x1f2   : > { %v11399_v20 = vcombine.low %v3872_v31, %v3882_v9  ;;  %v11400_v13 = vcombine.low %v3896_v3, %v3906_v43  ;;  %v3920_v0 = vsel %vm13809_vm4, %v3915_v32, %v15305_v15  ;;  %v3930_v58 = vsel %vm13809_vm4, %v3925_v53, %v3929_v35  ;;  %v11385_v32 = vld [vmem:[%s13774_s10 + $0xc0] sm:$0xf]  ;;  %v15357_v35 = vld [vmem:[%s13774_s10 + $0xc4] sm:$0xf] }
 0x1f3   : > { %v3953_v63 = vrot.slane %v3951_v27, 5  ;;  %v15346_v57 = vrot.slane %v3965_v60, 5  ;;  %v3971_v61 = vrot.slane %v3969_v30, 4  ;;  %v3991_v26 = vrot.slane %v3989_v52, 5 }
 0x1f4   : > { %v3995_v56 = vrot.slane %v3993_v48, 4  ;;  %v3939_v38 = vrot.slane %v3938_v28, 4  ;;  %v3949_v31 = vrot.slane %v3948_v39, 4  ;;  %v3962_v9 = vor.u32 %v3961_v51, %v3958_v40 }
 0x1f5   : > { %v3975_v15 = vshll.u32 %v15097_v7, 16  ;;  %v3999_v50 = vshll.u32 %v15349_v19, 16  ;;  %v11401_v49 = vcombine.low %v3920_v0, %v3930_v58  ;;  %v3972_v21 = vor.u32 %v3971_v61, %v15346_v57 }
 0x1f6   : > { %12555 = vmatmul.mubr.msk.bf16.gmra.mrb[8].mxu0 %vm766_vm3, %v11397_v12  ;;  %v3982_v12 = vrot.slane %v3980_v5, 4  ;;  %v4004_v3 = vshrl.u32 %v11382_v8, 16  ;;  %v4007_v43 = vshll.u32 %v11382_v8, 16  ;;  %v3996_v27 = vor.u32 %v3995_v56, %v3991_v26 }
 0x1f7   : > { %12558 = vmatprep.mubr.msk.bf16.mxu0 %vm766_vm3, %v11398_v36  ;;  %v3985_v36 = vrot.slane %v3983_v16, 5  ;;  %v4013_v60 = vshll.u32 %v15136_v23, 16  ;;  %v4017_v30 = vshrl.u32 %v15136_v23, 16  ;;  %v3944_v7 = vsel %vm13809_vm4, %v3939_v38, %v15317_v14  ;;  %v11388_v38 = vld [vmem:[%s13774_s10 + $0xcc] sm:$0xf] }
 0x1f8   : > { %v3954_v5 = vsel %vm13809_vm4, %v3949_v31, %v3953_v63  ;;  %v3963_v16 = vrot.slane %v3962_v9, 4  ;;  %v3977_v52 = vrot.slane %v3975_v15, 5  ;;  %v4028_v48 = vshrl.u32 %v11385_v32, 16 }
 0x1f9   : > { %v3986_v53 = vor.u32 %v3985_v36, %v3982_v12  ;;  %v4031_v28 = vshll.u32 %v11385_v32, 16  ;;  %v4037_v39 = vshll.u32 %v15357_v35, 16  ;;  %v4041_v40 = vshrl.u32 %v15357_v35, 16 }
 0x1fa   : > { %v3973_v51 = vrot.slane %v3972_v21, 4  ;;  %v4001_v23 = vrot.slane %v3999_v50, 5  ;;  %v3997_v58 = vrot.slane %v3996_v27, 4  ;;  %v4015_v14 = vrot.slane %v4013_v60, 5  ;;  %v15377_v50 = vld [vmem:[%s13774_s10 + $0xc8] sm:$0x1] }
 0x1fb   : > { %v3987_v0 = vrot.slane %v3986_v53, 4  ;;  %v4019_v61 = vrot.slane %v4017_v30, 4  ;;  %v11402_v12 = vcombine.low %v3944_v7, %v3954_v5  ;;  %v4030_v63 = vrot.slane %v4028_v48, 4 }
 0x1fc   : > { %v4033_v36 = vrot.slane %v4031_v28, 5  ;;  %v4039_v56 = vrot.slane %v4037_v39, 5  ;;  %v4043_v8 = vrot.slane %v4041_v40, 4  ;;  %v3968_v31 = vsel %vm13809_vm4, %v3963_v16, %v15346_v57 }
 0x1fd   : > { %v3978_v9 = vsel %vm13809_vm4, %v3973_v51, %v3977_v52  ;;  %v3992_v21 = vsel %vm13809_vm4, %v3987_v0, %v3991_v26  ;;  %v4023_v32 = vshll.u32 %v15139_v47, 16  ;;  %v4052_v57 = vshrl.u32 %v11388_v38, 16 }
 0x1fe   : > { %12559 = vmatmul.mubr.msk.bf16.gmra.mrb[12].mxu0 %vm766_vm3, %v11399_v20  ;;  %v4006_v20 = vrot.slane %v4004_v3, 4  ;;  %v4002_v3 = vsel %vm13809_vm4, %v3997_v58, %v4001_v23  ;;  %v4055_v53 = vshll.u32 %v11388_v38, 16  ;;  %v4061_v27 = vshll.u32 %v15192_v55, 16 }
 0x1ff   : > { %12562 = vmatprep.mubr.msk.bf16.mxu0 %vm766_vm3, %v11400_v13  ;;  %v4009_v13 = vrot.slane %v4007_v43, 5  ;;  %v4020_v43 = vor.u32 %v4019_v61, %v4015_v14  ;;  %v4065_v60 = vshrl.u32 %v15192_v55, 16  ;;  %v4034_v30 = vor.u32 %v4033_v36, %v4030_v63 }
 0x200   : > { %v4044_v7 = vor.u32 %v4043_v8, %v4039_v56  ;;  %v11403_v5 = vcombine.low %v3968_v31, %v3978_v9  ;;  %v11404_v26 = vcombine.low %v3992_v21, %v4002_v3  ;;  %v4025_v48 = vrot.slane %v4023_v32, 5  ;;  %v11424_v8 = vld [vmem:[%s13774_s10 + $0x18] sm:$0xe] }
 0x201   : > { %v4010_v15 = vor.u32 %v4009_v13, %v4006_v20  ;;  %v4021_v52 = vrot.slane %v4020_v43, 4  ;;  %v4054_v28 = vrot.slane %v4052_v57, 4  ;;  %v4057_v39 = vrot.slane %v4055_v53, 5  ;;  %v11425_v53 = vld [vmem:[%s13774_s10 + $0x24] sm:$0xe] }
 0x202   : > { %v4063_v47 = vrot.slane %v4061_v27, 5  ;;  %v4067_v40 = vrot.slane %v4065_v60, 4  ;;  %v4035_v51 = vrot.slane %v4034_v30, 4  ;;  %v4045_v23 = vrot.slane %v4044_v7, 4  ;;  %v11426_v27 = vld [vmem:[%s13774_s10 + $0x30] sm:$0xe] }
 0x203   : > { %v4011_v16 = vrot.slane %v4010_v15, 4  ;;  %v4026_v13 = vsel %vm13809_vm4, %v4021_v52, %v4025_v48  ;;  %v4058_v0 = vor.u32 %v4057_v39, %v4054_v28  ;;  %v4071_v61 = vshll.u32 %v15195_v37, 16  ;;  %v11427_v39 = vld [vmem:[%s13774_s10 + $0x3c] sm:$0xe] }
 0x204   : > { %v4068_v58 = vor.u32 %v4067_v40, %v4063_v47  ;;  %v4435_v36 = vrot.slane %v15039_v11, 5  ;;  %v11440_v21 = vrot.slane %v11424_v8, 9  ;;  %v4438_v37 = vrot.slane %v15066_v62, 5 }
 0x205   : > { %v4016_v55 = vsel %vm13809_vm4, %v4011_v16, %v4015_v14  ;;  %v4059_v31 = vrot.slane %v4058_v0, 4  ;;  %v4073_v15 = vrot.slane %v4071_v61, 5  ;;  %v4442_v43 = vrot.slane %v15062_v46, 5 }
 0x206   : > { %12563 = vmatmul.mubr.msk.bf16.gmra.mrb[16].mxu0 %vm766_vm3, %v11401_v49  ;;  %v4047_v49 = vshll.u32 %v15377_v50, 16  ;;  %v11405_v14 = vcombine.low %v4016_v55, %v4026_v13  ;;  %v4069_v9 = vrot.slane %v4068_v58, 4  ;;  %v4437_v3 = vrot.slane %v4435_v36, 4 }
 0x207   : > { %12566 = vmatprep.mubr.msk.bf16.mxu0 %vm766_vm3, %v11402_v12  ;;  %v4040_v12 = vsel %vm13809_vm4, %v4035_v51, %v4039_v56  ;;  %v4064_v56 = vsel %vm13809_vm4, %v4059_v31, %v4063_v47  ;;  %v4436_v32 = vsel %vm14124_vm7, %v11440_v21, %v4435_v36  ;;  %v4449_v62 = vrot.slane %v15091_v17, 5  ;;  %v11428_v47 = vld [vmem:[%s13774_s10 + $0x48] sm:$0xe] }
 0x208   : > { %v4049_v20 = vrot.slane %v4047_v49, 5  ;;  %v4074_v11 = vsel %vm13809_vm4, %v4069_v9, %v4073_v15  ;;  %v4439_v57 = vsel %vm14124_vm7, %v4437_v3, %v4438_v37  ;;  %v11441_v7 = vrot.slane %v11425_v53, 9  ;;  %v11432_v15 = vld [vmem:[%s13774_s10 + $0x78] sm:$0xe] }
 0x209   : > { %v11407_v60 = vcombine.low %v4064_v56, %v4074_v11  ;;  %v11457_v30 = vcombine.low %v4436_v32, %v4439_v57  ;;  %v4444_v49 = vrot.slane %v4442_v43, 4  ;;  %v4451_v46 = vrot.slane %v4449_v62, 4  ;;  %v11434_v32 = vld [vmem:[%s13774_s10 + $0x90] sm:$0xe] }
 0x20a   : > { %v4050_v63 = vsel %vm13809_vm4, %v4045_v23, %v4049_v20  ;;  %v4452_v16 = vrot.slane %v15128_v45, 5  ;;  %v4443_v17 = vsel %vm14124_vm7, %v11441_v7, %v4442_v43  ;;  %v4456_v48 = vrot.slane %v15111_v59, 5 }
 0x20b   : > { %v11406_v38 = vcombine.low %v4040_v12, %v4050_v63  ;;  %v4463_v45 = vrot.slane %v15157_v29, 5  ;;  %v11443_v23 = vrot.slane %v11427_v39, 9  ;;  %v4459_v55 = vrot.slane %v15162_v2, 5  ;;  %v17948_v39 = vld [vmem:[#allocation7_spill] sm:$0xff] }
 0x20c   : > { %v4458_v20 = vrot.slane %v4456_v48, 4  ;;  %v11444_v13 = vrot.slane %v11428_v47, 9  ;;  %v4466_v59 = vrot.slane %v15202_v42, 5  ;;  %v4477_v12 = vrot.slane %v15220_v24, 5  ;;  %v11430_v42 = vld [vmem:[%s13774_s10 + $0x60] sm:$0xe] }
 0x20d   : > { %v4465_v0 = vrot.slane %v4463_v45, 4  ;;  %v4457_v58 = vsel %vm14124_vm7, %v11443_v23, %v4456_v48  ;;  %v11446_v8 = vrot.slane %v11430_v42, 9  ;;  %v4491_v24 = vrot.slane %v15261_v6, 5  ;;  %v17951_v23 = vld [vmem:[#allocation9_spill] sm:$0xff] }
 0x20e   : > { %12567 = vmatmul.mubr.msk.bf16.gmra.mrb[20].mxu0 %vm766_vm3, %v11403_v5  ;;  %v4445_v5 = vrot.slane %v15085_v1, 5  ;;  %v4453_v1 = vsel %vm14124_vm7, %v4451_v46, %v4452_v16  ;;  %v4460_v29 = vsel %vm14124_vm7, %v4458_v20, %v4459_v55  ;;  %v4464_v61 = vsel %vm14124_vm7, %v11444_v13, %v4463_v45  ;;  %v17949_v45 = vld [vmem:[#allocation8_spill] sm:$0xff]  ;;  %v17952_v20 = vld [vmem:[#allocation10_spill] sm:$0xff]  ;;  %v17955_v13 = vld [vmem:[#allocation3_spill] sm:$0xff] }
 0x20f   : > { %12570 = vmatprep.mubr.msk.bf16.mxu0 %vm766_vm3, %v11404_v26  ;;  %v11442_v26 = vrot.slane %v11426_v27, 9  ;;  %v4467_v2 = vsel %vm14124_vm7, %v4465_v0, %v4466_v59  ;;  %v11460_v63 = vcombine.low %v4457_v58, %v4460_v29  ;;  %v4478_v31 = vsel %vm14124_vm7, %v11446_v8, %v4477_v12 }
 0x210   : > { %v4446_v52 = vsel %vm14124_vm7, %v4444_v49, %v4445_v5  ;;  %v11461_v36 = vcombine.low %v4464_v61, %v4467_v2  ;;  %v11448_v3 = vrot.slane %v11432_v15, 9  ;;  %v4493_v37 = vrot.slane %v4491_v24, 4 }
 0x211   : > { %v4450_v28 = vsel %vm14124_vm7, %v11442_v26, %v4449_v62  ;;  %v11458_v40 = vcombine.low %v4443_v17, %v4446_v52  ;;  %v4494_v56 = vrot.slane %v15281_v41, 5  ;;  %v4505_v43 = vrot.slane %v15297_v18, 5  ;;  %v17946_v26 = vld [vmem:[#allocation6_spill] sm:$0xff]  ;;  %v11438_v52 = vld [vmem:[%s13774_s10 + $0xc0] sm:$0xe] }
 0x212   : > { %v11459_v51 = vcombine.low %v4450_v28, %v4453_v1  ;;  %v4492_v11 = vsel %vm14124_vm7, %v11448_v3, %v4491_v24  ;;  %v11450_v53 = vrot.slane %v11434_v32, 9  ;;  %v4508_v62 = vrot.slane %v15315_v34, 5  ;;  %v15583_v32 = vld [vmem:[%s17756_s2] ss:$0 sm:$0xff] }
 0x213   : > { %v4495_v6 = vsel %vm14124_vm7, %v4493_v37, %v4494_v56  ;;  %v4507_v41 = vrot.slane %v4505_v43, 4  ;;  %v4522_v5 = vrot.slane %v15349_v19, 5  ;;  %v11454_v28 = vrot.slane %v11438_v52, 9 }
 0x214   : > { %v11465_v57 = vcombine.low %v4492_v11, %v4495_v6  ;;  %v4506_v27 = vsel %vm14124_vm7, %v11450_v53, %v4505_v43  ;;  %v4536_v19 = vrot.slane %v15377_v50, 5  ;;  %v17950_v47 = vcombine.low %v17948_v39, %v17949_v45  ;;  %v17954_v50 = vld [vmem:[#allocation11_spill] sm:$0xff]  ;;  %v5535_v43 = vld [vmem:[%s17757_s3] sm:$0xf] }
 0x215   : > { %v4509_v18 = vsel %vm14124_vm7, %v4507_v41, %v4508_v62  ;;  %v17953_v55 = vcombine.low %v17951_v23, %v17952_v20  ;;  %v17956_v0 = vcombine.low %v17954_v50, %v17955_v13  ;;  %v13710_v59 = vmov 0  }
 0x216   : > { %12571 = vmatmul.mubr.msk.bf16.gmra.mrb[24].mxu0 %vm766_vm3, %v11405_v14  ;;  %v4479_v14 = vrot.slane %v4477_v12, 4  ;;  %v11467_v7 = vcombine.low %v4506_v27, %v4509_v18  ;;  %4918 = vst.msk [vmem:[#allocation2 + $0x18] sm:$0xf] %vm4910_vm8, %v13710_v59  ;;  %4911 = vst.msk [vmem:[#allocation2] sm:$0xf] %vm4910_vm8, %v13710_v59 }
 0x217   : > { %12574 = vmatprep.mubr.msk.bf16.mxu0 %vm766_vm3, %v11406_v38  ;;  %v4480_v38 = vrot.slane %v15253_v44, 5  ;;  %v17942_v44 = vcombine.low %v15011_v33, %v15016_v22  ;;  %v17943_v33 = vld [vmem:[#allocation4_spill] sm:$0xff]  ;;  %4912 = vst.msk [vmem:[#allocation2 + $0x4] sm:$0xf] %vm4910_vm8, %v13710_v59  ;;  %4915 = vst.msk [vmem:[#allocation2 + $0xc] sm:$0xf] %vm4910_vm8, %v13710_v59 }
 0x218   : > { %v17944_v22 = vcombine.low %v15035_v4, %v17943_v33  ;;  %v17945_v4 = vld [vmem:[#allocation5_spill] sm:$0xff]  ;;  %4916 = vst.msk [vmem:[#allocation2 + $0x10] sm:$0xf] %vm4910_vm8, %v13710_v59  ;;  %4919 = vst.msk [vmem:[#allocation2 + $0x1c] sm:$0xf] %vm4910_vm8, %v13710_v59 }
 0x219   : > { %v4481_v9 = vsel %vm14124_vm7, %v4479_v14, %v4480_v38  ;;  %v17947_v46 = vcombine.low %v17945_v4, %v17946_v26  ;;  %4921 = vst.msk [vmem:[#allocation2 + $0x24] sm:$0xf] %vm4910_vm8, %v13710_v59  ;;  %4922 = vst.msk [vmem:[#allocation2 + $0x28] sm:$0xf] %vm4910_vm8, %v13710_v59  ;;  %v11522_v38 = vld [vmem:[%s17757_s3 + $0x4] sm:$0xf] }
 0x21a   : > { %v11463_v21 = vcombine.low %v4478_v31, %v4481_v9  ;;  %4924 = vst.msk [vmem:[#allocation2 + $0x30] sm:$0xf] %vm4910_vm8, %v13710_v59  ;;  %4925 = vst.msk [vmem:[#allocation2 + $0x34] sm:$0xf] %vm4910_vm8, %v13710_v59  ;;  %13571 = vmatprep.subr.msk.bf16.mxu0 %vm6035_vm10, %v11522_v38  ;;  %v6037_v31 = vsel %vm6035_vm10, %v11522_v38, 0  ;;  %13572 = vmatprep.subr.msk.bf16.mxu1 %vm6035_vm10, %v11522_v38 }
 0x21b   : > { %4927 = vst.msk [vmem:[#allocation2 + $0x3c] sm:$0xf] %vm4910_vm8, %v13710_v59  ;;  %4928 = vst.msk [vmem:[#allocation2 + $0x40] sm:$0xf] %vm4910_vm8, %v13710_v59  ;;  %12953 = vmatpush3.bf16.msra.mxu1 %v6037_v31 }
 0x21c   : > { %4930 = vst.msk [vmem:[#allocation2 + $0x48] sm:$0xf] %vm4910_vm8, %v13710_v59  ;;  %4931 = vst.msk [vmem:[#allocation2 + $0x4c] sm:$0xf] %vm4910_vm8, %v13710_v59  ;;  %13573 = vmatprep.subr.msk.bf16.mxu1 %vm6035_vm10, %v5535_v43 }
 0x21d   : > { %4933 = vst.msk [vmem:[#allocation2 + $0x54] sm:$0xf] %vm4910_vm8, %v13710_v59  ;;  %4934 = vst.msk [vmem:[#allocation2 + $0x58] sm:$0xf] %vm4910_vm8, %v13710_v59  ;;  %v5503_v58 = vld [vmem:[#allocation2] sm:$0xf] }
 0x21e   : > { %12575 = vmatmul.mubr.msk.bf16.gmra.mrb[28].mxu0 %vm766_vm3, %v11407_v60  ;;  %v4519_v60 = vrot.slane %v15326_v25, 5  ;;  %v4533_v25 = vrot.slane %v15357_v35, 5  ;;  %4936 = vst.msk [vmem:[#allocation2 + $0x60] sm:$0xf] %vm4910_vm8, %v13710_v59  ;;  %4937 = vst.msk [vmem:[#allocation2 + $0x64] sm:$0xf] %vm4910_vm8, %v13710_v59 }
 0x21f   : > { %12580 = vmatprep.mubr.msk.bf16.mxu0 %vm766_vm3, %v11457_v30  ;;  %v11436_v30 = vld [vmem:[%s13774_s10 + $0xa8] sm:$0xe]  ;;  %4939 = vst.msk [vmem:[#allocation2 + $0x6c] sm:$0xf] %vm4910_vm8, %v13710_v59  ;;  %4940 = vst.msk [vmem:[#allocation2 + $0x70] sm:$0xf] %vm4910_vm8, %v13710_v59 }
 0x220   : > { %v11452_v49 = vrot.slane %v11436_v30, 9  ;;  %v4521_v34 = vrot.slane %v4519_v60, 4  ;;  %v4535_v1 = vrot.slane %v4533_v25, 4  ;;  %4942 = vst.msk [vmem:[#allocation2 + $0x78] sm:$0xf] %vm4910_vm8, %v13710_v59  ;;  %v5553_v61 = vshrl.u32 %v5503_v58, 16 }
 0x221   : > { %4943 = vst.msk [vmem:[#allocation2 + $0x7c] sm:$0xf] %vm4910_vm8, %v13710_v59  ;;  %4945 = vst.msk [vmem:[#allocation2 + $0x84] sm:$0xf] %vm4910_vm8, %v13710_v59  ;;  %v5504_v29 = vld [vmem:[#allocation2 + $0x4] sm:$0xf] }
 0x222   : > { %v4520_v16 = vsel %vm14124_vm7, %v11452_v49, %v4519_v60  ;;  %v4523_v17 = vsel %vm14124_vm7, %v4521_v34, %v4522_v5  ;;  %4946 = vst.msk [vmem:[#allocation2 + $0x88] sm:$0xf] %vm4910_vm8, %v13710_v59  ;;  %4948 = vst.msk [vmem:[#allocation2 + $0x90] sm:$0xf] %vm4910_vm8, %v13710_v59  ;;  %v5556_v2 = vshll.u32 %v5503_v58, 16  ;;  %v5562_v12 = vshll.u32 %v5504_v29, 16 }
 0x223   : > { %v11469_v48 = vcombine.low %v4520_v16, %v4523_v17  ;;  %4949 = vst.msk [vmem:[#allocation2 + $0x94] sm:$0xf] %vm4910_vm8, %v13710_v59  ;;  %4951 = vst.msk [vmem:[#allocation2 + $0x9c] sm:$0xf] %vm4910_vm8, %v13710_v59  ;;  %v5566_v42 = vshrl.u32 %v5504_v29, 16 }
 0x224   : > { %4952 = vst.msk [vmem:[#allocation2 + $0xa0] sm:$0xf] %vm4910_vm8, %v13710_v59  ;;  %4954 = vst.msk [vmem:[#allocation2 + $0xa8] sm:$0xf] %vm4910_vm8, %v13710_v59  ;;  %v5564_v8 = vrot.slane %v5562_v12, 5 }
 0x225   : > { %4955 = vst.msk [vmem:[#allocation2 + $0xac] sm:$0xf] %vm4910_vm8, %v13710_v59  ;;  %4957 = vst.msk [vmem:[#allocation2 + $0xb4] sm:$0xf] %vm4910_vm8, %v13710_v59  ;;  %v5568_v14 = vrot.slane %v5566_v42, 4 }
 0x226   : > { %12581 = vmatmul.mubr.msk.bf16.vlgmr.msra.gmra.mrb[0].mxu0 %vm766_vm3, %v11458_v40  ;;  %v4534_v40 = vsel %vm14124_vm7, %v11454_v28, %v4533_v25  ;;  %4958 = vst.msk [vmem:[#allocation2 + $0xb8] sm:$0xf] %vm4910_vm8, %v13710_v59  ;;  %4960 = vst.msk [vmem:[#allocation2 + $0xc0] sm:$0xf] %vm4910_vm8, %v13710_v59  ;;  %v5389_v13 = vld [vmem:[#allocation2 + $0xc] sm:$0xf] }
 0x227   : > { %12584 = vmatprep.mubr.msk.bf16.mxu0 %vm766_vm3, %v11459_v51  ;;  %v4537_v51 = vsel %vm14124_vm7, %v4535_v1, %v4536_v19  ;;  %4961 = vst.msk [vmem:[#allocation2 + $0xc4] sm:$0xf] %vm4910_vm8, %v13710_v59  ;;  %4963 = vst.msk [vmem:[#allocation2 + $0xcc] sm:$0xf] %vm4910_vm8, %v13710_v59  ;;  %v5569_v15 = vor.u32 %v5568_v14, %v5564_v8  ;;  %12613 = vmatpush3.bf16.msra.mxu0 %v6037_v31 }
 0x228   : > { %v11471_v35 = vcombine.low %v4534_v40, %v4537_v51  ;;  %4964 = vst.msk [vmem:[#allocation2 + $0xd0] sm:$0xf] %vm4910_vm8, %v13710_v59 }
 0x229   : > { %4920 = vst.msk [vmem:[#allocation2 + $0x20] sm:$0x1] %vm4913_vm9, %v13710_v59  ;;  %4914 = vst.msk [vmem:[#allocation2 + $0x8] sm:$0x1] %vm4913_vm9, %v13710_v59  ;;  %v5570_v37 = vrot.slane %v5569_v15, 4 }
 0x22a   : > { %4917 = vst.msk [vmem:[#allocation2 + $0x14] sm:$0x1] %vm4913_vm9, %v13710_v59  ;;  %4923 = vst.msk [vmem:[#allocation2 + $0x2c] sm:$0x1] %vm4913_vm9, %v13710_v59 }
 0x22b   : > { %4926 = vst.msk [vmem:[#allocation2 + $0x38] sm:$0x1] %vm4913_vm9, %v13710_v59  ;;  %4929 = vst.msk [vmem:[#allocation2 + $0x44] sm:$0x1] %vm4913_vm9, %v13710_v59 }
 0x22c   : > { %4932 = vst.msk [vmem:[#allocation2 + $0x50] sm:$0x1] %vm4913_vm9, %v13710_v59  ;;  %4935 = vst.msk [vmem:[#allocation2 + $0x5c] sm:$0x1] %vm4913_vm9, %v13710_v59 }
 0x22d   : > { %4938 = vst.msk [vmem:[#allocation2 + $0x68] sm:$0x1] %vm4913_vm9, %v13710_v59  ;;  %4941 = vst.msk [vmem:[#allocation2 + $0x74] sm:$0x1] %vm4913_vm9, %v13710_v59 }
 0x22e   : > { %12585 = vmatmul.mubr.msk.bf16.gmra.mrb[4].mxu0 %vm766_vm3, %v11460_v63  ;;  %4944 = vst.msk [vmem:[#allocation2 + $0x80] sm:$0x1] %vm4913_vm9, %v13710_v59  ;;  %4947 = vst.msk [vmem:[#allocation2 + $0x8c] sm:$0x1] %vm4913_vm9, %v13710_v59  ;;  %v5555_v63 = vrot.slane %v5553_v61, 4 }
 0x22f   : > { %12588 = vmatprep.mubr.msk.bf16.mxu0 %vm766_vm3, %v11461_v36  ;;  %4950 = vst.msk [vmem:[#allocation2 + $0x98] sm:$0x1] %vm4913_vm9, %v13710_v59  ;;  %4953 = vst.msk [vmem:[#allocation2 + $0xa4] sm:$0x1] %vm4913_vm9, %v13710_v59  ;;  %v5558_v36 = vrot.slane %v5556_v2, 5 }
 0x230   : > { %4956 = vst.msk [vmem:[#allocation2 + $0xb0] sm:$0x1] %vm4913_vm9, %v13710_v59  ;;  %4959 = vst.msk [vmem:[#allocation2 + $0xbc] sm:$0x1] %vm4913_vm9, %v13710_v59  ;;  %v5536_v9 = vld [vmem:[#allocation2 + $0x8] sm:$0x1] }
 0x231   : > { %4962 = vst.msk [vmem:[#allocation2 + $0xc8] sm:$0x1] %vm4913_vm9, %v13710_v59  ;;  %4965 = vst.msk [vmem:[#allocation2 + $0xd4] sm:$0x1] %vm4913_vm9, %v13710_v59  ;;  %v5559_v24 = vor.u32 %v5558_v36, %v5555_v63  ;;  %v5402_v42 = vld [vmem:[#allocation2 + $0x20] sm:$0x1] }
 0x232   : > { %v5395_v31 = vld [vmem:[#allocation2 + $0x14] sm:$0x1] }
 0x233   : > { %v5560_v3 = vrot.slane %v5559_v24, 4 }
 0x236   : > { %12589 = vmatmul.mubr.msk.bf16.gmra.mrb[8].mxu0 %vm766_vm3, %v17942_v44  ;;  %v5565_v44 = vsel %vm13809_vm4, %v5560_v3, %v5564_v8 }
 0x237   : > { %12592 = vmatprep.mubr.msk.bf16.mxu0 %vm766_vm3, %v11463_v21  ;;  %v5572_v21 = vshll.u32 %v5536_v9, 16 }
 0x239   : > { %v5574_v56 = vrot.slane %v5572_v21, 5 }
 0x23b   : > { %v5575_v11 = vsel %vm13809_vm4, %v5570_v37, %v5574_v56 }
 0x23c   : > { %v11523_v6 = vcombine.low %v5565_v44, %v5575_v11 }
 0x23e   : > { %12593 = vmatmul.mubr.msk.bf16.gmra.mrb[12].mxu0 %vm766_vm3, %v17944_v22 }
 0x23f   : > { %12596 = vmatprep.mubr.msk.bf16.mxu0 %vm766_vm3, %v11465_v57 }
 0x246   : > { %12597 = vmatmul.mubr.msk.bf16.gmra.mrb[16].mxu0 %vm766_vm3, %v17947_v46 }
 0x247   : > { %12600 = vmatprep.mubr.msk.bf16.mxu0 %vm766_vm3, %v11467_v7 }
 0x24e   : > { %12601 = vmatmul.mubr.msk.bf16.gmra.mrb[20].mxu0 %vm766_vm3, %v17950_v47  ;;  %v5398_v47 = vld [vmem:[#allocation2 + $0x18] sm:$0xf] }
 0x24f   : > { %12604 = vmatprep.mubr.msk.bf16.mxu0 %vm766_vm3, %v11469_v48 }
 0x256   : > { %12605 = vmatmul.mubr.msk.bf16.gmra.mrb[24].mxu0 %vm766_vm3, %v17953_v55 }
 0x257   : > { %12608 = vmatprep.mubr.msk.bf16.mxu0 %vm766_vm3, %v11471_v35 }
 0x25e   : > { %12609 = vmatmul.mubr.msk.bf16.gmra.mrb[28].mxu0 %vm766_vm3, %v17956_v0 }
 0x25f   : > { %12614 = vmatprep.mubr.msk.bf16.mxu0 %vm5986_vm11, %v11523_v6 }
 0x2f9   : > { %v12582_v57 = vpop.f32.mrb[0].mxu0 }
 0x2fa   : > { %v4848_v53 = vadd.f32 %v12582_v57, %v15583_v32  ;;  %v4680_v41 = vpop.f32.mrb[1].mxu0 }
 0x2fb   : > { %v4846_v62 = vadd.f32 %v15583_v32, %v4680_v41  ;;  %v12583_v33 = vpop.f32.mrb[2].mxu0 }
 0x2fc   : > { %v4880_v22 = vmax.f32 %v4848_v53, 0.0  ;;  %v4849_v27 = vadd.f32 %v12583_v33, %v15583_v32  ;;  %v4683_v18 = vpop.f32.mrb[3].mxu0 }
 0x2fd   : > { %v4878_v60 = vmax.f32 %v4846_v62, 0.0  ;;  %v4847_v30 = vadd.f32 %v15583_v32, %v4683_v18  ;;  %v5412_v18 = vld [vmem:[#allocation2 + $0x30] sm:$0xf] }
 0x2fe   : > { %v11953_v7 = vpack.c.bf16 %v4880_v22, %v4880_v22  ;;  %v4881_v49 = vmax.f32 %v4849_v27, 0.0 }
 0x2ff   : > { %v11951_v34 = vpack.c.bf16 %v4878_v60, %v4878_v60  ;;  %v4879_v5 = vmax.f32 %v4847_v30, 0.0 }
 0x300   : > { %v5083_v4 = vshrl.u32 %v11953_v7, 16  ;;  %v11954_v26 = vpack.c.bf16 %v4881_v49, %v4881_v49  ;;  %v5086_v46 = vshll.u32 %v11953_v7, 16 }
 0x301   : > { %v5066_v16 = vshrl.u32 %v11951_v34, 16  ;;  %v5069_v17 = vshll.u32 %v11951_v34, 16  ;;  %v11952_v25 = vpack.c.bf16 %v4879_v5, %v4879_v5  ;;  %v12586_v52 = vpop.f32.mrb[4].mxu0 }
 0x302   : > { %v5085_v48 = vrot.slane %v5083_v4, 7  ;;  %v5091_v28 = vshrl.u32 %v11954_v26, 16  ;;  %v5094_v1 = vshll.u32 %v11954_v26, 16  ;;  %v4852_v19 = vadd.f32 %v12586_v52, %v15583_v32  ;;  %v4696_v39 = vpop.f32.mrb[5].mxu0  ;;  %v5405_v4 = vld [vmem:[#allocation2 + $0x24] sm:$0xf] }
 0x303   : > { %v5068_v40 = vrot.slane %v5066_v16, 7  ;;  %v5074_v51 = vshrl.u32 %v11952_v25, 16  ;;  %v5077_v35 = vshll.u32 %v11952_v25, 16  ;;  %v4850_v23 = vadd.f32 %v15583_v32, %v4696_v39  ;;  %v12587_v20 = vpop.f32.mrb[6].mxu0 }
 0x304   : > { %v5088_v55 = vor.u32 %v5086_v46, %v5085_v48  ;;  %v5089_v50 = vrot.slane %v5085_v48, 4  ;;  %v5093_v59 = vrot.slane %v5091_v28, 7  ;;  %v4884_v58 = vmax.f32 %v4852_v19, 0.0  ;;  %v4699_v29 = vpop.f32.mrb[7].mxu0 }
 0x305   : > { %v5071_v61 = vor.u32 %v5069_v17, %v5068_v40  ;;  %v5072_v2 = vrot.slane %v5068_v40, 4  ;;  %v5076_v63 = vrot.slane %v5074_v51, 7  ;;  %v4882_v36 = vmax.f32 %v4850_v23, 0.0 }
 0x306   : > { %v5399_v8 = vsel %vm15592_vm15, %v5088_v55, %v5398_v47  ;;  %v5096_v14 = vor.u32 %v5094_v1, %v5093_v59  ;;  %v5098_v38 = vrot.slane %v5093_v59, 4  ;;  %v11957_v9 = vpack.c.bf16 %v4884_v58, %v4884_v58  ;;  %v5409_v59 = vld [vmem:[#allocation2 + $0x2c] sm:$0x1] }
 0x307   : > { %5400 = vst [vmem:[#allocation2 + $0x18] sm:$0xf] %v5399_v8  ;;  %v5390_v24 = vsel %vm15592_vm15, %v5071_v61, %v5389_v13  ;;  %v5079_v15 = vor.u32 %v5077_v35, %v5076_v63  ;;  %v5081_v21 = vrot.slane %v5076_v63, 4  ;;  %v11955_v3 = vpack.c.bf16 %v4882_v36, %v4882_v36  ;;  %v5416_v13 = vld [vmem:[#allocation2 + $0x38] sm:$0x1] }
 0x308   : > { %5391 = vst [vmem:[#allocation2 + $0xc] sm:$0xf] %v5390_v24  ;;  %v5097_v37 = vsel %vm15599_vm1, %v5089_v50, %v5096_v14  ;;  %v5403_v56 = vsel %vm15605_vm2, %v5098_v38, %v5402_v42  ;;  %v5117_v44 = vshrl.u32 %v11957_v9, 16  ;;  %v5120_v43 = vshll.u32 %v11957_v9, 16  ;;  %v5426_v9 = vld [vmem:[#allocation2 + $0x48] sm:$0xf] }
 0x309   : > { %5401 = vst.msk [vmem:[#allocation2 + $0x1c] sm:$0xf] %vm4910_vm8, %v5097_v37  ;;  %5404 = vst [vmem:[#allocation2 + $0x20] sm:$0x1] %v5403_v56  ;;  %v5080_v11 = vsel %vm15599_vm1, %v5072_v2, %v5079_v15  ;;  %v5396_v6 = vsel %vm15605_vm2, %v5081_v21, %v5395_v31  ;;  %v5100_v57 = vshrl.u32 %v11955_v3, 16  ;;  %v12590_v53 = vpop.f32.mrb[8].mxu0  ;;  %v4853_v62 = vadd.f32 %v12587_v20, %v15583_v32 }
 0x30a   : > { %5392 = vst.msk [vmem:[#allocation2 + $0x10] sm:$0xf] %vm4910_vm8, %v5080_v11  ;;  %5397 = vst [vmem:[#allocation2 + $0x14] sm:$0x1] %v5396_v6  ;;  %v15623_v41 = vrot.slane %v5117_v44, 7  ;;  %v4851_v33 = vadd.f32 %v15583_v32, %v4699_v29  ;;  %v4856_v22 = vadd.f32 %v12590_v53, %v15583_v32  ;;  %v4712_v27 = vpop.f32.mrb[9].mxu0 }
 0x30b   : > { %v5102_v60 = vrot.slane %v5100_v57, 7  ;;  %v5103_v30 = vshll.u32 %v11955_v3, 16  ;;  %v4854_v7 = vadd.f32 %v15583_v32, %v4712_v27  ;;  %v12591_v49 = vpop.f32.mrb[10].mxu0  ;;  %v4885_v26 = vmax.f32 %v4853_v62, 0.0  ;;  %v5419_v6 = vld [vmem:[#allocation2 + $0x3c] sm:$0xf] }
 0x30c   : > { %v5122_v34 = vor.u32 %v5120_v43, %v15623_v41  ;;  %v5123_v5 = vrot.slane %v15623_v41, 4  ;;  %v4883_v46 = vmax.f32 %v4851_v33, 0.0  ;;  %v4715_v16 = vpop.f32.mrb[11].mxu0  ;;  %v4888_v52 = vmax.f32 %v4856_v22, 0.0 }
 0x30d   : > { %v5105_v17 = vor.u32 %v5103_v30, %v5102_v60  ;;  %v5106_v25 = vrot.slane %v5102_v60, 4  ;;  %v4886_v48 = vmax.f32 %v4854_v7, 0.0  ;;  %v11958_v1 = vpack.c.bf16 %v4885_v26, %v4885_v26 }
 0x30e   : > { %v5413_v28 = vsel %vm15592_vm15, %v5122_v34, %v5412_v18  ;;  %v11956_v19 = vpack.c.bf16 %v4883_v46, %v4883_v46  ;;  %v4857_v39 = vadd.f32 %v12591_v49, %v15583_v32  ;;  %v11961_v40 = vpack.c.bf16 %v4888_v52, %v4888_v52 }
 0x30f   : > { %5414 = vst [vmem:[#allocation2 + $0x30] sm:$0xf] %v5413_v28  ;;  %v5406_v47 = vsel %vm15592_vm15, %v5105_v17, %v5405_v4  ;;  %v11959_v51 = vpack.c.bf16 %v4886_v48, %v4886_v48  ;;  %v4855_v35 = vadd.f32 %v15583_v32, %v4715_v16  ;;  %v5125_v23 = vshrl.u32 %v11958_v1, 16  ;;  %v5430_v48 = vld [vmem:[#allocation2 + $0x50] sm:$0x1] }
 0x310   : > { %5407 = vst [vmem:[#allocation2 + $0x24] sm:$0xf] %v5406_v47  ;;  %v5128_v20 = vshll.u32 %v11958_v1, 16  ;;  %v5108_v55 = vshrl.u32 %v11956_v19, 16  ;;  %v5111_v50 = vshll.u32 %v11956_v19, 16  ;;  %v5151_v58 = vshrl.u32 %v11961_v40, 16 }
 0x311   : > { %v5154_v29 = vshll.u32 %v11961_v40, 16  ;;  %v5134_v61 = vshrl.u32 %v11959_v51, 16  ;;  %v5137_v2 = vshll.u32 %v11959_v51, 16  ;;  %v12594_v42 = vpop.f32.mrb[12].mxu0  ;;  %v5127_v63 = vrot.slane %v5125_v23, 7 }
 0x312   : > { %v5110_v36 = vrot.slane %v5108_v55, 7  ;;  %v4889_v8 = vmax.f32 %v4857_v39, 0.0  ;;  %v4887_v14 = vmax.f32 %v4855_v35, 0.0  ;;  %v4728_v38 = vpop.f32.mrb[13].mxu0  ;;  %v15637_v31 = vrot.slane %v5151_v58, 7 }
 0x313   : > { %v15639_v24 = vrot.slane %v5134_v61, 7  ;;  %v4860_v15 = vadd.f32 %v12594_v42, %v15583_v32  ;;  %v4858_v21 = vadd.f32 %v15583_v32, %v4728_v38  ;;  %v12595_v3 = vpop.f32.mrb[14].mxu0  ;;  %v5130_v37 = vor.u32 %v5128_v20, %v5127_v63  ;;  %v5423_v35 = vld [vmem:[#allocation2 + $0x44] sm:$0x1] }
 0x314   : > { %v5132_v56 = vrot.slane %v5127_v63, 4  ;;  %v5113_v44 = vor.u32 %v5111_v50, %v5110_v36  ;;  %v5115_v11 = vrot.slane %v5110_v36, 4  ;;  %v4731_v43 = vpop.f32.mrb[15].mxu0  ;;  %v5156_v57 = vor.u32 %v5154_v29, %v15637_v31 }
 0x315   : > { %v5157_v53 = vrot.slane %v15637_v31, 4  ;;  %v5139_v41 = vor.u32 %v5137_v2, %v15639_v24  ;;  %v5140_v62 = vrot.slane %v15639_v24, 4  ;;  %v5131_v33 = vsel %vm15599_vm1, %v5123_v5, %v5130_v37 }
 0x316   : > { %v5417_v22 = vsel %vm15605_vm2, %v5132_v56, %v5416_v13  ;;  %v5114_v27 = vsel %vm15599_vm1, %v5106_v25, %v5113_v44  ;;  %v5410_v18 = vsel %vm15605_vm2, %v5115_v11, %v5409_v59  ;;  %5415 = vst.msk [vmem:[#allocation2 + $0x34] sm:$0xf] %vm4910_vm8, %v5131_v33  ;;  %v5427_v60 = vsel %vm15592_vm15, %v5156_v57, %v5426_v9 }
 0x317   : > { %5418 = vst [vmem:[#allocation2 + $0x38] sm:$0x1] %v5417_v22  ;;  %5408 = vst.msk [vmem:[#allocation2 + $0x28] sm:$0xf] %vm4910_vm8, %v5114_v27  ;;  %v5420_v30 = vsel %vm15592_vm15, %v5139_v41, %v5419_v6  ;;  %v11962_v7 = vpack.c.bf16 %v4889_v8, %v4889_v8  ;;  %v11960_v49 = vpack.c.bf16 %v4887_v14, %v4887_v14  ;;  %v4892_v34 = vmax.f32 %v4860_v15, 0.0 }
 0x318   : > { %5411 = vst [vmem:[#allocation2 + $0x2c] sm:$0x1] %v5410_v18  ;;  %5428 = vst [vmem:[#allocation2 + $0x48] sm:$0xf] %v5427_v60  ;;  %v4890_v5 = vmax.f32 %v4858_v21, 0.0  ;;  %v4861_v4 = vadd.f32 %v12595_v3, %v15583_v32  ;;  %v4859_v26 = vadd.f32 %v15583_v32, %v4731_v43 }
 0x319   : > { %5421 = vst [vmem:[#allocation2 + $0x3c] sm:$0xf] %v5420_v30  ;;  %v5159_v46 = vshrl.u32 %v11962_v7, 16  ;;  %v5162_v16 = vshll.u32 %v11962_v7, 16  ;;  %v5142_v17 = vshrl.u32 %v11960_v49, 16  ;;  %v5145_v25 = vshll.u32 %v11960_v49, 16 }
 0x31a   : > { %v12598_v52 = vpop.f32.mrb[16].mxu0  ;;  %v11965_v28 = vpack.c.bf16 %v4892_v34, %v4892_v34  ;;  %v11963_v1 = vpack.c.bf16 %v4890_v5, %v4890_v5  ;;  %v4893_v19 = vmax.f32 %v4861_v4, 0.0  ;;  %v4891_v39 = vmax.f32 %v4859_v26, 0.0  ;;  %v5440_v21 = vld [vmem:[#allocation2 + $0x60] sm:$0xf] }
 0x31b   : > { %v4744_v47 = vpop.f32.mrb[17].mxu0  ;;  %v5161_v40 = vrot.slane %v5159_v46, 7  ;;  %v5144_v51 = vrot.slane %v5142_v17, 7  ;;  %v4864_v23 = vadd.f32 %v12598_v52, %v15583_v32  ;;  %v5433_v3 = vld [vmem:[#allocation2 + $0x54] sm:$0xf] }
 0x31c   : > { %v4862_v20 = vadd.f32 %v15583_v32, %v4744_v47  ;;  %v12599_v55 = vpop.f32.mrb[18].mxu0  ;;  %v5185_v50 = vshrl.u32 %v11965_v28, 16  ;;  %v5188_v13 = vshll.u32 %v11965_v28, 16  ;;  %v5168_v59 = vshrl.u32 %v11963_v1, 16  ;;  %v5505_v6 = vld [vmem:[#allocation2 + $0xc] sm:$0xf] }
 0x31d   : > { %v5171_v58 = vshll.u32 %v11963_v1, 16  ;;  %v4747_v29 = vpop.f32.mrb[19].mxu0  ;;  %v5164_v61 = vor.u32 %v5162_v16, %v5161_v40  ;;  %v5166_v2 = vrot.slane %v5161_v40, 4  ;;  %v5147_v42 = vor.u32 %v5145_v25, %v5144_v51  ;;  %v5444_v27 = vld [vmem:[#allocation2 + $0x68] sm:$0x1] }
 0x31e   : > { %v5149_v63 = vrot.slane %v5144_v51, 4  ;;  %v5187_v36 = vrot.slane %v5185_v50, 7  ;;  %v5170_v8 = vrot.slane %v5168_v59, 7  ;;  %v11966_v14 = vpack.c.bf16 %v4893_v19, %v4893_v19  ;;  %v5437_v18 = vld [vmem:[#allocation2 + $0x5c] sm:$0x1] }
 0x31f   : > { %v11964_v38 = vpack.c.bf16 %v4891_v39, %v4891_v39  ;;  %v5165_v31 = vsel %vm15599_vm1, %v5157_v53, %v5164_v61  ;;  %v5431_v9 = vsel %vm15605_vm2, %v5166_v2, %v5430_v48  ;;  %v5148_v24 = vsel %vm15599_vm1, %v5140_v62, %v5147_v42  ;;  %v5506_v17 = vld [vmem:[#allocation2 + $0x10] sm:$0xf]  ;;  %v5447_v59 = vld [vmem:[#allocation2 + $0x6c] sm:$0xf]  ;;  %v5537_v42 = vld [vmem:[#allocation2 + $0x14] sm:$0x1] }
 0x320   : > { %v5424_v15 = vsel %vm15605_vm2, %v5149_v63, %v5423_v35  ;;  %5429 = vst.msk [vmem:[#allocation2 + $0x4c] sm:$0xf] %vm4910_vm8, %v5165_v31  ;;  %5432 = vst [vmem:[#allocation2 + $0x50] sm:$0x1] %v5431_v9  ;;  %v5190_v37 = vor.u32 %v5188_v13, %v5187_v36  ;;  %v5191_v56 = vrot.slane %v5187_v36, 4  ;;  %v5173_v44 = vor.u32 %v5171_v58, %v5170_v8 }
 0x321   : > { %5422 = vst.msk [vmem:[#allocation2 + $0x40] sm:$0xf] %vm4910_vm8, %v5148_v24  ;;  %5425 = vst [vmem:[#allocation2 + $0x44] sm:$0x1] %v5424_v15  ;;  %v5174_v11 = vrot.slane %v5170_v8, 4  ;;  %v5193_v43 = vshrl.u32 %v11966_v14, 16  ;;  %v4865_v5 = vadd.f32 %v12599_v55, %v15583_v32  ;;  %v4863_v4 = vadd.f32 %v15583_v32, %v4747_v29 }
 0x322   : > { %v5196_v57 = vshll.u32 %v11966_v14, 16  ;;  %v5176_v53 = vshrl.u32 %v11964_v38, 16  ;;  %v5179_v41 = vshll.u32 %v11964_v38, 16  ;;  %v15675_v62 = vpop.f32.mrb[20].mxu0  ;;  %v5441_v33 = vsel %vm15592_vm15, %v5190_v37, %v5440_v21  ;;  %v5454_v13 = vld [vmem:[#allocation2 + $0x78] sm:$0xf] }
 0x323   : > { %v5434_v22 = vsel %vm15592_vm15, %v5173_v44, %v5433_v3  ;;  %v4896_v60 = vmax.f32 %v4864_v23, 0.0  ;;  %v4894_v30 = vmax.f32 %v4862_v20, 0.0  ;;  %v15681_v7 = vpop.f32.mrb[21].mxu0  ;;  %5442 = vst [vmem:[#allocation2 + $0x60] sm:$0xf] %v5441_v33  ;;  %v5195_v49 = vrot.slane %v5193_v43, 7 }
 0x324   : > { %5435 = vst [vmem:[#allocation2 + $0x54] sm:$0xf] %v5434_v22  ;;  %v5178_v34 = vrot.slane %v5176_v53, 7  ;;  %v15685_v26 = vpop.f32.mrb[22].mxu0  ;;  %v5577_v25 = vshrl.u32 %v5505_v6, 16  ;;  %v5580_v52 = vshll.u32 %v5505_v6, 16 }
 0x325   : > { %v11969_v46 = vpack.c.bf16 %v4896_v60, %v4896_v60  ;;  %v11967_v16 = vpack.c.bf16 %v4894_v30, %v4894_v30  ;;  %v15687_v48 = vpop.f32.mrb[23].mxu0  ;;  %v5198_v28 = vor.u32 %v5196_v57, %v5195_v49  ;;  %v5200_v1 = vrot.slane %v5195_v49, 4  ;;  %v5508_v33 = vld [vmem:[#allocation2 + $0x1c] sm:$0xf] }
 0x326   : > { %v5181_v19 = vor.u32 %v5179_v41, %v5178_v34  ;;  %v5183_v39 = vrot.slane %v5178_v34, 4  ;;  %v4897_v61 = vmax.f32 %v4865_v5, 0.0  ;;  %v4895_v2 = vmax.f32 %v4863_v4, 0.0 }
 0x327   : > { %v5219_v47 = vshrl.u32 %v11969_v46, 16  ;;  %v5222_v40 = vshll.u32 %v11969_v46, 16  ;;  %v5202_v51 = vshrl.u32 %v11967_v16, 16  ;;  %v5205_v35 = vshll.u32 %v11967_v16, 16  ;;  %v5458_v16 = vld [vmem:[#allocation2 + $0x80] sm:$0x1] }
 0x328   : > { %v5199_v23 = vsel %vm15599_vm1, %v5191_v56, %v5198_v28  ;;  %v5445_v20 = vsel %vm15605_vm2, %v5200_v1, %v5444_v27  ;;  %v5182_v55 = vsel %vm15599_vm1, %v5174_v11, %v5181_v19  ;;  %v5438_v50 = vsel %vm15605_vm2, %v5183_v39, %v5437_v18  ;;  %v5507_v11 = vld [vmem:[#allocation2 + $0x18] sm:$0xf]  ;;  %v5451_v28 = vld [vmem:[#allocation2 + $0x74] sm:$0x1] }
 0x329   : > { %5443 = vst.msk [vmem:[#allocation2 + $0x64] sm:$0xf] %vm4910_vm8, %v5199_v23  ;;  %5446 = vst [vmem:[#allocation2 + $0x68] sm:$0x1] %v5445_v20  ;;  %v5221_v58 = vrot.slane %v5219_v47, 7  ;;  %v5204_v29 = vrot.slane %v5202_v51, 7  ;;  %v11970_v3 = vpack.c.bf16 %v4897_v61, %v4897_v61  ;;  %v11968_v37 = vpack.c.bf16 %v4895_v2, %v4895_v2 }
 0x32a   : > { %5436 = vst.msk [vmem:[#allocation2 + $0x58] sm:$0xf] %vm4910_vm8, %v5182_v55  ;;  %5439 = vst [vmem:[#allocation2 + $0x5c] sm:$0x1] %v5438_v50  ;;  %v5579_v63 = vrot.slane %v5577_v25, 4  ;;  %v5582_v36 = vrot.slane %v5580_v52, 5 }
 0x32b   : > { %v5586_v8 = vshll.u32 %v5506_v17, 16  ;;  %v5590_v14 = vshrl.u32 %v5506_v17, 16  ;;  %v15699_v38 = vpop.f32.mrb[24].mxu0  ;;  %v5224_v31 = vor.u32 %v5222_v40, %v5221_v58  ;;  %v5225_v9 = vrot.slane %v5221_v58, 4  ;;  %v5538_v20 = vld [vmem:[#allocation2 + $0x20] sm:$0x1] }
 0x32c   : > { %v5207_v24 = vor.u32 %v5205_v35, %v5204_v29  ;;  %v5208_v15 = vrot.slane %v5204_v29, 4  ;;  %v15701_v21 = vpop.f32.mrb[25].mxu0  ;;  %v5583_v56 = vor.u32 %v5582_v36, %v5579_v63  ;;  %v5596_v41 = vshll.u32 %v5537_v42, 16  ;;  %v5509_v29 = vld [vmem:[#allocation2 + $0x24] sm:$0xf] }
 0x32d   : > { %v5588_v44 = vrot.slane %v5586_v8, 5  ;;  %v15703_v6 = vpop.f32.mrb[26].mxu0  ;;  %v5455_v43 = vsel %vm15592_vm15, %v5224_v31, %v5454_v13  ;;  %v5592_v53 = vrot.slane %v5590_v14, 4  ;;  %v5227_v27 = vshrl.u32 %v11970_v3, 16 }
 0x32e   : > { %v5448_v57 = vsel %vm15592_vm15, %v5207_v24, %v5447_v59  ;;  %v15709_v22 = vpop.f32.mrb[27].mxu0  ;;  %5456 = vst [vmem:[#allocation2 + $0x78] sm:$0xf] %v5455_v43  ;;  %v5230_v18 = vshll.u32 %v11970_v3, 16  ;;  %v5210_v60 = vshrl.u32 %v11968_v37, 16  ;;  %v5213_v30 = vshll.u32 %v11968_v37, 16 }
 0x32f   : > { %5449 = vst [vmem:[#allocation2 + $0x6c] sm:$0xf] %v5448_v57  ;;  %v5584_v49 = vrot.slane %v5583_v56, 4  ;;  %v5593_v34 = vor.u32 %v5592_v53, %v5588_v44  ;;  %v5598_v5 = vrot.slane %v5596_v41, 5  ;;  %v5601_v4 = vshrl.u32 %v5507_v11, 16 }
 0x330   : > { %v5229_v46 = vrot.slane %v5227_v27, 7  ;;  %v5212_v17 = vrot.slane %v5210_v60, 7  ;;  %v5604_v25 = vshll.u32 %v5507_v11, 16  ;;  %v5610_v52 = vshll.u32 %v5508_v33, 16  ;;  %v15741_v11 = vld [vmem:[#allocation2 + $0x28] sm:$0xf] }
 0x331   : > { %v5589_v1 = vsel %vm13809_vm4, %v5584_v49, %v5588_v44  ;;  %v5594_v19 = vrot.slane %v5593_v34, 4  ;;  %v5603_v39 = vrot.slane %v5601_v4, 4  ;;  %v5614_v47 = vshrl.u32 %v5508_v33, 16  ;;  %v15713_v55 = vpop.f32.mrb[28].mxu0 }
 0x332   : > { %v5232_v40 = vor.u32 %v5230_v18, %v5229_v46  ;;  %v5234_v51 = vrot.slane %v5229_v46, 4  ;;  %v5215_v35 = vor.u32 %v5213_v30, %v5212_v17  ;;  %v5217_v23 = vrot.slane %v5212_v17, 4  ;;  %v15717_v61 = vpop.f32.mrb[29].mxu0 }
 0x333   : > { %v5599_v50 = vsel %vm13809_vm4, %v5594_v19, %v5598_v5  ;;  %v5606_v13 = vrot.slane %v5604_v25, 5  ;;  %v5612_v59 = vrot.slane %v5610_v52, 5  ;;  %v5616_v58 = vrot.slane %v5614_v47, 4  ;;  %v15727_v8 = vpop.f32.mrb[30].mxu0  ;;  %v5539_v19 = vld [vmem:[#allocation2 + $0x2c] sm:$0x1] }
 0x334   : > { %v5233_v2 = vsel %vm15599_vm1, %v5225_v9, %v5232_v40  ;;  %v5459_v42 = vsel %vm15605_vm2, %v5234_v51, %v5458_v16  ;;  %v5216_v63 = vsel %vm15599_vm1, %v5208_v15, %v5215_v35  ;;  %v5452_v36 = vsel %vm15605_vm2, %v5217_v23, %v5451_v28  ;;  %v15731_v3 = vpop.f32.mrb[31].mxu0  ;;  %v5461_v47 = vld [vmem:[#allocation2 + $0x84] sm:$0xf] }
 0x335   : > { %5457 = vst.msk [vmem:[#allocation2 + $0x7c] sm:$0xf] %vm4910_vm8, %v5233_v2  ;;  %5460 = vst [vmem:[#allocation2 + $0x80] sm:$0x1] %v5459_v42  ;;  %v11524_v14 = vcombine.low %v5589_v1, %v5599_v50  ;;  %v5607_v31 = vor.u32 %v5606_v13, %v5603_v39  ;;  %v5617_v9 = vor.u32 %v5616_v58, %v5612_v59  ;;  %v5620_v24 = vshll.u32 %v5538_v20, 16 }
 0x336   : > { %5450 = vst.msk [vmem:[#allocation2 + $0x70] sm:$0xf] %vm4910_vm8, %v5216_v63  ;;  %5453 = vst [vmem:[#allocation2 + $0x74] sm:$0x1] %v5452_v36  ;;  %v4868_v15 = vadd.f32 %v15675_v62, %v15583_v32  ;;  %v4866_v37 = vadd.f32 %v15583_v32, %v15681_v7  ;;  %v4869_v56 = vadd.f32 %v15685_v26, %v15583_v32  ;;  %v5625_v41 = vshrl.u32 %v5509_v29, 16 }
 0x337   : > { %v4867_v44 = vadd.f32 %v15583_v32, %v15687_v48  ;;  %12615 = vmatmul.mubr.msk.bf16.vlgmr.msra.gmra.mrb[32].mxu0 %vm5986_vm11, %v11524_v14  ;;  %v5608_v43 = vrot.slane %v5607_v31, 4  ;;  %v5618_v57 = vrot.slane %v5617_v9, 4  ;;  %v5622_v53 = vrot.slane %v5620_v24, 5  ;;  %v5468_v39 = vld [vmem:[#allocation2 + $0x90] sm:$0xf] }
 0x338   : > { %v4900_v33 = vmax.f32 %v4868_v15, 0.0  ;;  %v4898_v27 = vmax.f32 %v4866_v37, 0.0  ;;  %v4901_v62 = vmax.f32 %v4869_v56, 0.0  ;;  %v5627_v60 = vrot.slane %v5625_v41, 4  ;;  %v5472_v13 = vld [vmem:[#allocation2 + $0x98] sm:$0x1] }
 0x339   : > { %v4899_v18 = vmax.f32 %v4867_v44, 0.0  ;;  %v5613_v7 = vsel %vm13809_vm4, %v5608_v43, %v5612_v59  ;;  %v5623_v26 = vsel %vm13809_vm4, %v5618_v57, %v5622_v53  ;;  %v5628_v48 = vshll.u32 %v5509_v29, 16  ;;  %v5465_v42 = vld [vmem:[#allocation2 + $0x8c] sm:$0x1]  ;;  %v15751_v43 = vld [vmem:[#allocation2 + $0x30] sm:$0xf] }
 0x33a   : > { %v11525_v30 = vcombine.low %v5613_v7, %v5623_v26  ;;  %v11973_v49 = vpack.c.bf16 %v4900_v33, %v4900_v33  ;;  %v11971_v34 = vpack.c.bf16 %v4898_v27, %v4898_v27  ;;  %v11974_v5 = vpack.c.bf16 %v4901_v62, %v4901_v62  ;;  %v15757_v27 = vld [vmem:[#allocation2 + $0x34] sm:$0xf]  ;;  %v5540_v62 = vld [vmem:[#allocation2 + $0x38] sm:$0x1] }
 0x33b   : > { %v11972_v4 = vpack.c.bf16 %v4899_v18, %v4899_v18  ;;  %v5630_v46 = vrot.slane %v5628_v48, 5  ;;  %v5634_v16 = vshll.u32 %v15741_v11, 16  ;;  %v5638_v17 = vshrl.u32 %v15741_v11, 16 }
 0x33c   : > { %12618 = vmatprep.mubr.msk.bf16.mxu0 %vm5986_vm11, %v11525_v30  ;;  %v5253_v25 = vshrl.u32 %v11973_v49, 16  ;;  %v5256_v52 = vshll.u32 %v11973_v49, 16  ;;  %v5236_v28 = vshrl.u32 %v11971_v34, 16  ;;  %v5239_v1 = vshll.u32 %v11971_v34, 16 }
 0x33d   : > { %v5261_v40 = vshrl.u32 %v11974_v5, 16  ;;  %v5264_v51 = vshll.u32 %v11974_v5, 16  ;;  %v5244_v35 = vshrl.u32 %v11972_v4, 16  ;;  %v5247_v23 = vshll.u32 %v11972_v4, 16 }
 0x33e   : > { %v5255_v20 = vrot.slane %v5253_v25, 7  ;;  %v5238_v50 = vrot.slane %v5236_v28, 7  ;;  %v5631_v59 = vor.u32 %v5630_v46, %v5627_v60  ;;  %v5636_v58 = vrot.slane %v5634_v16, 5 }
 0x33f   : > { %v5263_v29 = vrot.slane %v5261_v40, 7  ;;  %v5246_v2 = vrot.slane %v5244_v35, 7  ;;  %v5640_v63 = vrot.slane %v5638_v17, 4  ;;  %v5644_v36 = vshll.u32 %v5539_v19, 16 }
 0x340   : > { %v5258_v14 = vor.u32 %v5256_v52, %v5255_v20  ;;  %v5259_v31 = vrot.slane %v5255_v20, 4  ;;  %v5241_v9 = vor.u32 %v5239_v1, %v5238_v50  ;;  %v5242_v24 = vrot.slane %v5238_v50, 4  ;;  %v15781_v1 = vld [vmem:[#allocation2 + $0x3c] sm:$0xf] }
 0x341   : > { %v5266_v15 = vor.u32 %v5264_v51, %v5263_v29  ;;  %v5268_v37 = vrot.slane %v5263_v29, 4  ;;  %v5249_v56 = vor.u32 %v5247_v23, %v5246_v2  ;;  %v5251_v44 = vrot.slane %v5246_v2, 4 }
 0x342   : > { %v5469_v57 = vsel %vm15592_vm15, %v5258_v14, %v5468_v39  ;;  %v5462_v53 = vsel %vm15592_vm15, %v5241_v9, %v5461_v47  ;;  %v5632_v41 = vrot.slane %v5631_v59, 4  ;;  %v5641_v33 = vor.u32 %v5640_v63, %v5636_v58 }
 0x343   : > { %5470 = vst [vmem:[#allocation2 + $0x90] sm:$0xf] %v5469_v57  ;;  %5463 = vst [vmem:[#allocation2 + $0x84] sm:$0xf] %v5462_v53  ;;  %v5267_v18 = vsel %vm15599_vm1, %v5259_v31, %v5266_v15  ;;  %v5473_v7 = vsel %vm15605_vm2, %v5268_v37, %v5472_v13  ;;  %v5250_v26 = vsel %vm15599_vm1, %v5242_v24, %v5249_v56  ;;  %v5646_v49 = vrot.slane %v5644_v36, 5 }
 0x344   : > { %v5466_v60 = vsel %vm15605_vm2, %v5251_v44, %v5465_v42  ;;  %5471 = vst.msk [vmem:[#allocation2 + $0x94] sm:$0xf] %vm4910_vm8, %v5267_v18  ;;  %5474 = vst [vmem:[#allocation2 + $0x98] sm:$0x1] %v5473_v7  ;;  %v5637_v48 = vsel %vm13809_vm4, %v5632_v41, %v5636_v58  ;;  %v5642_v30 = vrot.slane %v5641_v33, 4  ;;  %v5649_v34 = vshrl.u32 %v15751_v43, 16 }
 0x345   : > { %5464 = vst.msk [vmem:[#allocation2 + $0x88] sm:$0xf] %vm4910_vm8, %v5250_v26  ;;  %5467 = vst [vmem:[#allocation2 + $0x8c] sm:$0x1] %v5466_v60  ;;  %v5652_v5 = vshll.u32 %v15751_v43, 16  ;;  %v5658_v4 = vshll.u32 %v15757_v27, 16  ;;  %v4872_v52 = vadd.f32 %v15699_v38, %v15583_v32  ;;  %v4870_v28 = vadd.f32 %v15583_v32, %v15701_v21 }
 0x346   : > { %v5662_v46 = vshrl.u32 %v15757_v27, 16  ;;  %v5668_v16 = vshll.u32 %v5540_v62, 16  ;;  %v5647_v17 = vsel %vm13809_vm4, %v5642_v30, %v5646_v49  ;;  %v5651_v25 = vrot.slane %v5649_v34, 4  ;;  %v5482_v37 = vld [vmem:[#allocation2 + $0xa8] sm:$0xf] }
 0x347   : > { %v11526_v19 = vcombine.low %v5637_v48, %v5647_v17  ;;  %v5654_v39 = vrot.slane %v5652_v5, 5  ;;  %v5660_v47 = vrot.slane %v5658_v4, 5  ;;  %v4904_v35 = vmax.f32 %v4872_v52, 0.0  ;;  %v5475_v56 = vld [vmem:[#allocation2 + $0x9c] sm:$0xf] }
 0x348   : > { %v5664_v40 = vrot.slane %v5662_v46, 4  ;;  %v5670_v51 = vrot.slane %v5668_v16, 5  ;;  %v4902_v23 = vmax.f32 %v4870_v28, 0.0  ;;  %v4873_v20 = vadd.f32 %v15703_v6, %v15583_v32  ;;  %v15794_v53 = vld [vmem:[#allocation2 + $0x40] sm:$0xf] }
 0x349   : > { %12619 = vmatmul.mubr.msk.bf16.gmra.mrb[36].mxu0 %vm5986_vm11, %v11526_v19  ;;  %v5655_v50 = vor.u32 %v5654_v39, %v5651_v25  ;;  %v4871_v38 = vadd.f32 %v15583_v32, %v15709_v22  ;;  %v5673_v21 = vshrl.u32 %v15781_v1, 16  ;;  %v11977_v59 = vpack.c.bf16 %v4904_v35, %v4904_v35  ;;  %v15796_v18 = vld [vmem:[#allocation2 + $0x44] sm:$0x1]  ;;  %v5486_v16 = vld [vmem:[#allocation2 + $0xb0] sm:$0x1] }
 0x34a   : > { %v5665_v13 = vor.u32 %v5664_v40, %v5660_v47  ;;  %v11975_v58 = vpack.c.bf16 %v4902_v23, %v4902_v23  ;;  %v4905_v29 = vmax.f32 %v4873_v20, 0.0  ;;  %v5676_v2 = vshll.u32 %v15781_v1, 16  ;;  %v5479_v39 = vld [vmem:[#allocation2 + $0xa4] sm:$0x1] }
 0x34b   : > { %v5656_v42 = vrot.slane %v5655_v50, 4  ;;  %v4903_v36 = vmax.f32 %v4871_v38, 0.0  ;;  %v5675_v14 = vrot.slane %v5673_v21, 4  ;;  %v5287_v31 = vshrl.u32 %v11977_v59, 16  ;;  %v15806_v50 = vld [vmem:[#allocation2 + $0x48] sm:$0xf] }
 0x34c   : > { %v5666_v63 = vrot.slane %v5665_v13, 4  ;;  %v5290_v6 = vshll.u32 %v11977_v59, 16  ;;  %v5270_v9 = vshrl.u32 %v11975_v58, 16  ;;  %v5273_v24 = vshll.u32 %v11975_v58, 16  ;;  %v15808_v13 = vld [vmem:[#allocation2 + $0x4c] sm:$0xf] }
 0x34d   : > { %v5661_v15 = vsel %vm13809_vm4, %v5656_v42, %v5660_v47  ;;  %v11978_v44 = vpack.c.bf16 %v4905_v29, %v4905_v29  ;;  %v11976_v57 = vpack.c.bf16 %v4903_v36, %v4903_v36  ;;  %v5289_v33 = vrot.slane %v5287_v31, 7  ;;  %v15810_v29 = vld [vmem:[#allocation2 + $0x50] sm:$0x1] }
 0x34e   : > { %v5671_v22 = vsel %vm13809_vm4, %v5666_v63, %v5670_v51  ;;  %v5272_v62 = vrot.slane %v5270_v9, 7  ;;  %v5678_v7 = vrot.slane %v5676_v2, 5  ;;  %v5682_v52 = vshll.u32 %v15794_v53, 16 }
 0x34f   : > { %v11527_v41 = vcombine.low %v5661_v15, %v5671_v22  ;;  %v5295_v26 = vshrl.u32 %v11978_v44, 16  ;;  %v5298_v60 = vshll.u32 %v11978_v44, 16  ;;  %v5278_v48 = vshrl.u32 %v11976_v57, 16 }
 0x350   : > { %v5281_v30 = vshll.u32 %v11976_v57, 16  ;;  %v5292_v49 = vor.u32 %v5290_v6, %v5289_v33  ;;  %v5293_v34 = vrot.slane %v5289_v33, 4  ;;  %v5275_v5 = vor.u32 %v5273_v24, %v5272_v62 }
 0x351   : > { %12622 = vmatprep.mubr.msk.bf16.mxu0 %vm5986_vm11, %v11527_v41  ;;  %v5276_v4 = vrot.slane %v5272_v62, 4  ;;  %v5297_v46 = vrot.slane %v5295_v26, 7  ;;  %v5280_v17 = vrot.slane %v5278_v48, 7  ;;  %v5679_v25 = vor.u32 %v5678_v7, %v5675_v14  ;;  %v13685_v41 = vld [vmem:[%s17756_s2] ss:$0 sm:$0xff] }
 0x352   : > { %v5483_v28 = vsel %vm15592_vm15, %v5292_v49, %v5482_v37  ;;  %v5476_v19 = vsel %vm15592_vm15, %v5275_v5, %v5475_v56  ;;  %v5686_v47 = vshrl.u32 %v15794_v53, 16  ;;  %v5692_v40 = vshll.u32 %v15796_v18, 16  ;;  %v15835_v48 = vld [vmem:[#allocation2 + $0x60] sm:$0xf] }
 0x353   : > { %5484 = vst [vmem:[#allocation2 + $0xa8] sm:$0xf] %v5483_v28  ;;  %5477 = vst [vmem:[#allocation2 + $0x9c] sm:$0xf] %v5476_v19  ;;  %v5300_v51 = vor.u32 %v5298_v60, %v5297_v46  ;;  %v5302_v35 = vrot.slane %v5297_v46, 4  ;;  %v5283_v23 = vor.u32 %v5281_v30, %v5280_v17  ;;  %v5285_v20 = vrot.slane %v5280_v17, 4 }
 0x354   : > { %v5680_v38 = vrot.slane %v5679_v25, 4  ;;  %v5684_v21 = vrot.slane %v5682_v52, 5  ;;  %v5688_v59 = vrot.slane %v5686_v47, 4  ;;  %v5694_v58 = vrot.slane %v5692_v40, 5 }
 0x355   : > { %v5301_v2 = vsel %vm15599_vm1, %v5293_v34, %v5300_v51  ;;  %v5487_v42 = vsel %vm15605_vm2, %v5302_v35, %v5486_v16  ;;  %v5284_v63 = vsel %vm15599_vm1, %v5276_v4, %v5283_v23  ;;  %v5480_v36 = vsel %vm15605_vm2, %v5285_v20, %v5479_v39 }
 0x356   : > { %5485 = vst.msk [vmem:[#allocation2 + $0xac] sm:$0xf] %vm4910_vm8, %v5301_v2  ;;  %5488 = vst [vmem:[#allocation2 + $0xb0] sm:$0x1] %v5487_v42  ;;  %v5685_v14 = vsel %vm13809_vm4, %v5680_v38, %v5684_v21  ;;  %v5689_v31 = vor.u32 %v5688_v59, %v5684_v21  ;;  %v5697_v6 = vshrl.u32 %v15806_v50, 16  ;;  %v5700_v9 = vshll.u32 %v15806_v50, 16 }
 0x357   : > { %5478 = vst.msk [vmem:[#allocation2 + $0xa0] sm:$0xf] %vm4910_vm8, %v5284_v63  ;;  %5481 = vst [vmem:[#allocation2 + $0xa4] sm:$0x1] %v5480_v36  ;;  %v5706_v24 = vshll.u32 %v15808_v13, 16  ;;  %v5710_v15 = vshrl.u32 %v15808_v13, 16  ;;  %v4876_v37 = vadd.f32 %v15713_v55, %v15583_v32  ;;  %v4874_v33 = vadd.f32 %v13685_v41, %v15717_v61 }
 0x358   : > { %v5716_v22 = vshll.u32 %v15810_v29, 16  ;;  %v5690_v56 = vrot.slane %v5689_v31, 4  ;;  %v5699_v44 = vrot.slane %v5697_v6, 4  ;;  %v5702_v57 = vrot.slane %v5700_v9, 5  ;;  %v15847_v38 = vld [vmem:[#allocation2 + $0x64] sm:$0xf] }
 0x359   : > { %v5708_v62 = vrot.slane %v5706_v24, 5  ;;  %v5712_v7 = vrot.slane %v5710_v15, 4  ;;  %v4908_v60 = vmax.f32 %v4876_v37, 0.0  ;;  %v4906_v32 = vmax.f32 %v4874_v33, 0.0 }
 0x35a   : > { %v5718_v26 = vrot.slane %v5716_v22, 5  ;;  %v5695_v30 = vsel %vm13809_vm4, %v5690_v56, %v5694_v58  ;;  %v5703_v49 = vor.u32 %v5702_v57, %v5699_v44  ;;  %v4877_v55 = vadd.f32 %v13685_v41, %v15727_v8  ;;  %v5496_v8 = vld [vmem:[#allocation2 + $0xc0] sm:$0xf]  ;;  %v5500_v22 = vld [vmem:[#allocation2 + $0xc8] sm:$0x1] }
 0x35b   : > { %v11528_v34 = vcombine.low %v5685_v14, %v5695_v30  ;;  %v5713_v5 = vor.u32 %v5712_v7, %v5708_v62  ;;  %v11981_v4 = vpack.c.bf16 %v4908_v60, %v4908_v60  ;;  %v4875_v46 = vadd.f32 %v13685_v41, %v15731_v3  ;;  %v5489_v14 = vld [vmem:[#allocation2 + $0xb4] sm:$0xf]  ;;  %v15853_v57 = vld [vmem:[#allocation2 + $0x68] sm:$0x1]  ;;  %v5493_v60 = vld [vmem:[#allocation2 + $0xbc] sm:$0x1] }
 0x35c   : > { %v5704_v16 = vrot.slane %v5703_v49, 4  ;;  %v11979_v61 = vpack.c.bf16 %v4906_v32, %v4906_v32  ;;  %v4909_v17 = vmax.f32 %v4877_v55, 0.0  ;;  %v5745_v25 = vshrl.u32 %v15835_v48, 16 }
 0x35d   : > { %12623 = vmatmul.mubr.msk.bf16.gmra.mrb[40].mxu0 %vm5986_vm11, %v11528_v34  ;;  %v5714_v52 = vrot.slane %v5713_v5, 4  ;;  %v5321_v28 = vshrl.u32 %v11981_v4, 16  ;;  %v5324_v19 = vshll.u32 %v11981_v4, 16  ;;  %v4907_v39 = vmax.f32 %v4875_v46, 0.0  ;;  %v15859_v5 = vld [vmem:[#allocation2 + $0x54] sm:$0xf] }
 0x35e   : > { %v5709_v47 = vsel %vm13809_vm4, %v5704_v16, %v5708_v62  ;;  %v5304_v40 = vshrl.u32 %v11979_v61, 16  ;;  %v5307_v51 = vshll.u32 %v11979_v61, 16  ;;  %v11982_v35 = vpack.c.bf16 %v4909_v17, %v4909_v17  ;;  %v15866_v61 = vld [vmem:[#allocation2 + $0x58] sm:$0xf]  ;;  %v15868_v17 = vld [vmem:[#allocation2 + $0x5c] sm:$0x1] }
 0x35f   : > { %v5719_v3 = vsel %vm13809_vm4, %v5714_v52, %v5718_v26  ;;  %v5323_v23 = vrot.slane %v5321_v28, 7  ;;  %v11980_v20 = vpack.c.bf16 %v4907_v39, %v4907_v39  ;;  %v5747_v21 = vrot.slane %v5745_v25, 4  ;;  %v13686_v39 = vld [vmem:[%s17757_s3] sm:$0xf] }
 0x360   : > { %v11529_v59 = vcombine.low %v5709_v47, %v5719_v3  ;;  %v5306_v58 = vrot.slane %v5304_v40, 7  ;;  %v5329_v2 = vshrl.u32 %v11982_v35, 16  ;;  %v5332_v42 = vshll.u32 %v11982_v35, 16  ;;  %v15888_v35 = vld [vmem:[#allocation2 + $0x74] sm:$0x1] }
 0x361   : > { %v5326_v63 = vor.u32 %v5324_v19, %v5323_v23  ;;  %v5327_v36 = vrot.slane %v5323_v23, 4  ;;  %v5312_v31 = vshrl.u32 %v11980_v20, 16  ;;  %v5315_v6 = vshll.u32 %v11980_v20, 16  ;;  %v15875_v19 = vld [vmem:[#allocation2 + $0x6c] sm:$0xf] }
 0x362   : > { %12626 = vmatprep.mubr.msk.bf16.mxu0 %vm5986_vm11, %v11529_v59  ;;  %v5309_v9 = vor.u32 %v5307_v51, %v5306_v58  ;;  %v5310_v24 = vrot.slane %v5306_v58, 4  ;;  %v5331_v15 = vrot.slane %v5329_v2, 7  ;;  %v5748_v37 = vshll.u32 %v15835_v48, 16  ;;  %v15886_v51 = vld [vmem:[#allocation2 + $0x70] sm:$0xf] }
 0x363   : > { %v5497_v56 = vsel %vm15592_vm15, %v5326_v63, %v5496_v8  ;;  %v5314_v44 = vrot.slane %v5312_v31, 7  ;;  %v5754_v41 = vshll.u32 %v15847_v38, 16  ;;  %v5758_v33 = vshrl.u32 %v15847_v38, 16  ;;  %v15893_v59 = vld [vmem:[#allocation2 + $0x78] sm:$0xf] }
 0x364   : > { %5498 = vst [vmem:[#allocation2 + $0xc0] sm:$0xf] %v5497_v56  ;;  %v5490_v62 = vsel %vm15592_vm15, %v5309_v9, %v5489_v14  ;;  %v5334_v7 = vor.u32 %v5332_v42, %v5331_v15  ;;  %v5336_v26 = vrot.slane %v5331_v15, 4  ;;  %v5750_v30 = vrot.slane %v5748_v37, 5  ;;  %v15901_v37 = vld [vmem:[#allocation2 + $0x7c] sm:$0xf] }
 0x365   : > { %5491 = vst [vmem:[#allocation2 + $0xb4] sm:$0xf] %v5490_v62  ;;  %v5317_v49 = vor.u32 %v5315_v6, %v5314_v44  ;;  %v5319_v32 = vrot.slane %v5314_v44, 4  ;;  %v5756_v55 = vrot.slane %v5754_v41, 5  ;;  %v5760_v34 = vrot.slane %v5758_v33, 4 }
 0x366   : > { %v5335_v4 = vsel %vm15599_vm1, %v5327_v36, %v5334_v7  ;;  %v5501_v46 = vsel %vm15605_vm2, %v5336_v26, %v5500_v22  ;;  %v5751_v16 = vor.u32 %v5750_v30, %v5747_v21  ;;  %v5764_v45 = vshll.u32 %v15853_v57, 16 }
 0x367   : > { %5499 = vst.msk [vmem:[#allocation2 + $0xc4] sm:$0xf] %vm4910_vm8, %v5335_v4  ;;  %5502 = vst [vmem:[#allocation2 + $0xc8] sm:$0x1] %v5501_v46  ;;  %v5318_v25 = vsel %vm15599_vm1, %v5310_v24, %v5317_v49  ;;  %v5494_v52 = vsel %vm15605_vm2, %v5319_v32, %v5493_v60  ;;  %v5761_v28 = vor.u32 %v5760_v34, %v5756_v55  ;;  %v15881_v47 = vsel %vm6035_vm10, %v13686_v39, 0 }
 0x368   : > { %5492 = vst.msk [vmem:[#allocation2 + $0xb8] sm:$0xf] %vm4910_vm8, %v5318_v25  ;;  %5495 = vst [vmem:[#allocation2 + $0xbc] sm:$0x1] %v5494_v52  ;;  %v5752_v8 = vrot.slane %v5751_v16, 4  ;;  %v5766_v40 = vrot.slane %v5764_v45, 5 }
 0x369   : > { %v5721_v0 = vshrl.u32 %v15859_v5, 16  ;;  %v5724_v12 = vshll.u32 %v15859_v5, 16  ;;  %v5762_v3 = vrot.slane %v5761_v28, 4  ;;  %v5730_v23 = vshll.u32 %v15866_v61, 16  ;;  %v15909_v34 = vld [vmem:[#allocation2 + $0x80] sm:$0x1] }
 0x36a   : > { %v5734_v20 = vshrl.u32 %v15866_v61, 16  ;;  %v5740_v21 = vshll.u32 %v15868_v17, 16  ;;  %v5757_v58 = vsel %vm13809_vm4, %v5752_v8, %v5756_v55  ;;  %v5769_v63 = vshrl.u32 %v15875_v19, 16  ;;  %v15913_v25 = vld [vmem:[#allocation2 + $0x84] sm:$0xf] }
 0x36b   : > { %v5723_v2 = vrot.slane %v5721_v0, 4  ;;  %v5726_v42 = vrot.slane %v5724_v12, 5  ;;  %v5767_v36 = vsel %vm13809_vm4, %v5762_v3, %v5766_v40  ;;  %v5732_v14 = vrot.slane %v5730_v23, 5  ;;  %v15920_v23 = vld [vmem:[#allocation2 + $0x88] sm:$0xf] }
 0x36c   : > { %v5736_v31 = vrot.slane %v5734_v20, 4  ;;  %v5742_v6 = vrot.slane %v5740_v21, 5  ;;  %v11531_v9 = vcombine.low %v5757_v58, %v5767_v36  ;;  %v5771_v15 = vrot.slane %v5769_v63, 4 }
 0x36d   : > { %v5727_v24 = vor.u32 %v5726_v42, %v5723_v2  ;;  %v5772_v22 = vshll.u32 %v15875_v19, 16  ;;  %v5778_v44 = vshll.u32 %v15886_v51, 16  ;;  %v5782_v41 = vshrl.u32 %v15886_v51, 16  ;;  %v15923_v42 = vld [vmem:[#allocation2 + $0x90] sm:$0xf] }
 0x36e   : > { %v5737_v56 = vor.u32 %v5736_v31, %v5732_v14  ;;  %v5788_v33 = vshll.u32 %v15888_v35, 16  ;;  %12630 = vmatprep.mubr.msk.bf16.mxu1 %vm5986_vm11, %v11531_v9  ;;  %v5793_v26 = vshrl.u32 %v15893_v59, 16  ;;  %v5796_v60 = vshll.u32 %v15893_v59, 16  ;;  %v15928_v31 = vld [vmem:[#allocation2 + $0x8c] sm:$0x1] }
 0x36f   : > { %v5728_v62 = vrot.slane %v5727_v24, 4  ;;  %v5774_v7 = vrot.slane %v5772_v22, 5  ;;  %v5780_v49 = vrot.slane %v5778_v44, 5  ;;  %v5784_v32 = vrot.slane %v5782_v41, 4  ;;  %v15939_v44 = vld [vmem:[%s17757_s3 + $0x8] sm:$0xf] }
 0x370   : > { %v5738_v30 = vrot.slane %v5737_v56, 4  ;;  %v5790_v55 = vrot.slane %v5788_v33, 5  ;;  %v5795_v16 = vrot.slane %v5793_v26, 4  ;;  %v5798_v45 = vrot.slane %v5796_v60, 5  ;;  %v15934_v56 = vld [vmem:[#allocation2 + $0x94] sm:$0xf] }
 0x371   : > { %v5733_v4 = vsel %vm13809_vm4, %v5728_v62, %v5732_v14  ;;  %v5775_v46 = vor.u32 %v5774_v7, %v5771_v15  ;;  %v5785_v28 = vor.u32 %v5784_v32, %v5780_v49  ;;  %v5802_v39 = vshll.u32 %v15901_v37, 16  ;;  %v15944_v26 = vld [vmem:[#allocation2 + $0x98] sm:$0x1] }
 0x372   : > { %v5743_v52 = vsel %vm13809_vm4, %v5738_v30, %v5742_v6  ;;  %v5806_v8 = vshrl.u32 %v15901_v37, 16  ;;  %v5799_v12 = vor.u32 %v5798_v45, %v5795_v16  ;;  %v5812_v3 = vshll.u32 %v15909_v34, 16 }
 0x373   : > { %v11530_v40 = vcombine.low %v5733_v4, %v5743_v52  ;;  %v5776_v0 = vrot.slane %v5775_v46, 4  ;;  %v5786_v20 = vrot.slane %v5785_v28, 4  ;;  %v5804_v21 = vrot.slane %v5802_v39, 5  ;;  %v15953_v52 = vld [vmem:[#allocation2 + $0xa0] sm:$0xf] }
 0x374   : > { %v5808_v58 = vrot.slane %v5806_v8, 4  ;;  %v5817_v2 = vshrl.u32 %v15913_v25, 16  ;;  %v5800_v36 = vrot.slane %v5799_v12, 4  ;;  %v5814_v14 = vrot.slane %v5812_v3, 5 }
 0x375   : > { %12627 = vmatmul.mubr.msk.bf16.gmra.mrb[44].mxu0 %vm5986_vm11, %v11530_v40  ;;  %v5781_v63 = vsel %vm13809_vm4, %v5776_v0, %v5780_v49  ;;  %v5820_v6 = vshll.u32 %v15913_v25, 16  ;;  %v5791_v9 = vsel %vm13809_vm4, %v5786_v20, %v5790_v55  ;;  %v5826_v22 = vshll.u32 %v15920_v23, 16  ;;  %v15948_v55 = vld [vmem:[#allocation2 + $0x9c] sm:$0xf] }
 0x376   : > { %v5809_v24 = vor.u32 %v5808_v58, %v5804_v21  ;;  %v5819_v15 = vrot.slane %v5817_v2, 4  ;;  %v11532_v41 = vcombine.low %v5781_v63, %v5791_v9  ;;  %v5805_v33 = vsel %vm13809_vm4, %v5800_v36, %v5804_v21  ;;  %v15959_v21 = vld [vmem:[#allocation2 + $0xa4] sm:$0x1]  ;;  %v15965_v36 = vld [vmem:[#allocation2 + $0xa8] sm:$0xf] }
 0x377   : > { %v5822_v62 = vrot.slane %v5820_v6, 5  ;;  %v5830_v7 = vshrl.u32 %v15920_v23, 16  ;;  %v5828_v30 = vrot.slane %v5826_v22, 5  ;;  %v5836_v49 = vshll.u32 %v15928_v31, 16 }
 0x378   : > { %v5810_v60 = vrot.slane %v5809_v24, 4  ;;  %v5841_v32 = vshrl.u32 %v15923_v42, 16  ;;  %12631 = vmatmul.mubr.msk.bf16.vlgmr.msra.gmra.mrb[0].mxu1 %vm5986_vm11, %v11532_v41  ;;  %v5844_v16 = vshll.u32 %v15923_v42, 16  ;;  %v5850_v45 = vshll.u32 %v15934_v56, 16 }
 0x379   : > { %v5823_v4 = vor.u32 %v5822_v62, %v5819_v15  ;;  %v5832_v46 = vrot.slane %v5830_v7, 4  ;;  %12647 = vmatpush3.bf16.msra.mxu1 %v15881_v47  ;;  %v5838_v39 = vrot.slane %v5836_v49, 5  ;;  %v5854_v40 = vshrl.u32 %v15934_v56, 16 }
 0x37a   : > { %v5815_v28 = vsel %vm13809_vm4, %v5810_v60, %v5814_v14  ;;  %v5843_v8 = vrot.slane %v5841_v32, 4  ;;  %v5846_v20 = vrot.slane %v5844_v16, 5  ;;  %13574 = vmatprep.subr.msk.bf16.mxu1 %vm6035_vm10, %v15939_v44  ;;  %v5852_v58 = vrot.slane %v5850_v45, 5  ;;  %v15975_v32 = vld [vmem:[#allocation2 + $0xac] sm:$0xf] }
 0x37b   : > { %v11533_v0 = vcombine.low %v5805_v33, %v5815_v28  ;;  %v5824_v12 = vrot.slane %v5823_v4, 4  ;;  %v5833_v3 = vor.u32 %v5832_v46, %v5828_v30  ;;  %v5856_v2 = vrot.slane %v5854_v40, 4  ;;  %v15978_v45 = vld [vmem:[#allocation2 + $0xb0] sm:$0x1] }
 0x37c   : > { %v5860_v47 = vshll.u32 %v15944_v26, 16  ;;  %v5865_v63 = vshrl.u32 %v15948_v55, 16  ;;  %v5847_v9 = vor.u32 %v5846_v20, %v5843_v8  ;;  %v5868_v24 = vshll.u32 %v15948_v55, 16 }
 0x37d   : > { %12634 = vmatprep.mubr.msk.bf16.mxu1 %vm5986_vm11, %v11533_v0  ;;  %v5829_v14 = vsel %vm13809_vm4, %v5824_v12, %v5828_v30  ;;  %v5834_v6 = vrot.slane %v5833_v3, 4  ;;  %v5857_v15 = vor.u32 %v5856_v2, %v5852_v58  ;;  %v5874_v33 = vshll.u32 %v15953_v52, 16  ;;  %v15981_v0 = vld [vmem:[#allocation2 + $0xb4] sm:$0xf]  ;;  %v15990_v2 = vld [vmem:[#allocation2 + $0xb8] sm:$0xf] }
 0x37e   : > { %v5862_v22 = vrot.slane %v5860_v47, 5  ;;  %v5867_v41 = vrot.slane %v5865_v63, 4  ;;  %v5848_v7 = vrot.slane %v5847_v9, 4  ;;  %v5870_v60 = vrot.slane %v5868_v24, 5 }
 0x37f   : > { %v5839_v62 = vsel %vm13809_vm4, %v5834_v6, %v5838_v39  ;;  %v5878_v49 = vshrl.u32 %v15953_v52, 16  ;;  %v5858_v30 = vrot.slane %v5857_v15, 4  ;;  %v5876_v46 = vrot.slane %v5874_v33, 5 }
 0x380   : > { %v11534_v4 = vcombine.low %v5829_v14, %v5839_v62  ;;  %v5884_v16 = vshll.u32 %v15959_v21, 16  ;;  %v5871_v28 = vor.u32 %v5870_v60, %v5867_v41  ;;  %v5889_v40 = vshrl.u32 %v15965_v36, 16 }
 0x381   : > { %v5880_v8 = vrot.slane %v5878_v49, 4  ;;  %v5853_v39 = vsel %vm13809_vm4, %v5848_v7, %v5852_v58  ;;  %v5863_v12 = vsel %vm13809_vm4, %v5858_v30, %v5862_v22  ;;  %v5892_v3 = vshll.u32 %v15965_v36, 16 }
 0x382   : > { %12635 = vmatmul.mubr.msk.bf16.gmra.mrb[4].mxu1 %vm5986_vm11, %v11534_v4  ;;  %v5898_v20 = vshll.u32 %v15975_v32, 16  ;;  %v11535_v47 = vcombine.low %v5853_v39, %v5863_v12  ;;  %v5872_v63 = vrot.slane %v5871_v28, 4  ;;  %v5891_v6 = vrot.slane %v5889_v40, 4  ;;  %v15999_v4 = vld [vmem:[#allocation2 + $0xbc] sm:$0x1] }
 0x383   : > { %v5881_v14 = vor.u32 %v5880_v8, %v5876_v46  ;;  %v5886_v9 = vrot.slane %v5884_v16, 5  ;;  %v5894_v24 = vrot.slane %v5892_v3, 5  ;;  %v5902_v41 = vshrl.u32 %v15975_v32, 16 }
 0x384   : > { %v5900_v15 = vrot.slane %v5898_v20, 5  ;;  %12638 = vmatprep.mubr.msk.bf16.mxu1 %vm5986_vm11, %v11535_v47  ;;  %v5908_v22 = vshll.u32 %v15978_v45, 16  ;;  %v5913_v33 = vshrl.u32 %v15981_v0, 16  ;;  %v5916_v62 = vshll.u32 %v15981_v0, 16 }
 0x385   : > { %v5882_v58 = vrot.slane %v5881_v14, 4  ;;  %v5877_v7 = vsel %vm13809_vm4, %v5872_v63, %v5876_v46  ;;  %v5895_v60 = vor.u32 %v5894_v24, %v5891_v6  ;;  %v5904_v49 = vrot.slane %v5902_v41, 4 }
 0x386   : > { %v5922_v30 = vshll.u32 %v15990_v2, 16  ;;  %v5915_v28 = vrot.slane %v5913_v33, 4  ;;  %v5918_v8 = vrot.slane %v5916_v62, 5  ;;  %v5926_v40 = vshrl.u32 %v15990_v2, 16  ;;  %v13687_v33 = vld [vmem:[#allocation2] sm:$0xf] }
 0x387   : > { %v5887_v16 = vsel %vm13809_vm4, %v5882_v58, %v5886_v9  ;;  %v5896_v12 = vrot.slane %v5895_v60, 4  ;;  %v5905_v3 = vor.u32 %v5904_v49, %v5900_v15  ;;  %v5932_v46 = vshll.u32 %v15999_v4, 16  ;;  %v16011_v62 = vld [vmem:[#allocation2 + $0x4] sm:$0xf] }
 0x388   : > { %v11536_v39 = vcombine.low %v5877_v7, %v5887_v16  ;;  %v5924_v20 = vrot.slane %v5922_v30, 5  ;;  %v5919_v47 = vor.u32 %v5918_v8, %v5915_v28  ;;  %v5928_v14 = vrot.slane %v5926_v40, 4 }
 0x389   : > { %v5906_v63 = vrot.slane %v5905_v3, 4  ;;  %v5910_v6 = vrot.slane %v5908_v22, 5  ;;  %v5901_v9 = vsel %vm13809_vm4, %v5896_v12, %v5900_v15  ;;  %v11555_v7 = vcombine.low %v13687_v33, %v16011_v62  ;;  %v16050_v33 = vld [vmem:[%s17757_s3 + $0xc] sm:$0xf] }
 0x38a   : > { %12639 = vmatmul.mubr.msk.bf16.gmra.mrb[8].mxu1 %vm5986_vm11, %v11536_v39  ;;  %v5920_v24 = vrot.slane %v5919_v47, 4  ;;  %v5929_v41 = vor.u32 %v5928_v14, %v5924_v20  ;;  %v5934_v16 = vrot.slane %v5932_v46, 5  ;;  %v11562_v22 = vcombine.low %v15859_v5, %v15866_v61  ;;  %v13689_v46 = vld [vmem:[#allocation2 + $0xc] sm:$0xf]  ;;  %v6502_v14 = vld [vmem:[#allocation2 + $0x78] sm:$0xe] }
 0x38b   : > { %v5911_v58 = vsel %vm13809_vm4, %v5906_v63, %v5910_v6  ;;  %v11563_v15 = vcombine.low %v15835_v48, %v15847_v38  ;;  %v11564_v28 = vcombine.low %v15875_v19, %v15886_v51  ;;  %v11565_v8 = vcombine.low %v15893_v59, %v15901_v37  ;;  %v16039_v63 = vld [vmem:[#allocation2 + $0x10] sm:$0xf]  ;;  %v6503_v47 = vld [vmem:[#allocation2 + $0x84] sm:$0xe]  ;;  %v6492_v5 = vld [vmem:[#allocation2] sm:$0xe] }
 0x38c   : > { %v11537_v60 = vcombine.low %v5901_v9, %v5911_v58  ;;  %v5925_v49 = vsel %vm13809_vm4, %v5920_v24, %v5924_v20  ;;  %v5930_v30 = vrot.slane %v5929_v41, 4  ;;  %v11566_v39 = vcombine.low %v15913_v25, %v15920_v23  ;;  %v13691_v41 = vld [vmem:[#allocation2 + $0x18] sm:$0xf]  ;;  %v16044_v9 = vld [vmem:[#allocation2 + $0x1c] sm:$0xf] }
 0x38d   : > { %v11556_v6 = vcombine.low %v13689_v46, %v16039_v63  ;;  %v6751_v24 = vsel %vm6035_vm10, %v15939_v44, 0  ;;  %v11557_v58 = vcombine.low %v13691_v41, %v16044_v9  ;;  %v6500_v44 = vld [vmem:[#allocation2 + $0x60] sm:$0xe]  ;;  %v13693_v46 = vld [vmem:[#allocation2 + $0x24] sm:$0xf]  ;;  %v11560_v41 = vcombine.low %v15781_v1, %v15794_v53 }
 0x38e   : > { %12642 = vmatprep.mubr.msk.bf16.mxu1 %vm5986_vm11, %v11537_v60  ;;  %v5935_v40 = vsel %vm13809_vm4, %v5930_v30, %v5934_v16  ;;  %v6591_v60 = vrot.slane %v15866_v61, 5  ;;  %v6608_v1 = vrot.slane %v15888_v35, 5  ;;  %v6615_v35 = vrot.slane %v15909_v34, 5 }
 0x38f   : > { %v11538_v20 = vcombine.low %v5925_v49, %v5935_v40  ;;  %v6601_v49 = vrot.slane %v15853_v57, 5  ;;  %v6594_v40 = vrot.slane %v15868_v17, 5  ;;  %v6636_v12 = vrot.slane %v15959_v21, 5 }
 0x390   : > { %v6593_v16 = vrot.slane %v6591_v60, 4  ;;  %v17963_v48 = vcombine.low %v15923_v42, %v15934_v56  ;;  %v11587_v61 = vrot.slane %v6492_v5, 9  ;;  %v17964_v59 = vcombine.low %v15948_v55, %v15953_v52  ;;  %v16232_v5 = vld [vmem:[%s17757_s3 + $0x10] sm:$0xf] }
 0x391   : > { %v6549_v42 = vrot.slane %v16039_v63, 5  ;;  %v17966_v55 = vcombine.low %v15981_v0, %v15990_v2 }
 0x392   : > { %12643 = vmatmul.mubr.msk.bf16.gmra.mrb[12].mxu1 %vm5986_vm11, %v11538_v20  ;;  %v6501_v20 = vld [vmem:[#allocation2 + $0x6c] sm:$0xe]  ;;  %v16071_v17 = vsel %vm14124_vm7, %v6593_v16, %v6594_v40  ;;  %v6612_v16 = vrot.slane %v15901_v37, 5  ;;  %v17965_v37 = vcombine.low %v15965_v36, %v15975_v32 }
 0x393   : > { %12648 = vmatprep.mubr.msk.bf16.mxu1 %vm5986_vm11, %v11555_v7  ;;  %v6499_v7 = vld [vmem:[#allocation2 + $0x54] sm:$0xe] }
 0x394   : > { %v11594_v30 = vrot.slane %v6499_v7, 9  ;;  %v11595_v7 = vrot.slane %v6500_v44, 9 }
 0x396   : > { %v16067_v57 = vsel %vm14124_vm7, %v11594_v30, %v6591_v60  ;;  %v11597_v30 = vrot.slane %v6502_v14, 9 }
 0x398   : > { %v16107_v14 = vsel %vm14124_vm7, %v11597_v30, %v6612_v16  ;;  %v6633_v30 = vrot.slane %v15953_v52, 5  ;;  %v6493_v52 = vld [vmem:[#allocation2 + $0xc] sm:$0xe] }
 0x39a   : > { %12649 = vmatmul.mubr.msk.bf16.vlgmr.msra.gmra.mrb[16].mxu1 %vm5986_vm11, %v11556_v6  ;;  %v11558_v6 = vcombine.low %v13693_v46, %v15741_v11  ;;  %v6605_v11 = vrot.slane %v15886_v51, 5  ;;  %v11596_v46 = vrot.slane %v6501_v20, 9  ;;  %v6619_v20 = vrot.slane %v15920_v23, 5  ;;  %v13694_v51 = vld [vmem:[#allocation2 + $0x8] sm:$0x1] }
 0x39b   : > { %12681 = vmatpush3.bf16.msra.mxu1 %v6751_v24  ;;  %12652 = vmatprep.mubr.msk.bf16.mxu1 %vm5986_vm11, %v11557_v58  ;;  %v11559_v24 = vcombine.low %v15751_v43, %v15757_v27  ;;  %v6598_v58 = vrot.slane %v15847_v38, 5  ;;  %v6542_v38 = vrot.slane %v16011_v62, 5 }
 0x39c   : > { %13575 = vmatprep.subr.msk.bf16.mxu1 %vm6035_vm10, %v16050_v33  ;;  %v6607_v60 = vrot.slane %v6605_v11, 4  ;;  %v16089_v40 = vsel %vm14124_vm7, %v11596_v46, %v6605_v11  ;;  %v11561_v11 = vcombine.low %v15806_v50, %v15808_v13  ;;  %v6622_v46 = vrot.slane %v15928_v31, 5 }
 0x39d   : > { %v6600_v27 = vrot.slane %v6598_v58, 4  ;;  %v16079_v3 = vsel %vm14124_vm7, %v11595_v7, %v6598_v58  ;;  %v6614_v58 = vrot.slane %v6612_v16, 4  ;;  %v6504_v7 = vld [vmem:[#allocation2 + $0x90] sm:$0xe]  ;;  %v6626_v50 = vrot.slane %v15934_v56, 5 }
 0x39e   : > { %v11599_v34 = vrot.slane %v6504_v7, 9  ;;  %v6506_v16 = vld [vmem:[#allocation2 + $0xa8] sm:$0xe]  ;;  %v6507_v7 = vld [vmem:[#allocation2 + $0xb4] sm:$0xe]  ;;  %v6544_v19 = vrot.slane %v6542_v38, 4  ;;  %v6543_v25 = vsel %vm14124_vm7, %v11587_v61, %v6542_v38 }
 0x39f   : > { %v16085_v44 = vsel %vm14124_vm7, %v6600_v27, %v6601_v49  ;;  %v11598_v49 = vrot.slane %v6503_v47, 9  ;;  %v6621_v27 = vrot.slane %v6619_v20, 4  ;;  %v6556_v56 = vrot.slane %v16044_v9, 5  ;;  %v13697_v9 = vld [vmem:[#allocation2 + $0x28] sm:$0xf] }
 0x3a0   : > { %v16130_v43 = vsel %vm14124_vm7, %v11599_v34, %v6626_v50  ;;  %v6495_v61 = vld [vmem:[#allocation2 + $0x24] sm:$0xe] }
 0x3a1   : > { %v16115_v47 = vsel %vm14124_vm7, %v11598_v49, %v6619_v20  ;;  %v16122_v31 = vsel %vm14124_vm7, %v6621_v27, %v6622_v46  ;;  %v6629_v20 = vrot.slane %v15944_v26, 5  ;;  %v6640_v27 = vrot.slane %v15975_v32, 5  ;;  %v13695_v32 = vld [vmem:[#allocation2 + $0x14] sm:$0x1] }
 0x3a2   : > { %12653 = vmatmul.mubr.msk.bf16.gmra.mrb[20].mxu1 %vm5986_vm11, %v11558_v6  ;;  %v16098_v6 = vsel %vm14124_vm7, %v6607_v60, %v6608_v1  ;;  %v16111_v1 = vsel %vm14124_vm7, %v6614_v58, %v6615_v35  ;;  %v6628_v58 = vrot.slane %v6626_v50, 4  ;;  %v6635_v60 = vrot.slane %v6633_v30, 4 }
 0x3a3   : > { %12656 = vmatprep.mubr.msk.bf16.mxu1 %vm5986_vm11, %v11559_v24  ;;  %v6505_v24 = vld [vmem:[#allocation2 + $0x9c] sm:$0xe]  ;;  %v11601_v26 = vrot.slane %v6506_v16, 9  ;;  %v6642_v50 = vrot.slane %v6640_v27, 4  ;;  %v11602_v16 = vrot.slane %v6507_v7, 9  ;;  %v6558_v36 = vrot.slane %v6556_v56, 4 }
 0x3a4   : > { %v11600_v49 = vrot.slane %v6505_v24, 9  ;;  %v16136_v46 = vsel %vm14124_vm7, %v6628_v58, %v6629_v20  ;;  %v6647_v24 = vrot.slane %v15990_v2, 5  ;;  %v16148_v21 = vsel %vm14124_vm7, %v6635_v60, %v6636_v12  ;;  %v13698_v2 = vld [vmem:[#allocation2 + $0x34] sm:$0xf] }
 0x3a5   : > { %v11616_v34 = vcombine.low %v16130_v43, %v16136_v46  ;;  %v6643_v58 = vrot.slane %v15978_v45, 5  ;;  %v11588_v7 = vrot.slane %v6493_v52, 9 }
 0x3a6   : > { %v16140_v35 = vsel %vm14124_vm7, %v11600_v49, %v6633_v30  ;;  %v6649_v20 = vrot.slane %v6647_v24, 4  ;;  %v6650_v49 = vrot.slane %v15999_v4, 5  ;;  %v17983_v4 = vcombine.low %v16115_v47, %v16122_v31  ;;  %v16419_v31 = vld [vmem:[#allocation2 + $0xac] sm:$0xf]  ;;  %v16439_v30 = vld [vmem:[#allocation2 + $0xb8] sm:$0xf] }
 0x3a7   : > { %v16161_v12 = vsel %vm14124_vm7, %v6642_v50, %v6643_v58  ;;  %v6570_v50 = vrot.slane %v13698_v2, 5  ;;  %v6550_v58 = vsel %vm14124_vm7, %v11588_v7, %v6549_v42 }
 0x3a8   : > { %v16171_v60 = vsel %vm14124_vm7, %v6649_v20, %v6650_v49  ;;  %v7109_v20 = vsel %vm6035_vm10, %v16050_v33, 0  ;;  %v6496_v33 = vld [vmem:[#allocation2 + $0x30] sm:$0xe] }
 0x3aa   : > { %12657 = vmatmul.mubr.msk.bf16.gmra.mrb[24].mxu1 %vm5986_vm11, %v11560_v41  ;;  %v16157_v41 = vsel %vm14124_vm7, %v11601_v26, %v6640_v27  ;;  %v6563_v26 = vrot.slane %v13697_v9, 5 }
 0x3ab   : > { %12660 = vmatprep.mubr.msk.bf16.mxu1 %vm5986_vm11, %v11561_v11  ;;  %v16167_v11 = vsel %vm14124_vm7, %v11602_v16, %v6647_v24 }
 0x3ac   : > { %v6565_v38 = vrot.slane %v6563_v26, 4 }
 0x3b2   : > { %12661 = vmatmul.mubr.msk.bf16.gmra.mrb[28].mxu1 %vm5986_vm11, %v11562_v22  ;;  %v6545_v22 = vrot.slane %v13694_v51, 5  ;;  %v13699_v51 = vld [vmem:[#allocation2 + $0x2c] sm:$0x1] }
 0x3b3   : > { %12664 = vmatprep.mubr.msk.bf16.mxu1 %vm5986_vm11, %v11563_v15  ;;  %v6551_v15 = vrot.slane %v6549_v42, 4  ;;  %v6577_v42 = vrot.slane %v15794_v53, 5  ;;  %v6580_v53 = vrot.slane %v15796_v18, 5  ;;  %v16262_v18 = vld [vmem:[#allocation2 + $0x28] sm:$0xf] }
 0x3b4   : > { %v6546_v23 = vsel %vm14124_vm7, %v6544_v19, %v6545_v22  ;;  %v6572_v19 = vrot.slane %v6570_v50, 4  ;;  %v6566_v22 = vrot.slane %v13699_v51, 5 }
 0x3b5   : > { %v11604_v62 = vcombine.low %v6543_v25, %v6546_v23  ;;  %v11590_v25 = vrot.slane %v6495_v61, 9  ;;  %v16278_v61 = vld [vmem:[#allocation2 + $0x40] sm:$0xf] }
 0x3b6   : > { %v6567_v23 = vsel %vm14124_vm7, %v6565_v38, %v6566_v22  ;;  %v8033_v38 = vld [vmem:[#allocation2 + $0x30] sm:$0xe]  ;;  %v16284_v22 = vld [vmem:[#allocation2 + $0x4c] sm:$0xf] }
 0x3ba   : > { %12665 = vmatmul.mubr.msk.bf16.gmra.mrb[0].mxu1 %vm5986_vm11, %v11564_v28  ;;  %v6552_v28 = vrot.slane %v13695_v32, 5 }
 0x3bb   : > { %12668 = vmatprep.mubr.msk.bf16.mxu1 %vm5986_vm11, %v11565_v8  ;;  %v6494_v8 = vld [vmem:[#allocation2 + $0x18] sm:$0xe] }
 0x3bc   : > { %v6553_v63 = vsel %vm14124_vm7, %v6551_v15, %v6552_v28  ;;  %v11589_v24 = vrot.slane %v6494_v8, 9  ;;  %v6584_v15 = vrot.slane %v15808_v13, 5  ;;  %v6579_v28 = vrot.slane %v6577_v42, 4  ;;  %v6497_v8 = vld [vmem:[#allocation2 + $0x3c] sm:$0xe] }
 0x3bd   : > { %v11605_v16 = vcombine.low %v6550_v58, %v6553_v63  ;;  %v6587_v13 = vrot.slane %v15810_v29, 5  ;;  %v11592_v7 = vrot.slane %v6497_v8, 9  ;;  %v16264_v29 = vld [vmem:[#allocation2 + $0x34] sm:$0xf]  ;;  %v17967_v58 = vcombine.low %v16067_v57, %v16071_v17  ;;  %v8034_v57 = vld [vmem:[#allocation2 + $0x3c] sm:$0xe] }
 0x3be   : > { %v6557_v49 = vsel %vm14124_vm7, %v11589_v24, %v6556_v56  ;;  %v11591_v56 = vrot.slane %v6496_v33, 9  ;;  %v6581_v63 = vsel %vm14124_vm7, %v6579_v28, %v6580_v53  ;;  %v8117_v51 = vrot.slane %v16264_v29, 5  ;;  %v16282_v17 = vld [vmem:[#allocation2 + $0x44] sm:$0x1]  ;;  %v8036_v8 = vld [vmem:[#allocation2 + $0x54] sm:$0xe] }
 0x3bf   : > { %v6578_v24 = vsel %vm14124_vm7, %v11592_v7, %v6577_v42  ;;  %v8131_v28 = vrot.slane %v16284_v22, 5  ;;  %v16309_v53 = vld [vmem:[#allocation2 + $0x64] sm:$0xf] }
 0x3c2   : > { %12669 = vmatmul.mubr.msk.bf16.gmra.mrb[4].mxu1 %vm5986_vm11, %v11566_v39  ;;  %v13696_v39 = vld [vmem:[#allocation2 + $0x20] sm:$0x1] }
 0x3c3   : > { %12672 = vmatprep.mubr.msk.bf16.mxu1 %vm5986_vm11, %v17963_v48  ;;  %v6559_v27 = vrot.slane %v13696_v39, 5  ;;  %v6586_v39 = vrot.slane %v6584_v15, 4 }
 0x3c5   : > { %v6560_v0 = vsel %vm14124_vm7, %v6558_v36, %v6559_v27  ;;  %v6571_v36 = vsel %vm14124_vm7, %v11591_v56, %v6570_v50  ;;  %v6498_v27 = vld [vmem:[#allocation2 + $0x48] sm:$0xe]  ;;  %v8119_v56 = vrot.slane %v8117_v51, 4 }
 0x3c6   : > { %v11606_v48 = vcombine.low %v6557_v49, %v6560_v0  ;;  %v11593_v9 = vrot.slane %v6498_v27, 9  ;;  %v11609_v0 = vcombine.low %v6578_v24, %v6581_v63  ;;  %v16274_v49 = vld [vmem:[#allocation2 + $0x2c] sm:$0x1]  ;;  %v8041_v27 = vld [vmem:[#allocation2 + $0x90] sm:$0xe] }
 0x3c8   : > { %v6585_v2 = vsel %vm14124_vm7, %v11593_v9, %v6584_v15  ;;  %v8124_v15 = vrot.slane %v16278_v61, 5  ;;  %v17973_v9 = vcombine.low %v16089_v40, %v16098_v6  ;;  %v16334_v40 = vld [vmem:[#allocation2 + $0x70] sm:$0xf] }
 0x3ca   : > { %12673 = vmatmul.mubr.msk.bf16.gmra.mrb[8].mxu1 %vm5986_vm11, %v17964_v59  ;;  %v13700_v59 = vld [vmem:[#allocation2 + $0x38] sm:$0x1]  ;;  %v8126_v7 = vrot.slane %v8124_v15, 4 }
 0x3cb   : > { %12676 = vmatprep.mubr.msk.bf16.mxu1 %vm5986_vm11, %v17965_v37  ;;  %v6573_v37 = vrot.slane %v13700_v59, 5  ;;  %v11705_v59 = vrot.slane %v8033_v38, 9  ;;  %v11708_v38 = vrot.slane %v8036_v8, 9 }
 0x3d2   : > { %12677 = vmatmul.mubr.msk.bf16.gmra.mrb[12].mxu1 %vm5986_vm11, %v17966_v55  ;;  %v6564_v55 = vsel %vm14124_vm7, %v11590_v25, %v6563_v26  ;;  %v6588_v26 = vsel %vm14124_vm7, %v6586_v39, %v6587_v13  ;;  %v8035_v25 = vld [vmem:[#allocation2 + $0x48] sm:$0xe]  ;;  %v16307_v39 = vld [vmem:[#allocation2 + $0x5c] sm:$0x1] }
 0x3d3   : > { %12682 = vmatprep.mubr.msk.bf16.mxu1 %vm5986_vm11, %v11604_v62  ;;  %v6574_v62 = vsel %vm14124_vm7, %v6572_v19, %v6573_v37  ;;  %v11607_v52 = vcombine.low %v6564_v55, %v6567_v23  ;;  %v11610_v50 = vcombine.low %v6585_v2, %v6588_v26  ;;  %v8110_v19 = vrot.slane %v16262_v18, 5  ;;  %v16288_v23 = vld [vmem:[#allocation2 + $0x50] sm:$0x1]  ;;  %v16295_v55 = vld [vmem:[#allocation2 + $0x58] sm:$0xf] }
 0x3d4   : > { %v11608_v32 = vcombine.low %v6571_v36, %v6574_v62  ;;  %v11706_v62 = vrot.slane %v8034_v57, 9  ;;  %v16303_v36 = vsel %vm14124_vm7, %v11705_v59, %v8117_v51  ;;  %v11707_v63 = vrot.slane %v8035_v25, 9  ;;  %v16321_v26 = vld [vmem:[#allocation2 + $0x68] sm:$0x1]  ;;  %v8038_v51 = vld [vmem:[#allocation2 + $0x6c] sm:$0xe] }
 0x3d5   : > { %17971 = vst [vmem:[#allocation6_spill] sm:$0xff] %v16303_v36  ;;  %v8133_v2 = vrot.slane %v8131_v28, 4  ;;  %v16345_v57 = vld [vmem:[#allocation2 + $0x74] sm:$0x1]  ;;  %v11710_v8 = vrot.slane %v8038_v51, 9  ;;  %v13657_v36 = vld [vmem:[#allocation2 + $0x6c] sm:$0xff]  }
 0x3da   : > { %12683 = vmatmul.mubr.msk.bf16.vlgmr.msra.gmra.mrb[16].mxu1 %vm5986_vm11, %v11605_v16  ;;  %v8032_v16 = vld [vmem:[#allocation2 + $0x24] sm:$0xe] }
 0x3db   : > { %12715 = vmatpush3.bf16.msra.mxu1 %v7109_v20  ;;  %12686 = vmatprep.mubr.msk.bf16.mxu1 %vm5986_vm11, %v11606_v48  ;;  %v17968_v20 = vcombine.low %v16079_v3, %v16085_v44  ;;  %v16276_v48 = vld [vmem:[#allocation2 + $0x38] sm:$0x1]  ;;  %v11704_v33 = vrot.slane %v8032_v16, 9  ;;  %v8112_v3 = vrot.slane %v8110_v19, 4  ;;  %v8113_v44 = vrot.slane %v16274_v49, 5 }
 0x3dc   : > { %13576 = vmatprep.subr.msk.bf16.mxu1 %vm6035_vm10, %v16232_v5  ;;  %v8120_v37 = vrot.slane %v16276_v48, 5  ;;  %v17975_v16 = vcombine.low %v16107_v14, %v16111_v1  ;;  %v16389_v14 = vld [vmem:[#allocation2 + $0x98] sm:$0x1] }
 0x3dd   : > { %v16292_v42 = vsel %vm14124_vm7, %v11704_v33, %v8110_v19  ;;  %v8138_v19 = vrot.slane %v16295_v55, 5  ;;  %v16347_v33 = vld [vmem:[#allocation2 + $0x7c] sm:$0xf] }
 0x3de   : > { %17969 = vst [vmem:[#allocation4_spill] sm:$0xff] %v16292_v42  ;;  %v16315_v13 = vsel %vm14124_vm7, %v8119_v56, %v8120_v37  ;;  %v8148_v56 = vrot.slane %v16321_v26, 5 }
 0x3df   : > { %17972 = vst [vmem:[#allocation7_spill] sm:$0xff] %v16315_v13  ;;  %v8140_v37 = vrot.slane %v8138_v19, 4  ;;  %v16574_v13 = vld [vmem:[#allocation2 + $0x20] sm:$0x1] }
 0x3e0   : > { %18011 = vst [vmem:[#allocation39_spill] sm:$0xff] %v16574_v13 }
 0x3e2   : > { %12687 = vmatmul.mubr.msk.bf16.gmra.mrb[20].mxu1 %vm5986_vm11, %v11607_v52  ;;  %v16299_v52 = vsel %vm14124_vm7, %v8112_v3, %v8113_v44  ;;  %v8141_v3 = vrot.slane %v16307_v39, 5  ;;  %v8145_v44 = vrot.slane %v16309_v53, 5 }
 0x3e3   : > { %12690 = vmatprep.mubr.msk.bf16.mxu1 %vm5986_vm11, %v11608_v32  ;;  %17970 = vst [vmem:[#allocation5_spill] sm:$0xff] %v16299_v52  ;;  %v8127_v32 = vrot.slane %v16282_v17, 5 }
 0x3e5   : > { %v16338_v6 = vsel %vm14124_vm7, %v8126_v7, %v8127_v32  ;;  %v16364_v32 = vsel %vm14124_vm7, %v11708_v38, %v8138_v19  ;;  %v8152_v7 = vrot.slane %v16334_v40, 5  ;;  %v16381_v38 = vld [vmem:[#allocation2 + $0x94] sm:$0xf]  ;;  %v16398_v19 = vld [vmem:[#allocation2 + $0xa0] sm:$0xf] }
 0x3e6   : > { %17976 = vst [vmem:[#allocation9_spill] sm:$0xff] %v16338_v6  ;;  %17979 = vst [vmem:[#allocation3_spill] sm:$0xff] %v16364_v32  ;;  %v7313_v6 = vld [vmem:[#allocation2 + $0x30] sm:$0xf] }
 0x3e7   : > { %v8154_v59 = vrot.slane %v8152_v7, 4 }
 0x3ea   : > { %12691 = vmatmul.mubr.msk.bf16.gmra.mrb[24].mxu1 %vm5986_vm11, %v11609_v0  ;;  %v16327_v0 = vsel %vm14124_vm7, %v11706_v62, %v8124_v15  ;;  %v8039_v62 = vld [vmem:[#allocation2 + $0x78] sm:$0xe]  ;;  %v16360_v15 = vld [vmem:[#allocation2 + $0x80] sm:$0x1] }
 0x3eb   : > { %12694 = vmatprep.mubr.msk.bf16.mxu1 %vm5986_vm11, %v11610_v50  ;;  %17974 = vst [vmem:[#allocation8_spill] sm:$0xff] %v16327_v0  ;;  %v8134_v50 = vrot.slane %v16288_v23, 5  ;;  %v8162_v24 = vrot.slane %v16360_v15, 5 }
 0x3ed   : > { %v16353_v1 = vsel %vm14124_vm7, %v8133_v2, %v8134_v50  ;;  %v16373_v2 = vsel %vm14124_vm7, %v8140_v37, %v8141_v3  ;;  %v11711_v3 = vrot.slane %v8039_v62, 9  ;;  %v8040_v37 = vld [vmem:[#allocation2 + $0x84] sm:$0xe]  ;;  %v16404_v62 = vsel %vm14124_vm7, %v11710_v8, %v8152_v7 }
 0x3ee   : > { %17978 = vst [vmem:[#allocation11_spill] sm:$0xff] %v16353_v1  ;;  %17980 = vst [vmem:[#allocation12_spill] sm:$0xff] %v16373_v2  ;;  %v11712_v8 = vrot.slane %v8040_v37, 9  ;;  %v8173_v7 = vrot.slane %v16381_v38, 5  ;;  %v8180_v37 = vrot.slane %v16398_v19, 5 }
 0x3ef   : > { %17984 = vst [vmem:[#allocation15_spill] sm:$0xff] %v16404_v62  ;;  %v16464_v2 = vld [vmem:[#allocation2 + $0xc8] sm:$0x1] }
 0x3f0   : > { %v8175_v45 = vrot.slane %v8173_v7, 4 }
 0x3f2   : > { %12695 = vmatmul.mubr.msk.bf16.gmra.mrb[28].mxu1 %vm5986_vm11, %v17967_v58  ;;  %v8037_v58 = vld [vmem:[#allocation2 + $0x60] sm:$0xe] }
 0x3f3   : > { %12698 = vmatprep.mubr.msk.bf16.mxu1 %vm5986_vm11, %v17968_v20  ;;  %v16342_v20 = vsel %vm14124_vm7, %v11707_v63, %v8131_v28  ;;  %v11709_v25 = vrot.slane %v8037_v58, 9  ;;  %v8147_v28 = vrot.slane %v8145_v44, 4  ;;  %v16367_v63 = vld [vmem:[#allocation2 + $0x88] sm:$0xf]  ;;  %v8155_v58 = vrot.slane %v16345_v57, 5 }
 0x3f4   : > { %17977 = vst [vmem:[#allocation10_spill] sm:$0xff] %v16342_v20  ;;  %v8166_v47 = vrot.slane %v16367_v63, 5 }
 0x3f5   : > { %v16377_v50 = vsel %vm14124_vm7, %v11709_v25, %v8145_v44  ;;  %v16387_v51 = vsel %vm14124_vm7, %v8147_v28, %v8148_v56  ;;  %v16400_v56 = vld [vmem:[#allocation2 + $0xa4] sm:$0x1]  ;;  %v16408_v28 = vsel %vm14124_vm7, %v8154_v59, %v8155_v58  ;;  %v8042_v58 = vld [vmem:[#allocation2 + $0x9c] sm:$0xe] }
 0x3f6   : > { %17981 = vst [vmem:[#allocation13_spill] sm:$0xff] %v16377_v50  ;;  %17982 = vst [vmem:[#allocation14_spill] sm:$0xff] %v16387_v51  ;;  %v8168_v46 = vrot.slane %v8166_v47, 4  ;;  %v8044_v50 = vld [vmem:[#allocation2 + $0xb4] sm:$0xe] }
 0x3f7   : > { %17985 = vst [vmem:[#allocation16_spill] sm:$0xff] %v16408_v28 }
 0x3fa   : > { %12699 = vmatmul.mubr.msk.bf16.gmra.mrb[0].mxu1 %vm5986_vm11, %v17973_v9  ;;  %v16369_v9 = vld [vmem:[#allocation2 + $0x8c] sm:$0x1] }
 0x3fb   : > { %12702 = vmatprep.mubr.msk.bf16.mxu1 %vm5986_vm11, %v17975_v16  ;;  %v8159_v16 = vrot.slane %v16347_v33, 5 }
 0x3fd   : > { %v8161_v25 = vrot.slane %v8159_v16, 4  ;;  %v16412_v44 = vsel %vm14124_vm7, %v11711_v3, %v8159_v16  ;;  %v16428_v16 = vld [vmem:[#allocation2 + $0xb0] sm:$0x1]  ;;  %v11713_v3 = vrot.slane %v8041_v27, 9  ;;  %v11714_v27 = vrot.slane %v8042_v58, 9 }
 0x3fe   : > { %17986 = vst [vmem:[#allocation17_spill] sm:$0xff] %v16412_v44  ;;  %v8190_v51 = vrot.slane %v16428_v16, 5 }
 0x3ff   : > { %v16425_v59 = vsel %vm14124_vm7, %v8161_v25, %v8162_v24  ;;  %v8176_v24 = vrot.slane %v16389_v14, 5  ;;  %v8043_v25 = vld [vmem:[#allocation2 + $0xa8] sm:$0xe]  ;;  %v16447_v43 = vsel %vm14124_vm7, %v11713_v3, %v8173_v7  ;;  %v16468_v44 = vsel %vm14124_vm7, %v11714_v27, %v8180_v37 }
 0x400   : > { %17987 = vst [vmem:[#allocation18_spill] sm:$0xff] %v16425_v59  ;;  %17990 = vst [vmem:[#allocation21_spill] sm:$0xff] %v16447_v43  ;;  %v16452_v59 = vld [vmem:[#allocation2 + $0xc4] sm:$0xf]  ;;  %v11715_v58 = vrot.slane %v8043_v25, 9  ;;  %v17994_v25 = vcombine.low %v16140_v35, %v16148_v21  ;;  %v8204_v7 = vrot.slane %v16464_v2, 5 }
 0x401   : > { %v16458_v62 = vsel %vm14124_vm7, %v8175_v45, %v8176_v24  ;;  %17992 = vst [vmem:[#allocation23_spill] sm:$0xff] %v16468_v44  ;;  %v8194_v24 = vrot.slane %v16439_v30, 5  ;;  %v8201_v27 = vrot.slane %v16452_v59, 5 }
 0x402   : > { %12703 = vmatmul.mubr.msk.bf16.gmra.mrb[4].mxu1 %vm5986_vm11, %v17983_v4  ;;  %v16435_v4 = vsel %vm14124_vm7, %v11712_v8, %v8166_v47  ;;  %v8187_v47 = vrot.slane %v16419_v31, 5  ;;  %v16450_v8 = vld [vmem:[#allocation2 + $0xbc] sm:$0x1]  ;;  %17991 = vst [vmem:[#allocation22_spill] sm:$0xff] %v16458_v62 }
 0x403   : > { %12706 = vmatprep.mubr.msk.bf16.mxu1 %vm5986_vm11, %v11616_v34  ;;  %v8169_v34 = vrot.slane %v16369_v9, 5  ;;  %17988 = vst [vmem:[#allocation19_spill] sm:$0xff] %v16435_v4 }
 0x404   : > { %v8189_v3 = vrot.slane %v8187_v47, 4  ;;  %v16483_v62 = vsel %vm14124_vm7, %v11715_v58, %v8187_v47  ;;  %v8197_v47 = vrot.slane %v16450_v8, 5 }
 0x405   : > { %v16443_v28 = vsel %vm14124_vm7, %v8168_v46, %v8169_v34  ;;  %v8182_v46 = vrot.slane %v8180_v37, 4  ;;  %v8183_v34 = vrot.slane %v16400_v56, 5  ;;  %17995 = vst [vmem:[#allocation25_spill] sm:$0xff] %v16483_v62 }
 0x406   : > { %17989 = vst [vmem:[#allocation20_spill] sm:$0xff] %v16443_v28  ;;  %v8045_v28 = vld [vmem:[#allocation2 + $0xc0] sm:$0xe]  ;;  %v16487_v37 = vsel %vm14124_vm7, %v8189_v3, %v8190_v51  ;;  %v8203_v3 = vrot.slane %v8201_v27, 4 }
 0x407   : > { %v16472_v45 = vsel %vm14124_vm7, %v8182_v46, %v8183_v34  ;;  %17996 = vst [vmem:[#allocation26_spill] sm:$0xff] %v16487_v37  ;;  %v17997_v46 = vcombine.low %v16157_v41, %v16161_v12  ;;  %v11716_v34 = vrot.slane %v8044_v50, 9  ;;  %v11717_v51 = vrot.slane %v8045_v28, 9 }
 0x408   : > { %17993 = vst [vmem:[#allocation24_spill] sm:$0xff] %v16472_v45  ;;  %v16522_v21 = vsel %vm14124_vm7, %v8203_v3, %v8204_v7  ;;  %v16536_v7 = vld [vmem:[%s17757_s3 + $0x14] sm:$0xf]  ;;  %v7414_v37 = vshrl.u32 %v16262_v18, 16 }
 0x409   : > { %v16506_v41 = vsel %vm14124_vm7, %v11716_v34, %v8194_v24  ;;  %v16518_v28 = vsel %vm14124_vm7, %v11717_v51, %v8201_v27  ;;  %18005 = vst [vmem:[#allocation34_spill] sm:$0xff] %v16522_v21  ;;  %v13649_v34 = vld [vmem:[#allocation2 + $0xc] sm:$0xff]   ;;  %v7835_v27 = vsel %vm6035_vm10, %v16232_v5, 0  ;;  %v13651_v51 = vld [vmem:[#allocation2 + $0x24] sm:$0xff]   ;;  %v13655_v21 = vld [vmem:[#allocation2 + $0x54] sm:$0xff]  }
 0x40a   : > { %12707 = vmatmul.mubr.msk.bf16.gmra.mrb[8].mxu1 %vm5986_vm11, %v17994_v25  ;;  %v16494_v35 = vpop.f32.mrb[32].mxu0  ;;  %v8196_v25 = vrot.slane %v8194_v24, 4  ;;  %18001 = vst [vmem:[#allocation30_spill] sm:$0xff] %v16506_v41  ;;  %18004 = vst [vmem:[#allocation33_spill] sm:$0xff] %v16518_v28  ;;  %v13652_v5 = vld [vmem:[#allocation2 + $0x30] sm:$0xff]   ;;  %v7410_v41 = vshll.u32 %v16262_v18, 16 }
 0x40b   : > { %12710 = vmatprep.mubr.msk.bf16.mxu1 %vm5986_vm11, %v17997_v46  ;;  %17998 = vst [vmem:[#allocation27_spill] sm:$0xff] %v16494_v35  ;;  %v16499_v58 = vpop.f32.mrb[33].mxu0  ;;  %v16550_v24 = vld [vmem:[#allocation2 + $0x10] sm:$0xf]  ;;  %v7307_v46 = vld [vmem:[#allocation2 + $0x18] sm:$0xf] }
 0x40c   : > { %17999 = vst [vmem:[#allocation28_spill] sm:$0xff] %v16499_v58  ;;  %v16502_v45 = vpop.f32.mrb[34].mxu0  ;;  %v16510_v12 = vsel %vm14124_vm7, %v8196_v25, %v8197_v47  ;;  %v18006_v25 = vcombine.low %v16167_v11, %v16171_v60  ;;  %v13650_v47 = vld [vmem:[#allocation2 + $0x18] sm:$0xff]   ;;  %v16572_v1 = vrot.slane %v7410_v41, 5  ;;  %v7416_v20 = vrot.slane %v7414_v37, 4  ;;  %v13656_v18 = vld [vmem:[#allocation2 + $0x60] sm:$0xff]  }
 0x40d   : > { %18000 = vst [vmem:[#allocation29_spill] sm:$0xff] %v16502_v45  ;;  %18002 = vst [vmem:[#allocation31_spill] sm:$0xff] %v16510_v12  ;;  %v16512_v50 = vpop.f32.mrb[35].mxu0  ;;  %v7377_v45 = vshrl.u32 %v7307_v46, 16  ;;  %v7310_v12 = vld [vmem:[#allocation2 + $0x24] sm:$0xf] }
 0x40e   : > { %18003 = vst [vmem:[#allocation32_spill] sm:$0xff] %v16512_v50  ;;  %v7401_v32 = vshrl.u32 %v7310_v12, 16  ;;  %v7417_v37 = vor.u32 %v7416_v20, %v16572_v1  ;;  %v7316_v20 = vld [vmem:[#allocation2 + $0x3c] sm:$0xf] }
 0x40f   : > { %v7379_v62 = vrot.slane %v7377_v45, 4  ;;  %v7449_v42 = vshrl.u32 %v7316_v20, 16 }
 0x412   : > { %12711 = vmatmul.mubr.msk.bf16.gmra.mrb[12].mxu1 %vm5986_vm11, %v18006_v25  ;;  %v13653_v25 = vld [vmem:[#allocation2 + $0x3c] sm:$0xff]  }
 0x413   : > { %12716 = vmatprep.mubr.msk.bf16.mxu1 %vm5986_vm11, %v13649_v34  ;;  %v18153_v10 = vld [vmem:[#allocation27_spill] sm:$0xff] }
 0x41a   : > { %12717 = vmatmul.mubr.msk.bf16.vlgmr.msra.gmra.mrb[16].mxu1 %vm5986_vm11, %v13650_v47  ;;  %v7304_v47 = vld [vmem:[#allocation2 + $0xc] sm:$0xf] }
 0x41b   : > { %12749 = vmatpush3.bf16.msra.mxu1 %v7835_v27  ;;  %12720 = vmatprep.mubr.msk.bf16.mxu1 %vm5986_vm11, %v13651_v51  ;;  %v7362_v27 = vshll.u32 %v16550_v24, 16  ;;  %v7366_v51 = vshrl.u32 %v16550_v24, 16  ;;  %v7356_v58 = vshll.u32 %v7304_v47, 16 }
 0x41c   : > { %13577 = vmatprep.subr.msk.bf16.mxu1 %vm6035_vm10, %v16536_v7  ;;  %v16542_v11 = vpop.f32.mrb[36].mxu0 }
 0x41d   : > { %18007 = vst [vmem:[#allocation35_spill] sm:$0xff] %v16542_v11  ;;  %v16544_v60 = vpop.f32.mrb[37].mxu0  ;;  %v16556_v11 = vld [vmem:[#allocation2 + $0x1c] sm:$0xf]  ;;  %v16560_v35 = vrot.slane %v7362_v27, 5  ;;  %v7368_v50 = vrot.slane %v7366_v51, 4 }
 0x41e   : > { %18008 = vst [vmem:[#allocation36_spill] sm:$0xff] %v16544_v60  ;;  %v16546_v3 = vpop.f32.mrb[38].mxu0  ;;  %v16558_v60 = vld [vmem:[#allocation2 + $0x14] sm:$0x1]  ;;  %v7390_v28 = vshrl.u32 %v16556_v11, 16  ;;  %v7358_v51 = vrot.slane %v7356_v58, 5 }
 0x41f   : > { %18009 = vst [vmem:[#allocation37_spill] sm:$0xff] %v16546_v3  ;;  %v16548_v34 = vpop.f32.mrb[39].mxu0  ;;  %v7353_v3 = vshrl.u32 %v7304_v47, 16  ;;  %v7372_v27 = vshll.u32 %v16558_v60, 16 }
 0x420   : > { %18010 = vst [vmem:[#allocation38_spill] sm:$0xff] %v16548_v34  ;;  %v13654_v34 = vld [vmem:[#allocation2 + $0x48] sm:$0xff]   ;;  %v7392_v4 = vrot.slane %v7390_v28, 4 }
 0x421   : > { %v7355_v47 = vrot.slane %v7353_v3, 4  ;;  %v7374_v3 = vrot.slane %v7372_v27, 5  ;;  %v7438_v27 = vshrl.u32 %v16264_v29, 16 }
 0x422   : > { %12721 = vmatmul.mubr.msk.bf16.gmra.mrb[20].mxu1 %vm5986_vm11, %v13652_v5  ;;  %v7380_v5 = vshll.u32 %v7307_v46, 16  ;;  %v7369_v46 = vor.u32 %v7368_v50, %v16560_v35 }
 0x423   : > { %12724 = vmatprep.mubr.msk.bf16.mxu1 %vm5986_vm11, %v13653_v25  ;;  %v7386_v25 = vshll.u32 %v16556_v11, 16  ;;  %v7359_v0 = vor.u32 %v7358_v51, %v7355_v47  ;;  %v7434_v47 = vshll.u32 %v16264_v29, 16  ;;  %v7418_v29 = vrot.slane %v7417_v37, 4 }
 0x424   : > { %v7382_v44 = vrot.slane %v7380_v5, 5  ;;  %v7403_v5 = vrot.slane %v7401_v32, 4 }
 0x425   : > { %v16570_v43 = vrot.slane %v7386_v25, 5  ;;  %v7425_v25 = vshrl.u32 %v7313_v6, 16 }
 0x426   : > { %v7383_v58 = vor.u32 %v7382_v44, %v7379_v62  ;;  %v7396_v62 = vshll.u32 %v16574_v13, 16  ;;  %v7452_v13 = vshll.u32 %v7316_v20, 16 }
 0x427   : > { %v7393_v45 = vor.u32 %v7392_v4, %v16570_v43  ;;  %v7360_v4 = vrot.slane %v7359_v0, 4 }
 0x428   : > { %v7398_v52 = vrot.slane %v7396_v62, 5  ;;  %v7454_v62 = vrot.slane %v7452_v13, 5 }
 0x429   : > { %v7365_v0 = vsel %vm13809_vm4, %v7360_v4, %v16560_v35 }
 0x42a   : > { %12725 = vmatmul.mubr.msk.bf16.gmra.mrb[24].mxu1 %vm5986_vm11, %v13654_v34  ;;  %v7404_v34 = vshll.u32 %v7310_v12, 16  ;;  %v7428_v12 = vshll.u32 %v7313_v6, 16  ;;  %v7384_v6 = vrot.slane %v7383_v58, 4  ;;  %v7319_v58 = vld [vmem:[#allocation2 + $0x48] sm:$0xf] }
 0x42b   : > { %12728 = vmatprep.mubr.msk.bf16.mxu1 %vm5986_vm11, %v13655_v21  ;;  %v7370_v21 = vrot.slane %v7369_v46, 4  ;;  %v7420_v46 = vshll.u32 %v16274_v49, 16  ;;  %v7458_v49 = vshll.u32 %v16278_v61, 16  ;;  %v7473_v4 = vshrl.u32 %v7319_v58, 16 }
 0x42c   : > { %v7406_v28 = vrot.slane %v7404_v34, 5  ;;  %v7394_v34 = vrot.slane %v7393_v45, 4  ;;  %v13659_v45 = vld [vmem:[#allocation2 + $0x84] sm:$0xff]  }
 0x42d   : > { %v7375_v51 = vsel %vm13809_vm4, %v7370_v21, %v7374_v3  ;;  %v7422_v21 = vrot.slane %v7420_v46, 5  ;;  %v7462_v3 = vshrl.u32 %v16278_v61, 16  ;;  %v7482_v46 = vshll.u32 %v16284_v22, 16 }
 0x42f   : > { %v7423_v35 = vsel %vm13809_vm4, %v7418_v29, %v7422_v21 }
 0x430   : > { %v16576_v50 = vpop.f32.mrb[40].mxu0 }
 0x431   : > { %18012 = vst [vmem:[#allocation40_spill] sm:$0xff] %v16576_v50  ;;  %v16580_v41 = vpop.f32.mrb[41].mxu0  ;;  %v7430_v50 = vrot.slane %v7428_v12, 5 }
 0x432   : > { %12729 = vmatmul.mubr.msk.bf16.gmra.mrb[28].mxu1 %vm5986_vm11, %v13656_v18  ;;  %18013 = vst [vmem:[#allocation41_spill] sm:$0xff] %v16580_v41  ;;  %v16586_v44 = vpop.f32.mrb[42].mxu0  ;;  %v7407_v18 = vor.u32 %v7406_v28, %v7403_v5  ;;  %v7427_v41 = vrot.slane %v7425_v25, 4  ;;  %v16601_v5 = vcombine.low %v7365_v0, %v7375_v51  ;;  %v7389_v28 = vsel %vm13809_vm4, %v7384_v6, %v16570_v43 }
 0x433   : > { %12732 = vmatprep.mubr.msk.bf16.mxu1 %vm5986_vm11, %v13657_v36  ;;  %18014 = vst [vmem:[#allocation42_spill] sm:$0xff] %v16586_v44  ;;  %v16589_v32 = vpop.f32.mrb[43].mxu0  ;;  %v16594_v36 = vrot.slane %v7434_v47, 5  ;;  %v7440_v44 = vrot.slane %v7438_v27, 4  ;;  %v7399_v25 = vsel %vm13809_vm4, %v7394_v34, %v7398_v52  ;;  %v7444_v47 = vshll.u32 %v16276_v48, 16 }
 0x434   : > { %18015 = vst [vmem:[#allocation43_spill] sm:$0xff] %v16589_v32  ;;  %v13658_v32 = vld [vmem:[#allocation2 + $0x78] sm:$0xff]   ;;  %v7408_v37 = vrot.slane %v7407_v18, 4  ;;  %v7431_v12 = vor.u32 %v7430_v50, %v7427_v41  ;;  %v7451_v27 = vrot.slane %v7449_v42, 4  ;;  %v7476_v43 = vshll.u32 %v7319_v58, 16 }
 0x435   : > { %v7441_v61 = vor.u32 %v7440_v44, %v16594_v36  ;;  %v16614_v51 = vrot.slane %v7458_v49, 5  ;;  %v7464_v52 = vrot.slane %v7462_v3, 4  ;;  %v16618_v20 = vcombine.low %v7389_v28, %v7399_v25  ;;  %v7322_v48 = vld [vmem:[#allocation2 + $0x54] sm:$0xf]  ;;  %v7325_v18 = vld [vmem:[#allocation2 + $0x60] sm:$0xf] }
 0x436   : > { %v7413_v50 = vsel %vm13809_vm4, %v7408_v37, %v16572_v1  ;;  %v7506_v41 = vshll.u32 %v16295_v55, 16  ;;  %v7510_v42 = vshrl.u32 %v16295_v55, 16  ;;  %v7432_v44 = vrot.slane %v7431_v12, 4  ;;  %v13660_v49 = vld [vmem:[#allocation2 + $0x90] sm:$0xff]   ;;  %v7328_v28 = vld [vmem:[#allocation2 + $0x6c] sm:$0xf] }
 0x437   : > { %v16625_v13 = vcombine.low %v7413_v50, %v7423_v35  ;;  %v7446_v6 = vrot.slane %v7444_v47, 5  ;;  %v7468_v34 = vshll.u32 %v16282_v17, 16  ;;  %v7442_v29 = vrot.slane %v7441_v61, 4  ;;  %v13661_v55 = vld [vmem:[#allocation2 + $0x9c] sm:$0xff]  }
 0x438   : > { %v7475_v0 = vrot.slane %v7473_v4, 4  ;;  %v7478_v21 = vrot.slane %v7476_v43, 5  ;;  %v7465_v3 = vor.u32 %v7464_v52, %v16614_v51  ;;  %v16629_v1 = vrot.slane %v7482_v46, 5 }
 0x439   : > { %v7500_v25 = vshll.u32 %v7322_v48, 16  ;;  %v16631_v37 = vrot.slane %v7506_v41, 5  ;;  %v7512_v35 = vrot.slane %v7510_v42, 4  ;;  %v7521_v12 = vshrl.u32 %v7325_v18, 16 }
 0x43a   : > { %12733 = vmatmul.mubr.msk.bf16.gmra.mrb[0].mxu1 %vm5986_vm11, %v13658_v32  ;;  %v7486_v32 = vshrl.u32 %v16284_v22, 16  ;;  %v7455_v22 = vor.u32 %v7454_v62, %v7451_v27  ;;  %v7437_v17 = vsel %vm13809_vm4, %v7432_v44, %v16594_v36  ;;  %v7524_v61 = vshll.u32 %v7325_v18, 16 }
 0x43b   : > { %12736 = vmatprep.mubr.msk.bf16.mxu1 %vm5986_vm11, %v13659_v45  ;;  %v7497_v45 = vshrl.u32 %v7322_v48, 16  ;;  %v7530_v47 = vshll.u32 %v16309_v53, 16  ;;  %v7534_v27 = vshrl.u32 %v16309_v53, 16  ;;  %v7447_v62 = vsel %vm13809_vm4, %v7442_v29, %v7446_v6 }
 0x43c   : > { %v7488_v58 = vrot.slane %v7486_v32, 4  ;;  %v7456_v4 = vrot.slane %v7455_v22, 4  ;;  %v7545_v43 = vshrl.u32 %v7328_v28, 16  ;;  %v7548_v52 = vshll.u32 %v7328_v28, 16 }
 0x43d   : > { %v7466_v46 = vrot.slane %v7465_v3, 4  ;;  %v7479_v32 = vor.u32 %v7478_v21, %v7475_v0  ;;  %v7492_v50 = vshll.u32 %v16288_v23, 16  ;;  %v7499_v48 = vrot.slane %v7497_v45, 4  ;;  %v13662_v23 = vld [vmem:[#allocation2 + $0xa8] sm:$0xff]  }
 0x43e   : > { %v7489_v36 = vor.u32 %v7488_v58, %v16629_v1  ;;  %v7502_v41 = vrot.slane %v7500_v25, 5  ;;  %v7513_v42 = vor.u32 %v7512_v35, %v16631_v37  ;;  %v7523_v44 = vrot.slane %v7521_v12, 4  ;;  %v7331_v25 = vld [vmem:[#allocation2 + $0x78] sm:$0xf] }
 0x43f   : > { %v7526_v53 = vrot.slane %v7524_v61, 5  ;;  %v16645_v18 = vrot.slane %v7530_v47, 5  ;;  %v7554_v6 = vshll.u32 %v16334_v40, 16  ;;  %v7470_v29 = vrot.slane %v7468_v34, 5  ;;  %v13663_v34 = vld [vmem:[#allocation2 + $0xb4] sm:$0xff]  }
 0x440   : > { %v7547_v22 = vrot.slane %v7545_v43, 4  ;;  %v7550_v28 = vrot.slane %v7548_v52, 5  ;;  %v7558_v0 = vshrl.u32 %v16334_v40, 16  ;;  %v16651_v3 = vcombine.low %v7437_v17, %v7447_v62 }
 0x441   : > { %v7461_v58 = vsel %vm13809_vm4, %v7456_v4, %v16614_v51  ;;  %v7480_v45 = vrot.slane %v7479_v32, 4  ;;  %v7471_v12 = vsel %vm13809_vm4, %v7466_v46, %v7470_v29  ;;  %v7490_v40 = vrot.slane %v7489_v36, 4 }
 0x442   : > { %12737 = vmatmul.mubr.msk.bf16.gmra.mrb[4].mxu1 %vm5986_vm11, %v13660_v49  ;;  %v7536_v49 = vrot.slane %v7534_v27, 4  ;;  %v7494_v61 = vrot.slane %v7492_v50, 5  ;;  %v7503_v47 = vor.u32 %v7502_v41, %v7499_v48  ;;  %v7514_v17 = vrot.slane %v7513_v42, 4 }
 0x443   : > { %12740 = vmatprep.mubr.msk.bf16.mxu1 %vm5986_vm11, %v13661_v55  ;;  %v7516_v55 = vshll.u32 %v16307_v39, 16  ;;  %v7527_v62 = vor.u32 %v7526_v53, %v7523_v44  ;;  %v16665_v4 = vrot.slane %v7554_v6, 5  ;;  %v7551_v43 = vor.u32 %v7550_v28, %v7547_v22  ;;  %v7334_v6 = vld [vmem:[#allocation2 + $0x84] sm:$0xf] }
 0x444   : > { %v7537_v51 = vor.u32 %v7536_v49, %v16645_v18  ;;  %v7560_v52 = vrot.slane %v7558_v0, 4  ;;  %v7569_v46 = vshrl.u32 %v7331_v25, 16  ;;  %v7572_v32 = vshll.u32 %v7331_v25, 16 }
 0x445   : > { %v16670_v50 = vcombine.low %v7461_v58, %v7471_v12  ;;  %v7485_v48 = vsel %vm13809_vm4, %v7480_v45, %v16629_v1  ;;  %v7518_v36 = vrot.slane %v7516_v55, 5  ;;  %v7540_v41 = vshll.u32 %v16321_v26, 16  ;;  %v16694_v45 = vld [vmem:[#allocation2 + $0x34] sm:$0xf] }
 0x446   : > { %v7495_v42 = vsel %vm13809_vm4, %v7490_v40, %v7494_v61  ;;  %v7504_v44 = vrot.slane %v7503_v47, 4  ;;  %v7578_v53 = vshll.u32 %v16347_v33, 16  ;;  %v7582_v49 = vshrl.u32 %v16347_v33, 16  ;;  %v13664_v33 = vld [vmem:[#allocation2 + $0xc0] sm:$0xff]   ;;  %v16701_v40 = vld [vmem:[#allocation2 + $0x38] sm:$0x1] }
 0x447   : > { %v7519_v29 = vsel %vm13809_vm4, %v7514_v17, %v7518_v36  ;;  %v16682_v22 = vrot.slane %v7527_v62, 4  ;;  %v16684_v28 = vrot.slane %v7537_v51, 4  ;;  %v7564_v1 = vshll.u32 %v16345_v57, 16  ;;  %18020 = vst [vmem:[#allocation48_spill] sm:$0xff] %v16701_v40  ;;  %v9587_v62 = vld [vmem:[#allocation2 + $0x30] sm:$0xe] }
 0x448   : > { %v16649_v21 = vpop.f32.mrb[44].mxu0  ;;  %v16687_v0 = vrot.slane %v7551_v43, 4  ;;  %v7561_v26 = vor.u32 %v7560_v52, %v16665_v4  ;;  %v16692_v58 = vrot.slane %v7572_v32, 5  ;;  %v16696_v55 = vcombine.low %v7485_v48, %v7495_v42  ;;  %v16723_v52 = vld [vmem:[#allocation2 + $0x40] sm:$0xf] }
 0x449   : > { %18016 = vst [vmem:[#allocation44_spill] sm:$0xff] %v16649_v21  ;;  %v16657_v35 = vpop.f32.mrb[45].mxu0  ;;  %v16698_v25 = vrot.slane %v7540_v41, 5  ;;  %v7593_v12 = vshrl.u32 %v7334_v6, 16  ;;  %v7509_v57 = vsel %vm13809_vm4, %v7504_v44, %v16631_v37  ;;  %v16706_v61 = vrot.slane %v7578_v53, 5  ;;  %18021 = vst [vmem:[#allocation49_spill] sm:$0xff] %v16723_v52 }
 0x44a   : > { %18017 = vst [vmem:[#allocation45_spill] sm:$0xff] %v16657_v35  ;;  %v16661_v27 = vpop.f32.mrb[46].mxu0  ;;  %12741 = vmatmul.mubr.msk.bf16.gmra.mrb[8].mxu1 %vm5986_vm11, %v13662_v23  ;;  %v16690_v23 = vrot.slane %v7569_v46, 4  ;;  %v16708_v47 = vrot.slane %v7582_v49, 4  ;;  %v7596_v17 = vshll.u32 %v7334_v6, 16  ;;  %v16711_v51 = vcombine.low %v7509_v57, %v7519_v29 }
 0x44b   : > { %18018 = vst [vmem:[#allocation46_spill] sm:$0xff] %v16661_v27  ;;  %v16667_v39 = vpop.f32.mrb[47].mxu0  ;;  %12744 = vmatprep.mubr.msk.bf16.mxu1 %vm5986_vm11, %v13663_v34  ;;  %v7588_v34 = vshll.u32 %v16360_v15, 16  ;;  %v16721_v43 = vrot.slane %v7564_v1, 5  ;;  %v16725_v46 = vld [vmem:[#allocation2 + $0x44] sm:$0x1] }
 0x44c   : > { %18019 = vst [vmem:[#allocation47_spill] sm:$0xff] %v16667_v39  ;;  %18022 = vst [vmem:[#allocation50_spill] sm:$0xff] %v16725_v46  ;;  %v16727_v32 = vld [vmem:[#allocation2 + $0x4c] sm:$0xf]  ;;  %v16735_v36 = vrot.slane %v7561_v26, 4  ;;  %v9665_v53 = vrot.slane %v16694_v45, 5 }
 0x44d   : > { %v16739_v42 = vld [vmem:[#allocation2 + $0x50] sm:$0x1]  ;;  %v16741_v44 = vld [vmem:[#allocation2 + $0x58] sm:$0xf]  ;;  %v9588_v49 = vld [vmem:[#allocation2 + $0x3c] sm:$0xe] }
 0x44e   : > { %18023 = vst [vmem:[#allocation51_spill] sm:$0xff] %v16739_v42  ;;  %18024 = vst [vmem:[#allocation52_spill] sm:$0xff] %v16741_v44  ;;  %v16744_v6 = vrot.slane %v7588_v34, 5  ;;  %v11819_v1 = vrot.slane %v9587_v62, 9  ;;  %v16751_v57 = vrot.slane %v7596_v17, 5  ;;  %v9667_v48 = vrot.slane %v9665_v53, 4 }
 0x44f   : > { %v16753_v41 = vld [vmem:[#allocation2 + $0x5c] sm:$0x1]  ;;  %v9668_v15 = vrot.slane %v16701_v40, 5  ;;  %v8305_v34 = vsel %vm6035_vm10, %v16536_v7, 0  ;;  %v16758_v37 = vld [vmem:[#allocation2 + $0x64] sm:$0xf] }
 0x450   : > { %18025 = vst [vmem:[#allocation53_spill] sm:$0xff] %v16753_v41  ;;  %18026 = vst [vmem:[#allocation54_spill] sm:$0xff] %v16758_v37  ;;  %v11820_v62 = vrot.slane %v9588_v49, 9  ;;  %v9672_v29 = vrot.slane %v16723_v52, 5  ;;  %v9590_v26 = vld [vmem:[#allocation2 + $0x54] sm:$0xe] }
 0x451   : > { %v16767_v17 = vsel %vm14124_vm7, %v9667_v48, %v9668_v15  ;;  %v9675_v39 = vrot.slane %v16725_v46, 5  ;;  %v9679_v35 = vrot.slane %v16727_v32, 5  ;;  %v9591_v7 = vld [vmem:[#allocation2 + $0x60] sm:$0xe]  ;;  %v16771_v21 = vld [vmem:[#allocation2 + $0x68] sm:$0x1] }
 0x452   : > { %12745 = vmatmul.mubr.msk.bf16.gmra.mrb[12].mxu1 %vm5986_vm11, %v13664_v33  ;;  %v9589_v33 = vld [vmem:[#allocation2 + $0x48] sm:$0xe]  ;;  %18028 = vst [vmem:[#allocation56_spill] sm:$0xff] %v16767_v17  ;;  %18029 = vst [vmem:[#allocation57_spill] sm:$0xff] %v16771_v21  ;;  %v16773_v40 = vld [vmem:[#allocation2 + $0x70] sm:$0xf]  ;;  %v16786_v48 = vsel %vm14124_vm7, %v11820_v62, %v9672_v29 }
 0x453   : > { %12750 = vmatprep.mubr.msk.bf16.mxu1 %vm5986_vm11, %v16601_v5  ;;  %v16746_v5 = vrot.slane %v7593_v12, 4  ;;  %v16762_v12 = vsel %vm14124_vm7, %v11819_v1, %v9665_v53  ;;  %v11821_v27 = vrot.slane %v9589_v33, 9  ;;  %18030 = vst [vmem:[#allocation58_spill] sm:$0xff] %v16773_v40  ;;  %v9674_v49 = vrot.slane %v9672_v29, 4  ;;  %v16782_v15 = vld [vmem:[%s17757_s3 + $0x18] sm:$0xf] }
 0x454   : > { %18027 = vst [vmem:[#allocation55_spill] sm:$0xff] %v16762_v12  ;;  %v9682_v1 = vrot.slane %v16739_v42, 5  ;;  %v9686_v52 = vrot.slane %v16741_v44, 5  ;;  %18031 = vst [vmem:[#allocation59_spill] sm:$0xff] %v16786_v48  ;;  %v9681_v46 = vrot.slane %v9679_v35, 4  ;;  %v11822_v53 = vrot.slane %v9590_v26, 9 }
 0x455   : > { %v16790_v33 = vsel %vm14124_vm7, %v11821_v27, %v9679_v35  ;;  %v9592_v17 = vld [vmem:[#allocation2 + $0x6c] sm:$0xe]  ;;  %v16794_v12 = vld [vmem:[#allocation2 + $0x7c] sm:$0xf]  ;;  %v16798_v42 = vsel %vm14124_vm7, %v9674_v49, %v9675_v39  ;;  %v9689_v29 = vrot.slane %v16753_v41, 5  ;;  %v11823_v62 = vrot.slane %v9591_v7, 9 }
 0x456   : > { %18032 = vst [vmem:[#allocation60_spill] sm:$0xff] %v16790_v33  ;;  %18033 = vst [vmem:[#allocation61_spill] sm:$0xff] %v16794_v12  ;;  %v9688_v44 = vrot.slane %v9686_v52, 4  ;;  %v16803_v35 = vld [vmem:[#allocation2 + $0x74] sm:$0x1]  ;;  %v16811_v26 = vsel %vm14124_vm7, %v9681_v46, %v9682_v1  ;;  %v16815_v39 = vsel %vm14124_vm7, %v11822_v53, %v9686_v52  ;;  %v11824_v46 = vrot.slane %v9592_v17, 9 }
 0x457   : > { %18034 = vst [vmem:[#allocation62_spill] sm:$0xff] %v16798_v42  ;;  %18035 = vst [vmem:[#allocation63_spill] sm:$0xff] %v16803_v35  ;;  %v16805_v27 = vld [vmem:[#allocation2 + $0x80] sm:$0x1]  ;;  %v9700_v1 = vrot.slane %v16773_v40, 5  ;;  %v9696_v7 = vrot.slane %v16771_v21, 5 }
 0x458   : > { %18036 = vst [vmem:[#allocation64_spill] sm:$0xff] %v16805_v27  ;;  %18037 = vst [vmem:[#allocation65_spill] sm:$0xff] %v16811_v26  ;;  %v16826_v49 = vsel %vm14124_vm7, %v9688_v44, %v9689_v29  ;;  %v16829_v52 = vld [vmem:[#allocation2 + $0x94] sm:$0xf]  ;;  %v9594_v26 = vld [vmem:[#allocation2 + $0x84] sm:$0xe] }
 0x459   : > { %18038 = vst [vmem:[#allocation66_spill] sm:$0xff] %v16815_v39  ;;  %18040 = vst [vmem:[#allocation68_spill] sm:$0xff] %v16826_v49  ;;  %v16838_v33 = vld [vmem:[#allocation2 + $0x8c] sm:$0x1]  ;;  %v16842_v44 = vsel %vm14124_vm7, %v11824_v46, %v9700_v1  ;;  %v9702_v17 = vrot.slane %v9700_v1, 4  ;;  %v9703_v29 = vrot.slane %v16803_v35, 5 }
 0x45a   : > { %12751 = vmatmul.mubr.msk.bf16.vlgmr.msra.gmra.mrb[16].mxu1 %vm5986_vm11, %v16618_v20  ;;  %v9593_v20 = vld [vmem:[#allocation2 + $0x78] sm:$0xe]  ;;  %18042 = vst [vmem:[#allocation70_spill] sm:$0xff] %v16838_v33  ;;  %18043 = vst [vmem:[#allocation71_spill] sm:$0xff] %v16842_v44  ;;  %v9707_v40 = vrot.slane %v16794_v12, 5  ;;  %v9710_v49 = vrot.slane %v16805_v27, 5 }
 0x45b   : > { %12783 = vmatpush3.bf16.msra.mxu1 %v8305_v34  ;;  %12754 = vmatprep.mubr.msk.bf16.mxu1 %vm5986_vm11, %v16625_v13  ;;  %v9693_v34 = vrot.slane %v16758_v37, 5  ;;  %v16820_v13 = vld [vmem:[#allocation2 + $0x88] sm:$0xf]  ;;  %v16846_v53 = vld [vmem:[#allocation2 + $0x98] sm:$0x1]  ;;  %v16862_v35 = vsel %vm14124_vm7, %v9702_v17, %v9703_v29  ;;  %v11826_v41 = vrot.slane %v9594_v26, 9 }
 0x45c   : > { %13578 = vmatprep.subr.msk.bf16.mxu1 %vm6035_vm10, %v16782_v15  ;;  %18039 = vst [vmem:[#allocation67_spill] sm:$0xff] %v16820_v13  ;;  %18044 = vst [vmem:[#allocation72_spill] sm:$0xff] %v16846_v53  ;;  %v9714_v39 = vrot.slane %v16820_v13, 5  ;;  %v16854_v21 = vld [vmem:[#allocation2 + $0xa0] sm:$0xf]  ;;  %v9709_v12 = vrot.slane %v9707_v40, 4 }
 0x45d   : > { %v16835_v42 = vsel %vm14124_vm7, %v11823_v62, %v9693_v34  ;;  %v9695_v48 = vrot.slane %v9693_v34, 4  ;;  %v11825_v34 = vrot.slane %v9593_v20, 9  ;;  %18046 = vst [vmem:[#allocation74_spill] sm:$0xff] %v16854_v21  ;;  %v16856_v46 = vld [vmem:[#allocation2 + $0xac] sm:$0xf]  ;;  %18048 = vst [vmem:[#allocation76_spill] sm:$0xff] %v16862_v35 }
 0x45e   : > { %18041 = vst [vmem:[#allocation69_spill] sm:$0xff] %v16835_v42  ;;  %18047 = vst [vmem:[#allocation75_spill] sm:$0xff] %v16856_v46  ;;  %v7606_v20 = vshrl.u32 %v16367_v63, 16  ;;  %v9716_v27 = vrot.slane %v9714_v39, 4  ;;  %v9717_v13 = vrot.slane %v16838_v33, 5  ;;  %v16880_v17 = vsel %vm14124_vm7, %v9709_v12, %v9710_v49  ;;  %v18129_v54 = vld [vmem:[#allocation60_spill] sm:$0xff] }
 0x45f   : > { %v16850_v62 = vsel %vm14124_vm7, %v9695_v48, %v9696_v7  ;;  %v9595_v48 = vld [vmem:[#allocation2 + $0x90] sm:$0xe]  ;;  %v9596_v37 = vld [vmem:[#allocation2 + $0x9c] sm:$0xe]  ;;  %v16870_v1 = vld [vmem:[#allocation2 + $0xa4] sm:$0x1]  ;;  %v16876_v26 = vsel %vm14124_vm7, %v11825_v34, %v9707_v40  ;;  %v16884_v29 = vsel %vm14124_vm7, %v11826_v41, %v9714_v39 }
 0x460   : > { %18045 = vst [vmem:[#allocation73_spill] sm:$0xff] %v16850_v62  ;;  %18049 = vst [vmem:[#allocation77_spill] sm:$0xff] %v16870_v1  ;;  %v16872_v62 = vld [vmem:[#allocation2 + $0xb0] sm:$0x1]  ;;  %v9721_v7 = vrot.slane %v16829_v52, 5  ;;  %v16895_v40 = vsel %vm14124_vm7, %v9716_v27, %v9717_v13  ;;  %v11827_v12 = vrot.slane %v9595_v48, 9 }
 0x461   : > { %18050 = vst [vmem:[#allocation78_spill] sm:$0xff] %v16876_v26  ;;  %18051 = vst [vmem:[#allocation79_spill] sm:$0xff] %v16880_v17  ;;  %v9728_v49 = vrot.slane %v16854_v21, 5  ;;  %v9597_v34 = vld [vmem:[#allocation2 + $0xa8] sm:$0xe]  ;;  %v11828_v42 = vrot.slane %v9596_v37, 9 }
 0x462   : > { %12755 = vmatmul.mubr.msk.bf16.gmra.mrb[20].mxu1 %vm5986_vm11, %v16651_v3  ;;  %18052 = vst [vmem:[#allocation80_spill] sm:$0xff] %v16884_v29  ;;  %v16889_v3 = vld [vmem:[#allocation2 + $0xb8] sm:$0xf]  ;;  %18054 = vst [vmem:[#allocation82_spill] sm:$0xff] %v16895_v40  ;;  %v8900_v41 = vld [vmem:[#allocation2 + $0xbc] sm:$0x1]  ;;  %v16903_v33 = vsel %vm14124_vm7, %v11827_v12, %v9721_v7 }
 0x463   : > { %12758 = vmatprep.mubr.msk.bf16.mxu1 %vm5986_vm11, %v16670_v50  ;;  %18053 = vst [vmem:[#allocation81_spill] sm:$0xff] %v16889_v3  ;;  %v9723_v44 = vrot.slane %v9721_v7, 4  ;;  %v9724_v50 = vrot.slane %v16846_v53, 5  ;;  %v9730_v35 = vrot.slane %v9728_v49, 4  ;;  %v9731_v27 = vrot.slane %v16870_v1, 5 }
 0x464   : > { %v9735_v13 = vrot.slane %v16856_v46, 5  ;;  %v9598_v48 = vld [vmem:[#allocation2 + $0xb4] sm:$0xe]  ;;  %v16907_v17 = vld [vmem:[#allocation2 + $0xc4] sm:$0xf]  ;;  %v16915_v39 = vsel %vm14124_vm7, %v11828_v42, %v9728_v49  ;;  %v11829_v37 = vrot.slane %v9597_v34, 9 }
 0x465   : > { %v16911_v26 = vsel %vm14124_vm7, %v9723_v44, %v9724_v50  ;;  %v9742_v7 = vrot.slane %v16889_v3, 5  ;;  %v16918_v12 = vld [vmem:[#allocation2 + $0xc8] sm:$0x1]  ;;  %v16924_v29 = vsel %vm14124_vm7, %v9730_v35, %v9731_v27  ;;  %v9738_v44 = vrot.slane %v16872_v62, 5  ;;  %v9599_v46 = vld [vmem:[#allocation2 + $0xc0] sm:$0xe] }
 0x466   : > { %v9737_v1 = vrot.slane %v9735_v13, 4  ;;  %v11845_v50 = vcombine.low %v16915_v39, %v16924_v29  ;;  %v11830_v42 = vrot.slane %v9598_v48, 9  ;;  %v9745_v34 = vrot.slane %v8900_v41, 5  ;;  %v7337_v21 = vld [vmem:[#allocation2 + $0x90] sm:$0xf] }
 0x467   : > { %v9744_v49 = vrot.slane %v9742_v7, 4  ;;  %v18055_v3 = vshll.u32 %v16367_v63, 16  ;;  %v16935_v40 = vsel %vm14124_vm7, %v11829_v37, %v9735_v13  ;;  %v9749_v27 = vrot.slane %v16907_v17, 5  ;;  %v11875_v29 = vld [vmem:[%s13774_s10 + $0x2c] sm:$0x1] }
 0x468   : > { %v16939_v35 = vsel %vm14124_vm7, %v9737_v1, %v9738_v44  ;;  %v7608_v41 = vrot.slane %v7606_v20, 4  ;;  %v11831_v48 = vrot.slane %v9599_v46, 9  ;;  %v9752_v20 = vrot.slane %v16918_v12, 5  ;;  %v7340_v1 = vld [vmem:[#allocation2 + $0x9c] sm:$0xf] }
 0x469   : > { %v16931_v53 = vrot.slane %v18055_v3, 5  ;;  %v16948_v3 = vsel %vm14124_vm7, %v11830_v42, %v9742_v7  ;;  %v16952_v13 = vsel %vm14124_vm7, %v9744_v49, %v9745_v34  ;;  %v7567_v37 = vsel %vm13809_vm4, %v16735_v36, %v16721_v43  ;;  %v11878_v39 = vld [vmem:[%s13774_s10 + $0x38] sm:$0x1] }
 0x46a   : > { %12759 = vmatmul.mubr.msk.bf16.gmra.mrb[24].mxu1 %vm5986_vm11, %v16696_v55  ;;  %v9751_v55 = vrot.slane %v9749_v27, 4  ;;  %v18056_v7 = vor.u32 %v16708_v47, %v16706_v61  ;;  %v7617_v42 = vshrl.u32 %v7337_v21, 16  ;;  %v7620_v49 = vshll.u32 %v7337_v21, 16 }
 0x46b   : > { %12762 = vmatprep.mubr.msk.bf16.mxu1 %vm5986_vm11, %v16711_v51  ;;  %v7626_v51 = vshll.u32 %v16381_v38, 16  ;;  %v7630_v34 = vshrl.u32 %v16381_v38, 16  ;;  %v16970_v46 = vsel %vm14124_vm7, %v11831_v48, %v9749_v27  ;;  %v7609_v43 = vor.u32 %v7608_v41, %v16931_v53 }
 0x46c   : > { %v7586_v44 = vrot.slane %v18056_v7, 4  ;;  %v16974_v63 = vsel %vm14124_vm7, %v9751_v55, %v9752_v20  ;;  %v7650_v47 = vshll.u32 %v16398_v19, 16  ;;  %v7654_v36 = vshrl.u32 %v16398_v19, 16 }
 0x46d   : > { %v18057_v38 = vsel %vm13809_vm4, %v16684_v28, %v16698_v25  ;;  %v18058_v27 = vsel %vm13809_vm4, %v16682_v22, %v16645_v18  ;;  %v18059_v41 = vsel %vm13809_vm4, %v16687_v0, %v16665_v4  ;;  %v18060_v55 = vor.u32 %v16692_v58, %v16690_v23 }
 0x46e   : > { %v11677_v48 = vcombine.low %v18058_v27, %v18057_v38  ;;  %v11678_v19 = vcombine.low %v18059_v41, %v7567_v37  ;;  %v7599_v7 = vor.u32 %v16751_v57, %v16746_v5  ;;  %v7591_v28 = vsel %vm13809_vm4, %v7586_v44, %v16744_v6  ;;  %v7343_v44 = vld [vmem:[#allocation2 + $0xa8] sm:$0xf] }
 0x46f   : > { %v7576_v20 = vrot.slane %v18060_v55, 4  ;;  %v7612_v18 = vshll.u32 %v16369_v9, 16  ;;  %v7641_v22 = vshrl.u32 %v7340_v1, 16  ;;  %v7644_v25 = vshll.u32 %v7340_v1, 16 }
 0x470   : > { %v7619_v38 = vrot.slane %v7617_v42, 4  ;;  %v7622_v27 = vrot.slane %v7620_v49, 5  ;;  %v7628_v21 = vrot.slane %v7626_v51, 5  ;;  %v7632_v4 = vrot.slane %v7630_v34, 4 }
 0x471   : > { %v7610_v0 = vrot.slane %v7609_v43, 4  ;;  %v7652_v23 = vrot.slane %v7650_v47, 5  ;;  %v7656_v58 = vrot.slane %v7654_v36, 4  ;;  %v7581_v5 = vsel %vm13809_vm4, %v7576_v20, %v16706_v61  ;;  %v7346_v43 = vld [vmem:[#allocation2 + $0xb4] sm:$0xf] }
 0x472   : > { %12763 = vmatmul.mubr.msk.bf16.gmra.mrb[28].mxu1 %vm5986_vm11, %v11677_v48  ;;  %v7600_v6 = vrot.slane %v7599_v7, 4  ;;  %v11679_v57 = vcombine.low %v7581_v5, %v7591_v28  ;;  %v7614_v9 = vrot.slane %v7612_v18, 5  ;;  %v7643_v37 = vrot.slane %v7641_v22, 4 }
 0x473   : > { %12766 = vmatprep.mubr.msk.bf16.mxu1 %vm5986_vm11, %v11678_v19  ;;  %v7646_v1 = vrot.slane %v7644_v25, 5  ;;  %v7623_v42 = vor.u32 %v7622_v27, %v7619_v38  ;;  %v7633_v49 = vor.u32 %v7632_v4, %v7628_v21  ;;  %v7674_v51 = vshll.u32 %v16419_v31, 16 }
 0x474   : > { %v7678_v34 = vshrl.u32 %v16419_v31, 16  ;;  %v7615_v47 = vsel %vm13809_vm4, %v7610_v0, %v7614_v9  ;;  %v7657_v36 = vor.u32 %v7656_v58, %v7652_v23  ;;  %v7698_v48 = vshll.u32 %v16439_v30, 16 }
 0x475   : > { %v7702_v61 = vshrl.u32 %v16439_v30, 16  ;;  %v7605_v41 = vsel %vm13809_vm4, %v7600_v6, %v16931_v53  ;;  %v7636_v19 = vshll.u32 %v16389_v14, 16  ;;  %v7665_v55 = vshrl.u32 %v7343_v44, 16 }
 0x476   : > { %v7668_v20 = vshll.u32 %v7343_v44, 16  ;;  %v7647_v7 = vor.u32 %v7646_v1, %v7643_v37  ;;  %v7660_v31 = vshll.u32 %v16400_v56, 16  ;;  %v7689_v28 = vshrl.u32 %v7346_v43, 16  ;;  %v7349_v1 = vld [vmem:[#allocation2 + $0xc0] sm:$0xf] }
 0x477   : > { %v7692_v18 = vshll.u32 %v7346_v43, 16  ;;  %v11680_v22 = vcombine.low %v7605_v41, %v7615_v47  ;;  %v7634_v25 = vrot.slane %v7633_v49, 4  ;;  %v7676_v38 = vrot.slane %v7674_v51, 5 }
 0x478   : > { %v7680_v27 = vrot.slane %v7678_v34, 4  ;;  %v7624_v30 = vrot.slane %v7623_v42, 4  ;;  %v7658_v4 = vrot.slane %v7657_v36, 4  ;;  %v7700_v0 = vrot.slane %v7698_v48, 5 }
 0x479   : > { %v7704_v58 = vrot.slane %v7702_v61, 4  ;;  %v7638_v14 = vrot.slane %v7636_v19, 5  ;;  %v7667_v53 = vrot.slane %v7665_v55, 4  ;;  %v7670_v5 = vrot.slane %v7668_v20, 5 }
 0x47a   : > { %12767 = vmatmul.mubr.msk.bf16.gmra.mrb[0].mxu1 %vm5986_vm11, %v11679_v57  ;;  %v7648_v6 = vrot.slane %v7647_v7, 4  ;;  %v7662_v9 = vrot.slane %v7660_v31, 5  ;;  %v7691_v56 = vrot.slane %v7689_v28, 4  ;;  %v7694_v37 = vrot.slane %v7692_v18, 5 }
 0x47b   : > { %12770 = vmatprep.mubr.msk.bf16.mxu1 %vm5986_vm11, %v11680_v22  ;;  %v7639_v44 = vsel %vm13809_vm4, %v7634_v25, %v7638_v14  ;;  %v7681_v49 = vor.u32 %v7680_v27, %v7676_v38  ;;  %v7722_v57 = vshll.u32 %v16452_v59, 16  ;;  %v7726_v42 = vshrl.u32 %v16452_v59, 16 }
 0x47c   : > { %v7629_v51 = vsel %vm13809_vm4, %v7624_v30, %v7628_v21  ;;  %v7663_v34 = vsel %vm13809_vm4, %v7658_v4, %v7662_v9  ;;  %v7705_v43 = vor.u32 %v7704_v58, %v7700_v0  ;;  %v7671_v47 = vor.u32 %v7670_v5, %v7667_v53 }
 0x47d   : > { %v7684_v36 = vshll.u32 %v16428_v16, 16  ;;  %v7713_v48 = vshrl.u32 %v7349_v1, 16  ;;  %v7716_v61 = vshll.u32 %v7349_v1, 16  ;;  %v11681_v41 = vcombine.low %v7629_v51, %v7639_v44 }
 0x47e   : > { %v7653_v19 = vsel %vm13809_vm4, %v7648_v6, %v7652_v23  ;;  %v7695_v55 = vor.u32 %v7694_v37, %v7691_v56  ;;  %v7708_v20 = vshll.u32 %v16450_v8, 16  ;;  %v7682_v7 = vrot.slane %v7681_v49, 4 }
 0x47f   : > { %v11682_v59 = vcombine.low %v7653_v19, %v7663_v34  ;;  %v7724_v31 = vrot.slane %v7722_v57, 5  ;;  %v7728_v21 = vrot.slane %v7726_v42, 4  ;;  %v7706_v28 = vrot.slane %v7705_v43, 4 }
 0x480   : > { %v7672_v18 = vrot.slane %v7671_v47, 4  ;;  %v7686_v16 = vrot.slane %v7684_v36, 5  ;;  %v7715_v22 = vrot.slane %v7713_v48, 4  ;;  %v7718_v25 = vrot.slane %v7716_v61, 5  ;;  %v18061_v48 = vld [vmem:[#allocation39_spill] sm:$0xff] }
 0x481   : > { %v7696_v27 = vrot.slane %v7695_v55, 4  ;;  %v7710_v30 = vrot.slane %v7708_v20, 5  ;;  %v7729_v4 = vor.u32 %v7728_v21, %v7724_v31  ;;  %v8096_v58 = vrot.slane %v16550_v24, 5  ;;  %v8030_v24 = vld [vmem:[#allocation2 + $0xc] sm:$0xe] }
 0x482   : > { %12771 = vmatmul.mubr.msk.bf16.gmra.mrb[4].mxu1 %vm5986_vm11, %v11681_v41  ;;  %v7687_v23 = vsel %vm13809_vm4, %v7682_v7, %v7686_v16  ;;  %v7677_v14 = vsel %vm13809_vm4, %v7672_v18, %v7676_v38  ;;  %v7719_v53 = vor.u32 %v7718_v25, %v7715_v22  ;;  %v7732_v5 = vshll.u32 %v16464_v2, 16  ;;  %v18062_v7 = vld [vmem:[#allocation4_spill] sm:$0xff]  ;;  %v18066_v18 = vld [vmem:[#allocation7_spill] sm:$0xff]  ;;  %v18069_v22 = vld [vmem:[#allocation9_spill] sm:$0xff] }
 0x483   : > { %12774 = vmatprep.mubr.msk.bf16.mxu1 %vm5986_vm11, %v11682_v59  ;;  %v7711_v8 = vsel %vm13809_vm4, %v7706_v28, %v7710_v30  ;;  %v11683_v6 = vcombine.low %v7677_v14, %v7687_v23  ;;  %v7701_v9 = vsel %vm13809_vm4, %v7696_v27, %v7700_v0  ;;  %v7730_v37 = vrot.slane %v7729_v4, 4  ;;  %v11784_v59 = vld [vmem:[%s17757_s3 + $0x1c] sm:$0xf]  ;;  %v18065_v28 = vld [vmem:[#allocation6_spill] sm:$0xff]  ;;  %v18077_v14 = vld [vmem:[#allocation13_spill] sm:$0xff] }
 0x484   : > { %v11684_v56 = vcombine.low %v7701_v9, %v7711_v8  ;;  %v8098_v1 = vrot.slane %v8096_v58, 4  ;;  %v7720_v44 = vrot.slane %v7719_v53, 4  ;;  %v7734_v49 = vrot.slane %v7732_v5, 5  ;;  %v18071_v27 = vld [vmem:[#allocation10_spill] sm:$0xff]  ;;  %v18072_v30 = vld [vmem:[#allocation11_spill] sm:$0xff]  ;;  %v18075_v8 = vld [vmem:[#allocation12_spill] sm:$0xff] }
 0x485   : > { %v8099_v57 = vrot.slane %v16558_v60, 5  ;;  %v8103_v2 = vrot.slane %v16556_v11, 5  ;;  %v11702_v42 = vrot.slane %v8030_v24, 9  ;;  %v8031_v60 = vld [vmem:[#allocation2 + $0x18] sm:$0xe]  ;;  %v8106_v11 = vrot.slane %v18061_v48, 5 }
 0x486   : > { %v7735_v38 = vsel %vm13809_vm4, %v7730_v37, %v7734_v49  ;;  %v7725_v51 = vsel %vm13809_vm4, %v7720_v44, %v7724_v31  ;;  %v11703_v61 = vrot.slane %v8031_v60, 9  ;;  %v8664_v20 = vsel %vm6035_vm10, %v16782_v15, 0  ;;  %v18063_v31 = vld [vmem:[#allocation5_spill] sm:$0xff]  ;;  %v18068_v15 = vld [vmem:[#allocation8_spill] sm:$0xff]  ;;  %v18074_v4 = vld [vmem:[#allocation3_spill] sm:$0xff] }
 0x487   : > { %v8100_v0 = vsel %vm14124_vm7, %v8098_v1, %v8099_v57  ;;  %v11685_v34 = vcombine.low %v7725_v51, %v7735_v38  ;;  %v8097_v43 = vsel %vm14124_vm7, %v11702_v42, %v8096_v58  ;;  %v8105_v36 = vrot.slane %v8103_v2, 4  ;;  %v18078_v53 = vld [vmem:[#allocation14_spill] sm:$0xff]  ;;  %v18081_v9 = vld [vmem:[#allocation16_spill] sm:$0xff]  ;;  %v18083_v37 = vld [vmem:[#allocation17_spill] sm:$0xff] }
 0x488   : > { %v11719_v47 = vcombine.low %v8097_v43, %v8100_v0  ;;  %v8104_v19 = vsel %vm14124_vm7, %v11703_v61, %v8103_v2  ;;  %v18064_v21 = vcombine.low %v18062_v7, %v18063_v31  ;;  %v18067_v16 = vcombine.low %v18065_v28, %v18066_v18  ;;  %v18084_v1 = vld [vmem:[#allocation18_spill] sm:$0xff]  ;;  %v18086_v49 = vld [vmem:[#allocation19_spill] sm:$0xff]  ;;  %v18087_v24 = vld [vmem:[#allocation20_spill] sm:$0xff] }
 0x489   : > { %v8107_v41 = vsel %vm14124_vm7, %v8105_v36, %v8106_v11  ;;  %v18070_v25 = vcombine.low %v18068_v15, %v18069_v22  ;;  %v18073_v23 = vcombine.low %v18071_v27, %v18072_v30  ;;  %v18076_v58 = vcombine.low %v18074_v4, %v18075_v8  ;;  %v18089_v38 = vld [vmem:[#allocation21_spill] sm:$0xff]  ;;  %v18090_v2 = vld [vmem:[#allocation22_spill] sm:$0xff]  ;;  %v18092_v0 = vld [vmem:[#allocation23_spill] sm:$0xff] }
 0x48a   : > { %12775 = vmatmul.mubr.msk.bf16.gmra.mrb[8].mxu1 %vm5986_vm11, %v11683_v6  ;;  %v11720_v55 = vcombine.low %v8104_v19, %v8107_v41  ;;  %v18079_v5 = vcombine.low %v18077_v14, %v18078_v53  ;;  %v18080_v6 = vld [vmem:[#allocation15_spill] sm:$0xff]  ;;  %v18085_v44 = vcombine.low %v18083_v37, %v18084_v1  ;;  %v18088_v57 = vcombine.low %v18086_v49, %v18087_v24  ;;  %v18093_v51 = vld [vmem:[#allocation24_spill] sm:$0xff]  ;;  %v18095_v43 = vld [vmem:[#allocation25_spill] sm:$0xff] }
 0x48b   : > { %12778 = vmatprep.mubr.msk.bf16.mxu1 %vm5986_vm11, %v11684_v56  ;;  %v18082_v56 = vcombine.low %v18080_v6, %v18081_v9  ;;  %v18091_v42 = vcombine.low %v18089_v38, %v18090_v2  ;;  %v18098_v60 = vld [vmem:[#allocation30_spill] sm:$0xff]  ;;  %v18099_v48 = vld [vmem:[#allocation31_spill] sm:$0xff]  ;;  %v18101_v41 = vld [vmem:[#allocation33_spill] sm:$0xff]  ;;  %v9390_v7 = vsel %vm6035_vm10, %v11784_v59, 0 }
 0x48c   : > { %v18100_v11 = vcombine.low %v18098_v60, %v18099_v48  ;;  %v13665_v61 = vld [vmem:[#allocation2 + $0x18] sm:$0xff]   ;;  %v18102_v19 = vld [vmem:[#allocation34_spill] sm:$0xff]  ;;  %v13669_v18 = vld [vmem:[#allocation2 + $0x48] sm:$0xff]  }
 0x48d   : > { %v13667_v31 = vld [vmem:[#allocation2 + $0x30] sm:$0xff]   ;;  %v13668_v28 = vld [vmem:[#allocation2 + $0x3c] sm:$0xff]   ;;  %v8859_v27 = vld [vmem:[#allocation2 + $0x18] sm:$0xf] }
 0x48e   : > { %v13672_v15 = vld [vmem:[#allocation2 + $0x6c] sm:$0xff]   ;;  %v13673_v22 = vld [vmem:[#allocation2 + $0x78] sm:$0xff]   ;;  %v13674_v4 = vld [vmem:[#allocation2 + $0x84] sm:$0xff]   ;;  %v8908_v8 = vshrl.u32 %v8859_v27, 16 }
 0x48f   : > { %v13675_v14 = vld [vmem:[#allocation2 + $0x90] sm:$0xff]   ;;  %v8862_v53 = vld [vmem:[#allocation2 + $0x24] sm:$0xf]  ;;  %v17161_v48 = vld [vmem:[#allocation2 + $0x2c] sm:$0x1] }
 0x490   : > { %v8932_v1 = vshrl.u32 %v8862_v53, 16  ;;  %v8865_v2 = vld [vmem:[#allocation2 + $0x30] sm:$0xf] }
 0x492   : > { %12779 = vmatmul.mubr.msk.bf16.gmra.mrb[12].mxu1 %vm5986_vm11, %v11685_v34  ;;  %v18094_v34 = vcombine.low %v18092_v0, %v18093_v51  ;;  %v8969_v0 = vshrl.u32 %v16694_v45, 16  ;;  %v13676_v51 = vld [vmem:[#allocation2 + $0x9c] sm:$0xff]  }
 0x493   : > { %12784 = vmatprep.mubr.msk.bf16.mxu1 %vm5986_vm11, %v11719_v47  ;;  %v18096_v47 = vld [vmem:[#allocation26_spill] sm:$0xff] }
 0x494   : > { %v18097_v36 = vcombine.low %v18095_v43, %v18096_v47  ;;  %v8934_v43 = vrot.slane %v8932_v1, 4  ;;  %v18104_v1 = vld [vmem:[#allocation48_spill] sm:$0xff] }
 0x49a   : > { %12785 = vmatmul.mubr.msk.bf16.vlgmr.msra.gmra.mrb[16].mxu1 %vm5986_vm11, %v11720_v55  ;;  %v18103_v55 = vcombine.low %v18101_v41, %v18102_v19  ;;  %v8956_v41 = vshrl.u32 %v8865_v2, 16  ;;  %v8959_v19 = vshll.u32 %v8865_v2, 16 }
 0x49b   : > { %12817 = vmatpush3.bf16.msra.mxu1 %v8664_v20  ;;  %12788 = vmatprep.mubr.msk.bf16.mxu1 %vm5986_vm11, %v18064_v21  ;;  %v13666_v20 = vld [vmem:[#allocation2 + $0x24] sm:$0xff]   ;;  %v17134_v21 = vld [vmem:[%s17757_s3 + $0x20] sm:$0xf] }
 0x49c   : > { %13579 = vmatprep.subr.msk.bf16.mxu1 %vm6035_vm10, %v11784_v59  ;;  %v13670_v59 = vld [vmem:[#allocation2 + $0x54] sm:$0xff]  }
 0x4a2   : > { %12789 = vmatmul.mubr.msk.bf16.gmra.mrb[20].mxu1 %vm5986_vm11, %v18067_v16  ;;  %v13671_v16 = vld [vmem:[#allocation2 + $0x60] sm:$0xff]  }
 0x4a3   : > { %12792 = vmatprep.mubr.msk.bf16.mxu1 %vm5986_vm11, %v18070_v25  ;;  %v17146_v25 = vld [vmem:[#allocation2 + $0x1c] sm:$0xf] }
 0x4a4   : > { %v8917_v30 = vshll.u32 %v17146_v25, 16 }
 0x4a6   : > { %v8919_v6 = vrot.slane %v8917_v30, 5 }
 0x4aa   : > { %12793 = vmatmul.mubr.msk.bf16.gmra.mrb[24].mxu1 %vm5986_vm11, %v18073_v23  ;;  %v8921_v23 = vshrl.u32 %v17146_v25, 16 }
 0x4ab   : > { %12796 = vmatprep.mubr.msk.bf16.mxu1 %vm5986_vm11, %v18076_v58  ;;  %v8911_v58 = vshll.u32 %v8859_v27, 16 }
 0x4ac   : > { %v8923_v9 = vrot.slane %v8921_v23, 4 }
 0x4ad   : > { %v8913_v37 = vrot.slane %v8911_v58, 5 }
 0x4ae   : > { %v8924_v38 = vor.u32 %v8923_v9, %v8919_v6  ;;  %v8871_v9 = vld [vmem:[#allocation2 + $0x48] sm:$0xf] }
 0x4b2   : > { %12797 = vmatmul.mubr.msk.bf16.gmra.mrb[28].mxu1 %vm5986_vm11, %v18079_v5  ;;  %v17151_v5 = vld [vmem:[#allocation2 + $0x28] sm:$0xf] }
 0x4b3   : > { %12800 = vmatprep.mubr.msk.bf16.mxu1 %vm5986_vm11, %v18082_v56  ;;  %v8910_v56 = vrot.slane %v8908_v8, 4  ;;  %v8941_v49 = vshll.u32 %v17151_v5, 16  ;;  %v8945_v24 = vshrl.u32 %v17151_v5, 16 }
 0x4ba   : > { %12801 = vmatmul.mubr.msk.bf16.gmra.mrb[0].mxu1 %vm5986_vm11, %v18085_v44  ;;  %v8935_v44 = vshll.u32 %v8862_v53, 16 }
 0x4bb   : > { %12804 = vmatprep.mubr.msk.bf16.mxu1 %vm5986_vm11, %v18088_v57  ;;  %v17156_v57 = vld [vmem:[#allocation2 + $0x20] sm:$0x1] }
 0x4bc   : > { %v8937_v47 = vrot.slane %v8935_v44, 5  ;;  %v8927_v60 = vshll.u32 %v17156_v57, 16  ;;  %v8975_v44 = vshll.u32 %v18104_v1, 16 }
 0x4c2   : > { %12805 = vmatmul.mubr.msk.bf16.gmra.mrb[4].mxu1 %vm5986_vm11, %v18091_v42  ;;  %v8965_v42 = vshll.u32 %v16694_v45, 16 }
 0x4c3   : > { %12808 = vmatprep.mubr.msk.bf16.mxu1 %vm5986_vm11, %v18094_v34  ;;  %v8914_v34 = vor.u32 %v8913_v37, %v8910_v56  ;;  %v13679_v56 = vld [vmem:[#allocation2 + $0xc0] sm:$0xff]  }
 0x4c4   : > { %v17167_v45 = vrot.slane %v8965_v42, 5 }
 0x4ca   : > { %12809 = vmatmul.mubr.msk.bf16.gmra.mrb[8].mxu1 %vm5986_vm11, %v18097_v36  ;;  %v13677_v36 = vld [vmem:[#allocation2 + $0xa8] sm:$0xff]  }
 0x4cb   : > { %12812 = vmatprep.mubr.msk.bf16.mxu1 %vm5986_vm11, %v18100_v11  ;;  %v17163_v11 = vrot.slane %v8941_v49, 5  ;;  %v18105_v49 = vld [vmem:[#allocation49_spill] sm:$0xff] }
 0x4d2   : > { %12813 = vmatmul.mubr.msk.bf16.gmra.mrb[12].mxu1 %vm5986_vm11, %v18103_v55  ;;  %v8925_v55 = vrot.slane %v8924_v38, 4  ;;  %v8993_v38 = vshrl.u32 %v18105_v49, 16 }
 0x4d3   : > { %12818 = vmatprep.mubr.msk.bf16.mxu1 %vm5986_vm11, %v13665_v61  ;;  %v8947_v61 = vrot.slane %v8945_v24, 4  ;;  %v8989_v24 = vshll.u32 %v18105_v49, 16 }
 0x4da   : > { %12819 = vmatmul.mubr.msk.bf16.vlgmr.msra.gmra.mrb[16].mxu1 %vm5986_vm11, %v13666_v20  ;;  %v8971_v20 = vrot.slane %v8969_v0, 4  ;;  %v9017_v0 = vshrl.u32 %v16727_v32, 16 }
 0x4db   : > { %12851 = vmatpush3.bf16.msra.mxu1 %v9390_v7  ;;  %12822 = vmatprep.mubr.msk.bf16.mxu1 %vm5986_vm11, %v13667_v31  ;;  %v8915_v7 = vrot.slane %v8914_v34, 4  ;;  %v8938_v31 = vor.u32 %v8937_v47, %v8934_v43  ;;  %v17188_v34 = vld [vmem:[#allocation2 + $0xd4] sm:$0x1] }
 0x4dc   : > { %13580 = vmatprep.subr.msk.bf16.mxu1 %vm6035_vm10, %v17134_v21  ;;  %v8972_v30 = vor.u32 %v8971_v20, %v17167_v45 }
 0x4dd   : > { %v8920_v8 = vsel %vm13809_vm4, %v8915_v7, %v8919_v6  ;;  %v17176_v58 = vrot.slane %v8938_v31, 4  ;;  %v9013_v6 = vshll.u32 %v16727_v32, 16  ;;  %v17195_v31 = vrot.slane %v8989_v24, 5  ;;  %v8877_v24 = vld [vmem:[#allocation2 + $0x60] sm:$0xf] }
 0x4de   : > { %v8973_v43 = vrot.slane %v8972_v30, 4 }
 0x4e2   : > { %12823 = vmatmul.mubr.msk.bf16.gmra.mrb[20].mxu1 %vm5986_vm11, %v13668_v28  ;;  %v8951_v28 = vshll.u32 %v17161_v48, 16 }
 0x4e3   : > { %12826 = vmatprep.mubr.msk.bf16.mxu1 %vm5986_vm11, %v13669_v18  ;;  %v8868_v18 = vld [vmem:[#allocation2 + $0x3c] sm:$0xf] }
 0x4e4   : > { %v8980_v23 = vshrl.u32 %v8868_v18, 16  ;;  %v8983_v53 = vshll.u32 %v8868_v18, 16  ;;  %v9004_v18 = vshrl.u32 %v8871_v9, 16 }
 0x4e6   : > { %v8982_v47 = vrot.slane %v8980_v23, 4  ;;  %v8977_v23 = vrot.slane %v8975_v44, 5 }
 0x4ea   : > { %12827 = vmatmul.mubr.msk.bf16.gmra.mrb[24].mxu1 %vm5986_vm11, %v13670_v59  ;;  %v8929_v59 = vrot.slane %v8927_v60, 5 }
 0x4eb   : > { %12830 = vmatprep.mubr.msk.bf16.mxu1 %vm5986_vm11, %v13671_v16  ;;  %v8948_v16 = vor.u32 %v8947_v61, %v17163_v11  ;;  %v9759_v61 = vrot.slane %v17188_v34, 5 }
 0x4ec   : > { %v8930_v27 = vsel %vm13809_vm4, %v8925_v55, %v8929_v59  ;;  %v18106_v55 = vld [vmem:[#allocation52_spill] sm:$0xff] }
 0x4ed   : > { %v8949_v37 = vrot.slane %v8948_v16, 4  ;;  %v11785_v2 = vcombine.low %v8920_v8, %v8930_v27  ;;  %v9037_v20 = vshll.u32 %v18106_v55, 16  ;;  %v9041_v7 = vshrl.u32 %v18106_v55, 16  ;;  %v13680_v16 = vld [vmem:[#allocation2 + $0xcc] sm:$0xff]  }
 0x4ee   : > { %v9019_v27 = vrot.slane %v9017_v0, 4  ;;  %v9055_v55 = vshll.u32 %v8877_v24, 16 }
 0x4ef   : > { %v17207_v1 = vrot.slane %v9037_v20, 5  ;;  %v9043_v49 = vrot.slane %v9041_v7, 4 }
 0x4f2   : > { %12831 = vmatmul.mubr.msk.bf16.gmra.mrb[28].mxu1 %vm5986_vm11, %v13672_v15  ;;  %v8958_v15 = vrot.slane %v8956_v41, 4  ;;  %v8985_v41 = vrot.slane %v8983_v53, 5 }
 0x4f3   : > { %12834 = vmatprep.mubr.msk.bf16.mxu1 %vm5986_vm11, %v13673_v22  ;;  %v8961_v22 = vrot.slane %v8959_v19, 5  ;;  %v8874_v19 = vld [vmem:[#allocation2 + $0x54] sm:$0xf] }
 0x4f4   : > { %v9031_v8 = vshll.u32 %v8874_v19, 16 }
 0x4f5   : > { %v8962_v42 = vor.u32 %v8961_v22, %v8958_v15  ;;  %v9007_v15 = vshll.u32 %v8871_v9, 16  ;;  %v17197_v22 = vrot.slane %v9013_v6, 5  ;;  %v8978_v6 = vsel %vm13809_vm4, %v8973_v43, %v8977_v23  ;;  %v18107_v43 = vld [vmem:[#allocation54_spill] sm:$0xff] }
 0x4fa   : > { %12835 = vmatmul.mubr.msk.bf16.gmra.mrb[0].mxu1 %vm5986_vm11, %v13674_v4  ;;  %v13678_v4 = vld [vmem:[#allocation2 + $0xb4] sm:$0xff]  }
 0x4fb   : > { %12838 = vmatprep.mubr.msk.bf16.mxu1 %vm5986_vm11, %v13675_v14  ;;  %v17178_v14 = vrot.slane %v8951_v28, 5  ;;  %v8995_v28 = vrot.slane %v8993_v38, 4  ;;  %v8944_v38 = vsel %vm13809_vm4, %v17176_v58, %v17163_v11  ;;  %v9033_v11 = vrot.slane %v9031_v8, 5 }
 0x4fc   : > { %v9052_v58 = vshrl.u32 %v8877_v24, 16  ;;  %v9860_v24 = vsel %vm6035_vm10, %v17134_v21, 0 }
 0x4fd   : > { %v8954_v44 = vsel %vm13809_vm4, %v8949_v37, %v17178_v14  ;;  %v8996_v0 = vor.u32 %v8995_v28, %v17195_v31  ;;  %v9044_v37 = vor.u32 %v9043_v49, %v17207_v1  ;;  %v9057_v49 = vrot.slane %v9055_v55, 5 }
 0x4fe   : > { %v11786_v20 = vcombine.low %v8944_v38, %v8954_v44 }
 0x502   : > { %12839 = vmatmul.mubr.msk.bf16.gmra.mrb[4].mxu1 %vm5986_vm11, %v13676_v51  ;;  %v17186_v51 = vld [vmem:[#allocation2 + $0xd0] sm:$0xf] }
 0x503   : > { %12842 = vmatprep.mubr.msk.bf16.mxu1 %vm5986_vm11, %v13677_v36  ;;  %v9600_v36 = vld [vmem:[#allocation2 + $0xcc] sm:$0xe]  ;;  %v9756_v60 = vrot.slane %v17186_v51, 5 }
 0x504   : > { %v11832_v32 = vrot.slane %v9600_v36, 9  ;;  %v9006_v36 = vrot.slane %v9004_v18, 4  ;;  %v18109_v18 = vld [vmem:[#allocation51_spill] sm:$0xff] }
 0x505   : > { %v9758_v59 = vrot.slane %v9756_v60, 4 }
 0x506   : > { %v17201_v30 = vsel %vm14124_vm7, %v11832_v32, %v9756_v60  ;;  %v9009_v60 = vrot.slane %v9007_v15, 5  ;;  %v18108_v32 = vld [vmem:[#allocation50_spill] sm:$0xff] }
 0x507   : > { %v17205_v53 = vsel %vm14124_vm7, %v9758_v59, %v9759_v61  ;;  %v9020_v61 = vor.u32 %v9019_v27, %v17197_v22  ;;  %v8999_v28 = vshll.u32 %v18108_v32, 16  ;;  %v18110_v27 = vld [vmem:[#allocation53_spill] sm:$0xff] }
 0x508   : > { %v11849_v9 = vcombine.low %v17201_v30, %v17205_v53  ;;  %v9010_v15 = vor.u32 %v9009_v60, %v9006_v36  ;;  %v9047_v23 = vshll.u32 %v18110_v27, 16  ;;  %v18111_v60 = vld [vmem:[#allocation58_spill] sm:$0xff] }
 0x509   : > { %v9021_v8 = vrot.slane %v9020_v61, 4  ;;  %v9085_v61 = vshll.u32 %v18111_v60, 16 }
 0x50a   : > { %12843 = vmatmul.mubr.msk.bf16.gmra.mrb[8].mxu1 %vm5986_vm11, %v13678_v4  ;;  %v9028_v4 = vshrl.u32 %v8874_v19, 16  ;;  %v9049_v21 = vrot.slane %v9047_v23, 5  ;;  %v9011_v55 = vrot.slane %v9010_v15, 4  ;;  %v18113_v23 = vld [vmem:[#allocation61_spill] sm:$0xff] }
 0x50b   : > { %12846 = vmatprep.mubr.msk.bf16.mxu1 %vm5986_vm11, %v13679_v56  ;;  %v8963_v56 = vrot.slane %v8962_v42, 4  ;;  %v8986_v42 = vor.u32 %v8985_v41, %v8982_v47  ;;  %v9061_v47 = vshll.u32 %v18107_v43, 16  ;;  %v9065_v41 = vshrl.u32 %v18107_v43, 16 }
 0x50c   : > { %v9030_v19 = vrot.slane %v9028_v4, 4  ;;  %v8880_v4 = vld [vmem:[#allocation2 + $0x6c] sm:$0xf]  ;;  %v9045_v43 = vrot.slane %v9044_v37, 4  ;;  %v17259_v15 = vrot.slane %v9085_v61, 5 }
 0x50d   : > { %v8968_v14 = vsel %vm13809_vm4, %v8963_v56, %v17167_v45  ;;  %v8987_v59 = vrot.slane %v8986_v42, 4  ;;  %v9054_v56 = vrot.slane %v9052_v58, 4  ;;  %v17235_v38 = vrot.slane %v9061_v47, 5 }
 0x50e   : > { %v11787_v7 = vcombine.low %v8968_v14, %v8978_v6  ;;  %v9034_v45 = vor.u32 %v9033_v11, %v9030_v19  ;;  %v9067_v44 = vrot.slane %v9065_v41, 4  ;;  %v9001_v6 = vrot.slane %v8999_v28, 5  ;;  %v8883_v11 = vld [vmem:[#allocation2 + $0x78] sm:$0xf]  ;;  %v18112_v28 = vld [vmem:[#allocation57_spill] sm:$0xff] }
 0x50f   : > { %v9076_v32 = vshrl.u32 %v8880_v4, 16  ;;  %v9079_v42 = vshll.u32 %v8880_v4, 16  ;;  %v8992_v36 = vsel %vm13809_vm4, %v8987_v59, %v17195_v31  ;;  %v9089_v19 = vshrl.u32 %v18111_v60, 16 }
 0x510   : > { %v9035_v47 = vrot.slane %v9034_v45, 4  ;;  %v9050_v31 = vsel %vm13809_vm4, %v9045_v43, %v9049_v21  ;;  %v9058_v41 = vor.u32 %v9057_v49, %v9054_v56  ;;  %v9100_v59 = vshrl.u32 %v8883_v11, 16 }
 0x511   : > { %v9091_v27 = vrot.slane %v9089_v19, 4  ;;  %v9109_v4 = vshll.u32 %v18113_v23, 16  ;;  %v9016_v56 = vsel %vm13809_vm4, %v9011_v55, %v17197_v22  ;;  %v8889_v19 = vld [vmem:[#allocation2 + $0x90] sm:$0xf] }
 0x512   : > { %12847 = vmatmul.mubr.msk.bf16.gmra.mrb[12].mxu1 %vm5986_vm11, %v13680_v16  ;;  %v8997_v16 = vrot.slane %v8996_v0, 4  ;;  %v17240_v0 = vld [vmem:[%s17759_s5] sm:$0x3]  ;;  %v9040_v49 = vsel %vm13809_vm4, %v9035_v47, %v17207_v1  ;;  %v9102_v60 = vrot.slane %v9100_v59, 4 }
 0x513   : > { %12852 = vmatprep.mubr.msk.bf16.mxu1 %vm5986_vm11, %v11785_v2  ;;  %v9023_v2 = vshll.u32 %v18109_v18, 16  ;;  %v9071_v18 = vshll.u32 %v18112_v28, 16  ;;  %v11790_v43 = vcombine.low %v9040_v49, %v9050_v31  ;;  %v9092_v22 = vor.u32 %v9091_v27, %v17259_v15 }
 0x514   : > { %v9002_v58 = vsel %vm13809_vm4, %v8997_v16, %v9001_v6  ;;  %v9103_v16 = vshll.u32 %v8883_v11, 16  ;;  %v9111_v11 = vrot.slane %v9109_v4, 5  ;;  %v9157_v28 = vshll.u32 %v16829_v52, 16 }
 0x515   : > { %v9025_v14 = vrot.slane %v9023_v2, 5  ;;  %v9081_v2 = vrot.slane %v9079_v42, 5  ;;  %v11788_v45 = vcombine.low %v8992_v36, %v9002_v58  ;;  %v9073_v6 = vrot.slane %v9071_v18, 5  ;;  %v18114_v42 = vld [vmem:[#allocation63_spill] sm:$0xff] }
 0x516   : > { %v9095_v21 = vshll.u32 %v18114_v42, 16  ;;  %v9105_v61 = vrot.slane %v9103_v16, 5  ;;  %v9161_v18 = vshrl.u32 %v16829_v52, 16 }
 0x517   : > { %v9026_v37 = vsel %vm13809_vm4, %v9021_v8, %v9025_v14  ;;  %v9113_v8 = vshrl.u32 %v18113_v23, 16  ;;  %v8886_v14 = vld [vmem:[#allocation2 + $0x84] sm:$0xf]  ;;  %v9093_v23 = vrot.slane %v9092_v22, 4 }
 0x518   : > { %v9124_v1 = vshrl.u32 %v8886_v14, 16  ;;  %v9127_v55 = vshll.u32 %v8886_v14, 16  ;;  %v9097_v59 = vrot.slane %v9095_v21, 5  ;;  %v9106_v16 = vor.u32 %v9105_v61, %v9102_v60 }
 0x519   : > { %v9115_v58 = vrot.slane %v9113_v8, 4  ;;  %v18116_v8 = vld [vmem:[#allocation64_spill] sm:$0xff] }
 0x51a   : > { %12853 = vmatmul.mubr.msk.bf16.vlgmr.msra.gmra.mrb[16].mxu1 %vm5986_vm11, %v11786_v20  ;;  %v9068_v20 = vor.u32 %v9067_v44, %v17235_v38  ;;  %v9059_v44 = vrot.slane %v9058_v41, 4  ;;  %v9148_v41 = vshrl.u32 %v8889_v19, 16  ;;  %v9129_v49 = vrot.slane %v9127_v55, 5  ;;  %v18117_v55 = vld [vmem:[#allocation70_spill] sm:$0xff] }
 0x51b   : > { %12885 = vmatpush3.bf16.msra.mxu1 %v9860_v24  ;;  %12856 = vmatprep.mubr.msk.bf16.mxu1 %vm5986_vm11, %v11787_v7  ;;  %v9078_v7 = vrot.slane %v9076_v32, 4  ;;  %v11789_v24 = vcombine.low %v9016_v56, %v9026_v37  ;;  %v18115_v37 = vld [vmem:[#allocation67_spill] sm:$0xff]  ;;  %v9116_v4 = vor.u32 %v9115_v58, %v9111_v11  ;;  %v9126_v56 = vrot.slane %v9124_v1, 4 }
 0x51c   : > { %13581 = vmatprep.subr.msk.bf16.mxu1 %vm815_vm0, %v17240_v0  ;;  %v9069_v32 = vrot.slane %v9068_v20, 4  ;;  %v9133_v47 = vshll.u32 %v18115_v37, 16  ;;  %v9137_v31 = vshrl.u32 %v18115_v37, 16  ;;  %v9151_v20 = vshll.u32 %v8889_v19, 16 }
 0x51d   : > { %v9082_v36 = vor.u32 %v9081_v2, %v9078_v7  ;;  %v9064_v7 = vsel %vm13809_vm4, %v9059_v44, %v17235_v38  ;;  %v9150_v52 = vrot.slane %v9148_v41, 4  ;;  %v17285_v19 = vrot.slane %v9157_v28, 5  ;;  %v8892_v44 = vld [vmem:[#allocation2 + $0x9c] sm:$0xf] }
 0x51e   : > { %v9074_v2 = vsel %vm13809_vm4, %v9069_v32, %v9073_v6  ;;  %v9139_v14 = vrot.slane %v9137_v31, 4  ;;  %v9153_v42 = vrot.slane %v9151_v20, 5  ;;  %v9163_v38 = vrot.slane %v9161_v18, 4  ;;  %v18118_v20 = vld [vmem:[#allocation74_spill] sm:$0xff] }
 0x51f   : > { %v9083_v27 = vrot.slane %v9082_v36, 4  ;;  %v11791_v37 = vcombine.low %v9064_v7, %v9074_v2  ;;  %v9107_v6 = vrot.slane %v9106_v16, 4  ;;  %v9098_v21 = vsel %vm13809_vm4, %v9093_v23, %v9097_v59  ;;  %v8895_v7 = vld [vmem:[#allocation2 + $0xa8] sm:$0xf]  ;;  %v18119_v59 = vld [vmem:[#allocation72_spill] sm:$0xff] }
 0x520   : > { %v9117_v60 = vrot.slane %v9116_v4, 4  ;;  %v9130_v61 = vor.u32 %v9129_v49, %v9126_v56  ;;  %v9172_v22 = vshrl.u32 %v8892_v44, 16  ;;  %v9175_v58 = vshll.u32 %v8892_v44, 16 }
 0x521   : > { %v9088_v32 = vsel %vm13809_vm4, %v9083_v27, %v17259_v15  ;;  %v9154_v31 = vor.u32 %v9153_v42, %v9150_v52  ;;  %v9112_v15 = vsel %vm13809_vm4, %v9107_v6, %v9111_v11  ;;  %v9181_v28 = vshll.u32 %v18118_v20, 16  ;;  %v18120_v27 = vld [vmem:[#allocation75_spill] sm:$0xff] }
 0x522   : > { %12857 = vmatmul.mubr.msk.bf16.gmra.mrb[20].mxu1 %vm5986_vm11, %v11788_v45  ;;  %v9119_v45 = vshll.u32 %v18116_v8, 16  ;;  %v11792_v41 = vcombine.low %v9088_v32, %v9098_v21  ;;  %v9185_v18 = vshrl.u32 %v18118_v20, 16  ;;  %v9167_v16 = vshll.u32 %v18119_v59, 16 }
 0x523   : > { %12860 = vmatprep.mubr.msk.bf16.mxu1 %vm5986_vm11, %v11789_v24  ;;  %v17283_v24 = vrot.slane %v9133_v47, 5  ;;  %v9143_v47 = vshll.u32 %v18117_v55, 16  ;;  %v9205_v23 = vshll.u32 %v18120_v27, 16  ;;  %v9209_v4 = vshrl.u32 %v18120_v27, 16 }
 0x524   : > { %v9121_v1 = vrot.slane %v9119_v45, 5  ;;  %v9131_v8 = vrot.slane %v9130_v61, 4  ;;  %v9174_v56 = vrot.slane %v9172_v22, 4  ;;  %v9177_v49 = vrot.slane %v9175_v58, 5  ;;  %v18121_v58 = vld [vmem:[#allocation77_spill] sm:$0xff] }
 0x525   : > { %v9140_v36 = vor.u32 %v9139_v14, %v17283_v24  ;;  %v9155_v14 = vrot.slane %v9154_v31, 4  ;;  %v9196_v52 = vshrl.u32 %v8895_v7, 16  ;;  %v9199_v42 = vshll.u32 %v8895_v7, 16  ;;  %v8901_v7 = vld [vmem:[#allocation2 + $0xc0] sm:$0xf] }
 0x526   : > { %v9122_v2 = vsel %vm13809_vm4, %v9117_v60, %v9121_v1  ;;  %v9145_v44 = vrot.slane %v9143_v47, 5  ;;  %v9187_v6 = vrot.slane %v9185_v18, 4  ;;  %v9169_v32 = vrot.slane %v9167_v16, 5  ;;  %v8898_v1 = vld [vmem:[#allocation2 + $0xb4] sm:$0xf] }
 0x527   : > { %v9141_v45 = vrot.slane %v9140_v36, 4  ;;  %v17309_v21 = vrot.slane %v9205_v23, 5  ;;  %v9211_v60 = vrot.slane %v9209_v4, 4  ;;  %v9136_v61 = vsel %vm13809_vm4, %v9131_v8, %v17283_v24 }
 0x528   : > { %v9178_v22 = vor.u32 %v9177_v49, %v9174_v56  ;;  %v9191_v55 = vshll.u32 %v18121_v58, 16  ;;  %v9160_v47 = vsel %vm13809_vm4, %v9155_v14, %v17285_v19  ;;  %v9220_v20 = vshrl.u32 %v8898_v1, 16 }
 0x529   : > { %v9146_v36 = vsel %vm13809_vm4, %v9141_v45, %v9145_v44  ;;  %v9223_v59 = vshll.u32 %v8898_v1, 16  ;;  %v9253_v16 = vshll.u32 %v16907_v17, 16  ;;  %v9215_v56 = vshll.u32 %v16872_v62, 16 }
 0x52a   : > { %12861 = vmatmul.mubr.msk.bf16.gmra.mrb[24].mxu1 %vm5986_vm11, %v11790_v43  ;;  %v9164_v43 = vor.u32 %v9163_v38, %v17285_v19  ;;  %v11793_v38 = vcombine.low %v9112_v15, %v9122_v2  ;;  %v9212_v2 = vor.u32 %v9211_v60, %v17309_v21  ;;  %v9257_v19 = vshrl.u32 %v16907_v17, 16 }
 0x52b   : > { %12864 = vmatprep.mubr.msk.bf16.mxu1 %vm5986_vm11, %v11791_v37  ;;  %v17306_v37 = vrot.slane %v9181_v28, 5  ;;  %v18122_v28 = vld [vmem:[#allocation81_spill] sm:$0xff]  ;;  %v11794_v27 = vcombine.low %v9136_v61, %v9146_v36  ;;  %v9179_v4 = vrot.slane %v9178_v22, 4  ;;  %v9193_v8 = vrot.slane %v9191_v55, 5 }
 0x52c   : > { %v9165_v11 = vrot.slane %v9164_v43, 4  ;;  %v9198_v43 = vrot.slane %v9196_v52, 4  ;;  %v9229_v24 = vshll.u32 %v18122_v28, 16  ;;  %v9233_v18 = vshrl.u32 %v18122_v28, 16  ;;  %v13701_v28 = vld [vmem:[#allocation2 + $0xbc] sm:$0x1] }
 0x52d   : > { %v9188_v15 = vor.u32 %v9187_v6, %v17306_v37  ;;  %v9244_v49 = vshrl.u32 %v8901_v7, 16  ;;  %v9247_v14 = vshll.u32 %v8901_v7, 16  ;;  %v9213_v6 = vrot.slane %v9212_v2, 4 }
 0x52e   : > { %v9170_v31 = vsel %vm13809_vm4, %v9165_v11, %v9169_v32  ;;  %v8904_v11 = vld [vmem:[#allocation2 + $0xcc] sm:$0xf]  ;;  %v9235_v44 = vrot.slane %v9233_v18, 4  ;;  %v9225_v32 = vrot.slane %v9223_v59, 5  ;;  %v9255_v60 = vrot.slane %v9253_v16, 5 }
 0x52f   : > { %v11795_v23 = vcombine.low %v9160_v47, %v9170_v31  ;;  %v9189_v52 = vrot.slane %v9188_v15, 4  ;;  %v9259_v17 = vrot.slane %v9257_v19, 4  ;;  %v9268_v1 = vshrl.u32 %v8904_v11, 16 }
 0x530   : > { %v9271_v61 = vshll.u32 %v8904_v11, 16  ;;  %v9277_v36 = vshll.u32 %v17186_v51, 16  ;;  %v9281_v62 = vshrl.u32 %v17186_v51, 16  ;;  %v9217_v58 = vrot.slane %v9215_v56, 5 }
 0x531   : > { %v9246_v55 = vrot.slane %v9244_v49, 4  ;;  %v9249_v47 = vrot.slane %v9247_v14, 5  ;;  %v9184_v31 = vsel %vm13809_vm4, %v9179_v4, %v17306_v37  ;;  %v9260_v18 = vor.u32 %v9259_v17, %v9255_v60 }
 0x532   : > { %12865 = vmatmul.mubr.msk.bf16.gmra.mrb[28].mxu1 %vm5986_vm11, %v11792_v41  ;;  %v9201_v41 = vrot.slane %v9199_v42, 5  ;;  %v9222_v42 = vrot.slane %v9220_v20, 4  ;;  %v9218_v15 = vsel %vm13809_vm4, %v9213_v6, %v9217_v58  ;;  %v9270_v51 = vrot.slane %v9268_v1, 4 }
 0x533   : > { %12868 = vmatprep.mubr.msk.bf16.mxu1 %vm5986_vm11, %v11793_v38  ;;  %v9231_v38 = vrot.slane %v9229_v24, 5  ;;  %v9239_v24 = vshll.u32 %v13701_v28, 16  ;;  %v9273_v7 = vrot.slane %v9271_v61, 5  ;;  %v9279_v2 = vrot.slane %v9277_v36, 5 }
 0x534   : > { %v9202_v45 = vor.u32 %v9201_v41, %v9198_v43  ;;  %v9194_v43 = vsel %vm13809_vm4, %v9189_v52, %v9193_v8  ;;  %v9226_v20 = vor.u32 %v9225_v32, %v9222_v42  ;;  %v9283_v59 = vrot.slane %v9281_v62, 4 }
 0x535   : > { %v9236_v41 = vor.u32 %v9235_v44, %v9231_v38  ;;  %v11796_v16 = vcombine.low %v9184_v31, %v9194_v43  ;;  %v9250_v19 = vor.u32 %v9249_v47, %v9246_v55  ;;  %v9241_v8 = vrot.slane %v9239_v24, 5 }
 0x536   : > { %v9203_v22 = vrot.slane %v9202_v45, 4  ;;  %v9261_v45 = vrot.slane %v9260_v18, 4  ;;  %v9227_v56 = vrot.slane %v9226_v20, 4  ;;  %v9274_v49 = vor.u32 %v9273_v7, %v9270_v51  ;;  %v9586_v20 = vld [vmem:[#allocation2 + $0x24] sm:$0xe]  ;;  %v18123_v7 = vld [vmem:[#allocation55_spill] sm:$0xff] }
 0x537   : > { %v9237_v4 = vrot.slane %v9236_v41, 4  ;;  %v9284_v14 = vor.u32 %v9283_v59, %v9279_v2  ;;  %v9287_v11 = vshll.u32 %v17188_v34, 16  ;;  %v9251_v52 = vrot.slane %v9250_v19, 4  ;;  %v18130_v19 = vld [vmem:[#allocation65_spill] sm:$0xff] }
 0x538   : > { %v9208_v37 = vsel %vm13809_vm4, %v9203_v22, %v17309_v21  ;;  %v9651_v44 = vrot.slane %v17146_v25, 5  ;;  %v9232_v6 = vsel %vm13809_vm4, %v9227_v56, %v9231_v38  ;;  %v9275_v32 = vrot.slane %v9274_v49, 4  ;;  %v9585_v38 = vld [vmem:[#allocation2 + $0x18] sm:$0xe] }
 0x539   : > { %v9242_v21 = vsel %vm13809_vm4, %v9237_v4, %v9241_v8  ;;  %v9285_v17 = vrot.slane %v9284_v14, 4  ;;  %v9289_v1 = vrot.slane %v9287_v11, 5  ;;  %v9256_v34 = vsel %vm13809_vm4, %v9251_v52, %v9255_v60  ;;  %v18135_v8 = vld [vmem:[#allocation69_spill] sm:$0xff]  ;;  %v18138_v49 = vld [vmem:[#allocation71_spill] sm:$0xff]  ;;  %v18139_v14 = vld [vmem:[#allocation76_spill] sm:$0xff] }
 0x53a   : > { %12869 = vmatmul.mubr.msk.bf16.gmra.mrb[0].mxu1 %vm5986_vm11, %v11794_v27  ;;  %v9263_v27 = vshll.u32 %v16918_v12, 16  ;;  %v11798_v61 = vcombine.low %v9232_v6, %v9242_v21  ;;  %v9653_v62 = vrot.slane %v9651_v44, 4  ;;  %v9280_v22 = vsel %vm13809_vm4, %v9275_v32, %v9279_v2  ;;  %v18124_v2 = vld [vmem:[#allocation56_spill] sm:$0xff]  ;;  %v18141_v52 = vld [vmem:[#allocation78_spill] sm:$0xff] }
 0x53b   : > { %12872 = vmatprep.mubr.msk.bf16.mxu1 %vm5986_vm11, %v11795_v23  ;;  %v11797_v23 = vcombine.low %v9208_v37, %v9218_v15  ;;  %v9290_v25 = vsel %vm13809_vm4, %v9285_v17, %v9289_v1  ;;  %v9654_v58 = vrot.slane %v17156_v57, 5  ;;  %v9658_v55 = vrot.slane %v17151_v5, 5 }
 0x53c   : > { %v9265_v42 = vrot.slane %v9263_v27, 5  ;;  %v11800_v47 = vcombine.low %v9280_v22, %v9290_v25  ;;  %v11817_v31 = vrot.slane %v9585_v38, 9  ;;  %v9661_v57 = vrot.slane %v17161_v48, 5  ;;  %v18126_v48 = vld [vmem:[#allocation59_spill] sm:$0xff]  ;;  %v11869_v25 = vld [vmem:[%s13774_s10 + $0x14] sm:$0x1] }
 0x53d   : > { %v9655_v60 = vsel %vm14124_vm7, %v9653_v62, %v9654_v58  ;;  %v9660_v15 = vrot.slane %v9658_v55, 4  ;;  %v11818_v5 = vrot.slane %v9586_v20, 9  ;;  %v10631_v51 = vsel %vm815_vm0, %v17240_v0, 0  ;;  %v18132_v0 = vld [vmem:[#allocation66_spill] sm:$0xff]  ;;  %v11871_v38 = vld [vmem:[%s13774_s10 + $0x1c] sm:$0xf] }
 0x53e   : > { %v9266_v12 = vsel %vm13809_vm4, %v9261_v45, %v9265_v42  ;;  %v9652_v43 = vsel %vm14124_vm7, %v11817_v31, %v9651_v44  ;;  %v18125_v59 = vcombine.low %v18123_v7, %v18124_v2  ;;  %v18131_v27 = vcombine.low %v18129_v54, %v18130_v19  ;;  %v18136_v45 = vld [vmem:[#allocation73_spill] sm:$0xff]  ;;  %v18142_v42 = vld [vmem:[#allocation79_spill] sm:$0xff]  ;;  %v11868_v44 = vld [vmem:[%s13774_s10 + $0x10] sm:$0xf] }
 0x53f   : > { %v11799_v36 = vcombine.low %v9256_v34, %v9266_v12  ;;  %v11834_v41 = vcombine.low %v9652_v43, %v9655_v60  ;;  %v9662_v28 = vsel %vm14124_vm7, %v9660_v15, %v9661_v57  ;;  %v9659_v24 = vsel %vm14124_vm7, %v11818_v5, %v9658_v55  ;;  %v11867_v12 = vld [vmem:[%s13774_s10 + $0xc] sm:$0xf]  ;;  %v18144_v34 = vld [vmem:[#allocation80_spill] sm:$0xff]  ;;  %v11876_v15 = vld [vmem:[%s13774_s10 + $0x30] sm:$0xf] }
 0x540   : > { %v11835_v18 = vcombine.low %v9659_v24, %v9662_v28  ;;  %v18137_v56 = vcombine.low %v18135_v8, %v18136_v45  ;;  %v18140_v11 = vcombine.low %v18138_v49, %v18139_v14  ;;  %v18143_v21 = vcombine.low %v18141_v52, %v18142_v42  ;;  %v11873_v55 = vld [vmem:[%s13774_s10 + $0x24] sm:$0xf]  ;;  %v11877_v28 = vld [vmem:[%s13774_s10 + $0x34] sm:$0xf]  ;;  %v11872_v24 = vld [vmem:[%s13774_s10 + $0x20] sm:$0x1] }
 0x541   : > { %v10143_v6 = vshrl.u32 %v11867_v12, 16  ;;  %v10146_v32 = vshll.u32 %v11867_v12, 16  ;;  %v10152_v17 = vshll.u32 %v11868_v44, 16  ;;  %v10156_v1 = vshrl.u32 %v11868_v44, 16  ;;  %v11879_v12 = vld [vmem:[%s13774_s10 + $0x3c] sm:$0xf] }
 0x542   : > { %12873 = vmatmul.mubr.msk.bf16.gmra.mrb[4].mxu1 %vm5986_vm11, %v11796_v16  ;;  %v18127_v16 = vld [vmem:[#allocation62_spill] sm:$0xff]  ;;  %v18147_v22 = vcombine.low %v16903_v33, %v16911_v26  ;;  %v10176_v57 = vshll.u32 %v11871_v38, 16  ;;  %v10180_v5 = vshrl.u32 %v11871_v38, 16  ;;  %v10191_v33 = vshrl.u32 %v11873_v55, 16 }
 0x543   : > { %12876 = vmatprep.mubr.msk.bf16.mxu1 %vm5986_vm11, %v11797_v23  ;;  %v18128_v37 = vcombine.low %v18126_v48, %v18127_v16  ;;  %v18133_v23 = vld [vmem:[#allocation68_spill] sm:$0xff]  ;;  %v10145_v31 = vrot.slane %v10143_v6, 4  ;;  %v10148_v60 = vrot.slane %v10146_v32, 5  ;;  %v17422_v43 = vrot.slane %v10152_v17, 5 }
 0x544   : > { %v18134_v4 = vcombine.low %v18132_v0, %v18133_v23  ;;  %v10194_v26 = vshll.u32 %v11873_v55, 16  ;;  %v10162_v7 = vshll.u32 %v11869_v25, 16  ;;  %v10218_v48 = vshll.u32 %v11876_v15, 16  ;;  %v11880_v32 = vld [vmem:[%s13774_s10 + $0x40] sm:$0xf] }
 0x545   : > { %v10149_v16 = vor.u32 %v10148_v60, %v10145_v31  ;;  %v10224_v54 = vshll.u32 %v11877_v28, 16  ;;  %v10228_v19 = vshrl.u32 %v11877_v28, 16  ;;  %v17432_v0 = vrot.slane %v10176_v57, 5 }
 0x546   : > { %v10182_v23 = vrot.slane %v10180_v5, 4  ;;  %v18148_v8 = vcombine.low %v16935_v40, %v16939_v35  ;;  %v10193_v45 = vrot.slane %v10191_v33, 4  ;;  %v10164_v52 = vrot.slane %v10162_v7, 5 }
 0x547   : > { %v17442_v42 = vrot.slane %v10224_v54, 5  ;;  %v10150_v44 = vrot.slane %v10149_v16, 4  ;;  %v10242_v38 = vshll.u32 %v11879_v12, 16  ;;  %v10252_v55 = vshrl.u32 %v11880_v32, 16  ;;  %v11881_v16 = vld [vmem:[%s13774_s10 + $0x44] sm:$0x1] }
 0x548   : > { %v10183_v6 = vor.u32 %v10182_v23, %v17432_v0  ;;  %v18149_v31 = vcombine.low %v16948_v3, %v16952_v13  ;;  %v18150_v57 = vcombine.low %v16970_v46, %v16974_v63  ;;  %v11886_v23 = vld [vmem:[%s13774_s10 + $0x58] sm:$0xf] }
 0x549   : > { %v10155_v60 = vsel %vm13809_vm4, %v10150_v44, %v17422_v43  ;;  %v10254_v63 = vrot.slane %v10252_v55, 4  ;;  %v10300_v44 = vshrl.u32 %v11886_v23, 16 }
 0x54a   : > { %12877 = vmatmul.mubr.msk.bf16.gmra.mrb[8].mxu1 %vm5986_vm11, %v11798_v61  ;;  %v11870_v61 = vld [vmem:[%s13774_s10 + $0x18] sm:$0xf] }
 0x54b   : > { %12880 = vmatprep.mubr.msk.bf16.mxu1 %vm5986_vm11, %v11799_v36  ;;  %v18145_v36 = vld [vmem:[#allocation82_spill] sm:$0xff]  ;;  %v10167_v58 = vshrl.u32 %v11870_v61, 16  ;;  %v10170_v20 = vshll.u32 %v11870_v61, 16  ;;  %v10210_v61 = vshll.u32 %v11875_v29, 16  ;;  %v11888_v29 = vld [vmem:[%s13774_s10 + $0x60] sm:$0xf] }
 0x54c   : > { %v18146_v62 = vcombine.low %v18144_v34, %v18145_v36  ;;  %v10234_v34 = vshll.u32 %v11878_v39, 16 }
 0x54d   : > { %v10169_v2 = vrot.slane %v10167_v58, 4  ;;  %v10248_v58 = vshll.u32 %v11880_v32, 16  ;;  %v10212_v13 = vrot.slane %v10210_v61, 5  ;;  %v10311_v32 = vshrl.u32 %v11888_v29, 16 }
 0x54e   : > { %v10236_v28 = vrot.slane %v10234_v34, 5 }
 0x552   : > { %12881 = vmatmul.mubr.msk.bf16.gmra.mrb[12].mxu1 %vm5986_vm11, %v11800_v47  ;;  %v11874_v47 = vld [vmem:[%s13774_s10 + $0x28] sm:$0xf] }
 0x553   : > { %12886 = vmatprep.mubr.msk.bf16.mxu1 %vm5986_vm11, %v11834_v41  ;;  %v10158_v41 = vrot.slane %v10156_v1, 4 }
 0x55a   : > { %12887 = vmatmul.mubr.msk.bf16.vlgmr.msra.gmra.mrb[16].mxu1 %vm5986_vm11, %v11835_v18  ;;  %v10200_v18 = vshll.u32 %v11874_v47, 16 }
 0x55b   : > { %12919 = vmatpush3.bf16.msra.mxu1 %v10631_v51  ;;  %12890 = vmatprep.mubr.msk.bf16.mxu1 %vm5986_vm11, %v18125_v59  ;;  %v10204_v51 = vshrl.u32 %v11874_v47, 16  ;;  %v10215_v59 = vshrl.u32 %v11876_v15, 16  ;;  %v11882_v47 = vld [vmem:[%s13774_s10 + $0x48] sm:$0xf] }
 0x55c   : > { %v17438_v49 = vrot.slane %v10200_v18, 5  ;;  %v10266_v18 = vshll.u32 %v11882_v47, 16 }
 0x55d   : > { %v10206_v14 = vrot.slane %v10204_v51, 4  ;;  %v11885_v51 = vld [vmem:[%s13774_s10 + $0x54] sm:$0xf] }
 0x55f   : > { %v10207_v1 = vor.u32 %v10206_v14, %v17438_v49  ;;  %v10268_v14 = vrot.slane %v10266_v18, 5  ;;  %v11894_v18 = vld [vmem:[%s13774_s10 + $0x78] sm:$0xf] }
 0x561   : > { %v10208_v3 = vrot.slane %v10207_v1, 4 }
 0x562   : > { %12891 = vmatmul.mubr.msk.bf16.gmra.mrb[20].mxu1 %vm5986_vm11, %v18128_v37  ;;  %v10159_v37 = vor.u32 %v10158_v41, %v17422_v43  ;;  %v10263_v43 = vshrl.u32 %v11882_v47, 16  ;;  %v11892_v47 = vld [vmem:[%s13774_s10 + $0x70] sm:$0xf] }
 0x563   : > { %12894 = vmatprep.mubr.msk.bf16.mxu1 %vm5986_vm11, %v18131_v27  ;;  %v10172_v27 = vrot.slane %v10170_v20, 5  ;;  %v10184_v20 = vrot.slane %v10183_v6, 4  ;;  %v11889_v6 = vld [vmem:[%s13774_s10 + $0x64] sm:$0xf] }
 0x564   : > { %v10160_v40 = vrot.slane %v10159_v37, 4  ;;  %v10324_v55 = vshrl.u32 %v11889_v6, 16 }
 0x565   : > { %v10173_v35 = vor.u32 %v10172_v27, %v10169_v2  ;;  %v10244_v2 = vrot.slane %v10242_v38, 5  ;;  %v10302_v38 = vrot.slane %v10300_v44, 4 }
 0x566   : > { %v10165_v41 = vsel %vm13809_vm4, %v10160_v40, %v10164_v52  ;;  %v11884_v52 = vld [vmem:[%s13774_s10 + $0x50] sm:$0x1] }
 0x567   : > { %v10174_v15 = vrot.slane %v10173_v35, 4  ;;  %v11916_v46 = vcombine.low %v10155_v60, %v10165_v41  ;;  %v10282_v53 = vshll.u32 %v11884_v52, 16  ;;  %v11887_v60 = vld [vmem:[%s13774_s10 + $0x5c] sm:$0x1] }
 0x56a   : > { %12895 = vmatmul.mubr.msk.bf16.gmra.mrb[24].mxu1 %vm5986_vm11, %v18134_v4  ;;  %v10186_v4 = vshll.u32 %v11872_v24, 16  ;;  %v11883_v24 = vld [vmem:[%s13774_s10 + $0x4c] sm:$0xf] }
 0x56b   : > { %12898 = vmatprep.mubr.msk.bf16.mxu1 %vm5986_vm11, %v18137_v56  ;;  %v10196_v56 = vrot.slane %v10194_v26, 5  ;;  %v10272_v37 = vshll.u32 %v11883_v24, 16  ;;  %v10276_v54 = vshrl.u32 %v11883_v24, 16 }
 0x56c   : > { %v10188_v36 = vrot.slane %v10186_v4, 5  ;;  %v10287_v4 = vshrl.u32 %v11885_v51, 16 }
 0x56d   : > { %v10197_v17 = vor.u32 %v10196_v56, %v10193_v45  ;;  %v10213_v45 = vsel %vm13809_vm4, %v10208_v3, %v10212_v13  ;;  %v10265_v56 = vrot.slane %v10263_v43, 4  ;;  %v11890_v3 = vld [vmem:[%s13774_s10 + $0x68] sm:$0x1]  ;;  %v10348_v43 = vshrl.u32 %v11892_v47, 16 }
 0x56e   : > { %v10289_v40 = vrot.slane %v10287_v4, 4 }
 0x56f   : > { %v10198_v5 = vrot.slane %v10197_v17, 4  ;;  %v10314_v17 = vshll.u32 %v11888_v29, 16  ;;  %v10269_v30 = vor.u32 %v10268_v14, %v10265_v56 }
 0x571   : > { %v10203_v27 = vsel %vm13809_vm4, %v10198_v5, %v17438_v49  ;;  %v10284_v5 = vrot.slane %v10282_v53, 5 }
 0x572   : > { %12899 = vmatmul.mubr.msk.bf16.gmra.mrb[28].mxu1 %vm5986_vm11, %v18140_v11  ;;  %v10220_v11 = vrot.slane %v10218_v48, 5  ;;  %v10179_v48 = vsel %vm13809_vm4, %v10174_v15, %v17432_v0  ;;  %v11918_v61 = vcombine.low %v10203_v27, %v10213_v45  ;;  %v10313_v15 = vrot.slane %v10311_v32, 4  ;;  %v11898_v32 = vld [vmem:[%s13774_s10 + $0x88] sm:$0xf] }
 0x573   : > { %12902 = vmatprep.mubr.msk.bf16.mxu1 %vm5986_vm11, %v18143_v21  ;;  %v10230_v21 = vrot.slane %v10228_v19, 4  ;;  %v10189_v19 = vsel %vm13809_vm4, %v10184_v20, %v10188_v36  ;;  %v10316_v20 = vrot.slane %v10314_v17, 5 }
 0x574   : > { %v11917_v1 = vcombine.low %v10179_v48, %v10189_v19  ;;  %v10362_v19 = vshll.u32 %v11894_v18, 16 }
 0x575   : > { %v10231_v25 = vor.u32 %v10230_v21, %v17442_v42  ;;  %v17491_v21 = vrot.slane %v10272_v37, 5  ;;  %v10330_v37 = vshll.u32 %v11890_v3, 16 }
 0x577   : > { %v10232_v7 = vrot.slane %v10231_v25, 4 }
 0x579   : > { %v10237_v39 = vsel %vm13809_vm4, %v10232_v7, %v10236_v28 }
 0x57a   : > { %12903 = vmatmul.mubr.msk.bf16.gmra.mrb[0].mxu1 %vm5986_vm11, %v18146_v62 }
 0x57b   : > { %12906 = vmatprep.mubr.msk.bf16.mxu1 %vm5986_vm11, %v18147_v22  ;;  %v10239_v22 = vshrl.u32 %v11879_v12, 16  ;;  %v10296_v12 = vshll.u32 %v11886_v23, 16 }
 0x57d   : > { %v10241_v26 = vrot.slane %v10239_v22, 4  ;;  %v11891_v22 = vld [vmem:[%s13774_s10 + $0x6c] sm:$0xf]  ;;  %v17498_v25 = vrot.slane %v10296_v12, 5  ;;  %v11897_v12 = vld [vmem:[%s13774_s10 + $0x84] sm:$0xf] }
 0x57e   : > { %v10335_v13 = vshrl.u32 %v11891_v22, 16  ;;  %v10338_v28 = vshll.u32 %v11891_v22, 16  ;;  %v10392_v22 = vshll.u32 %v11898_v32, 16 }
 0x57f   : > { %v10303_v7 = vor.u32 %v10302_v38, %v17498_v25 }
 0x580   : > { %v10337_v4 = vrot.slane %v10335_v13, 4 }
 0x581   : > { %v10304_v14 = vrot.slane %v10303_v7, 4 }
 0x582   : > { %12907 = vmatmul.mubr.msk.bf16.gmra.mrb[4].mxu1 %vm5986_vm11, %v11845_v50  ;;  %v10217_v50 = vrot.slane %v10215_v59, 4  ;;  %v17465_v59 = vrot.slane %v10248_v58, 5  ;;  %v10320_v58 = vshll.u32 %v11889_v6, 16 }
 0x583   : > { %12910 = vmatprep.mubr.msk.bf16.mxu1 %vm5986_vm11, %v18148_v8  ;;  %v10290_v8 = vshll.u32 %v11885_v51, 16  ;;  %v11895_v51 = vld [vmem:[%s13774_s10 + $0x7c] sm:$0xf] }
 0x584   : > { %v10221_v62 = vor.u32 %v10220_v11, %v10217_v50  ;;  %v10245_v50 = vor.u32 %v10244_v2, %v10241_v26  ;;  %v10255_v49 = vor.u32 %v10254_v63, %v17465_v59  ;;  %v10258_v11 = vshll.u32 %v11881_v16, 16 }
 0x585   : > { %v10292_v35 = vrot.slane %v10290_v8, 5  ;;  %v10344_v26 = vshll.u32 %v11892_v47, 16  ;;  %v10306_v2 = vshll.u32 %v11887_v60, 16  ;;  %v17513_v63 = vrot.slane %v10320_v58, 5 }
 0x586   : > { %v10222_v33 = vrot.slane %v10221_v62, 4  ;;  %v10246_v34 = vrot.slane %v10245_v50, 4  ;;  %v10256_v36 = vrot.slane %v10255_v49, 4  ;;  %v10260_v62 = vrot.slane %v10258_v11, 5  ;;  %v11893_v50 = vld [vmem:[%s13774_s10 + $0x74] sm:$0x1] }
 0x587   : > { %v10293_v41 = vor.u32 %v10292_v35, %v10289_v40  ;;  %v10317_v16 = vor.u32 %v10316_v20, %v10313_v15  ;;  %v10368_v27 = vshll.u32 %v11895_v51, 16  ;;  %v10372_v23 = vshrl.u32 %v11895_v51, 16  ;;  %v11899_v20 = vld [vmem:[%s13774_s10 + $0x8c] sm:$0x1]  ;;  %v11904_v51 = vld [vmem:[%s13774_s10 + $0xa0] sm:$0xf] }
 0x588   : > { %v10227_v0 = vsel %vm13809_vm4, %v10222_v33, %v17442_v42  ;;  %v10278_v42 = vrot.slane %v10276_v54, 4  ;;  %v10251_v24 = vsel %vm13809_vm4, %v10246_v34, %v17465_v59  ;;  %v10261_v33 = vsel %vm13809_vm4, %v10256_v36, %v10260_v62 }
 0x589   : > { %v10294_v59 = vrot.slane %v10293_v41, 4  ;;  %v10359_v54 = vshrl.u32 %v11894_v18, 16  ;;  %v10340_v8 = vrot.slane %v10338_v28, 5  ;;  %v17516_v45 = vrot.slane %v10344_v26, 5  ;;  %v11901_v28 = vld [vmem:[%s13774_s10 + $0x94] sm:$0xf] }
 0x58a   : > { %12911 = vmatmul.mubr.msk.bf16.gmra.mrb[8].mxu1 %vm5986_vm11, %v18149_v31  ;;  %v10279_v31 = vor.u32 %v10278_v42, %v17491_v21  ;;  %v11920_v56 = vcombine.low %v10251_v24, %v10261_v33  ;;  %v10308_v29 = vrot.slane %v10306_v2, 5  ;;  %v17528_v42 = vrot.slane %v10330_v37, 5  ;;  %v11903_v24 = vld [vmem:[%s13774_s10 + $0x9c] sm:$0xf] }
 0x58b   : > { %12914 = vmatprep.mubr.msk.bf16.mxu1 %vm5986_vm11, %v18150_v57  ;;  %v10270_v57 = vrot.slane %v10269_v30, 4  ;;  %v10299_v52 = vsel %vm13809_vm4, %v10294_v59, %v17498_v25  ;;  %v10361_v44 = vrot.slane %v10359_v54, 4  ;;  %v10364_v40 = vrot.slane %v10362_v19, 5  ;;  %v11896_v30 = vld [vmem:[%s13774_s10 + $0x80] sm:$0x1] }
 0x58c   : > { %v10280_v48 = vrot.slane %v10279_v31, 4  ;;  %v17531_v35 = vrot.slane %v10368_v27, 5  ;;  %v10374_v6 = vrot.slane %v10372_v23, 4  ;;  %v10318_v17 = vrot.slane %v10317_v16, 4  ;;  %v11900_v31 = vld [vmem:[%s13774_s10 + $0x90] sm:$0xf] }
 0x58d   : > { %v10275_v49 = vsel %vm13809_vm4, %v10270_v57, %v17491_v21  ;;  %v10309_v53 = vsel %vm13809_vm4, %v10304_v14, %v10308_v29  ;;  %v10383_v36 = vshrl.u32 %v11897_v12, 16  ;;  %v10386_v62 = vshll.u32 %v11897_v12, 16 }
 0x58e   : > { %v10285_v11 = vsel %vm13809_vm4, %v10280_v48, %v10284_v5  ;;  %v10396_v25 = vshrl.u32 %v11898_v32, 16  ;;  %v10365_v58 = vor.u32 %v10364_v40, %v10361_v44  ;;  %v10378_v47 = vshll.u32 %v11896_v30, 16  ;;  %v11905_v44 = vld [vmem:[%s13774_s10 + $0xa4] sm:$0x1] }
 0x58f   : > { %v11921_v38 = vcombine.low %v10275_v49, %v10285_v11  ;;  %v10323_v57 = vsel %vm13809_vm4, %v10318_v17, %v17513_v63  ;;  %v10385_v3 = vrot.slane %v10383_v36, 4  ;;  %v10388_v13 = vrot.slane %v10386_v62, 5 }
 0x590   : > { %v17552_v33 = vrot.slane %v10392_v22, 5  ;;  %v10398_v26 = vrot.slane %v10396_v25, 4  ;;  %v10410_v18 = vshll.u32 %v11900_v31, 16  ;;  %v10366_v7 = vrot.slane %v10365_v58, 4  ;;  %v11909_v22 = vld [vmem:[%s13774_s10 + $0xb4] sm:$0xf] }
 0x591   : > { %v10402_v48 = vshll.u32 %v11899_v20, 16  ;;  %v10416_v59 = vshll.u32 %v11901_v28, 16  ;;  %v10431_v16 = vshrl.u32 %v11903_v24, 16  ;;  %v10434_v37 = vshll.u32 %v11903_v24, 16  ;;  %v11910_v25 = vld [vmem:[%s13774_s10 + $0xb8] sm:$0xf] }
 0x592   : > { %12915 = vmatmul.mubr.msk.bf16.gmra.mrb[12].mxu1 %vm5986_vm11, %v11849_v9  ;;  %v17495_v9 = vcombine.low %v10227_v0, %v10237_v39  ;;  %v10350_v0 = vrot.slane %v10348_v43, 4  ;;  %v10407_v43 = vshrl.u32 %v11900_v31, 16  ;;  %v10440_v27 = vshll.u32 %v11904_v51, 16 }
 0x593   : > { %12920 = vmatprep.mubr.msk.bf16.mxu1 %vm766_vm3, %v11916_v46  ;;  %v10326_v46 = vrot.slane %v10324_v55, 4  ;;  %v10375_v55 = vor.u32 %v10374_v6, %v17531_v35  ;;  %v10444_v23 = vshrl.u32 %v11904_v51, 16  ;;  %v10371_v14 = vsel %vm13809_vm4, %v10366_v7, %v17531_v35  ;;  %v11906_v35 = vld [vmem:[%s13774_s10 + $0xa8] sm:$0xf] }
 0x594   : > { %v10351_v21 = vor.u32 %v10350_v0, %v17516_v45  ;;  %v10409_v0 = vrot.slane %v10407_v43, 4  ;;  %v10404_v29 = vrot.slane %v10402_v48, 5  ;;  %v10433_v11 = vrot.slane %v10431_v16, 4  ;;  %v11908_v43 = vld [vmem:[%s13774_s10 + $0xb0] sm:$0x1] }
 0x595   : > { %v10327_v39 = vor.u32 %v10326_v46, %v17513_v63  ;;  %v10376_v2 = vrot.slane %v10375_v55, 4  ;;  %v10380_v46 = vrot.slane %v10378_v47, 5  ;;  %v10420_v63 = vshrl.u32 %v11901_v28, 16  ;;  %v11913_v16 = vld [vmem:[%s13774_s10 + $0xc4] sm:$0xf] }
 0x596   : > { %v10352_v41 = vrot.slane %v10351_v21, 4  ;;  %v17572_v40 = vrot.slane %v10440_v27, 5  ;;  %v10446_v6 = vrot.slane %v10444_v23, 4  ;;  %v10450_v36 = vshll.u32 %v11905_v44, 16  ;;  %v11911_v27 = vld [vmem:[%s13774_s10 + $0xbc] sm:$0x1] }
 0x597   : > { %v10328_v34 = vrot.slane %v10327_v39, 4  ;;  %v11902_v39 = vld [vmem:[%s13774_s10 + $0x98] sm:$0x1]  ;;  %v10422_v49 = vrot.slane %v10420_v63, 4  ;;  %v10455_v62 = vshrl.u32 %v11906_v35, 16  ;;  %v10458_v58 = vshll.u32 %v11906_v35, 16 }
 0x598   : > { %v10426_v21 = vshll.u32 %v11902_v39, 16  ;;  %v10482_v20 = vshll.u32 %v11909_v22, 16  ;;  %v10452_v28 = vrot.slane %v10450_v36, 5 }
 0x599   : > { %v10333_v5 = vsel %vm13809_vm4, %v10328_v34, %v17528_v42  ;;  %v10457_v24 = vrot.slane %v10455_v62, 4 }
 0x59a   : > { %12921 = vmatmul.mubr.msk.bf16.vlgmr.msra.gmra.mrb[16].mxu1 %vm766_vm3, %v11917_v1  ;;  %v10341_v1 = vor.u32 %v10340_v8, %v10337_v4  ;;  %v10389_v4 = vor.u32 %v10388_v13, %v10385_v3  ;;  %v10399_v8 = vor.u32 %v10398_v26, %v17552_v33  ;;  %v11923_v42 = vcombine.low %v10323_v57, %v10333_v5 }
 0x59b   : > { %12924 = vmatprep.mubr.msk.bf16.mxu1 %vm766_vm3, %v11918_v61  ;;  %v10354_v61 = vshll.u32 %v11893_v50, 16  ;;  %v17569_v50 = vrot.slane %v10416_v59, 5  ;;  %v10488_v57 = vshll.u32 %v11910_v25, 16  ;;  %v10492_v5 = vshrl.u32 %v11910_v25, 16 }
 0x59c   : > { %v10342_v60 = vrot.slane %v10341_v1, 4  ;;  %v10390_v32 = vrot.slane %v10389_v4, 4  ;;  %v10400_v17 = vrot.slane %v10399_v8, 4  ;;  %v10484_v48 = vrot.slane %v10482_v20, 5  ;;  %v18151_v20 = vld [vmem:[#allocation29_spill] sm:$0xff] }
 0x59d   : > { %v10356_v15 = vrot.slane %v10354_v61, 5  ;;  %v11907_v61 = vld [vmem:[%s13774_s10 + $0xac] sm:$0xf]  ;;  %v10490_v59 = vrot.slane %v10488_v57, 5  ;;  %v10494_v63 = vrot.slane %v10492_v5, 4  ;;  %v18152_v5 = vld [vmem:[#allocation32_spill] sm:$0xff] }
 0x59e   : > { %v10347_v54 = vsel %vm13809_vm4, %v10342_v60, %v17516_v45  ;;  %v10381_v45 = vsel %vm13809_vm4, %v10376_v2, %v10380_v46  ;;  %v10464_v55 = vshll.u32 %v11907_v61, 16  ;;  %v10468_v47 = vshrl.u32 %v11907_v61, 16  ;;  %v11912_v2 = vld [vmem:[%s13774_s10 + $0xc0] sm:$0xf]  ;;  %v11914_v61 = vld [vmem:[%s13774_s10 + $0xc8] sm:$0x1] }
 0x59f   : > { %v10357_v19 = vsel %vm13809_vm4, %v10352_v41, %v10356_v15  ;;  %v11925_v30 = vcombine.low %v10371_v14, %v10381_v45  ;;  %v10395_v31 = vsel %vm13809_vm4, %v10390_v32, %v17552_v33  ;;  %v10428_v41 = vrot.slane %v10426_v21, 5 }
 0x5a0   : > { %v11924_v12 = vcombine.low %v10347_v54, %v10357_v19  ;;  %v10479_v15 = vshrl.u32 %v11909_v22, 16  ;;  %v10466_v33 = vrot.slane %v10464_v55, 5  ;;  %v10470_v51 = vrot.slane %v10468_v47, 4 }
 0x5a1   : > { %v10474_v19 = vshll.u32 %v11908_v43, 16  ;;  %v10506_v14 = vshll.u32 %v11912_v2, 16  ;;  %v10512_v45 = vshll.u32 %v11913_v16, 16  ;;  %v10522_v62 = vshll.u32 %v11914_v61, 16  ;;  %v18160_v61 = vld [vmem:[#allocation41_spill] sm:$0xff] }
 0x5a2   : > { %12925 = vmatmul.mubr.msk.bf16.gmra.mrb[20].mxu1 %vm766_vm3, %v17495_v9  ;;  %v11922_v9 = vcombine.low %v10299_v52, %v10309_v53  ;;  %v10436_v52 = vrot.slane %v10434_v37, 5  ;;  %v10423_v53 = vor.u32 %v10422_v49, %v17569_v50  ;;  %v10481_v46 = vrot.slane %v10479_v15, 4  ;;  %v17624_v15 = vld [vmem:[%s17758_s4] ss:$0 sm:$0xff] }
 0x5a3   : > { %12928 = vmatprep.mubr.msk.bf16.mxu1 %vm766_vm3, %v11920_v56  ;;  %v10412_v56 = vrot.slane %v10410_v18, 5  ;;  %v10460_v18 = vrot.slane %v10458_v58, 5  ;;  %v10498_v49 = vshll.u32 %v11911_v27, 16  ;;  %v10476_v44 = vrot.slane %v10474_v19, 5 }
 0x5a4   : > { %v10437_v34 = vor.u32 %v10436_v52, %v10433_v11  ;;  %v10424_v3 = vrot.slane %v10423_v53, 4  ;;  %v10485_v39 = vor.u32 %v10484_v48, %v10481_v46  ;;  %v10514_v35 = vrot.slane %v10512_v45, 5  ;;  %v18155_v48 = vld [vmem:[#allocation35_spill] sm:$0xff] }
 0x5a5   : > { %v10413_v1 = vor.u32 %v10412_v56, %v10409_v0  ;;  %v10461_v8 = vor.u32 %v10460_v18, %v10457_v24  ;;  %v10471_v0 = vor.u32 %v10470_v51, %v10466_v33  ;;  %v10503_v56 = vshrl.u32 %v11912_v2, 16  ;;  %v18154_v24 = vld [vmem:[#allocation28_spill] sm:$0xff] }
 0x5a6   : > { %v10438_v13 = vrot.slane %v10437_v34, 4  ;;  %v10429_v54 = vsel %vm13809_vm4, %v10424_v3, %v10428_v41  ;;  %v10500_v21 = vrot.slane %v10498_v49, 5  ;;  %v12960_v57 = vadd.f32 %v18151_v20, %v17624_v15 }
 0x5a7   : > { %v10414_v60 = vrot.slane %v10413_v1, 4  ;;  %v12963_v3 = vadd.f32 %v17624_v15, %v18152_v5 }
 0x5a8   : > { %v10443_v23 = vsel %vm13809_vm4, %v10438_v13, %v17572_v40  ;;  %v17633_v13 = vld [vmem:[%s17760_s6] ss:$0 sm:$0xff] }
 0x5a9   : > { %v10419_v37 = vsel %vm13809_vm4, %v10414_v60, %v17569_v50  ;;  %v10495_v50 = vor.u32 %v10494_v63, %v10490_v59  ;;  %v12961_v51 = vadd.f32 %v12960_v57, %v17633_v13  ;;  %v12964_v46 = vadd.f32 %v12963_v3, %v17633_v13  ;;  %v18163_v3 = vld [vmem:[#allocation44_spill] sm:$0xff] }
 0x5aa   : > { %12929 = vmatmul.mubr.msk.bf16.gmra.mrb[24].mxu1 %vm766_vm3, %v11921_v38  ;;  %v10447_v38 = vor.u32 %v10446_v6, %v17572_v40  ;;  %v11927_v11 = vcombine.low %v10419_v37, %v10429_v54  ;;  %v10505_v40 = vrot.slane %v10503_v56, 4  ;;  %v10508_v6 = vrot.slane %v10506_v14, 5  ;;  %v18156_v54 = vld [vmem:[#allocation36_spill] sm:$0xff]  ;;  %v18158_v14 = vld [vmem:[#allocation38_spill] sm:$0xff] }
 0x5ab   : > { %12932 = vmatprep.mubr.msk.bf16.mxu1 %vm766_vm3, %v11922_v9  ;;  %v10405_v9 = vsel %vm13809_vm4, %v10400_v17, %v10404_v29  ;;  %v10516_v29 = vshrl.u32 %v11913_v16, 16  ;;  %v10486_v17 = vrot.slane %v10485_v39, 4  ;;  %v10496_v1 = vrot.slane %v10495_v50, 4 }
 0x5ac   : > { %v10448_v26 = vrot.slane %v10447_v38, 4  ;;  %v11926_v7 = vcombine.low %v10395_v31, %v10405_v9  ;;  %v10509_v34 = vor.u32 %v10508_v6, %v10505_v40  ;;  %v10524_v31 = vrot.slane %v10522_v62, 5 }
 0x5ad   : > { %v10518_v32 = vrot.slane %v10516_v29, 4  ;;  %v10491_v22 = vsel %vm13809_vm4, %v10486_v17, %v10490_v59  ;;  %v10501_v25 = vsel %vm13809_vm4, %v10496_v1, %v10500_v21  ;;  %v12966_v59 = vadd.f32 %v18155_v48, %v17624_v15  ;;  %v18166_v48 = vld [vmem:[#allocation47_spill] sm:$0xff] }
 0x5ae   : > { %v10453_v4 = vsel %vm13809_vm4, %v10448_v26, %v10452_v28  ;;  %v11930_v58 = vcombine.low %v10491_v22, %v10501_v25  ;;  %v10510_v55 = vrot.slane %v10509_v34, 4  ;;  %v12954_v28 = vadd.f32 %v18153_v10, %v17624_v15  ;;  %v18162_v25 = vld [vmem:[#allocation43_spill] sm:$0xff] }
 0x5af   : > { %v11928_v52 = vcombine.low %v10443_v23, %v10453_v4  ;;  %v10519_v36 = vor.u32 %v10518_v32, %v10514_v35  ;;  %v12957_v26 = vadd.f32 %v17624_v15, %v18154_v24  ;;  %v12969_v19 = vadd.f32 %v17624_v15, %v18156_v54  ;;  %v18157_v4 = vld [vmem:[#allocation37_spill] sm:$0xff] }
 0x5b0   : > { %v10515_v9 = vsel %vm13809_vm4, %v10510_v55, %v10514_v35  ;;  %v12975_v45 = vadd.f32 %v17624_v15, %v18158_v14  ;;  %v12967_v50 = vadd.f32 %v12966_v59, %v17633_v13  ;;  %v18159_v35 = vld [vmem:[#allocation40_spill] sm:$0xff]  ;;  %v12990_v10 = vadd.f32 %v18163_v3, %v17624_v15 }
 0x5b1   : > { %v10520_v47 = vrot.slane %v10519_v36, 4  ;;  %v12978_v32 = vadd.f32 %v18159_v35, %v17624_v15  ;;  %v18161_v36 = vld [vmem:[#allocation42_spill] sm:$0xff]  ;;  %v12999_v59 = vadd.f32 %v17624_v15, %v18166_v48 }
 0x5b2   : > { %12933 = vmatmul.mubr.msk.bf16.gmra.mrb[28].mxu1 %vm766_vm3, %v11923_v42  ;;  %v10462_v42 = vrot.slane %v10461_v8, 4  ;;  %v12972_v8 = vadd.f32 %v18157_v4, %v17624_v15  ;;  %v12976_v6 = vadd.f32 %v12975_v45, %v17633_v13  ;;  %v12984_v62 = vadd.f32 %v18161_v36, %v17624_v15 }
 0x5b3   : > { %12936 = vmatprep.mubr.msk.bf16.mxu1 %vm766_vm3, %v11924_v12  ;;  %v10472_v12 = vrot.slane %v10471_v0, 4  ;;  %v10525_v60 = vsel %vm13809_vm4, %v10520_v47, %v10524_v31  ;;  %v12979_v55 = vadd.f32 %v12978_v32, %v17633_v13 }
 0x5b4   : > { %v11931_v41 = vcombine.low %v10515_v9, %v10525_v60 }
 0x5b5   : > { %v10477_v53 = vsel %vm13809_vm4, %v10472_v12, %v10476_v44  ;;  %v12973_v12 = vadd.f32 %v12972_v8, %v17633_v13 }
 0x5ba   : > { %12937 = vmatmul.mubr.msk.bf16.gmra.mrb[0].mxu1 %vm766_vm3, %v11925_v30  ;;  %v10467_v30 = vsel %vm13809_vm4, %v10462_v42, %v10466_v33 }
 0x5bb   : > { %12940 = vmatprep.mubr.msk.bf16.mxu1 %vm766_vm3, %v11926_v7  ;;  %v11929_v38 = vcombine.low %v10467_v30, %v10477_v53  ;;  %v12981_v30 = vadd.f32 %v17624_v15, %v18160_v61 }
 0x5bd   : > { %v12982_v31 = vadd.f32 %v12981_v30, %v17633_v13 }
 0x5c2   : > { %12941 = vmatmul.mubr.msk.bf16.gmra.mrb[4].mxu1 %vm766_vm3, %v11927_v11  ;;  %v12970_v11 = vadd.f32 %v12969_v19, %v17633_v13 }
 0x5c3   : > { %12944 = vmatprep.mubr.msk.bf16.mxu1 %vm766_vm3, %v11928_v52 }
 0x5ca   : > { %12945 = vmatmul.mubr.msk.bf16.gmra.mrb[8].mxu1 %vm766_vm3, %v11929_v38  ;;  %v12987_v38 = vadd.f32 %v17624_v15, %v18162_v25 }
 0x5cb   : > { %12948 = vmatprep.mubr.msk.bf16.mxu1 %vm766_vm3, %v11930_v58 }
 0x5cc   : > { %v12988_v5 = vadd.f32 %v12987_v38, %v17633_v13 }
 0x5d2   : > { %12949 = vmatmul.mubr.msk.bf16.gmra.mrb[12].mxu1 %vm766_vm3, %v11931_v41  ;;  %v12985_v41 = vadd.f32 %v12984_v62, %v17633_v13 }
 0x66d   : > { %v12922_v43 = vpop.f32.mrb[16].mxu1 }
 0x66e   : > { %v12955_v18 = vadd.f32 %v12954_v28, %v12922_v43  ;;  %v10667_v33 = vpop.f32.mrb[17].mxu1  ;;  %v18164_v43 = vld [vmem:[#allocation45_spill] sm:$0xff] }
 0x66f   : > { %v12958_v7 = vadd.f32 %v12957_v26, %v10667_v33  ;;  %v12923_v2 = vpop.f32.mrb[18].mxu1 }
 0x670   : > { %v12956_v63 = vadd.f32 %v12955_v18, %v17633_v13  ;;  %v12962_v16 = vadd.f32 %v12961_v51, %v12923_v2  ;;  %v10670_v37 = vpop.f32.mrb[19].mxu1  ;;  %v12993_v18 = vadd.f32 %v17624_v15, %v18164_v43 }
 0x671   : > { %v12959_v27 = vadd.f32 %v12958_v7, %v17633_v13  ;;  %v12965_v23 = vadd.f32 %v12964_v46, %v10670_v37  ;;  %v18165_v7 = vld [vmem:[#allocation46_spill] sm:$0xff] }
 0x672   : > { %v10828_v0 = vmax.f32 %v12956_v63, 0.0  ;;  %v10829_v56 = vmax.f32 %v12962_v16, 0.0  ;;  %v12996_v2 = vadd.f32 %v18165_v7, %v17624_v15  ;;  %v12991_v16 = vadd.f32 %v12990_v10, %v17633_v13 }
 0x673   : > { %v10826_v29 = vmax.f32 %v12959_v27, 0.0  ;;  %v10827_v39 = vmax.f32 %v12965_v23, 0.0  ;;  %v12994_v54 = vadd.f32 %v12993_v18, %v17633_v13 }
 0x674   : > { %10860 = vst.msk [vmem:[%s17650_s16 + $0x10] sm:$0xff] %vm5986_vm11, %v10828_v0  ;;  %10861 = vst.msk [vmem:[%s17650_s16 + $0x18] sm:$0xff] %vm5986_vm11, %v10829_v56  ;;  %v12997_v23 = vadd.f32 %v12996_v2, %v17633_v13  ;;  %v13000_v0 = vadd.f32 %v12999_v59, %v17633_v13 }
 0x675   : > { %10858 = vst.msk [vmem:[%s17650_s16] sm:$0xff] %vm5986_vm11, %v10826_v29  ;;  %10859 = vst.msk [vmem:[%s17650_s16 + $0x8] sm:$0xff] %vm5986_vm11, %v10827_v39  ;;  %v12926_v49 = vpop.f32.mrb[20].mxu1 }
 0x676   : > { %v12968_v52 = vadd.f32 %v12967_v50, %v12926_v49  ;;  %v10683_v42 = vpop.f32.mrb[21].mxu1  ;;  %v13004_v49 = vadd.f32 %v17633_v13, %v17624_v15 }
 0x677   : > { %v12971_v44 = vadd.f32 %v12970_v11, %v10683_v42  ;;  %v12927_v40 = vpop.f32.mrb[22].mxu1 }
 0x678   : > { %v10832_v17 = vmax.f32 %v12968_v52, 0.0  ;;  %v12974_v1 = vadd.f32 %v12973_v12, %v12927_v40  ;;  %v10686_v21 = vpop.f32.mrb[23].mxu1 }
 0x679   : > { %v10830_v53 = vmax.f32 %v12971_v44, 0.0  ;;  %v12977_v34 = vadd.f32 %v12976_v6, %v10686_v21 }
 0x67a   : > { %10864 = vst.msk [vmem:[%s17650_s16 + $0x30] sm:$0xff] %vm5986_vm11, %v10832_v17  ;;  %v10833_v22 = vmax.f32 %v12974_v1, 0.0 }
 0x67b   : > { %10862 = vst.msk [vmem:[%s17650_s16 + $0x20] sm:$0xff] %vm5986_vm11, %v10830_v53  ;;  %v10831_v58 = vmax.f32 %v12977_v34, 0.0 }
 0x67c   : > { %10865 = vst.msk [vmem:[%s17650_s16 + $0x38] sm:$0xff] %vm5986_vm11, %v10833_v22 }
 0x67d   : > { %10863 = vst.msk [vmem:[%s17650_s16 + $0x28] sm:$0xff] %vm5986_vm11, %v10831_v58  ;;  %v12930_v47 = vpop.f32.mrb[24].mxu1 }
 0x67e   : > { %v12980_v9 = vadd.f32 %v12979_v55, %v12930_v47  ;;  %v10699_v60 = vpop.f32.mrb[25].mxu1 }
 0x67f   : > { %v12983_v20 = vadd.f32 %v12982_v31, %v10699_v60  ;;  %v12931_v57 = vpop.f32.mrb[26].mxu1 }
 0x680   : > { %v10836_v28 = vmax.f32 %v12980_v9, 0.0  ;;  %v12986_v24 = vadd.f32 %v12985_v41, %v12931_v57  ;;  %v10702_v26 = vpop.f32.mrb[27].mxu1 }
 0x681   : > { %v10834_v33 = vmax.f32 %v12983_v20, 0.0  ;;  %v12989_v51 = vadd.f32 %v12988_v5, %v10702_v26 }
 0x682   : > { %10868 = vst.msk [vmem:[%s17650_s16 + $0x50] sm:$0xff] %vm5986_vm11, %v10836_v28  ;;  %v10837_v46 = vmax.f32 %v12986_v24, 0.0 }
 0x683   : > { %10866 = vst.msk [vmem:[%s17650_s16 + $0x40] sm:$0xff] %vm5986_vm11, %v10834_v33  ;;  %v10835_v63 = vmax.f32 %v12989_v51, 0.0 }
 0x684   : > { %10869 = vst.msk [vmem:[%s17650_s16 + $0x58] sm:$0xff] %vm5986_vm11, %v10837_v46 }
 0x685   : > { %10867 = vst.msk [vmem:[%s17650_s16 + $0x48] sm:$0xff] %vm5986_vm11, %v10835_v63  ;;  %v12934_v37 = vpop.f32.mrb[28].mxu1 }
 0x686   : > { %v12992_v19 = vadd.f32 %v12991_v16, %v12934_v37  ;;  %v10715_v27 = vpop.f32.mrb[29].mxu1 }
 0x687   : > { %v12995_v4 = vadd.f32 %v12994_v54, %v10715_v27  ;;  %v12935_v8 = vpop.f32.mrb[30].mxu1 }
 0x688   : > { %v10840_v56 = vmax.f32 %v12992_v19, 0.0  ;;  %v12998_v14 = vadd.f32 %v12997_v23, %v12935_v8  ;;  %v10718_v45 = vpop.f32.mrb[31].mxu1 }
 0x689   : > { %v10838_v29 = vmax.f32 %v12995_v4, 0.0  ;;  %v13001_v39 = vadd.f32 %v13000_v0, %v10718_v45 }
 0x68a   : > { %10872 = vst.msk [vmem:[%s17650_s16 + $0x70] sm:$0xff] %vm5986_vm11, %v10840_v56  ;;  %v10841_v50 = vmax.f32 %v12998_v14, 0.0 }
 0x68b   : > { %10870 = vst.msk [vmem:[%s17650_s16 + $0x60] sm:$0xff] %vm5986_vm11, %v10838_v29  ;;  %v10839_v11 = vmax.f32 %v13001_v39, 0.0 }
 0x68c   : > { %10873 = vst.msk [vmem:[%s17650_s16 + $0x78] sm:$0xff] %vm5986_vm11, %v10841_v50 }
 0x68d   : > { %10871 = vst.msk [vmem:[%s17650_s16 + $0x68] sm:$0xff] %vm5986_vm11, %v10839_v11  ;;  %v12938_v52 = vpop.f32.mrb[0].mxu1 }
 0x68e   : > { %v13003_v42 = vadd.f32 %v13004_v49, %v12938_v52  ;;  %v10731_v12 = vpop.f32.mrb[1].mxu1 }
 0x68f   : > { %v13005_v44 = vadd.f32 %v13004_v49, %v10731_v12  ;;  %v12939_v40 = vpop.f32.mrb[2].mxu1 }
 0x690   : > { %v10844_v6 = vmax.f32 %v13003_v42, 0.0  ;;  %v13007_v35 = vadd.f32 %v13004_v49, %v12939_v40  ;;  %v10734_v32 = vpop.f32.mrb[3].mxu1 }
 0x691   : > { %v10842_v17 = vmax.f32 %v13005_v44, 0.0  ;;  %v13009_v15 = vadd.f32 %v13004_v49, %v10734_v32 }
 0x692   : > { %10876 = vst.msk [vmem:[%s17650_s16 + $0x90] sm:$0xff] %vm5986_vm11, %v10844_v6  ;;  %v10845_v13 = vmax.f32 %v13007_v35, 0.0 }
 0x693   : > { %10874 = vst.msk [vmem:[%s17650_s16 + $0x80] sm:$0xff] %vm5986_vm11, %v10842_v17  ;;  %v10843_v1 = vmax.f32 %v13009_v15, 0.0 }
 0x694   : > { %10877 = vst.msk [vmem:[%s17650_s16 + $0x98] sm:$0xff] %vm5986_vm11, %v10845_v13 }
 0x695   : > { %10875 = vst.msk [vmem:[%s17650_s16 + $0x88] sm:$0xff] %vm5986_vm11, %v10843_v1  ;;  %v12942_v21 = vpop.f32.mrb[4].mxu1 }
 0x696   : > { %v13011_v61 = vadd.f32 %v13004_v49, %v12942_v21  ;;  %v10747_v30 = vpop.f32.mrb[5].mxu1 }
 0x697   : > { %v13013_v53 = vadd.f32 %v13004_v49, %v10747_v30  ;;  %v12943_v34 = vpop.f32.mrb[6].mxu1 }
 0x698   : > { %v10848_v36 = vmax.f32 %v13011_v61, 0.0  ;;  %v13015_v62 = vadd.f32 %v13004_v49, %v12943_v34  ;;  %v10750_v22 = vpop.f32.mrb[7].mxu1 }
 0x699   : > { %v10846_v25 = vmax.f32 %v13013_v53, 0.0  ;;  %v13017_v38 = vadd.f32 %v13004_v49, %v10750_v22 }
 0x69a   : > { %10880 = vst.msk [vmem:[%s17650_s16 + $0xb0] sm:$0xff] %vm5986_vm11, %v10848_v36  ;;  %v10849_v58 = vmax.f32 %v13015_v62, 0.0 }
 0x69b   : > { %10878 = vst.msk [vmem:[%s17650_s16 + $0xa0] sm:$0xff] %vm5986_vm11, %v10846_v25  ;;  %v10847_v55 = vmax.f32 %v13017_v38, 0.0 }
 0x69c   : > { %10881 = vst.msk [vmem:[%s17650_s16 + $0xb8] sm:$0xff] %vm5986_vm11, %v10849_v58 }
 0x69d   : > { %10879 = vst.msk [vmem:[%s17650_s16 + $0xa8] sm:$0xff] %vm5986_vm11, %v10847_v55  ;;  %v12946_v47 = vpop.f32.mrb[8].mxu1 }
 0x69e   : > { %v13019_v31 = vadd.f32 %v13004_v49, %v12946_v47  ;;  %v10763_v9 = vpop.f32.mrb[9].mxu1 }
 0x69f   : > { %v13021_v60 = vadd.f32 %v13004_v49, %v10763_v9  ;;  %v12947_v41 = vpop.f32.mrb[10].mxu1 }
 0x6a0   : > { %v10852_v20 = vmax.f32 %v13019_v31, 0.0  ;;  %v13023_v57 = vadd.f32 %v13004_v49, %v12947_v41  ;;  %v10766_v5 = vpop.f32.mrb[11].mxu1 }
 0x6a1   : > { %v10850_v3 = vmax.f32 %v13021_v60, 0.0  ;;  %v13025_v10 = vadd.f32 %v13004_v49, %v10766_v5 }
 0x6a2   : > { %10884 = vst.msk [vmem:[%s17650_s16 + $0xd0] sm:$0xff] %vm5986_vm11, %v10852_v20  ;;  %v10853_v28 = vmax.f32 %v13023_v57, 0.0 }
 0x6a3   : > { %10882 = vst.msk [vmem:[%s17650_s16 + $0xc0] sm:$0xff] %vm5986_vm11, %v10850_v3  ;;  %v10851_v24 = vmax.f32 %v13025_v10, 0.0 }
 0x6a4   : > { %10885 = vst.msk [vmem:[%s17650_s16 + $0xd8] sm:$0xff] %vm5986_vm11, %v10853_v28 }
 0x6a5   : > { %10883 = vst.msk [vmem:[%s17650_s16 + $0xc8] sm:$0xff] %vm5986_vm11, %v10851_v24  ;;  %v12950_v26 = vpop.f32.mrb[12].mxu1 }
 0x6a6   : > { %v13027_v43 = vadd.f32 %v13004_v49, %v12950_v26  ;;  %v10779_v18 = vpop.f32.mrb[13].mxu1 }
 0x6a7   : > { %v13029_v33 = vadd.f32 %v13004_v49, %v10779_v18  ;;  %v12951_v51 = vpop.f32.mrb[14].mxu1 }
 0x6a8   : > { %v10856_v7 = vmax.f32 %v13027_v43, 0.0  ;;  %v13031_v2 = vadd.f32 %v13004_v49, %v12951_v51  ;;  %v10782_v46 = vpop.f32.mrb[15].mxu1 }
 0x6a9   : > { %v10854_v48 = vmax.f32 %v13029_v33, 0.0  ;;  %v13033_v59 = vadd.f32 %v13004_v49, %v10782_v46 }
 0x6aa   : > { %10888 = vst.msk [vmem:[%s17650_s16 + $0xf0] sm:$0xff] %vm5986_vm11, %v10856_v7  ;;  %v10857_v63 = vmax.f32 %v13031_v2, 0.0 }
 0x6ab   : > { %10886 = vst.msk [vmem:[%s17650_s16 + $0xe0] sm:$0xff] %vm5986_vm11, %v10854_v48  ;;  %v10855_v16 = vmax.f32 %v13033_v59, 0.0 }
 0x6ac   : > { %10889 = vst.msk [vmem:[%s17650_s16 + $0xf8] sm:$0xff] %vm5986_vm11, %v10857_v63 }
 0x6ad   : > { %10887 = vst.msk [vmem:[%s17650_s16 + $0xe8] sm:$0xff] %vm5986_vm11, %v10855_v16 }
 0x6ae PF: > { %s17_s24 = sadd.s32 1, %s13708_s24  }
 0x6af   : > { %p14_p4 = scmp.ge.s32.totalorder %s17_s24, 4  }
 0x6b1   :  { %16 = sbr.rel (!%p14_p4) target bundleno = 1 (0x1), region = 98 }

</bundles_post_ra>
